<compile_context>
chip_gen: v5e
topology: v5e:2x2
jax: 0.10.0
libtpu: 0.0.40
codegen_flags: <defaults>
</compile_context>

<pallas_src>
import functools

import jax
import jax.numpy as jnp
from jax import lax
from jax.experimental import pallas as pl
from jax.experimental.pallas import tpu as pltpu


# ---------------------------------------------------------------------------
# Window partition / reverse and relative-position bias (plain JAX glue)
# ---------------------------------------------------------------------------
def window_partition(x, window_size):
    B, D, H, W, C = x.shape
    Wd, Wh, Ww = window_size
    x = x.reshape(B, D // Wd, Wd, H // Wh, Wh, W // Ww, Ww, C)
    x = jnp.transpose(x, (0, 1, 3, 5, 2, 4, 6, 7))
    return x.reshape(-1, Wd * Wh * Ww, C)


def window_reverse(windows, window_size, B, D, H, W):
    Wd, Wh, Ww = window_size
    C = windows.shape[-1]
    x = windows.reshape(B, D // Wd, H // Wh, W // Ww, Wd, Wh, Ww, C)
    x = jnp.transpose(x, (0, 1, 4, 2, 5, 3, 6, 7))
    return x.reshape(B, D, H, W, C)


def compute_relative_position_index(window_size):
    wd, wh, ww = window_size
    coords = jnp.stack(jnp.meshgrid(jnp.arange(wd), jnp.arange(wh), jnp.arange(ww),
                                    indexing="ij"))
    coords_flat = coords.reshape(3, -1)                              # (3, N)
    rel = coords_flat[:, :, None] - coords_flat[:, None, :]          # (3, N, N)
    rel = jnp.transpose(rel, (1, 2, 0))                              # (N, N, 3)
    rel = rel + jnp.array([wd - 1, wh - 1, ww - 1])
    rel = rel.at[:, :, 0].multiply((2 * wh - 1) * (2 * ww - 1))
    rel = rel.at[:, :, 1].multiply(2 * ww - 1)
    return rel.sum(-1)                                               # (N, N) int32


def build_relative_bias(table, rel_index, num_heads):
    N = rel_index.shape[0]
    bias = table[rel_index.reshape(-1)].reshape(N, N, num_heads)
    return jnp.transpose(bias, (2, 0, 1))                            # (H, N, N)


# ---------------------------------------------------------------------------
# Kernel 1: fused LayerNorm1 + 3D window attention (BW windows per grid step)
# ---------------------------------------------------------------------------
def _attn_kernel(x_ref, g_ref, b_ref, wqkv_ref, bqkv_ref, wproj_ref, bproj_ref,
                 bias_ref, o_ref, *, num_heads, head_dim, eps):
    BW, N, C = x_ref.shape
    M = BW * N

    # Fused LayerNorm (norm1) over channels; LN is per-token so it commutes with
    # the window_partition permutation done in the wrapper.
    x = x_ref[...].astype(jnp.float32)                              # (BW, N, C)
    mu = jnp.mean(x, axis=-1, keepdims=True)
    xc = x - mu
    var = jnp.mean(xc * xc, axis=-1, keepdims=True)
    xn = xc * lax.rsqrt(var + eps) * g_ref[...] + b_ref[...]

    # One big QKV projection: (BW*N, C) @ (C, 3C), bf16 in / f32 accumulate.
    # Scale is already folded into the Q columns of Wqkv / bqkv.
    xn2 = xn.reshape(M, C).astype(jnp.bfloat16)
    qkv = jnp.dot(xn2, wqkv_ref[...],
                  preferred_element_type=jnp.float32) + bqkv_ref[...]   # (M, 3C)
    qkv = qkv.reshape(BW, N, 3 * C)

    bias = bias_ref[...].astype(jnp.float32)                        # (H, N, N)
    wproj = wproj_ref[...]                                          # (C, C) bf16

    y = jnp.zeros((M, C), jnp.float32)
    for h in range(num_heads):
        lo = h * head_dim
        q = qkv[:, :, lo:lo + head_dim].astype(jnp.bfloat16)            # (BW, N, hd)
        k = qkv[:, :, C + lo:C + lo + head_dim].astype(jnp.bfloat16)
        v = qkv[:, :, 2 * C + lo:2 * C + lo + head_dim].astype(jnp.bfloat16)

        # Window-batched score matmul (single leading batch dim -> supported form).
        s = jnp.einsum("bnd,bmd->bnm", q, k,
                       preferred_element_type=jnp.float32) + bias[h]     # (BW, N, N)

        # Max-stabilized softmax; EUP reciprocal instead of a VPU divide.
        m_row = jnp.max(s, axis=-1, keepdims=True)
        e = jnp.exp(s - m_row)
        p = e * pl.reciprocal(jnp.sum(e, axis=-1, keepdims=True), approx=True)

        o_h = jnp.einsum("bnm,bmd->bnd", p.astype(jnp.bfloat16), v,
                         preferred_element_type=jnp.float32)             # (BW, N, hd)

        # Fold the head-concat into the output projection (no lane concatenate,
        # no masked per-head stores): y += o_h @ Wproj[h*hd:(h+1)*hd, :].
        y = y + jnp.dot(o_h.reshape(M, head_dim).astype(jnp.bfloat16),
                        wproj[lo:lo + head_dim, :],
                        preferred_element_type=jnp.float32)

    y = y + bproj_ref[...]
    o_ref[...] = y.reshape(BW, N, C).astype(o_ref.dtype)


def _pick_window_batch(num_windows, tokens_per_window, target_rows=256, max_rows=4096):
    """Largest window batch BW dividing num_windows with BW*N >= target (VMEM-capped)."""
    best = 1
    for bw in range(1, num_windows + 1):
        if num_windows % bw:
            continue
        if bw * tokens_per_window > max_rows:
            break
        best = bw
        if bw * tokens_per_window >= target_rows:
            break
    return best


def window_attention_3d(xw, gamma1, beta1, wqkv, bqkv, wproj, bproj, rel_bias,
                        *, num_heads, eps=1e-5):
    """Fused norm1 + WindowAttention3D.  xw: (B_, N, C) raw (un-normalized) windows.

    TODO(synk): shifted-window attn_mask path (mask=(attn_mask, nW)) not implemented;
    TransformerBlock3D calls attn(..., mask=None), which is what is implemented here.
    """
    B_, N, C = xw.shape
    head_dim = C // num_heads
    BW = _pick_window_batch(B_, N)

    kernel = functools.partial(_attn_kernel, num_heads=num_heads,
                               head_dim=head_dim, eps=eps)
    const2 = lambda b: (0, 0)
    # NOTE(v7x): constants below could use pipeline_mode=pl.Buffered(1) + bf16 rel_bias
    # (done) to halve resident VMEM under the 64 MiB / 32 MiB-scoped budget.
    return pl.pallas_call(
        kernel,
        out_shape=jax.ShapeDtypeStruct((B_, N, C), xw.dtype),
        grid_spec=pltpu.PrefetchScalarGridSpec(
            num_scalar_prefetch=0,
            grid=(B_ // BW,),
            in_specs=[
                pl.BlockSpec((BW, N, C), lambda b: (b, 0, 0)),          # x windows
                pl.BlockSpec((1, C), const2),                           # gamma1
                pl.BlockSpec((1, C), const2),                           # beta1
                pl.BlockSpec((C, 3 * C), const2),                       # Wqkv (bf16, scale folded)
                pl.BlockSpec((1, 3 * C), const2),                       # bqkv (scale folded)
                pl.BlockSpec((C, C), const2),                           # Wproj (bf16)
                pl.BlockSpec((1, C), const2),                           # bproj
                pl.BlockSpec((num_heads, N, N), lambda b: (0, 0, 0)),   # rel bias (bf16)
            ],
            out_specs=pl.BlockSpec((BW, N, C), lambda b: (b, 0, 0)),
        ),
        compiler_params=pltpu.CompilerParams(
            dimension_semantics=("parallel",)),
    )(xw, gamma1, beta1, wqkv, bqkv, wproj, bproj, rel_bias)


# ---------------------------------------------------------------------------
# Kernel 2: fused LayerNorm2 + MixFFN fc1
# ---------------------------------------------------------------------------
def _norm_fc1_kernel(x_ref, g_ref, b_ref, w1_ref, b1_ref, o_ref, *, eps):
    x = x_ref[...].astype(jnp.float32)
    mu = jnp.mean(x, axis=-1, keepdims=True)
    xc = x - mu
    var = jnp.mean(xc * xc, axis=-1, keepdims=True)
    xn = xc * lax.rsqrt(var + eps) * g_ref[...] + b_ref[...]
    h = jnp.dot(xn.astype(jnp.bfloat16), w1_ref[...],
                preferred_element_type=jnp.float32) + b1_ref[...]
    o_ref[...] = h.astype(o_ref.dtype)


def _pick_row_tile(total_rows, target=256):
    for t in range(target, total_rows):
        if total_rows % t == 0 and t % 8 == 0:
            return t
    return total_rows


def norm2_fc1(x2d, gamma2, beta2, w1, b1, *, eps=1e-5):
    T, C = x2d.shape
    Hd = w1.shape[1]
    TT = _pick_row_tile(T)
    const2 = lambda i: (0, 0)
    return pl.pallas_call(
        functools.partial(_norm_fc1_kernel, eps=eps),
        out_shape=jax.ShapeDtypeStruct((T, Hd), jnp.float32),
        grid_spec=pltpu.PrefetchScalarGridSpec(
            num_scalar_prefetch=0,
            grid=(T // TT,),
            in_specs=[
                pl.BlockSpec((TT, C), lambda i: (i, 0)),
                pl.BlockSpec((1, C), const2),
                pl.BlockSpec((1, C), const2),
                pl.BlockSpec((C, Hd), const2),
                pl.BlockSpec((1, Hd), const2),
            ],
            out_specs=pl.BlockSpec((TT, Hd), lambda i: (i, 0)),
        ),
        compiler_params=pltpu.CompilerParams(
            dimension_semantics=("parallel",)),
    )(x2d, gamma2, beta2, w1, b1)


# ---------------------------------------------------------------------------
# Kernel 3: GELU + MixFFN fc2 + 0.5-scaled residual add
# ---------------------------------------------------------------------------
def _gelu_fc2_res_kernel(h_ref, res_ref, w2_ref, b2_ref, o_ref, *, branch_scale):
    h = h_ref[...].astype(jnp.float32)
    # TODO(synk): PyTorch nn.GELU defaults to the exact erf form; Mosaic has no erf,
    # so the tanh approximation is used (reference below uses the same).
    g = jax.nn.gelu(h, approximate=True)
    y = jnp.dot(g.astype(jnp.bfloat16), w2_ref[...],
                preferred_element_type=jnp.float32) + b2_ref[...]
    o_ref[...] = (res_ref[...] + branch_scale * y).astype(o_ref.dtype)


def gelu_fc2_residual(h2d, res2d, w2, b2, *, branch_scale=0.5):
    T, Hd = h2d.shape
    C = w2.shape[1]
    TT = _pick_row_tile(T)
    const2 = lambda i: (0, 0)
    return pl.pallas_call(
        functools.partial(_gelu_fc2_res_kernel, branch_scale=branch_scale),
        out_shape=jax.ShapeDtypeStruct((T, C), res2d.dtype),
        grid_spec=pltpu.PrefetchScalarGridSpec(
            num_scalar_prefetch=0,
            grid=(T // TT,),
            in_specs=[
                pl.BlockSpec((TT, Hd), lambda i: (i, 0)),
                pl.BlockSpec((TT, C), lambda i: (i, 0)),
                pl.BlockSpec((Hd, C), const2),
                pl.BlockSpec((1, C), const2),
            ],
            out_specs=pl.BlockSpec((TT, C), lambda i: (i, 0)),
        ),
        compiler_params=pltpu.CompilerParams(
            dimension_semantics=("parallel",)),
    )(h2d, res2d, w2, b2)


# ---------------------------------------------------------------------------
# Depthwise 3x3x3 Conv3d (MixFFN dwconv)
# ---------------------------------------------------------------------------
def depthwise_conv3d(x, w, b):
    # TODO(synk): depthwise Conv3d is left to XLA (lax.conv_general_dilated); a Pallas
    # shift-and-accumulate kernel would need the whole padded volume per grid step.
    hidden = x.shape[-1]
    out = lax.conv_general_dilated(
        x, w, window_strides=(1, 1, 1), padding=[(1, 1)] * 3,
        dimension_numbers=("NDHWC", "DHWIO", "NDHWC"),
        feature_group_count=hidden)
    return out + b


# ---------------------------------------------------------------------------
# Full TransformerBlock3D forward (inference)
# ---------------------------------------------------------------------------
def transformer_block_3d(x, params, *, D, H, W, window_size, num_heads):
    B, Nt, C = x.shape
    Wd, Wh, Ww = window_size

    # Attention branch (norm1 fused inside the Pallas kernel).
    xw = window_partition(x.reshape(B, D, H, W, C), window_size)         # (B_, N, C)
    aw = window_attention_3d(
        xw, params["gamma1"], params["beta1"], params["wqkv"], params["bqkv"],
        params["wproj"], params["bproj"], params["rel_bias"], num_heads=num_heads)
    attn = window_reverse(aw.reshape(-1, Wd, Wh, Ww, C), window_size, B, D, H, W)
    x = x + 0.5 * attn.reshape(B, Nt, C)          # DropPath(scale_residual=0.5), eval

    # MixFFN branch.
    xr = x.reshape(B * Nt, C)
    h = norm2_fc1(xr, params["gamma2"], params["beta2"], params["w1"], params["b1"])
    hidden = h.shape[-1]
    hc = depthwise_conv3d(h.reshape(B, D, H, W, hidden), params["w_dw"], params["b_dw"])
    out = gelu_fc2_residual(hc.reshape(B * Nt, hidden), xr,
                            params["w2"], params["b2"], branch_scale=0.5)
    return out.reshape(B, Nt, C)


def prepare_params(raw, *, num_heads, window_size):
    """Kernel-ready parameters: attention scale folded into Wqkv/bqkv Q columns (one-time
    weight transform), MXU weights stored in bf16, relative-position bias pre-gathered."""
    C = raw["wqkv"].shape[0]
    head_dim = C // num_heads
    scale = head_dim ** (-0.5)
    wqkv = raw["wqkv"].at[:, :C].multiply(scale)
    bqkv = raw["bqkv"].at[:C].multiply(scale)
    rel_index = compute_relative_position_index(window_size)
    rel_bias = build_relative_bias(raw["rel_table"], rel_index, num_heads)
    return dict(
        gamma1=raw["gamma1"].reshape(1, C), beta1=raw["beta1"].reshape(1, C),
        wqkv=wqkv.astype(jnp.bfloat16), bqkv=bqkv.reshape(1, 3 * C),
        wproj=raw["wproj"].astype(jnp.bfloat16), bproj=raw["bproj"].reshape(1, C),
        rel_bias=rel_bias.astype(jnp.bfloat16),
        gamma2=raw["gamma2"].reshape(1, C), beta2=raw["beta2"].reshape(1, C),
        w1=raw["w1"].astype(jnp.bfloat16), b1=raw["b1"].reshape(1, -1),
        w_dw=raw["w_dw"], b_dw=raw["b_dw"],
        w2=raw["w2"].astype(jnp.bfloat16), b2=raw["b2"].reshape(1, C),
    )


# ---------------------------------------------------------------------------
# Pure-JAX reference (mirrors the PyTorch forward; f32, tanh-GELU)
# ---------------------------------------------------------------------------
def _layer_norm(x, g, b, eps=1e-5):
    mu = jnp.mean(x, axis=-1, keepdims=True)
    var = jnp.mean((x - mu) ** 2, axis=-1, keepdims=True)
    return (x - mu) * lax.rsqrt(var + eps) * g + b


def reference_block(x, raw, *, D, H, W, window_size, num_heads):
    B, Nt, C = x.shape
    hd = C // num_heads
    scale = hd ** (-0.5)
    Wd, Wh, Ww = window_size
    N = Wd * Wh * Ww
    rel_index = compute_relative_position_index(window_size)
    rel_bias = build_relative_bias(raw["rel_table"], rel_index, num_heads)

    shortcut = x
    xn = _layer_norm(x, raw["gamma1"], raw["beta1"])
    xw = window_partition(xn.reshape(B, D, H, W, C), window_size)
    B_ = xw.shape[0]
    qkv = xw @ raw["wqkv"] + raw["bqkv"]
    qkv = jnp.transpose(qkv.reshape(B_, N, 3, num_heads, hd), (2, 0, 3, 1, 4))
    q, k, v = qkv[0] * scale, qkv[1], qkv[2]
    attn = jnp.einsum("bhnd,bhmd->bhnm", q, k) + rel_bias[None]
    attn = jax.nn.softmax(attn, axis=-1)
    o = jnp.einsum("bhnm,bhmd->bhnd", attn, v)
    o = jnp.transpose(o, (0, 2, 1, 3)).reshape(B_, N, C) @ raw["wproj"] + raw["bproj"]
    attn_full = window_reverse(o.reshape(-1, Wd, Wh, Ww, C), window_size, B, D, H, W)
    x = shortcut + 0.5 * attn_full.reshape(B, Nt, C)

    xn2 = _layer_norm(x, raw["gamma2"], raw["beta2"])
    h = xn2 @ raw["w1"] + raw["b1"]
    hidden = h.shape[-1]
    hc = depthwise_conv3d(h.reshape(B, D, H, W, hidden), raw["w_dw"], raw["b_dw"])
    g = jax.nn.gelu(hc.reshape(B, Nt, hidden), approximate=True)
    y = g @ raw["w2"] + raw["b2"]
    return x + 0.5 * y


if __name__ == "__main__":
    B = 2
    dim = 128                       # C = 128 -> lane-dense output tiles
    num_heads = 4
    window_size = (2, 4, 4)         # N = 32 tokens per window
    D, H, W = 4, 8, 8               # Nt = 256 tokens; B_ = 16 windows
    mlp_ratio = 4.0
    hidden = int(dim * mlp_ratio)
    Nt = D * H * W
    table_size = ((2 * window_size[0] - 1) * (2 * window_size[1] - 1)
                  * (2 * window_size[2] - 1))

    std = 0.05
    keys = jax.random.split(jax.random.PRNGKey(0), 16)
    x = jax.random.normal(keys[0], (B, Nt, dim), jnp.float32)

    raw = dict(
        gamma1=1.0 + std * jax.random.normal(keys[1], (dim,), jnp.float32),
        beta1=std * jax.random.normal(keys[2], (dim,), jnp.float32),
        wqkv=std * jax.random.normal(keys[3], (dim, 3 * dim), jnp.float32),
        bqkv=std * jax.random.normal(keys[4], (3 * dim,), jnp.float32),
        wproj=std * jax.random.normal(keys[5], (dim, dim), jnp.float32),
        bproj=std * jax.random.normal(keys[6], (dim,), jnp.float32),
        rel_table=0.02 * jax.random.truncated_normal(
            keys[7], -2.0, 2.0, (table_size, num_heads), jnp.float32),
        gamma2=1.0 + std * jax.random.normal(keys[8], (dim,), jnp.float32),
        beta2=std * jax.random.normal(keys[9], (dim,), jnp.float32),
        w1=std * jax.random.normal(keys[10], (dim, hidden), jnp.float32),
        b1=std * jax.random.normal(keys[11], (hidden,), jnp.float32),
        w_dw=std * jax.random.normal(keys[12], (3, 3, 3, 1, hidden), jnp.float32),
        b_dw=std * jax.random.normal(keys[13], (hidden,), jnp.float32),
        w2=std * jax.random.normal(keys[14], (hidden, dim), jnp.float32),
        b2=std * jax.random.normal(keys[15], (dim,), jnp.float32),
    )

    params = prepare_params(raw, num_heads=num_heads, window_size=window_size)

    out = transformer_block_3d(x, params, D=D, H=H, W=W,
                               window_size=window_size, num_heads=num_heads)
    out = jax.block_until_ready(out)

    with jax.default_matmul_precision("float32"):
        ref = reference_block(x, raw, D=D, H=H, W=W,
                              window_size=window_size, num_heads=num_heads)
    ref = jax.block_until_ready(ref)

    assert out.shape == (B, Nt, dim), out.shape
    max_err = jnp.max(jnp.abs(out - ref))
    assert jnp.allclose(out, ref, atol=1e-2, rtol=2e-2), f"max abs err {max_err}"
    print("KERNEL_OK")
</pallas_src>

<mosaic_0001>
module attributes {stable_mosaic.version = 11 : i64} {
  func.func @_attn_kernel(%arg0: i32, %arg1: memref<8x32x128xf32, #tpu.memory_space<vmem>>, %arg2: memref<1x128xf32, #tpu.memory_space<vmem>>, %arg3: memref<1x128xf32, #tpu.memory_space<vmem>>, %arg4: memref<128x384xbf16, #tpu.memory_space<vmem>>, %arg5: memref<1x384xf32, #tpu.memory_space<vmem>>, %arg6: memref<128x128xbf16, #tpu.memory_space<vmem>>, %arg7: memref<1x128xf32, #tpu.memory_space<vmem>>, %arg8: memref<4x32x32xbf16, #tpu.memory_space<vmem>>, %arg9: memref<8x32x128xf32, #tpu.memory_space<vmem>>) attributes {dimension_semantics = [#tpu.dimension_semantics<parallel>], iteration_bounds = array<i64: 2>, scalar_prefetch = 0 : i64, scratch_operands = 0 : i64, tpu.core_type = #tpu.core_type<tc>, window_params = [{transform_indices = @transform_0, window_bounds = array<i64: 8, 32, 128>}, {pipeline_mode = #tpu.pipeline_mode<synchronous>, transform_indices = @transform_1, window_bounds = array<i64: 1, 128>}, {pipeline_mode = #tpu.pipeline_mode<synchronous>, transform_indices = @transform_2, window_bounds = array<i64: 1, 128>}, {pipeline_mode = #tpu.pipeline_mode<synchronous>, transform_indices = @transform_3, window_bounds = array<i64: 128, 384>}, {pipeline_mode = #tpu.pipeline_mode<synchronous>, transform_indices = @transform_4, window_bounds = array<i64: 1, 384>}, {pipeline_mode = #tpu.pipeline_mode<synchronous>, transform_indices = @transform_5, window_bounds = array<i64: 128, 128>}, {pipeline_mode = #tpu.pipeline_mode<synchronous>, transform_indices = @transform_6, window_bounds = array<i64: 1, 128>}, {pipeline_mode = #tpu.pipeline_mode<synchronous>, transform_indices = @transform_7, window_bounds = array<i64: 4, 32, 32>}, {transform_indices = @transform_8, window_bounds = array<i64: 8, 32, 128>}]} {
    %c0 = arith.constant 0 : index
    %c0_0 = arith.constant 0 : index
    %c0_1 = arith.constant 0 : index
    %0 = vector.load %arg1[%c0, %c0_0, %c0_1] : memref<8x32x128xf32, #tpu.memory_space<vmem>>, vector<8x32x128xf32>
    %cst = arith.constant dense<0.000000e+00> : vector<8x32xf32>
    %1 = vector.multi_reduction <add>, %0, %cst [2] : vector<8x32x128xf32> to vector<8x32xf32>
    %2 = vector.shape_cast %1 : vector<8x32xf32> to vector<8x32x1xf32>
    %cst_2 = arith.constant 1.280000e+02 : f32
    %3 = vector.broadcast %cst_2 : f32 to vector<8x32x1xf32>
    %4 = arith.divf %2, %3 : vector<8x32x1xf32>
    %5 = vector.broadcast %4 : vector<8x32x1xf32> to vector<8x32x128xf32>
    %6 = arith.subf %0, %5 : vector<8x32x128xf32>
    %7 = arith.mulf %6, %6 : vector<8x32x128xf32>
    %cst_3 = arith.constant dense<0.000000e+00> : vector<8x32xf32>
    %8 = vector.multi_reduction <add>, %7, %cst_3 [2] : vector<8x32x128xf32> to vector<8x32xf32>
    %9 = vector.shape_cast %8 : vector<8x32xf32> to vector<8x32x1xf32>
    %cst_4 = arith.constant 1.280000e+02 : f32
    %10 = vector.broadcast %cst_4 : f32 to vector<8x32x1xf32>
    %11 = arith.divf %9, %10 : vector<8x32x1xf32>
    %cst_5 = arith.constant 9.99999974E-6 : f32
    %12 = vector.broadcast %cst_5 : f32 to vector<8x32x1xf32>
    %13 = arith.addf %11, %12 : vector<8x32x1xf32>
    %14 = math.rsqrt %13 : vector<8x32x1xf32>
    %15 = vector.broadcast %14 : vector<8x32x1xf32> to vector<8x32x128xf32>
    %16 = arith.mulf %6, %15 : vector<8x32x128xf32>
    %c0_6 = arith.constant 0 : index
    %c0_7 = arith.constant 0 : index
    %17 = vector.load %arg2[%c0_6, %c0_7] : memref<1x128xf32, #tpu.memory_space<vmem>>, vector<1x128xf32>
    %18 = vector.shape_cast %17 : vector<1x128xf32> to vector<1x1x128xf32>
    %19 = vector.broadcast %18 : vector<1x1x128xf32> to vector<8x32x128xf32>
    %20 = arith.mulf %16, %19 : vector<8x32x128xf32>
    %c0_8 = arith.constant 0 : index
    %c0_9 = arith.constant 0 : index
    %21 = vector.load %arg3[%c0_8, %c0_9] : memref<1x128xf32, #tpu.memory_space<vmem>>, vector<1x128xf32>
    %22 = vector.shape_cast %21 : vector<1x128xf32> to vector<1x1x128xf32>
    %23 = vector.broadcast %22 : vector<1x1x128xf32> to vector<8x32x128xf32>
    %24 = arith.addf %20, %23 : vector<8x32x128xf32>
    %25 = vector.shape_cast %24 : vector<8x32x128xf32> to vector<256x128xf32>
    %26 = arith.truncf %25 : vector<256x128xf32> to vector<256x128xbf16>
    %c0_10 = arith.constant 0 : index
    %c0_11 = arith.constant 0 : index
    %27 = vector.load %arg4[%c0_10, %c0_11] : memref<128x384xbf16, #tpu.memory_space<vmem>>, vector<128x384xbf16>
    %cst_12 = arith.constant dense<0.000000e+00> : vector<256x384xf32>
    %28 = tpu.matmul %26, %27, %cst_12 {dimension_numbers = #tpu.dot_dimension_numbers<[1], [0], [0], [1], [0, 0, 1, 1], [], []>} : vector<256x128xbf16>, vector<128x384xbf16>, vector<256x384xf32> -> vector<256x384xf32>
    %c0_13 = arith.constant 0 : index
    %c0_14 = arith.constant 0 : index
    %29 = vector.load %arg5[%c0_13, %c0_14] : memref<1x384xf32, #tpu.memory_space<vmem>>, vector<1x384xf32>
    %30 = vector.broadcast %29 : vector<1x384xf32> to vector<256x384xf32>
    %31 = arith.addf %28, %30 : vector<256x384xf32>
    %32 = vector.shape_cast %31 : vector<256x384xf32> to vector<8x32x384xf32>
    %c0_15 = arith.constant 0 : index
    %c0_16 = arith.constant 0 : index
    %c0_17 = arith.constant 0 : index
    %33 = vector.load %arg8[%c0_15, %c0_16, %c0_17] : memref<4x32x32xbf16, #tpu.memory_space<vmem>>, vector<4x32x32xbf16>
    %34 = arith.extf %33 : vector<4x32x32xbf16> to vector<4x32x32xf32>
    %c0_18 = arith.constant 0 : index
    %c0_19 = arith.constant 0 : index
    %35 = vector.load %arg6[%c0_18, %c0_19] : memref<128x128xbf16, #tpu.memory_space<vmem>>, vector<128x128xbf16>
    %cst_20 = arith.constant 0.000000e+00 : f32
    %36 = vector.broadcast %cst_20 : f32 to vector<256x128xf32>
    %37 = vector.extract_strided_slice %32 {offsets = [0, 0, 0], sizes = [8, 32, 32], strides = [1, 1, 1]} : vector<8x32x384xf32> to vector<8x32x32xf32>
    %38 = arith.truncf %37 : vector<8x32x32xf32> to vector<8x32x32xbf16>
    %39 = vector.extract_strided_slice %32 {offsets = [0, 0, 128], sizes = [8, 32, 32], strides = [1, 1, 1]} : vector<8x32x384xf32> to vector<8x32x32xf32>
    %40 = arith.truncf %39 : vector<8x32x32xf32> to vector<8x32x32xbf16>
    %41 = vector.extract_strided_slice %32 {offsets = [0, 0, 256], sizes = [8, 32, 32], strides = [1, 1, 1]} : vector<8x32x384xf32> to vector<8x32x32xf32>
    %42 = arith.truncf %41 : vector<8x32x32xf32> to vector<8x32x32xbf16>
    "tpu.trace_start"() <{level = 10 : i32, message = "bnd,bmd->bnm"}> : () -> ()
    %cst_21 = arith.constant dense<0.000000e+00> : vector<8x32x32xf32>
    %43 = tpu.matmul %38, %40, %cst_21 {dimension_numbers = #tpu.dot_dimension_numbers<[2], [2], [1], [1], [0, 0, 0, 1, 1, 1], [0], [0]>} : vector<8x32x32xbf16>, vector<8x32x32xbf16>, vector<8x32x32xf32> -> vector<8x32x32xf32>
    "tpu.trace_stop"() : () -> ()
    %44 = vector.extract_strided_slice %34 {offsets = [0, 0, 0], sizes = [1, 32, 32], strides = [1, 1, 1]} : vector<4x32x32xf32> to vector<1x32x32xf32>
    %45 = vector.shape_cast %44 : vector<1x32x32xf32> to vector<32x32xf32>
    %46 = vector.shape_cast %45 : vector<32x32xf32> to vector<1x32x32xf32>
    %47 = vector.broadcast %46 : vector<1x32x32xf32> to vector<8x32x32xf32>
    %48 = arith.addf %43, %47 : vector<8x32x32xf32>
    %cst_22 = arith.constant dense<0xFF800000> : vector<8x32xf32>
    %49 = vector.multi_reduction <maximumf>, %48, %cst_22 [2] : vector<8x32x32xf32> to vector<8x32xf32>
    %50 = vector.shape_cast %49 : vector<8x32xf32> to vector<8x32x1xf32>
    %51 = vector.broadcast %50 : vector<8x32x1xf32> to vector<8x32x32xf32>
    %52 = arith.subf %48, %51 : vector<8x32x32xf32>
    %53 = math.exp %52 : vector<8x32x32xf32>
    %cst_23 = arith.constant dense<0.000000e+00> : vector<8x32xf32>
    %54 = vector.multi_reduction <add>, %53, %cst_23 [2] : vector<8x32x32xf32> to vector<8x32xf32>
    %55 = vector.shape_cast %54 : vector<8x32xf32> to vector<8x32x1xf32>
    %56 = tpu.reciprocal %55 {approx = true} : vector<8x32x1xf32> -> vector<8x32x1xf32>
    %57 = vector.broadcast %56 : vector<8x32x1xf32> to vector<8x32x32xf32>
    %58 = arith.mulf %53, %57 : vector<8x32x32xf32>
    %59 = arith.truncf %58 : vector<8x32x32xf32> to vector<8x32x32xbf16>
    "tpu.trace_start"() <{level = 10 : i32, message = "bnm,bmd->bnd"}> : () -> ()
    %cst_24 = arith.constant dense<0.000000e+00> : vector<8x32x32xf32>
    %60 = tpu.matmul %59, %42, %cst_24 {dimension_numbers = #tpu.dot_dimension_numbers<[2], [1], [1], [2], [0, 0, 0, 1, 1, 2], [0], [0]>} : vector<8x32x32xbf16>, vector<8x32x32xbf16>, vector<8x32x32xf32> -> vector<8x32x32xf32>
    "tpu.trace_stop"() : () -> ()
    %61 = vector.shape_cast %60 : vector<8x32x32xf32> to vector<256x32xf32>
    %62 = arith.truncf %61 : vector<256x32xf32> to vector<256x32xbf16>
    %63 = vector.extract_strided_slice %35 {offsets = [0, 0], sizes = [32, 128], strides = [1, 1]} : vector<128x128xbf16> to vector<32x128xbf16>
    %cst_25 = arith.constant dense<0.000000e+00> : vector<256x128xf32>
    %64 = tpu.matmul %62, %63, %cst_25 {dimension_numbers = #tpu.dot_dimension_numbers<[1], [0], [0], [1], [0, 0, 1, 1], [], []>} : vector<256x32xbf16>, vector<32x128xbf16>, vector<256x128xf32> -> vector<256x128xf32>
    %65 = arith.addf %36, %64 : vector<256x128xf32>
    %66 = vector.extract_strided_slice %32 {offsets = [0, 0, 32], sizes = [8, 32, 32], strides = [1, 1, 1]} : vector<8x32x384xf32> to vector<8x32x32xf32>
    %67 = arith.truncf %66 : vector<8x32x32xf32> to vector<8x32x32xbf16>
    %68 = vector.extract_strided_slice %32 {offsets = [0, 0, 160], sizes = [8, 32, 32], strides = [1, 1, 1]} : vector<8x32x384xf32> to vector<8x32x32xf32>
    %69 = arith.truncf %68 : vector<8x32x32xf32> to vector<8x32x32xbf16>
    %70 = vector.extract_strided_slice %32 {offsets = [0, 0, 288], sizes = [8, 32, 32], strides = [1, 1, 1]} : vector<8x32x384xf32> to vector<8x32x32xf32>
    %71 = arith.truncf %70 : vector<8x32x32xf32> to vector<8x32x32xbf16>
    "tpu.trace_start"() <{level = 10 : i32, message = "bnd,bmd->bnm"}> : () -> ()
    %cst_26 = arith.constant dense<0.000000e+00> : vector<8x32x32xf32>
    %72 = tpu.matmul %67, %69, %cst_26 {dimension_numbers = #tpu.dot_dimension_numbers<[2], [2], [1], [1], [0, 0, 0, 1, 1, 1], [0], [0]>} : vector<8x32x32xbf16>, vector<8x32x32xbf16>, vector<8x32x32xf32> -> vector<8x32x32xf32>
    "tpu.trace_stop"() : () -> ()
    %73 = vector.extract_strided_slice %34 {offsets = [1, 0, 0], sizes = [1, 32, 32], strides = [1, 1, 1]} : vector<4x32x32xf32> to vector<1x32x32xf32>
    %74 = vector.shape_cast %73 : vector<1x32x32xf32> to vector<32x32xf32>
    %75 = vector.shape_cast %74 : vector<32x32xf32> to vector<1x32x32xf32>
    %76 = vector.broadcast %75 : vector<1x32x32xf32> to vector<8x32x32xf32>
    %77 = arith.addf %72, %76 : vector<8x32x32xf32>
    %cst_27 = arith.constant dense<0xFF800000> : vector<8x32xf32>
    %78 = vector.multi_reduction <maximumf>, %77, %cst_27 [2] : vector<8x32x32xf32> to vector<8x32xf32>
    %79 = vector.shape_cast %78 : vector<8x32xf32> to vector<8x32x1xf32>
    %80 = vector.broadcast %79 : vector<8x32x1xf32> to vector<8x32x32xf32>
    %81 = arith.subf %77, %80 : vector<8x32x32xf32>
    %82 = math.exp %81 : vector<8x32x32xf32>
    %cst_28 = arith.constant dense<0.000000e+00> : vector<8x32xf32>
    %83 = vector.multi_reduction <add>, %82, %cst_28 [2] : vector<8x32x32xf32> to vector<8x32xf32>
    %84 = vector.shape_cast %83 : vector<8x32xf32> to vector<8x32x1xf32>
    %85 = tpu.reciprocal %84 {approx = true} : vector<8x32x1xf32> -> vector<8x32x1xf32>
    %86 = vector.broadcast %85 : vector<8x32x1xf32> to vector<8x32x32xf32>
    %87 = arith.mulf %82, %86 : vector<8x32x32xf32>
    %88 = arith.truncf %87 : vector<8x32x32xf32> to vector<8x32x32xbf16>
    "tpu.trace_start"() <{level = 10 : i32, message = "bnm,bmd->bnd"}> : () -> ()
    %cst_29 = arith.constant dense<0.000000e+00> : vector<8x32x32xf32>
    %89 = tpu.matmul %88, %71, %cst_29 {dimension_numbers = #tpu.dot_dimension_numbers<[2], [1], [1], [2], [0, 0, 0, 1, 1, 2], [0], [0]>} : vector<8x32x32xbf16>, vector<8x32x32xbf16>, vector<8x32x32xf32> -> vector<8x32x32xf32>
    "tpu.trace_stop"() : () -> ()
    %90 = vector.shape_cast %89 : vector<8x32x32xf32> to vector<256x32xf32>
    %91 = arith.truncf %90 : vector<256x32xf32> to vector<256x32xbf16>
    %92 = vector.extract_strided_slice %35 {offsets = [32, 0], sizes = [32, 128], strides = [1, 1]} : vector<128x128xbf16> to vector<32x128xbf16>
    %cst_30 = arith.constant dense<0.000000e+00> : vector<256x128xf32>
    %93 = tpu.matmul %91, %92, %cst_30 {dimension_numbers = #tpu.dot_dimension_numbers<[1], [0], [0], [1], [0, 0, 1, 1], [], []>} : vector<256x32xbf16>, vector<32x128xbf16>, vector<256x128xf32> -> vector<256x128xf32>
    %94 = arith.addf %65, %93 : vector<256x128xf32>
    %95 = vector.extract_strided_slice %32 {offsets = [0, 0, 64], sizes = [8, 32, 32], strides = [1, 1, 1]} : vector<8x32x384xf32> to vector<8x32x32xf32>
    %96 = arith.truncf %95 : vector<8x32x32xf32> to vector<8x32x32xbf16>
    %97 = vector.extract_strided_slice %32 {offsets = [0, 0, 192], sizes = [8, 32, 32], strides = [1, 1, 1]} : vector<8x32x384xf32> to vector<8x32x32xf32>
    %98 = arith.truncf %97 : vector<8x32x32xf32> to vector<8x32x32xbf16>
    %99 = vector.extract_strided_slice %32 {offsets = [0, 0, 320], sizes = [8, 32, 32], strides = [1, 1, 1]} : vector<8x32x384xf32> to vector<8x32x32xf32>
    %100 = arith.truncf %99 : vector<8x32x32xf32> to vector<8x32x32xbf16>
    "tpu.trace_start"() <{level = 10 : i32, message = "bnd,bmd->bnm"}> : () -> ()
    %cst_31 = arith.constant dense<0.000000e+00> : vector<8x32x32xf32>
    %101 = tpu.matmul %96, %98, %cst_31 {dimension_numbers = #tpu.dot_dimension_numbers<[2], [2], [1], [1], [0, 0, 0, 1, 1, 1], [0], [0]>} : vector<8x32x32xbf16>, vector<8x32x32xbf16>, vector<8x32x32xf32> -> vector<8x32x32xf32>
    "tpu.trace_stop"() : () -> ()
    %102 = vector.extract_strided_slice %34 {offsets = [2, 0, 0], sizes = [1, 32, 32], strides = [1, 1, 1]} : vector<4x32x32xf32> to vector<1x32x32xf32>
    %103 = vector.shape_cast %102 : vector<1x32x32xf32> to vector<32x32xf32>
    %104 = vector.shape_cast %103 : vector<32x32xf32> to vector<1x32x32xf32>
    %105 = vector.broadcast %104 : vector<1x32x32xf32> to vector<8x32x32xf32>
    %106 = arith.addf %101, %105 : vector<8x32x32xf32>
    %cst_32 = arith.constant dense<0xFF800000> : vector<8x32xf32>
    %107 = vector.multi_reduction <maximumf>, %106, %cst_32 [2] : vector<8x32x32xf32> to vector<8x32xf32>
    %108 = vector.shape_cast %107 : vector<8x32xf32> to vector<8x32x1xf32>
    %109 = vector.broadcast %108 : vector<8x32x1xf32> to vector<8x32x32xf32>
    %110 = arith.subf %106, %109 : vector<8x32x32xf32>
    %111 = math.exp %110 : vector<8x32x32xf32>
    %cst_33 = arith.constant dense<0.000000e+00> : vector<8x32xf32>
    %112 = vector.multi_reduction <add>, %111, %cst_33 [2] : vector<8x32x32xf32> to vector<8x32xf32>
    %113 = vector.shape_cast %112 : vector<8x32xf32> to vector<8x32x1xf32>
    %114 = tpu.reciprocal %113 {approx = true} : vector<8x32x1xf32> -> vector<8x32x1xf32>
    %115 = vector.broadcast %114 : vector<8x32x1xf32> to vector<8x32x32xf32>
    %116 = arith.mulf %111, %115 : vector<8x32x32xf32>
    %117 = arith.truncf %116 : vector<8x32x32xf32> to vector<8x32x32xbf16>
    "tpu.trace_start"() <{level = 10 : i32, message = "bnm,bmd->bnd"}> : () -> ()
    %cst_34 = arith.constant dense<0.000000e+00> : vector<8x32x32xf32>
    %118 = tpu.matmul %117, %100, %cst_34 {dimension_numbers = #tpu.dot_dimension_numbers<[2], [1], [1], [2], [0, 0, 0, 1, 1, 2], [0], [0]>} : vector<8x32x32xbf16>, vector<8x32x32xbf16>, vector<8x32x32xf32> -> vector<8x32x32xf32>
    "tpu.trace_stop"() : () -> ()
    %119 = vector.shape_cast %118 : vector<8x32x32xf32> to vector<256x32xf32>
    %120 = arith.truncf %119 : vector<256x32xf32> to vector<256x32xbf16>
    %121 = vector.extract_strided_slice %35 {offsets = [64, 0], sizes = [32, 128], strides = [1, 1]} : vector<128x128xbf16> to vector<32x128xbf16>
    %cst_35 = arith.constant dense<0.000000e+00> : vector<256x128xf32>
    %122 = tpu.matmul %120, %121, %cst_35 {dimension_numbers = #tpu.dot_dimension_numbers<[1], [0], [0], [1], [0, 0, 1, 1], [], []>} : vector<256x32xbf16>, vector<32x128xbf16>, vector<256x128xf32> -> vector<256x128xf32>
    %123 = arith.addf %94, %122 : vector<256x128xf32>
    %124 = vector.extract_strided_slice %32 {offsets = [0, 0, 96], sizes = [8, 32, 32], strides = [1, 1, 1]} : vector<8x32x384xf32> to vector<8x32x32xf32>
    %125 = arith.truncf %124 : vector<8x32x32xf32> to vector<8x32x32xbf16>
    %126 = vector.extract_strided_slice %32 {offsets = [0, 0, 224], sizes = [8, 32, 32], strides = [1, 1, 1]} : vector<8x32x384xf32> to vector<8x32x32xf32>
    %127 = arith.truncf %126 : vector<8x32x32xf32> to vector<8x32x32xbf16>
    %128 = vector.extract_strided_slice %32 {offsets = [0, 0, 352], sizes = [8, 32, 32], strides = [1, 1, 1]} : vector<8x32x384xf32> to vector<8x32x32xf32>
    %129 = arith.truncf %128 : vector<8x32x32xf32> to vector<8x32x32xbf16>
    "tpu.trace_start"() <{level = 10 : i32, message = "bnd,bmd->bnm"}> : () -> ()
    %cst_36 = arith.constant dense<0.000000e+00> : vector<8x32x32xf32>
    %130 = tpu.matmul %125, %127, %cst_36 {dimension_numbers = #tpu.dot_dimension_numbers<[2], [2], [1], [1], [0, 0, 0, 1, 1, 1], [0], [0]>} : vector<8x32x32xbf16>, vector<8x32x32xbf16>, vector<8x32x32xf32> -> vector<8x32x32xf32>
    "tpu.trace_stop"() : () -> ()
    %131 = vector.extract_strided_slice %34 {offsets = [3, 0, 0], sizes = [1, 32, 32], strides = [1, 1, 1]} : vector<4x32x32xf32> to vector<1x32x32xf32>
    %132 = vector.shape_cast %131 : vector<1x32x32xf32> to vector<32x32xf32>
    %133 = vector.shape_cast %132 : vector<32x32xf32> to vector<1x32x32xf32>
    %134 = vector.broadcast %133 : vector<1x32x32xf32> to vector<8x32x32xf32>
    %135 = arith.addf %130, %134 : vector<8x32x32xf32>
    %cst_37 = arith.constant dense<0xFF800000> : vector<8x32xf32>
    %136 = vector.multi_reduction <maximumf>, %135, %cst_37 [2] : vector<8x32x32xf32> to vector<8x32xf32>
    %137 = vector.shape_cast %136 : vector<8x32xf32> to vector<8x32x1xf32>
    %138 = vector.broadcast %137 : vector<8x32x1xf32> to vector<8x32x32xf32>
    %139 = arith.subf %135, %138 : vector<8x32x32xf32>
    %140 = math.exp %139 : vector<8x32x32xf32>
    %cst_38 = arith.constant dense<0.000000e+00> : vector<8x32xf32>
    %141 = vector.multi_reduction <add>, %140, %cst_38 [2] : vector<8x32x32xf32> to vector<8x32xf32>
    %142 = vector.shape_cast %141 : vector<8x32xf32> to vector<8x32x1xf32>
    %143 = tpu.reciprocal %142 {approx = true} : vector<8x32x1xf32> -> vector<8x32x1xf32>
    %144 = vector.broadcast %143 : vector<8x32x1xf32> to vector<8x32x32xf32>
    %145 = arith.mulf %140, %144 : vector<8x32x32xf32>
    %146 = arith.truncf %145 : vector<8x32x32xf32> to vector<8x32x32xbf16>
    "tpu.trace_start"() <{level = 10 : i32, message = "bnm,bmd->bnd"}> : () -> ()
    %cst_39 = arith.constant dense<0.000000e+00> : vector<8x32x32xf32>
    %147 = tpu.matmul %146, %129, %cst_39 {dimension_numbers = #tpu.dot_dimension_numbers<[2], [1], [1], [2], [0, 0, 0, 1, 1, 2], [0], [0]>} : vector<8x32x32xbf16>, vector<8x32x32xbf16>, vector<8x32x32xf32> -> vector<8x32x32xf32>
    "tpu.trace_stop"() : () -> ()
    %148 = vector.shape_cast %147 : vector<8x32x32xf32> to vector<256x32xf32>
    %149 = arith.truncf %148 : vector<256x32xf32> to vector<256x32xbf16>
    %150 = vector.extract_strided_slice %35 {offsets = [96, 0], sizes = [32, 128], strides = [1, 1]} : vector<128x128xbf16> to vector<32x128xbf16>
    %cst_40 = arith.constant dense<0.000000e+00> : vector<256x128xf32>
    %151 = tpu.matmul %149, %150, %cst_40 {dimension_numbers = #tpu.dot_dimension_numbers<[1], [0], [0], [1], [0, 0, 1, 1], [], []>} : vector<256x32xbf16>, vector<32x128xbf16>, vector<256x128xf32> -> vector<256x128xf32>
    %152 = arith.addf %123, %151 : vector<256x128xf32>
    %c0_41 = arith.constant 0 : index
    %c0_42 = arith.constant 0 : index
    %153 = vector.load %arg7[%c0_41, %c0_42] : memref<1x128xf32, #tpu.memory_space<vmem>>, vector<1x128xf32>
    %154 = vector.broadcast %153 : vector<1x128xf32> to vector<256x128xf32>
    %155 = arith.addf %152, %154 : vector<256x128xf32>
    %156 = vector.shape_cast %155 : vector<256x128xf32> to vector<8x32x128xf32>
    %c0_43 = arith.constant 0 : index
    %c0_44 = arith.constant 0 : index
    %c0_45 = arith.constant 0 : index
    %157 = vector.load %arg9[%c0_43, %c0_44, %c0_45] : memref<8x32x128xf32, #tpu.memory_space<vmem>>, vector<8x32x128xf32>
    tpu.vector_store %arg9[%c0_43, %c0_44, %c0_45], %156 {strides = array<i32>} : memref<8x32x128xf32, #tpu.memory_space<vmem>>, vector<8x32x128xf32>,
    return
  }
  func.func @transform_0(%arg0: i32) -> (i32, i32, i32) {
    %c0_i32 = arith.constant 0 : i32
    %c0_i32_0 = arith.constant 0 : i32
    %c0_i32_1 = arith.constant 0 : i32
    return %arg0, %c0_i32, %c0_i32_0 : i32, i32, i32
  }
  func.func @transform_1(%arg0: i32) -> (i32, i32) {
    %c0_i32 = arith.constant 0 : i32
    %c0_i32_0 = arith.constant 0 : i32
    %c0_i32_1 = arith.constant 0 : i32
    return %c0_i32, %c0_i32_0 : i32, i32
  }
  func.func @transform_2(%arg0: i32) -> (i32, i32) {
    %c0_i32 = arith.constant 0 : i32
    %c0_i32_0 = arith.constant 0 : i32
    %c0_i32_1 = arith.constant 0 : i32
    return %c0_i32, %c0_i32_0 : i32, i32
  }
  func.func @transform_3(%arg0: i32) -> (i32, i32) {
    %c0_i32 = arith.constant 0 : i32
    %c0_i32_0 = arith.constant 0 : i32
    %c0_i32_1 = arith.constant 0 : i32
    return %c0_i32, %c0_i32_0 : i32, i32
  }
  func.func @transform_4(%arg0: i32) -> (i32, i32) {
    %c0_i32 = arith.constant 0 : i32
    %c0_i32_0 = arith.constant 0 : i32
    %c0_i32_1 = arith.constant 0 : i32
    return %c0_i32, %c0_i32_0 : i32, i32
  }
  func.func @transform_5(%arg0: i32) -> (i32, i32) {
    %c0_i32 = arith.constant 0 : i32
    %c0_i32_0 = arith.constant 0 : i32
    %c0_i32_1 = arith.constant 0 : i32
    return %c0_i32, %c0_i32_0 : i32, i32
  }
  func.func @transform_6(%arg0: i32) -> (i32, i32) {
    %c0_i32 = arith.constant 0 : i32
    %c0_i32_0 = arith.constant 0 : i32
    %c0_i32_1 = arith.constant 0 : i32
    return %c0_i32, %c0_i32_0 : i32, i32
  }
  func.func @transform_7(%arg0: i32) -> (i32, i32, i32) {
    %c0_i32 = arith.constant 0 : i32
    %c0_i32_0 = arith.constant 0 : i32
    %c0_i32_1 = arith.constant 0 : i32
    %c0_i32_2 = arith.constant 0 : i32
    return %c0_i32, %c0_i32_0, %c0_i32_1 : i32, i32, i32
  }
  func.func @transform_8(%arg0: i32) -> (i32, i32, i32) {
    %c0_i32 = arith.constant 0 : i32
    %c0_i32_0 = arith.constant 0 : i32
    %c0_i32_1 = arith.constant 0 : i32
    return %arg0, %c0_i32, %c0_i32_0 : i32, i32, i32
  }
}

</mosaic_0001>

<bundles_post_ra>
// kernel: tpu_custom_call.1
= control target key start
LH: loop header
LB: loop body
LE: loop exit
PB: predicated region body
PF: predicated region fallthrough
CT: control target
= control target key end

     0   :  { %s12702_s0 = inlined_call_operand.hbm [shape: f32[16,32,128], index: 0, kind: input, shape index: {}]   ;;  %s12703_s1 = inlined_call_operand.hbm [shape: f32[1,128], index: 1, kind: input, shape index: {}]   ;;  %s12704_s2 = inlined_call_operand.hbm [shape: f32[1,128], index: 2, kind: input, shape index: {}]   ;;  %s12705_s3 = inlined_call_operand.hbm [shape: bf16[128,384], index: 3, kind: input, shape index: {}]   ;;  %s12706_s4 = inlined_call_operand.vmem [shape: f32[1,384], index: 4, kind: input, shape index: {}]   ;;  %s12707_s5 = inlined_call_operand.hbm [shape: bf16[128,128], index: 5, kind: input, shape index: {}]   ;;  %s12708_s6 = inlined_call_operand.vmem [shape: f32[1,128], index: 6, kind: input, shape index: {}]   ;;  %s12709_s7 = inlined_call_operand.hbm [shape: bf16[4,32,32], index: 7, kind: input, shape index: {}]   ;;  %s12710_s8 = inlined_call_operand.hbm [shape: f32[16,32,128], index: 8, kind: output, shape index: {}]  }
   0x1   :  { %12773 = sst [smem:[#allocation138_spill]] %s12703_s1 }
   0x2   :  { %12774 = sst [smem:[#allocation139_spill]] %s12704_s2 }
   0x3   :  { %12775 = sst [smem:[#allocation140_spill]] %s12705_s3 }
   0x4   :  { %13 = vsyncpa [#allocation3], 0 }
   0x5   :  { %15 = vsyncpa [#allocation3 + $0x1], 0 }
   0x6   :  { %16 = vsyncpa [#allocation6], 0 }
   0x7   :  { %17 = vsyncpa [#allocation9], 0 }
   0x8   :  { %18 = vsyncpa [#allocation12], 0 }
   0x9   :  { %19 = vsyncpa [#allocation4], 0 }
   0xa   :  { %21 = vsyncpa [#allocation4 + $0x1], 0  ;;  %s8377_s27 = smov 0   ;;  %s8379_s28 = smov 0  }
   0xb   :  { %s8381_s29 = smov 0   ;;  %s8383_s30 = smov 0  }
   0xc LB: > { %s12776_s1 = sld [smem:[#allocation138_spill]]  ;;  %s8401_s12 = sadd.s32 4294967295, %s8313_s30   ;;  %s8313_s30 = sphi %s8383_s30, %s13256_s30   ;;  %s8309_s29 = sphi %s8381_s29, %s13255_s29   ;;  %s8305_s28 = sphi %s8379_s28, %s13254_s28   ;;  %s8301_s27 = sphi %s8377_s27, %s13253_s27  }
   0xd   : > { %p6927_p0 = scmp.ge.s32.totalorder %s8313_s30, 1  ;;  %p48_p1 = scmp.eq.s32.totalorder %s8401_s12, 0 }
   0xe   : > { %p231_p2 = scmp.lt.s32.totalorder %s8313_s30, 3  ;;  %s8315_s14 = smov [#allocation5]  }
   0xf   : > { %s245_s15 = sshll.u32 %s8315_s14, 4  ;;  %s12778_s3 = sld [smem:[#allocation140_spill]]  ;;  %s246_s15 = int_to_ptr.vmem [resolvable:$true] %s245_s15 }
  0x10   : > { %p8406_p3 = pnand %p6927_p0, %p231_p2  ;;  %s8316_s20 = smov [#allocation8]  }
  0x11   : > { %s268_s21 = sshll.u32 %s8316_s20, 4  ;;  %s8317_s22 = smov 192   ;;  %s269_s21 = int_to_ptr.vmem [resolvable:$true] %s268_s21 }
  0x12   : > { %s243_s11 = sshll.u32 %s12776_s1, 4  ;;  %p7387_p5 = pneg %p8406_p3  ;;  %s244_s11 = int_to_ptr.hbm [resolvable:$true] %s243_s11 }
  0x13   : > { %s8318_s23 = smov 12   ;;  %s12780_s2 = sld [smem:[#allocation139_spill]] }
  0x14   : > { %p8418_p6 = pnand %p7387_p5, %p48_p1  ;;  %s8319_s9 = smov [#allocation7]  }
  0x15   : > { %s266_s18 = sshll.u32 %s12778_s3, 4  ;;  %s257_s10 = sshll.u32 %s8319_s9, 4  ;;  %s267_s18 = int_to_ptr.hbm [resolvable:$true] %s266_s18  ;;  %s258_s10 = int_to_ptr.vmem [resolvable:$true] %s257_s10 }
  0x16   : > { %7390 = dma.hbm_to_vmem [thread:$0]  (!%p8418_p6), %s244_s11, 16, %s246_s15, [#allocation6]  }
  0x17   : > { %7396 = dma.hbm_to_vmem [thread:$0]  (!%p8418_p6), %s267_s18, 3072, %s269_s21, [#allocation9], %s8317_s22, %s8317_s22, %s8318_s23  }
  0x18   : > { %s283_s17 = sshll.u32 %s12707_s5, 4  ;;  %s8320_s11 = smov [#allocation10]   ;;  %s284_s17 = int_to_ptr.hbm [resolvable:$true] %s283_s17 }
  0x19   : > { %s255_s26 = sshll.u32 %s12780_s2, 4  ;;  %s285_s15 = sshll.u32 %s8320_s11, 4  ;;  %s256_s26 = int_to_ptr.hbm [resolvable:$true] %s255_s26  ;;  %s286_s15 = int_to_ptr.vmem [resolvable:$true] %s285_s15 }
  0x1a   : > { %7393 = dma.hbm_to_vmem [thread:$0]  (!%p8418_p6), %s256_s26, 16, %s258_s10, [#allocation6]  }
  0x1b   : > { %s8321_s18 = smov 64   ;;  %s8322_s20 = smov 4  }
  0x1c   : > { %7399 = dma.hbm_to_vmem [thread:$0]  (!%p8418_p6), %s284_s17, 1024, %s286_s15, [#allocation9], %s8321_s18, %s8321_s18, %s8322_s20  }
  0x1d   : > { %s300_s23 = sshll.u32 %s12709_s7, 4  ;;  %s8323_s24 = smov [#allocation11]   ;;  %s301_s23 = int_to_ptr.hbm [resolvable:$true] %s300_s23 }
  0x1e   : > { %s302_s25 = sshll.u32 %s8323_s24, 4  ;;  %s6926_s26 = sadd.s32 4294967294, %s8313_s30   ;;  %s303_s25 = int_to_ptr.vmem [resolvable:$true] %s302_s25 }
  0x1f   : > { %7402 = dma.hbm_to_vmem [thread:$0]  (!%p8418_p6), %s301_s23, 1024, %s303_s25, [#allocation12], %s8321_s18, %s8321_s18, %s8322_s20  }
  0x20   : > { %s8443_s9 = sadd.s32 1, %s8313_s30   ;;  %s34_s10 = sadd.s32 1, %s8309_s29 }
  0x21   : > { %s31_s14 = ssub.s32 %s8313_s30, %s8443_s9  ;;  %p41_p7 = scmp.ne.s32.totalorder %s8309_s29, %s8305_s28 }
  0x22   : > { %p32_p8 = scmp.eq.s32.totalorder %s31_s14, 0  ;;  %p42_p9 = scmp.eq.s32.totalorder %s8313_s30, 0 }
  0x23   : > { %p47_p10 = scmp.ne.s32.totalorder %s8305_s28, %s8301_s27  ;;  %p218_p11 = scmp.eq.s32.totalorder %s8401_s12, 1 }
  0x24   : > { %s8455_s16 = scalar_select %p32_p8, %s8309_s29, %s34_s10  }
  0x25   : > { %p8457_p12 = por %p42_p9, %p41_p7  ;;  %p8463_p13 = por %p48_p1, %p47_p10 }
  0x26   : > { %p8467_p0 = por %p218_p11, %p41_p7  ;;  %p224_p2 = scmp.eq.s32.totalorder %s6926_s26, 1 }
  0x27   : > { %p7416_p5 = scmp.lt.s32.totalorder %s8313_s30, 2  ;;  %s316_s15 = sand.u32 1, %s8309_s29  }
  0x28   : > { %p8473_p6 = por %p224_p2, %p47_p10  ;;  %s6934_s20 = sshll.u32 %s316_s15, 8 }
  0x29   : > { %s7273_s21 = sshll.u32 %s8313_s30, 8  ;;  %s320_s10 = scalar_lea.vmem [#allocation2], %s6934_s20 }
  0x2a   : > { %s326_s24 = scalar_lea.hbm %s12702_s0, %s7273_s21  ;;  %s329_s14 = sshll.u32 %s320_s10, 4  ;;  %s330_s14 = int_to_ptr.vmem [resolvable:$true] %s329_s14 }
  0x2b   : > { %s327_s25 = sshll.u32 %s326_s24, 4  ;;  %p8483_p7 = pnand %p7416_p5, %p8457_p12  ;;  %s328_s25 = int_to_ptr.hbm [resolvable:$true] %s327_s25 }
  0x2c   : > { %s317_s1 = scalar_lea.sflag [#allocation3], %s316_s15  ;;  %s8205_s2 = sshra.s32 %s328_s25, 4  ;;  %s8206_s2 = int_to_ptr.hbm [resolvable:$true] %s8205_s2 }
  0x2d   : > { %s8207_s3 = scalar_lea.hbm %s8206_s2, 256  ;;  %p8209_p9 = pneg %p8483_p7 }
  0x2e   : > { %p8208_p8 = scmp.ne.s32.totalorder %s8206_s2, %s8207_s3  ;;  %s8212_s22 = scalar_lea.hbm %s12702_s0, 512 }
  0x2f   : > { %p8213_p12 = scmp.lt.s32.totalorder %s8206_s2, %s12702_s0  ;;  %p8214_p2 = scmp.lt.s32.totalorder %s8212_s22, %s8207_s3 }
  0x30   : > { %p8210_p10 = pnand %p8209_p9, %p8208_p8 }
  0x31   : > { %p8215_p5 = por %p8214_p2, %p8213_p12 }
  0x32   : > { %p8211_p11 = pneg %p8210_p10 }
  0x34   : > { %p8216_p4 = pnand %p8215_p5, %p8211_p11 }
  0x36   : > { %8219 = shalt.err (!%p8216_p4)
}
  0x37   : > { %s8324_s15 = smov 128   ;;  %s8325_s24 = smov 8  }
  0x38   : > { %7406 = dma.hbm_to_vmem [thread:$0]  (!%p8483_p7), %s328_s25, 4096, %s330_s14, %s317_s1, %s8324_s15, %s8324_s15, %s8325_s24  }
  0x39   : > { %341 = sbr.rel (%p8406_p3) target bundleno = 4080 (0xff0), region = 52 }
  0x3e   : > { %s8500_s10 = sand.u32 1, %s8305_s28  }
  0x3f   : > { %s6939_s2 = sshll.u32 %s8500_s10, 8  ;;  %s344_s3 = scalar_lea.sflag [#allocation3], %s8500_s10 }
  0x40   : > { %s8506_s21 = scalar_lea.vmem [#allocation2], %s6939_s2 }
  0x41   : > { %8280 = dma.done.wait (%p8463_p13), %s344_s3, 4096  }
  0x42   : > { %8282 = vsyncadd (%p8463_p13), %s344_s3, 4294963200 }
  0x43   : > { %8284 = dma.done.wait (%p48_p1), [#allocation6], 32  }
  0x44   : > { %8286 = vsyncadd (%p48_p1), [#allocation6], 4294967264 }
  0x45   : > { %8288 = dma.done.wait (%p48_p1), [#allocation9], 4096  }
  0x46   : > { %8290 = vsyncadd (%p48_p1), [#allocation9], 4294963200 }
  0x47   : > { %8292 = dma.done.wait (%p48_p1), [#allocation12], 1024  }
  0x48   : > { %8294 = vsyncadd (%p48_p1), [#allocation12], 4294966272  ;;  %v411_v0 = vld [vmem:[%s8506_s21 + $0x10] sm:$0xff]  ;;  %v409_v1 = vld [vmem:[%s8506_s21] sm:$0xff]  ;;  %v8326_v7 = vmov 128.0   ;;  %s8327_s19 = smov 96  }
  0x49   : > { %445 = vadd.xlane.f32.xlu1 %v411_v0  ;;  %441 = vadd.xlane.f32.xlu0 %v409_v1  ;;  %v413_v2 = vld [vmem:[%s8506_s21 + $0x20] sm:$0xff]  ;;  %v412_v3 = vld [vmem:[%s8506_s21 + $0x18] sm:$0xff]  ;;  %v410_v4 = vld [vmem:[%s8506_s21 + $0x8] sm:$0xff]  ;;  %7475 = vrcp.f32 %v8326_v7  ;;  %s8328_s25 = smov 64   ;;  %s8329_s14 = smov 32  }
  0x4a   : > { %449 = vadd.xlane.f32.xlu2 %v413_v2  ;;  %v414_v5 = vld [vmem:[%s8506_s21 + $0x28] sm:$0xff]  ;;  %v415_v6 = vld [vmem:[%s8506_s21 + $0x30] sm:$0xff]  ;;  %v8547_v28 = vld [vmem:[%s8506_s21 + $0x38] sm:$0xff]  ;;  %s12528_s22 = scalar_lea.vmem [#allocation13], %s6939_s2  ;;  %s7307_s23 = sshll.u32 %s8401_s12, 8 }
  0x4b   : > { %v8562_v36 = vld [vmem:[%s8506_s21 + $0x40] sm:$0xff]  ;;  %v8573_v42 = vld [vmem:[%s8506_s21 + $0x58] sm:$0xff]  ;;  %v8576_v43 = vld [vmem:[%s8506_s21 + $0x48] sm:$0xff]  ;;  %s6801_s24 = scalar_lea.hbm %s12710_s8, %s7307_s23  ;;  %s6802_s2 = sshll.u32 %s12528_s22, 4  ;;  %s6803_s2 = int_to_ptr.vmem [resolvable:$true] %s6802_s2 }
  0x4c   : > { %v8585_v46 = vld [vmem:[%s8506_s21 + $0x60] sm:$0xff]  ;;  %v8588_v47 = vld [vmem:[%s8506_s21 + $0x50] sm:$0xff]  ;;  %v8593_v48 = vld [vmem:[%s8506_s21 + $0x68] sm:$0xff]  ;;  %s6804_s3 = sshll.u32 %s6801_s24, 4  ;;  %s6789_s12 = scalar_lea.sflag [#allocation4], %s8500_s10  ;;  %s6805_s3 = int_to_ptr.hbm [resolvable:$true] %s6804_s3 }
  0x4d   : > { %v8597_v49 = vld [vmem:[%s8506_s21 + $0x70] sm:$0xff]  ;;  %v7032_v50 = vld [vmem:[#allocation8 + $0xa8] sm:$0xf]  ;;  %v7296_v51 = vld [vmem:[#allocation8 + $0xb0] sm:$0xf0] }
  0x4e   : > { %v7033_v52 = vor.u32 %v7296_v51, %v7032_v50  ;;  %v7020_v53 = vld [vmem:[#allocation8 + $0x90] sm:$0xf]  ;;  %v7293_v54 = vld [vmem:[#allocation8 + $0x98] sm:$0xf0]  ;;  %v7008_v56 = vld [vmem:[#allocation8 + $0x78] sm:$0xf] }
  0x4f   : > { %v7476_v8 = vpop.eup %7475  ;;  %v7021_v55 = vor.u32 %v7293_v54, %v7020_v53  ;;  %v7290_v57 = vld [vmem:[#allocation8 + $0x80] sm:$0xf0]  ;;  %v6996_v59 = vld [vmem:[#allocation8 + $0x60] sm:$0xf]  ;;  %v7287_v60 = vld [vmem:[#allocation8 + $0x68] sm:$0xf0] }
  0x50   : > { %v506_v9 = vmul.f32 128.0, %v7476_v8  ;;  %vm510_vm0 = vweird.f32 %v7476_v8  ;;  %1344 = vmatpush.bf16.msra.mxu0 %v7033_v52  ;;  %v7009_v58 = vor.u32 %v7290_v57, %v7008_v56  ;;  %v6997_v61 = vor.u32 %v7287_v60, %v6996_v59  ;;  %v6984_v62 = vld [vmem:[#allocation8 + $0x48] sm:$0xf]  ;;  %v7284_v63 = vld [vmem:[#allocation8 + $0x50] sm:$0xf0] }
  0x51   : > { %447 = vadd.xlane.f32.xlu1 %v412_v3  ;;  %443 = vadd.xlane.f32.xlu0 %v410_v4 }
  0x52   : > { %451 = vadd.xlane.f32.xlu2 %v414_v5  ;;  %v507_v10 = vsub.f32 1.0, %v506_v9 }
  0x54   : > { %v508_v11 = vmul.f32 %v7476_v8, %v507_v10  ;;  %1345 = vmatpush.bf16.msra.mxu0 %v7021_v55  ;;  %v6948_v10 = vld [vmem:[#allocation8] sm:$0xf] }
  0x56   : > { %v509_v12 = vadd.f32 %v7476_v8, %v508_v11  ;;  %v7275_v11 = vld [vmem:[#allocation8 + $0x8] sm:$0xf0] }
  0x58   : > { %v8531_v13 = vsel %vm510_vm0, %v7476_v8, %v509_v12  ;;  %1346 = vmatpush.bf16.msra.mxu0 %v7009_v58  ;;  %v6949_v12 = vor.u32 %v7275_v11, %v6948_v10 }
  0x5a   : > { %453 = vadd.xlane.f32.xlu2 %v415_v6 }
  0x5c   : > { %1347 = vmatpush.bf16.msra.mxu0 %v6997_v61 }
  0xbc   : > { %v446_v14 = vpop.xlane.xlu1 %445  ;;  %v442_v15 = vpop.xlane.xlu0 %441 }
  0xbd   : > { %v512_v16 = vmul.f32 %v8531_v13, %v442_v15  ;;  %v450_v18 = vpop.xlane.xlu2 %449  ;;  %v514_v27 = vmul.f32 %v8531_v13, %v446_v14 }
  0xbe   : > { %v516_v26 = vmul.f32 %v8531_v13, %v450_v18 }
  0xbf   : > { %v8534_v17 = vsub.f32 %v409_v1, %v512_v16  ;;  %v8556_v33 = vsub.f32 %v411_v0, %v514_v27  ;;  %v6985_v0 = vor.u32 %v7284_v63, %v6984_v62  ;;  %v6972_v1 = vld [vmem:[#allocation8 + $0x30] sm:$0xf] }
  0xc0   : > { %v8554_v32 = vsub.f32 %v413_v2, %v516_v26  ;;  %v7281_v2 = vld [vmem:[#allocation8 + $0x38] sm:$0xf0] }
  0xc1   : > { %v576_v19 = vmul.f32 %v8534_v17, %v8534_v17  ;;  %v578_v37 = vmul.f32 %v8556_v33, %v8556_v33  ;;  %1348 = vmatpush.bf16.msra.mxu0 %v6985_v0 }
  0xc2   : > { %v580_v34 = vmul.f32 %v8554_v32, %v8554_v32 }
  0xc3   : > { %608 = vadd.xlane.f32.xlu0 %v576_v19 }
  0xc4   : > { %v448_v20 = vpop.xlane.xlu1 %447  ;;  %v444_v21 = vpop.xlane.xlu0 %443 }
  0xc5   : > { %v515_v22 = vmul.f32 %v8531_v13, %v448_v20  ;;  %v513_v23 = vmul.f32 %v8531_v13, %v444_v21  ;;  %v452_v31 = vpop.xlane.xlu2 %451 }
  0xc6   : > { %v517_v35 = vmul.f32 %v8531_v13, %v452_v31 }
  0xc7   : > { %v8540_v24 = vsub.f32 %v412_v3, %v515_v22  ;;  %v8542_v25 = vsub.f32 %v410_v4, %v513_v23  ;;  %v6973_v3 = vor.u32 %v7281_v2, %v6972_v1  ;;  %v6960_v4 = vld [vmem:[#allocation8 + $0x18] sm:$0xf] }
  0xc8   : > { %v8567_v38 = vsub.f32 %v414_v5, %v517_v35  ;;  %v7278_v5 = vld [vmem:[#allocation8 + $0x20] sm:$0xf0] }
  0xc9   : > { %v579_v29 = vmul.f32 %v8540_v24, %v8540_v24  ;;  %v577_v30 = vmul.f32 %v8542_v25, %v8542_v25  ;;  %1349 = vmatpush.bf16.msra.mxu0 %v6973_v3  ;;  %v6961_v7 = vor.u32 %v7278_v5, %v6960_v4 }
  0xca   : > { %v581_v40 = vmul.f32 %v8567_v38, %v8567_v38 }
  0xcb   : > { %614 = vadd.xlane.f32.xlu2 %v579_v29  ;;  %455 = vadd.xlane.f32.xlu0 %v8547_v28 }
  0xcc   : > { %610 = vadd.xlane.f32.xlu1 %v577_v30 }
  0xcd   : > { %v454_v39 = vpop.xlane.xlu2 %453  ;;  %1350 = vmatpush.bf16.msra.mxu0 %v6961_v7 }
  0xce   : > { %v518_v41 = vmul.f32 %v8531_v13, %v454_v39 }
  0xd0   : > { %v8579_v44 = vsub.f32 %v415_v6, %v518_v41 }
  0xd1   : > { %1351 = vmatpush.bf16.msra.mxu0 %v6949_v12  ;;  %v8658_v12 = vld [vmem:[%s8506_s21 + $0x78] sm:$0xff] }
  0xd2   : > { %v582_v45 = vmul.f32 %v8579_v44, %v8579_v44 }
  0xd3   : > { %616 = vadd.xlane.f32.xlu2 %v580_v34  ;;  %457 = vadd.xlane.f32.xlu0 %v8562_v36 }
  0xd4   : > { %612 = vadd.xlane.f32.xlu1 %v578_v37 }
  0xdb   : > { %463 = vadd.xlane.f32.xlu2 %v8573_v42  ;;  %618 = vadd.xlane.f32.xlu0 %v581_v40 }
  0xdc   : > { %459 = vadd.xlane.f32.xlu1 %v8576_v43 }
  0xe3   : > { %465 = vadd.xlane.f32.xlu2 %v8585_v46  ;;  %620 = vadd.xlane.f32.xlu0 %v582_v45 }
  0xe4   : > { %461 = vadd.xlane.f32.xlu1 %v8588_v47 }
  0xeb   : > { %467 = vadd.xlane.f32.xlu0 %v8593_v48 }
  0xf3   : > { %469 = vadd.xlane.f32.xlu0 %v8597_v49 }
 0x136   : > { %v609_v6 = vpop.xlane.xlu0 %608 }
 0x137   : > { %v672_v8 = vmul.f32 %v609_v6, %v8531_v13 }
 0x139   : > { %v704_v9 = vadd.f32 1e-05, %v672_v8 }
 0x13b   : > { %7477 = vrsqrt.f32 %v704_v9  ;;  %vm742_vm2 = vweird.f32 %v704_v9 }
 0x13e   : > { %v615_v14 = vpop.xlane.xlu2 %614  ;;  %v456_v15 = vpop.xlane.xlu0 %455 }
 0x13f   : > { %v675_v16 = vmul.f32 %v615_v14, %v8531_v13  ;;  %v611_v18 = vpop.xlane.xlu1 %610  ;;  %v519_v19 = vmul.f32 %v8531_v13, %v456_v15  ;;  %v8661_v15 = vld [vmem:[#allocation5] ss:$0 sm:$0xff] }
 0x140   : > { %v673_v20 = vmul.f32 %v611_v18, %v8531_v13 }
 0x141   : > { %v7478_v21 = vpop.eup %7477  ;;  %v8604_v22 = vadd.f32 1e-05, %v675_v16  ;;  %v8607_v23 = vsub.f32 %v8547_v28, %v519_v19 }
 0x142   : > { %v737_v26 = vmul.f32 %v7478_v21, %v704_v9  ;;  %v705_v27 = vadd.f32 1e-05, %v673_v20  ;;  %vm743_vm1 = vweird.f32 %v7478_v21 }
 0x143   : > { %7479 = vrsqrt.f32 %v8604_v22  ;;  %v583_v29 = vmul.f32 %v8607_v23, %v8607_v23  ;;  %vm8627_vm4 = vmor %vm742_vm2, %vm743_vm1  ;;  %vm772_vm9 = vweird.f32 %v8604_v22 }
 0x144   : > { %v738_v30 = vmul.f32 %v7478_v21, %v737_v26  ;;  %7481 = vrsqrt.f32 %v705_v27  ;;  %vm752_vm3 = vweird.f32 %v705_v27 }
 0x145   : > { %622 = vadd.xlane.f32.xlu1 %v583_v29 }
 0x146   : > { %v739_v31 = vmul.f32 0.5, %v738_v30  ;;  %v617_v34 = vpop.xlane.xlu2 %616  ;;  %v458_v35 = vpop.xlane.xlu0 %457 }
 0x147   : > { %v613_v37 = vpop.xlane.xlu1 %612  ;;  %v520_v39 = vmul.f32 %v8531_v13, %v458_v35  ;;  %v676_v54 = vmul.f32 %v617_v34, %v8531_v13  ;;  %v8676_v35 = vld [vmem:[#allocation7] ss:$0 sm:$0xff] }
 0x148   : > { %v740_v40 = vsub.f32 1.5, %v739_v31  ;;  %v674_v28 = vmul.f32 %v613_v37, %v8531_v13 }
 0x149   : > { %v8614_v41 = vpop.eup %7479  ;;  %v8617_v45 = vsub.f32 %v8562_v36, %v520_v39  ;;  %v8635_v1 = vadd.f32 1e-05, %v676_v54 }
 0x14a   : > { %v7482_v50 = vpop.eup %7481  ;;  %v8619_v51 = vadd.f32 1e-05, %v674_v28  ;;  %v741_v53 = vmul.f32 %v7478_v21, %v740_v40  ;;  %v767_v55 = vmul.f32 %v8614_v41, %v8604_v22  ;;  %vm773_vm10 = vweird.f32 %v8614_v41 }
 0x14b   : > { %v747_v52 = vmul.f32 %v7482_v50, %v705_v27  ;;  %v584_v57 = vmul.f32 %v8617_v45, %v8617_v45  ;;  %vm753_vm5 = vweird.f32 %v7482_v50  ;;  %vm8710_vm12 = vmor %vm772_vm9, %vm773_vm10  ;;  %vm782_vm15 = vweird.f32 %v8635_v1 }
 0x14c   : > { %7483 = vrsqrt.f32 %v8619_v51  ;;  %v745_v0 = vsel %vm8627_vm4, %v7478_v21, %v741_v53  ;;  %v768_v3 = vmul.f32 %v8614_v41, %v767_v55  ;;  %vm8645_vm6 = vmor %vm752_vm3, %vm753_vm5  ;;  %vm762_vm7 = vweird.f32 %v8619_v51 }
 0x14d   : > { %v748_v56 = vmul.f32 %v7482_v50, %v747_v52  ;;  %624 = vadd.xlane.f32.xlu1 %v584_v57  ;;  %v1056_v14 = vmul.f32 %v745_v0, %v8534_v17 }
 0x14e   : > { %v464_v36 = vpop.xlane.xlu2 %463  ;;  %v619_v58 = vpop.xlane.xlu0 %618  ;;  %v769_v16 = vmul.f32 0.5, %v768_v3 }
 0x14f   : > { %v749_v60 = vmul.f32 0.5, %v748_v56  ;;  %v523_v61 = vmul.f32 %v8531_v13, %v464_v36  ;;  %v460_v62 = vpop.xlane.xlu1 %459  ;;  %v677_v63 = vmul.f32 %v619_v58, %v8531_v13  ;;  %v1092_v31 = vmul.f32 %v8661_v15, %v1056_v14  ;;  %v8705_v56 = vld [vmem:[%s8506_s21 + $0x80] sm:$0xff] }
 0x150   : > { %v521_v2 = vmul.f32 %v8531_v13, %v460_v62 }
 0x151   : > { %v750_v4 = vsub.f32 1.5, %v749_v60  ;;  %v8639_v5 = vadd.f32 1e-05, %v677_v63  ;;  %v8642_v6 = vsub.f32 %v8573_v42, %v523_v61 }
 0x152   : > { %v7484_v7 = vpop.eup %7483  ;;  %v8650_v9 = vsub.f32 %v8576_v43, %v521_v2 }
 0x153   : > { %v751_v10 = vmul.f32 %v7482_v50, %v750_v4  ;;  %v757_v11 = vmul.f32 %v7484_v7, %v8619_v51  ;;  %7485 = vrsqrt.f32 %v8639_v5  ;;  %v587_v42 = vmul.f32 %v8642_v6, %v8642_v6  ;;  %v7010_v51 = vld [vmem:[#allocation8 + $0x84] sm:$0xf0] }
 0x154   : > { %7487 = vrsqrt.f32 %v8635_v1  ;;  %v585_v19 = vmul.f32 %v8650_v9, %v8650_v9  ;;  %vm763_vm8 = vweird.f32 %v7484_v7  ;;  %vm792_vm13 = vweird.f32 %v8639_v5 }
 0x155   : > { %v755_v43 = vsel %vm8645_vm6, %v7482_v50, %v751_v10  ;;  %v758_v18 = vmul.f32 %v7484_v7, %v757_v11  ;;  %630 = vadd.xlane.f32.xlu0 %v587_v42  ;;  %471 = vadd.xlane.f32.xlu1 %v8658_v12  ;;  %vm8696_vm11 = vmor %vm762_vm7, %vm763_vm8  ;;  %v8736_v10 = vld [vmem:[%s8506_s21 + $0x88] sm:$0xff] }
 0x156   : > { %v466_v20 = vpop.xlane.xlu2 %465  ;;  %v8667_v21 = vpop.xlane.xlu0 %620  ;;  %v1057_v26 = vmul.f32 %v755_v43, %v8542_v25  ;;  %626 = vadd.xlane.f32.xlu2 %v585_v19  ;;  %v770_v25 = vsub.f32 1.5, %v769_v16 }
 0x157   : > { %v759_v27 = vmul.f32 0.5, %v758_v18  ;;  %v524_v17 = vmul.f32 %v8531_v13, %v466_v20  ;;  %v462_v29 = vpop.xlane.xlu1 %461  ;;  %v8754_v20 = vld [vmem:[%s8506_s21 + $0xa0] sm:$0xff] }
 0x158   : > { %v522_v30 = vmul.f32 %v8531_v13, %v462_v29  ;;  %v1093_v34 = vmul.f32 %v8661_v15, %v1057_v26  ;;  %v771_v57 = vmul.f32 %v8614_v41, %v770_v25 }
 0x159   : > { %v8678_v37 = vpop.eup %7485  ;;  %v760_v39 = vsub.f32 1.5, %v759_v27  ;;  %v8681_v40 = vsub.f32 %v8585_v46, %v524_v17 }
 0x15a   : > { %v8683_v28 = vpop.eup %7487  ;;  %v8687_v50 = vsub.f32 %v8588_v47, %v522_v30  ;;  %v787_v53 = vmul.f32 %v8678_v37, %v8639_v5  ;;  %v1128_v47 = vadd.f32 %v8676_v35, %v1092_v31  ;;  %v1129_v55 = vadd.f32 %v8676_v35, %v1093_v34  ;;  %v8759_v5 = vld [vmem:[%s8506_s21 + $0x90] sm:$0xff]  ;;  %v8772_v31 = vld [vmem:[%s8506_s21 + $0xa8] sm:$0xff] }
 0x15b   : > { %v761_v52 = vmul.f32 %v7484_v7, %v760_v39  ;;  %v588_v54 = vmul.f32 %v8681_v40, %v8681_v40  ;;  %v777_v36 = vmul.f32 %v8683_v28, %v8635_v1  ;;  %v775_v63 = vsel %vm8710_vm12, %v8614_v41, %v771_v57 }
 0x15c   : > { %v586_v22 = vmul.f32 %v8687_v50, %v8687_v50  ;;  %v8714_v58 = vpack.c.bf16 %v1129_v55, %v1128_v47  ;;  %v788_v61 = vmul.f32 %v8678_v37, %v787_v53  ;;  %v1059_v11 = vmul.f32 %v775_v63, %v8540_v24  ;;  %v8781_v53 = vld [vmem:[%s8506_s21 + $0xb0] sm:$0xff]  ;;  %v7292_v47 = vld [vmem:[#allocation8 + $0x94] sm:$0xf]  ;;  %v7022_v55 = vld [vmem:[#allocation8 + $0x9c] sm:$0xf0] }
 0x15d   : > { %632 = vadd.xlane.f32.xlu0 %v588_v54  ;;  %v765_v60 = vsel %vm8696_vm11, %v7484_v7, %v761_v52  ;;  %473 = vadd.xlane.f32.xlu1 %v8705_v56  ;;  %v778_v0 = vmul.f32 %v8683_v28, %v777_v36  ;;  %v8731_v7 = vld [vmem:[%s8506_s21 + $0x98] sm:$0xff]  ;;  %vm793_vm14 = vweird.f32 %v8678_v37  ;;  %vm783_vm0 = vweird.f32 %v8683_v28  ;;  %v7289_v36 = vld [vmem:[#allocation8 + $0x7c] sm:$0xf] }
 0x15e   : > { %v468_v59 = vpop.xlane.xlu0 %467  ;;  %628 = vadd.xlane.f32.xlu2 %v586_v22  ;;  %1352 = vmatmul.bf16.vlgmr.msra.gmra.mxu0 %v8714_v58  ;;  %v1058_v3 = vmul.f32 %v765_v60, %v8556_v33  ;;  %v789_v4 = vmul.f32 0.5, %v788_v61  ;;  %v1095_v16 = vmul.f32 %v8661_v15, %v1059_v11  ;;  %vm794_vm1 = vmor %vm792_vm13, %vm793_vm14  ;;  %v7025_v57 = vor.u32 %v7292_v47, %v7022_v55  ;;  %v7286_v60 = vld [vmem:[#allocation8 + $0x64] sm:$0xf]  ;;  %v6998_v61 = vld [vmem:[#allocation8 + $0x6c] sm:$0xf0] }
 0x15f   : > { %v525_v62 = vmul.f32 %v8531_v13, %v468_v59  ;;  %v779_v42 = vmul.f32 0.5, %v778_v0  ;;  %vm784_vm2 = vmor %vm782_vm15, %vm783_vm0  ;;  %v7013_v59 = vor.u32 %v7289_v36, %v7010_v51 }
 0x160   : > { %v790_v14 = vsub.f32 1.5, %v789_v4  ;;  %v6986_v4 = vld [vmem:[#allocation8 + $0x54] sm:$0xf0] }
 0x161   : > { %v8727_v2 = vsub.f32 %v8593_v48, %v525_v62  ;;  %v1094_v48 = vmul.f32 %v8661_v15, %v1058_v3  ;;  %v780_v43 = vsub.f32 1.5, %v779_v42  ;;  %v7001_v62 = vor.u32 %v7286_v60, %v6998_v61  ;;  %v7283_v3 = vld [vmem:[#allocation8 + $0x4c] sm:$0xf] }
 0x162   : > { %v791_v19 = vmul.f32 %v8678_v37, %v790_v14  ;;  %v6989_v11 = vor.u32 %v7283_v3, %v6986_v4  ;;  %v6974_v14 = vld [vmem:[#allocation8 + $0x3c] sm:$0xf0] }
 0x163   : > { %v589_v8 = vmul.f32 %v8727_v2, %v8727_v2  ;;  %v1130_v18 = vadd.f32 %v8676_v35, %v1094_v48  ;;  %v781_v27 = vmul.f32 %v8683_v28, %v780_v43  ;;  %v7280_v48 = vld [vmem:[#allocation8 + $0x34] sm:$0xf] }
 0x164   : > { %v795_v17 = vsel %vm794_vm1, %v8678_v37, %v791_v19  ;;  %v6962_v19 = vld [vmem:[#allocation8 + $0x24] sm:$0xf0] }
 0x165   : > { %479 = vadd.xlane.f32.xlu0 %v8731_v7  ;;  %634 = vadd.xlane.f32.xlu1 %v589_v8  ;;  %v785_v29 = vsel %vm784_vm2, %v8683_v28, %v781_v27  ;;  %v1061_v30 = vmul.f32 %v795_v17, %v8567_v38  ;;  %v7295_v38 = vld [vmem:[#allocation8 + $0xac] sm:$0xf]  ;;  %v7034_v28 = vld [vmem:[#allocation8 + $0xb4] sm:$0xf0] }
 0x166   : > { %v470_v41 = vpop.xlane.xlu0 %469  ;;  %475 = vadd.xlane.f32.xlu2 %v8736_v10  ;;  %v1060_v34 = vmul.f32 %v785_v29, %v8554_v32  ;;  %v678_v32 = vmul.f32 %v8667_v21, %v8531_v13  ;;  %v7037_v46 = vor.u32 %v7295_v38, %v7034_v28 }
 0x167   : > { %v526_v33 = vmul.f32 %v8531_v13, %v470_v41  ;;  %v1097_v25 = vmul.f32 %v8661_v15, %v1061_v30 }
 0x168   : > { %v1096_v39 = vmul.f32 %v8661_v15, %v1060_v34  ;;  %v8789_v22 = vadd.f32 1e-05, %v678_v32  ;;  %7347 = vmatpush.bf16.msra.mxu1 %v7037_v46  ;;  %7348 = vmatpush.bf16.msra.mxu2 %v7037_v46 }
 0x169   : > { %v8747_v24 = vsub.f32 %v8597_v49, %v526_v33  ;;  %v1131_v49 = vadd.f32 %v8676_v35, %v1095_v16  ;;  %v1133_v37 = vadd.f32 %v8676_v35, %v1097_v25  ;;  %1433 = vmatpush.bf16.msrb.mxu0 %v7037_v46  ;;  %v6977_v33 = vor.u32 %v7280_v48, %v6974_v14  ;;  %v7274_v25 = vld [vmem:[#allocation8 + $0x4] sm:$0xf] }
 0x16a   : > { %v1132_v52 = vadd.f32 %v8676_v35, %v1096_v39  ;;  %7489 = vrsqrt.f32 %v8789_v22  ;;  %vm802_vm3 = vweird.f32 %v8789_v22  ;;  %v6950_v39 = vld [vmem:[#allocation8 + $0xc] sm:$0xf0] }
 0x16b   : > { %v590_v26 = vmul.f32 %v8747_v24, %v8747_v24  ;;  %v8764_v1 = vpack.c.bf16 %v1131_v49, %v1130_v18  ;;  %v7277_v18 = vld [vmem:[#allocation8 + $0x1c] sm:$0xf] }
 0x16c   : > { %v8783_v54 = vpack.c.bf16 %v1133_v37, %v1132_v52  ;;  %7349 = vmatpush.bf16.msra.mxu1 %v7025_v57  ;;  %7350 = vmatpush.bf16.msra.mxu2 %v7025_v57  ;;  %v6965_v17 = vor.u32 %v7277_v18, %v6962_v19  ;;  %v6953_v52 = vor.u32 %v7274_v25, %v6950_v39 }
 0x16d   : > { %481 = vadd.xlane.f32.xlu0 %v8754_v20  ;;  %636 = vadd.xlane.f32.xlu1 %v590_v26 }
 0x16e   : > { %477 = vadd.xlane.f32.xlu2 %v8759_v5  ;;  %1357 = vmatmul.bf16.gmra.mxu0 %v8764_v1 }
 0x16f   : > { %1434 = vmatpush.bf16.msrb.mxu0 %v7025_v57 }
 0x170   : > { %7351 = vmatpush.bf16.msra.mxu1 %v7013_v59  ;;  %7352 = vmatpush.bf16.msra.mxu2 %v7013_v59  ;;  %v8792_v21 = vpop.eup %7489 }
 0x171   : > { %v797_v63 = vmul.f32 %v8792_v21, %v8789_v22  ;;  %vm803_vm4 = vweird.f32 %v8792_v21 }
 0x172   : > { %vm8805_vm5 = vmor %vm802_vm3, %vm803_vm4 }
 0x173   : > { %1435 = vmatpush.bf16.msrb.mxu0 %v7013_v59  ;;  %v798_v42 = vmul.f32 %v8792_v21, %v797_v63 }
 0x174   : > { %7353 = vmatpush.bf16.msra.mxu1 %v7001_v62  ;;  %7354 = vmatpush.bf16.msra.mxu2 %v7001_v62 }
 0x175   : > { %483 = vadd.xlane.f32.xlu1 %v8772_v31  ;;  %v799_v16 = vmul.f32 0.5, %v798_v42 }
 0x177   : > { %1436 = vmatpush.bf16.msrb.mxu0 %v7001_v62  ;;  %v800_v49 = vsub.f32 1.5, %v799_v16 }
 0x178   : > { %7355 = vmatpush.bf16.msra.mxu1 %v6989_v11  ;;  %7356 = vmatpush.bf16.msra.mxu2 %v6989_v11 }
 0x179   : > { %v801_v37 = vmul.f32 %v8792_v21, %v800_v49 }
 0x17b   : > { %1437 = vmatpush.bf16.msrb.mxu0 %v6989_v11  ;;  %v805_v57 = vsel %vm8805_vm5, %v8792_v21, %v801_v37 }
 0x17c   : > { %7357 = vmatpush.bf16.msra.mxu1 %v6977_v33  ;;  %7358 = vmatpush.bf16.msra.mxu2 %v6977_v33  ;;  %v1062_v21 = vmul.f32 %v805_v57, %v8579_v44 }
 0x17d   : > { %485 = vadd.xlane.f32.xlu1 %v8781_v53 }
 0x17e   : > { %1362 = vmatmul.bf16.gmra.mxu0 %v8783_v54  ;;  %v1098_v14 = vmul.f32 %v8661_v15, %v1062_v21 }
 0x17f   : > { %1438 = vmatpush.bf16.msrb.mxu0 %v6977_v33 }
 0x180   : > { %7359 = vmatpush.bf16.msra.mxu1 %v6965_v17  ;;  %7360 = vmatpush.bf16.msra.mxu2 %v6965_v17 }
 0x183   : > { %1439 = vmatpush.bf16.msrb.mxu0 %v6965_v17 }
 0x184   : > { %7361 = vmatpush.bf16.msra.mxu1 %v6953_v52  ;;  %7362 = vmatpush.bf16.msra.mxu2 %v6953_v52 }
 0x187   : > { %1440 = vmatpush.bf16.msrb.mxu0 %v6953_v52 }
 0x1b8   : > { %v623_v0 = vpop.xlane.xlu1 %622 }
 0x1b9   : > { %v679_v8 = vmul.f32 %v623_v0, %v8531_v13 }
 0x1bb   : > { %v711_v41 = vadd.f32 1e-05, %v679_v8 }
 0x1bd   : > { %7491 = vrsqrt.f32 %v711_v41  ;;  %vm812_vm7 = vweird.f32 %v711_v41 }
 0x1c0   : > { %v625_v43 = vpop.xlane.xlu1 %624 }
 0x1c1   : > { %v680_v27 = vmul.f32 %v625_v43, %v8531_v13 }
 0x1c3   : > { %v7492_v26 = vpop.eup %7491  ;;  %v8801_v30 = vadd.f32 1e-05, %v680_v27 }
 0x1c4   : > { %v807_v29 = vmul.f32 %v7492_v26, %v711_v41  ;;  %vm813_vm6 = vweird.f32 %v7492_v26 }
 0x1c5   : > { %7493 = vrsqrt.f32 %v8801_v30  ;;  %vm814_vm8 = vmor %vm812_vm7, %vm813_vm6  ;;  %vm822_vm10 = vweird.f32 %v8801_v30 }
 0x1c6   : > { %v808_v34 = vmul.f32 %v7492_v26, %v807_v29  ;;  %v1134_v29 = vadd.f32 %v8676_v35, %v1098_v14 }
 0x1c8   : > { %v809_v38 = vmul.f32 0.5, %v808_v34  ;;  %v631_v28 = vpop.xlane.xlu0 %630  ;;  %v472_v47 = vpop.xlane.xlu1 %471 }
 0x1c9   : > { %v627_v22 = vpop.xlane.xlu2 %626  ;;  %v683_v55 = vmul.f32 %v631_v28, %v8531_v13  ;;  %v527_v51 = vmul.f32 %v8531_v13, %v472_v47 }
 0x1ca   : > { %v810_v46 = vsub.f32 1.5, %v809_v38  ;;  %v681_v36 = vmul.f32 %v627_v22, %v8531_v13 }
 0x1cb   : > { %v8815_v60 = vadd.f32 1e-05, %v683_v55  ;;  %v7494_v61 = vpop.eup %7493  ;;  %v8818_v63 = vsub.f32 %v8658_v12, %v527_v51 }
 0x1cc   : > { %v811_v59 = vmul.f32 %v7492_v26, %v810_v46  ;;  %v713_v62 = vadd.f32 1e-05, %v681_v36  ;;  %v817_v3 = vmul.f32 %v7494_v61, %v8801_v30  ;;  %vm823_vm9 = vweird.f32 %v7494_v61 }
 0x1cd   : > { %7495 = vrsqrt.f32 %v8815_v60  ;;  %v591_v4 = vmul.f32 %v8818_v63, %v8818_v63  ;;  %vm8848_vm12 = vmor %vm822_vm10, %vm823_vm9  ;;  %vm852_vm1 = vweird.f32 %v8815_v60 }
 0x1ce   : > { %v815_v0 = vsel %vm814_vm8, %v7492_v26, %v811_v59  ;;  %7497 = vrsqrt.f32 %v713_v62  ;;  %v818_v8 = vmul.f32 %v7494_v61, %v817_v3  ;;  %vm832_vm11 = vweird.f32 %v713_v62 }
 0x1cf   : > { %v1063_v11 = vmul.f32 %v815_v0, %v8607_v23  ;;  %638 = vadd.xlane.f32.xlu2 %v591_v4 }
 0x1d0   : > { %v633_v42 = vpop.xlane.xlu0 %632  ;;  %v819_v41 = vmul.f32 0.5, %v818_v8  ;;  %v474_v12 = vpop.xlane.xlu1 %473 }
 0x1d1   : > { %v629_v48 = vpop.xlane.xlu2 %628  ;;  %v1099_v33 = vmul.f32 %v8661_v15, %v1063_v11  ;;  %v528_v44 = vmul.f32 %v8531_v13, %v474_v12  ;;  %v684_v17 = vmul.f32 %v633_v42, %v8531_v13 }
 0x1d2   : > { %v682_v16 = vmul.f32 %v629_v48, %v8531_v13  ;;  %v820_v18 = vsub.f32 1.5, %v819_v41 }
 0x1d3   : > { %v8830_v43 = vpop.eup %7495  ;;  %v1135_v19 = vadd.f32 %v8676_v35, %v1099_v33  ;;  %v8836_v49 = vsub.f32 %v8705_v56, %v528_v44  ;;  %v8852_v28 = vadd.f32 1e-05, %v684_v17 }
 0x1d4   : > { %v7498_v26 = vpop.eup %7497  ;;  %v8833_v23 = vadd.f32 1e-05, %v682_v16  ;;  %v821_v34 = vmul.f32 %v7494_v61, %v820_v18  ;;  %v847_v25 = vmul.f32 %v8830_v43, %v8815_v60  ;;  %vm853_vm2 = vweird.f32 %v8830_v43 }
 0x1d5   : > { %v827_v27 = vmul.f32 %v7498_v26, %v713_v62  ;;  %v592_v37 = vmul.f32 %v8836_v49, %v8836_v49  ;;  %v8845_v52 = vpack.c.bf16 %v1135_v19, %v1134_v29  ;;  %vm833_vm13 = vweird.f32 %v7498_v26  ;;  %v8876_v62 = vld [vmem:[%s8506_s21 + $0xb8] sm:$0xff]  ;;  %vm8926_vm4 = vmor %vm852_vm1, %vm853_vm2 }
 0x1d6   : > { %7499 = vrsqrt.f32 %v8833_v23  ;;  %v825_v30 = vsel %vm8848_vm12, %v7494_v61, %v821_v34  ;;  %v848_v55 = vmul.f32 %v8830_v43, %v847_v25  ;;  %vm8862_vm14 = vmor %vm832_vm11, %vm833_vm13  ;;  %vm842_vm15 = vweird.f32 %v8833_v23 }
 0x1d7   : > { %v828_v39 = vmul.f32 %v7498_v26, %v827_v27  ;;  %640 = vadd.xlane.f32.xlu2 %v592_v37  ;;  %1367 = vmatmul.bf16.gmra.mxu0 %v8845_v52  ;;  %7501 = vrsqrt.f32 %v8852_v28  ;;  %v1064_v8 = vmul.f32 %v825_v30, %v8617_v45  ;;  %vm862_vm7 = vweird.f32 %v8852_v28 }
 0x1d8   : > { %v480_v56 = vpop.xlane.xlu0 %479  ;;  %v635_v22 = vpop.xlane.xlu1 %634  ;;  %v849_v11 = vmul.f32 0.5, %v848_v55 }
 0x1d9   : > { %v829_v38 = vmul.f32 0.5, %v828_v39  ;;  %v476_v46 = vpop.xlane.xlu2 %475  ;;  %v531_v47 = vmul.f32 %v8531_v13, %v480_v56  ;;  %v685_v57 = vmul.f32 %v635_v22, %v8531_v13  ;;  %v1100_v18 = vmul.f32 %v8661_v15, %v1064_v8  ;;  %v8922_v22 = vld [vmem:[%s8506_s21 + $0xc0] sm:$0xff] }
 0x1da   : > { %v529_v51 = vmul.f32 %v8531_v13, %v476_v46  ;;  %v850_v19 = vsub.f32 1.5, %v849_v11 }
 0x1db   : > { %v830_v36 = vsub.f32 1.5, %v829_v38  ;;  %v8866_v3 = vadd.f32 1e-05, %v685_v57  ;;  %v8869_v21 = vsub.f32 %v8731_v7, %v531_v47  ;;  %v1136_v38 = vadd.f32 %v8676_v35, %v1100_v18 }
 0x1dc   : > { %v7500_v59 = vpop.eup %7499  ;;  %v8881_v48 = vsub.f32 %v8736_v10, %v529_v51 }
 0x1dd   : > { %v831_v4 = vmul.f32 %v7498_v26, %v830_v36  ;;  %v837_v61 = vmul.f32 %v7500_v59, %v8833_v23  ;;  %7503 = vrsqrt.f32 %v8866_v3  ;;  %v595_v7 = vmul.f32 %v8869_v21, %v8869_v21  ;;  %v8896_v27 = vpop.eup %7501 }
 0x1de   : > { %v593_v33 = vmul.f32 %v8881_v48, %v8881_v48  ;;  %vm843_vm0 = vweird.f32 %v7500_v59  ;;  %v857_v46 = vmul.f32 %v8896_v27, %v8852_v28  ;;  %vm872_vm5 = vweird.f32 %v8866_v3  ;;  %v8981_v28 = vld [vmem:[%s8506_s21 + $0xe0] sm:$0xff] }
 0x1df   : > { %v835_v42 = vsel %vm8862_vm14, %v7498_v26, %v831_v4  ;;  %v838_v41 = vmul.f32 %v7500_v59, %v837_v61  ;;  %487 = vadd.xlane.f32.xlu2 %v8876_v62  ;;  %646 = vadd.xlane.f32.xlu1 %v595_v7  ;;  %vm8911_vm3 = vmor %vm842_vm15, %vm843_vm0  ;;  %vm863_vm8 = vweird.f32 %v8896_v27 }
 0x1e0   : > { %v482_v12 = vpop.xlane.xlu0 %481  ;;  %v1065_v45 = vmul.f32 %v835_v42, %v8650_v9  ;;  %v8890_v44 = vpop.xlane.xlu1 %636  ;;  %642 = vadd.xlane.f32.xlu0 %v593_v33  ;;  %v858_v51 = vmul.f32 %v8896_v27, %v857_v46  ;;  %v8955_v42 = vld [vmem:[%s8506_s21 + $0xd8] sm:$0xff]  ;;  %vm864_vm10 = vmor %vm862_vm7, %vm863_vm8 }
 0x1e1   : > { %v839_v14 = vmul.f32 0.5, %v838_v41  ;;  %v478_v16 = vpop.xlane.xlu2 %477  ;;  %v532_v10 = vmul.f32 %v8531_v13, %v482_v12  ;;  %v8959_v12 = vld [vmem:[%s8506_s21 + $0xc8] sm:$0xff] }
 0x1e2   : > { %v530_v26 = vmul.f32 %v8531_v13, %v478_v16  ;;  %v1101_v9 = vmul.f32 %v8661_v15, %v1065_v45  ;;  %v859_v11 = vmul.f32 0.5, %v858_v51 }
 0x1e3   : > { %v840_v17 = vsub.f32 1.5, %v839_v14  ;;  %v8899_v29 = vpop.eup %7503  ;;  %v8907_v39 = vsub.f32 %v8754_v20, %v532_v10 }
 0x1e4   : > { %v8903_v34 = vsub.f32 %v8759_v5, %v530_v26  ;;  %v1137_v25 = vadd.f32 %v8676_v35, %v1101_v9  ;;  %v867_v32 = vmul.f32 %v8899_v29, %v8866_v3  ;;  %v851_v5 = vmul.f32 %v8830_v43, %v850_v19  ;;  %v8985_v9 = vld [vmem:[%s8506_s21 + $0xd0] sm:$0xff] }
 0x1e5   : > { %v841_v37 = vmul.f32 %v7500_v59, %v840_v17  ;;  %v596_v57 = vmul.f32 %v8907_v39, %v8907_v39  ;;  %v860_v14 = vsub.f32 1.5, %v859_v11  ;;  %vm873_vm6 = vweird.f32 %v8899_v29 }
 0x1e6   : > { %v594_v23 = vmul.f32 %v8903_v34, %v8903_v34  ;;  %v8932_v47 = vpack.c.bf16 %v1137_v25, %v1136_v38  ;;  %v868_v55 = vmul.f32 %v8899_v29, %v867_v32  ;;  %v855_v36 = vsel %vm8926_vm4, %v8830_v43, %v851_v5  ;;  %vm874_vm9 = vmor %vm872_vm5, %vm873_vm6  ;;  %v9003_v38 = vld [vmem:[%s8506_s21 + $0xf0] sm:$0xff] }
 0x1e7   : > { %v845_v30 = vsel %vm8911_vm3, %v7500_v59, %v841_v37  ;;  %489 = vadd.xlane.f32.xlu2 %v8922_v22  ;;  %648 = vadd.xlane.f32.xlu1 %v596_v57  ;;  %v1067_v8 = vmul.f32 %v855_v36, %v8642_v6  ;;  %v861_v10 = vmul.f32 %v8896_v27, %v860_v14  ;;  %v8995_v37 = vld [vmem:[%s8506_s21 + $0xe8] sm:$0xff] }
 0x1e8   : > { %1461 = vmatmul.bf16.vlgmr.msra.gmra.mxu1 %v8932_v47  ;;  %v484_v60 = vpop.xlane.xlu1 %483  ;;  %1372 = vmatmul.bf16.gmra.mxu0 %v8932_v47  ;;  %v1066_v0 = vmul.f32 %v845_v30, %v8687_v50  ;;  %v869_v4 = vmul.f32 0.5, %v868_v55 }
 0x1e9   : > { %v533_v59 = vmul.f32 %v8531_v13, %v484_v60  ;;  %644 = vadd.xlane.f32.xlu0 %v594_v23  ;;  %v1103_v50 = vmul.f32 %v8661_v15, %v1067_v8 }
 0x1ea   : > { %v1102_v41 = vmul.f32 %v8661_v15, %v1066_v0  ;;  %v870_v7 = vsub.f32 1.5, %v869_v4 }
 0x1eb   : > { %v8949_v61 = vsub.f32 %v8772_v31, %v533_v59  ;;  %v1139_v16 = vadd.f32 %v8676_v35, %v1103_v50 }
 0x1ec   : > { %v1138_v31 = vadd.f32 %v8676_v35, %v1102_v41  ;;  %v871_v33 = vmul.f32 %v8899_v29, %v870_v7 }
 0x1ed   : > { %v597_v43 = vmul.f32 %v8949_v61, %v8949_v61 }
 0x1ee   : > { %v8978_v19 = vpack.c.bf16 %v1139_v16, %v1138_v31  ;;  %v875_v26 = vsel %vm874_vm9, %v8899_v29, %v871_v33 }
 0x1ef   : > { %650 = vadd.xlane.f32.xlu2 %v597_v43  ;;  %495 = vadd.xlane.f32.xlu1 %v8955_v42  ;;  %v1069_v17 = vmul.f32 %v875_v26, %v8727_v2 }
 0x1f0   : > { %v486_v45 = vpop.xlane.xlu1 %485 }
 0x1f1   : > { %v534_v6 = vmul.f32 %v8531_v13, %v486_v45  ;;  %491 = vadd.xlane.f32.xlu0 %v8959_v12  ;;  %v1105_v29 = vmul.f32 %v8661_v15, %v1069_v17 }
 0x1f3   : > { %v8972_v3 = vsub.f32 %v8781_v53, %v534_v6  ;;  %v865_v53 = vsel %vm864_vm10, %v8896_v27, %v861_v10  ;;  %v1141_v27 = vadd.f32 %v8676_v35, %v1105_v29 }
 0x1f4   : > { %v1068_v25 = vmul.f32 %v865_v53, %v8681_v40  ;;  %v686_v40 = vmul.f32 %v8890_v44, %v8531_v13 }
 0x1f5   : > { %v598_v18 = vmul.f32 %v8972_v3, %v8972_v3 }
 0x1f6   : > { %v1104_v56 = vmul.f32 %v8661_v15, %v1068_v25  ;;  %v718_v2 = vadd.f32 1e-05, %v686_v40 }
 0x1f7   : > { %652 = vadd.xlane.f32.xlu2 %v598_v18  ;;  %497 = vadd.xlane.f32.xlu1 %v8981_v28 }
 0x1f8   : > { %1466 = vmatmul.bf16.gmra.mxu1 %v8978_v19  ;;  %1377 = vmatmul.bf16.gmra.mxu0 %v8978_v19  ;;  %v1140_v32 = vadd.f32 %v8676_v35, %v1104_v56  ;;  %7505 = vrsqrt.f32 %v718_v2  ;;  %vm882_vm11 = vweird.f32 %v718_v2 }
 0x1f9   : > { %493 = vadd.xlane.f32.xlu0 %v8985_v9 }
 0x1fa   : > { %v9005_v5 = vpack.c.bf16 %v1141_v27, %v1140_v32 }
 0x1fe   : > { %v7506_v46 = vpop.eup %7505 }
 0x1ff   : > { %499 = vadd.xlane.f32.xlu2 %v8995_v37  ;;  %v877_v20 = vmul.f32 %v7506_v46, %v718_v2  ;;  %vm883_vm12 = vweird.f32 %v7506_v46 }
 0x200   : > { %vm884_vm13 = vmor %vm882_vm11, %vm883_vm12 }
 0x201   : > { %v878_v23 = vmul.f32 %v7506_v46, %v877_v20 }
 0x203   : > { %v879_v60 = vmul.f32 0.5, %v878_v23 }
 0x205   : > { %v880_v36 = vsub.f32 1.5, %v879_v60 }
 0x207   : > { %501 = vadd.xlane.f32.xlu2 %v9003_v38  ;;  %v881_v4 = vmul.f32 %v7506_v46, %v880_v36 }
 0x208   : > { %1471 = vmatmul.bf16.gmra.mxu1 %v9005_v5  ;;  %1382 = vmatmul.bf16.gmra.mxu0 %v9005_v5 }
 0x209   : > { %v885_v43 = vsel %vm884_vm13, %v7506_v46, %v881_v4 }
 0x20a   : > { %v1070_v33 = vmul.f32 %v885_v43, %v8747_v24 }
 0x20c   : > { %v1106_v32 = vmul.f32 %v8661_v15, %v1070_v33 }
 0x242   : > { %v639_v30 = vpop.xlane.xlu2 %638 }
 0x243   : > { %v687_v55 = vmul.f32 %v639_v30, %v8531_v13 }
 0x245   : > { %v719_v57 = vadd.f32 1e-05, %v687_v55  ;;  %v1142_v55 = vadd.f32 %v8676_v35, %v1106_v32 }
 0x247   : > { %7507 = vrsqrt.f32 %v719_v57  ;;  %vm892_vm15 = vweird.f32 %v719_v57 }
 0x24a   : > { %v641_v51 = vpop.xlane.xlu2 %640 }
 0x24b   : > { %v688_v59 = vmul.f32 %v641_v51, %v8531_v13 }
 0x24d   : > { %v7508_v0 = vpop.eup %7507  ;;  %v9014_v8 = vadd.f32 1e-05, %v688_v59 }
 0x24e   : > { %v887_v44 = vmul.f32 %v7508_v0, %v719_v57  ;;  %vm893_vm14 = vweird.f32 %v7508_v0 }
 0x24f   : > { %7509 = vrsqrt.f32 %v9014_v8  ;;  %vm894_vm0 = vmor %vm892_vm15, %vm893_vm14  ;;  %vm902_vm4 = vweird.f32 %v9014_v8 }
 0x250   : > { %v888_v11 = vmul.f32 %v7508_v0, %v887_v44 }
 0x252   : > { %v889_v41 = vmul.f32 0.5, %v888_v11  ;;  %v488_v7 = vpop.xlane.xlu2 %487  ;;  %v647_v14 = vpop.xlane.xlu1 %646 }
 0x253   : > { %v535_v50 = vmul.f32 %v8531_v13, %v488_v7  ;;  %v691_v6 = vmul.f32 %v647_v14, %v8531_v13  ;;  %v643_v31 = vpop.xlane.xlu0 %642 }
 0x254   : > { %v890_v45 = vsub.f32 1.5, %v889_v41  ;;  %v689_v18 = vmul.f32 %v643_v31, %v8531_v13 }
 0x255   : > { %v9020_v16 = vpop.eup %7509  ;;  %v9024_v26 = vsub.f32 %v8876_v62, %v535_v50  ;;  %v9028_v17 = vadd.f32 1e-05, %v691_v6 }
 0x256   : > { %v891_v10 = vmul.f32 %v7508_v0, %v890_v45  ;;  %v897_v53 = vmul.f32 %v9020_v16, %v9014_v8  ;;  %v721_v29 = vadd.f32 1e-05, %v689_v18  ;;  %vm903_vm1 = vweird.f32 %v9020_v16 }
 0x257   : > { %v599_v24 = vmul.f32 %v9024_v26, %v9024_v26  ;;  %vm9074_vm5 = vmor %vm902_vm4, %vm903_vm1  ;;  %vm932_vm9 = vweird.f32 %v9028_v17 }
 0x258   : > { %v895_v25 = vsel %vm894_vm0, %v7508_v0, %v891_v10  ;;  %v898_v56 = vmul.f32 %v9020_v16, %v897_v53  ;;  %7511 = vrsqrt.f32 %v721_v29  ;;  %vm912_vm2 = vweird.f32 %v721_v29  ;;  %v9070_v53 = vpop.f32.mrf.mxu0 }
 0x259   : > { %v1071_v27 = vmul.f32 %v895_v25, %v8818_v63  ;;  %654 = vadd.xlane.f32.xlu0 %v599_v24  ;;  %7513 = vrsqrt.f32 %v9028_v17 }
 0x25a   : > { %v490_v62 = vpop.xlane.xlu2 %489  ;;  %v649_v46 = vpop.xlane.xlu1 %648  ;;  %v899_v20 = vmul.f32 0.5, %v898_v56 }
 0x25b   : > { %v1107_v40 = vmul.f32 %v8661_v15, %v1071_v27  ;;  %v536_v2 = vmul.f32 %v8531_v13, %v490_v62  ;;  %v692_v23 = vmul.f32 %v649_v46, %v8531_v13 }
 0x25c   : > { %v645_v30 = vpop.xlane.xlu0 %644  ;;  %v900_v44 = vsub.f32 1.5, %v899_v20 }
 0x25d   : > { %v1143_v63 = vadd.f32 %v8676_v35, %v1107_v40  ;;  %v690_v57 = vmul.f32 %v645_v30, %v8531_v13  ;;  %v9042_v60 = vadd.f32 1e-05, %v692_v23  ;;  %v9045_v36 = vsub.f32 %v8922_v22, %v536_v2 }
 0x25e   : > { %v7512_v59 = vpop.eup %7511  ;;  %v901_v14 = vmul.f32 %v9020_v16, %v900_v44 }
 0x25f   : > { %v9047_v51 = vpack.c.bf16 %v1143_v63, %v1142_v55  ;;  %v9049_v0 = vadd.f32 1e-05, %v690_v57  ;;  %v9051_v4 = vpop.eup %7513  ;;  %v907_v11 = vmul.f32 %v7512_v59, %v721_v29  ;;  %7515 = vrsqrt.f32 %v9042_v60  ;;  %v9100_v29 = vld [vmem:[%s8506_s21 + $0xf8] sm:$0xff]  ;;  %s8249_s21 = sshra.s32 %s6805_s3, 4  ;;  %s8250_s21 = int_to_ptr.hbm [resolvable:$true] %s8249_s21 }
 0x260   : > { %v600_v22 = vmul.f32 %v9045_v36, %v9045_v36  ;;  %v927_v7 = vmul.f32 %v9051_v4, %v9028_v17  ;;  %vm913_vm3 = vweird.f32 %v7512_v59  ;;  %v905_v2 = vsel %vm9074_vm5, %v9020_v16, %v901_v14  ;;  %v9135_v25 = vpop.f32.mrf.mxu0  ;;  %s8251_s1 = scalar_lea.hbm %s8250_s21, 256  ;;  %p8256_p13 = scmp.lt.s32.totalorder %s8250_s21, %s12710_s8 }
 0x261   : > { %1387 = vmatmul.bf16.gmra.mxu0 %v9047_v51  ;;  %1476 = vmatmul.bf16.gmra.mxu1 %v9047_v51  ;;  %7517 = vrsqrt.f32 %v9049_v0  ;;  %v908_v43 = vmul.f32 %v7512_v59, %v907_v11  ;;  %vm9086_vm6 = vmor %vm912_vm2, %vm913_vm3  ;;  %vm942_vm7 = vweird.f32 %v9042_v60  ;;  %vm933_vm10 = vweird.f32 %v9051_v4  ;;  %p8252_p1 = scmp.ne.s32.totalorder %s8250_s21, %s8251_s1 }
 0x262   : > { %v651_v41 = vpop.xlane.xlu2 %650  ;;  %v496_v50 = vpop.xlane.xlu1 %495  ;;  %656 = vadd.xlane.f32.xlu0 %v600_v22  ;;  %v928_v32 = vmul.f32 %v9051_v4, %v927_v7  ;;  %vm922_vm12 = vweird.f32 %v9049_v0  ;;  %vm9168_vm1 = vmor %vm932_vm9, %vm933_vm10 }
 0x263   : > { %v693_v45 = vmul.f32 %v651_v41, %v8531_v13  ;;  %v909_v6 = vmul.f32 0.5, %v908_v43  ;;  %v539_v31 = vmul.f32 %v8531_v13, %v496_v50  ;;  %v1072_v43 = vmul.f32 %v905_v2, %v8836_v49  ;;  %p8253_p3 = pnand %p8252_p1, %p8467_p0 }
 0x264   : > { %v492_v33 = vpop.xlane.xlu0 %491  ;;  %v929_v57 = vmul.f32 0.5, %v928_v32 }
 0x265   : > { %v9066_v10 = vadd.f32 1e-05, %v693_v45  ;;  %v9068_v18 = vpop.eup %7515  ;;  %v910_v24 = vsub.f32 1.5, %v909_v6  ;;  %v537_v56 = vmul.f32 %v8531_v13, %v492_v33  ;;  %v9080_v27 = vsub.f32 %v8955_v42, %v539_v31  ;;  %p8254_p4 = pneg %p8253_p3 }
 0x266   : > { %v937_v40 = vmul.f32 %v9068_v18, %v9042_v60  ;;  %vm943_vm8 = vweird.f32 %v9068_v18 }
 0x267   : > { %v9082_v8 = vpop.eup %7517  ;;  %7519 = vrsqrt.f32 %v9066_v10  ;;  %v911_v42 = vmul.f32 %v7512_v59, %v910_v24  ;;  %v603_v55 = vmul.f32 %v9080_v27, %v9080_v27  ;;  %v9108_v63 = vsub.f32 %v8959_v12, %v537_v56  ;;  %vm9129_vm11 = vmor %vm942_vm7, %vm943_vm8 }
 0x268   : > { %v917_v46 = vmul.f32 %v9082_v8, %v9049_v0  ;;  %v938_v20 = vmul.f32 %v9068_v18, %v937_v40  ;;  %v930_v24 = vsub.f32 1.5, %v929_v57  ;;  %vm923_vm13 = vweird.f32 %v9082_v8 }
 0x269   : > { %v915_v23 = vsel %vm9086_vm6, %v7512_v59, %v911_v42  ;;  %662 = vadd.xlane.f32.xlu2 %v603_v55  ;;  %v601_v22 = vmul.f32 %v9108_v63, %v9108_v63  ;;  %vm952_vm14 = vweird.f32 %v9066_v10  ;;  %vm9154_vm0 = vmor %vm922_vm12, %vm923_vm13 }
 0x26a   : > { %v918_v30 = vmul.f32 %v9082_v8, %v917_v46  ;;  %v9110_v16 = vpop.xlane.xlu2 %652  ;;  %v939_v44 = vmul.f32 0.5, %v938_v20  ;;  %v498_v11 = vpop.xlane.xlu1 %497  ;;  %503 = vadd.xlane.f32.xlu0 %v9100_v29  ;;  %v1073_v14 = vmul.f32 %v915_v23, %v8881_v48  ;;  %v1108_v48 = vmul.f32 %v8661_v15, %v1072_v43 }
 0x26b   : > { %v540_v12 = vmul.f32 %v8531_v13, %v498_v11  ;;  %658 = vadd.xlane.f32.xlu1 %v601_v22  ;;  %v9190_v22 = vld [vmem:[#allocation5] ss:$0 sm:$0xff] }
 0x26c   : > { %v919_v59 = vmul.f32 0.5, %v918_v30  ;;  %v494_v41 = vpop.xlane.xlu0 %493  ;;  %v940_v45 = vsub.f32 1.5, %v939_v44  ;;  %v1109_v60 = vmul.f32 %v8661_v15, %v1073_v14  ;;  %v1144_v15 = vadd.f32 %v8676_v35, %v1108_v48 }
 0x26d   : > { %v7520_v7 = vpop.eup %7519  ;;  %v538_v50 = vmul.f32 %v8531_v13, %v494_v41  ;;  %v9139_v32 = vsub.f32 %v8981_v28, %v540_v12  ;;  %v931_v30 = vmul.f32 %v9051_v4, %v930_v24  ;;  %v1358_v41 = vpop.f32.mrf.mxu0 }
 0x26e   : > { %v920_v49 = vsub.f32 1.5, %v919_v59  ;;  %v947_v6 = vmul.f32 %v7520_v7, %v9066_v10  ;;  %v941_v31 = vmul.f32 %v9068_v18, %v940_v45  ;;  %vm953_vm15 = vweird.f32 %v7520_v7 }
 0x26f   : > { %v9144_v62 = vsub.f32 %v8985_v9, %v538_v50  ;;  %v604_v46 = vmul.f32 %v9139_v32, %v9139_v32  ;;  %v1145_v9 = vadd.f32 %v8676_v35, %v1109_v60  ;;  %vm954_vm2 = vmor %vm952_vm14, %vm953_vm15  ;;  %v935_v10 = vsel %vm9168_vm1, %v9051_v4, %v931_v30  ;;  %v9220_v60 = vld [vmem:[%s12706_s4] sm:$0x7] }
 0x270   : > { %v948_v56 = vmul.f32 %v7520_v7, %v947_v6  ;;  %v945_v40 = vsel %vm9129_vm11, %v9068_v18, %v941_v31  ;;  %v921_v2 = vmul.f32 %v9082_v8, %v920_v49  ;;  %v1075_v4 = vmul.f32 %v935_v10, %v8869_v21  ;;  %v9200_v49 = vld [vmem:[#allocation7] ss:$0 sm:$0xff] }
 0x271   : > { %v602_v18 = vmul.f32 %v9144_v62, %v9144_v62  ;;  %v9175_v57 = vpack.c.bf16 %v1145_v9, %v1144_v15  ;;  %v1076_v44 = vmul.f32 %v945_v40, %v8907_v39  ;;  %v9230_v15 = vperm.slane %v9220_v60, 0 }
 0x272   : > { %v949_v42 = vmul.f32 0.5, %v948_v56  ;;  %v500_v28 = vpop.xlane.xlu2 %499  ;;  %664 = vadd.xlane.f32.xlu0 %v604_v46  ;;  %v925_v11 = vsel %vm9154_vm0, %v9082_v8, %v921_v2  ;;  %v1111_v21 = vmul.f32 %v9190_v22, %v1075_v4  ;;  %v9223_v2 = vperm.slane %v9220_v60, 1 }
 0x273   : > { %v541_v23 = vmul.f32 %v8531_v13, %v500_v28  ;;  %660 = vadd.xlane.f32.xlu1 %v602_v18  ;;  %1392 = vmatmul.bf16.gmra.mxu0 %v9175_v57  ;;  %v1112_v8 = vmul.f32 %v9190_v22, %v1076_v44  ;;  %v1074_v12 = vmul.f32 %v925_v11, %v8903_v34 }
 0x274   : > { %v950_v55 = vsub.f32 1.5, %v949_v42  ;;  %1481 = vmatmul.bf16.gmra.mxu1 %v9175_v57  ;;  %v1147_v24 = vadd.f32 %v9200_v49, %v1111_v21  ;;  %v1356_v18 = vadd.f32 %v9135_v25, %v9230_v15  ;;  %v1354_v30 = vadd.f32 %v9070_v53, %v9230_v15 }
 0x275   : > { %v9182_v17 = vsub.f32 %v8995_v37, %v541_v23  ;;  %v1110_v31 = vmul.f32 %v9190_v22, %v1074_v12  ;;  %v1360_v56 = vpop.f32.mrf.mxu0  ;;  %v1359_v11 = vadd.f32 %v1358_v41, %v9230_v15 }
 0x276   : > { %v951_v43 = vmul.f32 %v7520_v7, %v950_v55  ;;  %v1361_v0 = vadd.f32 %v1360_v56, %v9230_v15  ;;  %v1660_v44 = vpack.c.bf16 %v1356_v18, %v1356_v18  ;;  %v1659_v10 = vpack.c.bf16 %v1354_v30, %v1354_v30 }
 0x277   : > { %v605_v37 = vmul.f32 %v9182_v17, %v9182_v17 }
 0x278   : > { %v955_v59 = vsel %vm954_vm2, %v7520_v7, %v951_v43  ;;  %v1462_v7 = vpop.f32.mrf.mxu1  ;;  %v1759_v53 = vunpack.c.l.b16 %v1659_v10 }
 0x279   : > { %v1077_v39 = vmul.f32 %v955_v59, %v8949_v61  ;;  %v1148_v61 = vadd.f32 %v8676_v35, %v1112_v8  ;;  %v1146_v35 = vadd.f32 %v9200_v49, %v1110_v31  ;;  %v1463_v46 = vadd.f32 %v1462_v7, %v9223_v2 }
 0x27a   : > { %v502_v45 = vpop.xlane.xlu2 %501  ;;  %v1662_v59 = vpack.c.bf16 %v1361_v0, %v1361_v0  ;;  %v1661_v8 = vpack.c.bf16 %v1359_v11, %v1359_v11 }
 0x27b   : > { %v542_v50 = vmul.f32 %v8531_v13, %v502_v45  ;;  %v1113_v14 = vmul.f32 %v9190_v22, %v1077_v39  ;;  %666 = vadd.xlane.f32.xlu1 %v605_v37  ;;  %v1699_v9 = vpack.c.bf16 %v1463_v46, %v1463_v46  ;;  %v1760_v39 = vunpack.c.l.b16 %v1660_v44 }
 0x27c   : > { %v1762_v12 = vunpack.c.l.b16 %v1662_v59  ;;  %v1761_v45 = vunpack.c.l.b16 %v1661_v8 }
 0x27d   : > { %v1149_v6 = vadd.f32 %v9200_v49, %v1113_v14  ;;  %v9204_v34 = vsub.f32 %v9003_v38, %v542_v50  ;;  %v9215_v38 = vpack.c.bf16 %v1147_v24, %v1146_v35  ;;  %v1363_v20 = vpop.f32.mrf.mxu0  ;;  %v1872_v55 = vunpack.c.l.b16 %v1699_v9 }
 0x27e   : > { %v9246_v37 = vpack.c.b16 %v1760_v39, %v1759_v53  ;;  %v1364_v50 = vadd.f32 %v1363_v20, %v9230_v15  ;;  %v9249_v14 = vpack.c.b16 %v1762_v12, %v1761_v45 }
 0x27f   : > { %v9207_v33 = vpack.c.bf16 %v1149_v6, %v1148_v61  ;;  %v606_v48 = vmul.f32 %v9204_v34, %v9204_v34 }
 0x280   : > { %v1464_v40 = vpop.f32.mrf.mxu1  ;;  %12815 = vst [vmem:[#allocation20_spill] sm:$0xff] %v9246_v37  ;;  %v1663_v7 = vpack.c.bf16 %v1364_v50, %v1364_v50 }
 0x281   : > { %1491 = vmatmul.bf16.vlgmr.msra.gmra.mxu2 %v9207_v33  ;;  %668 = vadd.xlane.f32.xlu2 %v606_v48  ;;  %v1465_v42 = vadd.f32 %v1464_v40, %v9223_v2  ;;  %12816 = vst [vmem:[#allocation21_spill] sm:$0xff] %v9249_v14  ;;  %v694_v48 = vmul.f32 %v9110_v16, %v8531_v13 }
 0x282   : > { %v1811_v6 = vunpack.c.l.b16 %v1663_v7 }
 0x283   : > { %1397 = vmatmul.bf16.gmra.mxu0 %v9215_v38  ;;  %v1700_v28 = vpack.c.bf16 %v1465_v42, %v1465_v42  ;;  %v726_v21 = vadd.f32 1e-05, %v694_v48 }
 0x284   : > { %1486 = vmatmul.bf16.gmra.mxu1 %v9215_v38 }
 0x285   : > { %v1873_v23 = vunpack.c.l.b16 %v1700_v28  ;;  %v1365_v25 = vpop.f32.mrf.mxu0  ;;  %7521 = vrsqrt.f32 %v726_v21  ;;  %vm962_vm3 = vweird.f32 %v726_v21 }
 0x286   : > { %v1366_v41 = vadd.f32 %v1365_v25, %v9230_v15 }
 0x287   : > { %v9238_v43 = vpack.c.b16 %v1873_v23, %v1872_v55 }
 0x288   : > { %v1664_v4 = vpack.c.bf16 %v1366_v41, %v1366_v41 }
 0x289   : > { %12814 = vst [vmem:[#allocation19_spill] sm:$0xff] %v9238_v43 }
 0x28a   : > { %v1812_v61 = vunpack.c.l.b16 %v1664_v4 }
 0x28b   : > { %v7522_v35 = vpop.eup %7521 }
 0x28c   : > { %v9255_v31 = vpack.c.b16 %v1812_v61, %v1811_v6  ;;  %v957_v24 = vmul.f32 %v7522_v35, %v726_v21  ;;  %vm963_vm4 = vweird.f32 %v7522_v35 }
 0x28d   : > { %vm964_vm5 = vmor %vm962_vm3, %vm963_vm4 }
 0x28e   : > { %12817 = vst [vmem:[#allocation22_spill] sm:$0xff] %v9255_v31  ;;  %v958_v42 = vmul.f32 %v7522_v35, %v957_v24 }
 0x290   : > { %v959_v28 = vmul.f32 0.5, %v958_v42 }
 0x292   : > { %v960_v20 = vsub.f32 1.5, %v959_v28 }
 0x293   : > { %1402 = vmatmul.bf16.gmra.mxu0 %v9207_v33 }
 0x294   : > { %3022 = vrot.lane.b32.xlu1 %v9238_v43, %s8327_s19  ;;  %v961_v16 = vmul.f32 %v7522_v35, %v960_v20 }
 0x296   : > { %v965_v11 = vsel %vm964_vm5, %v7522_v35, %v961_v16 }
 0x297   : > { %v1078_v41 = vmul.f32 %v965_v11, %v8972_v3 }
 0x299   : > { %4360 = vrot.lane.b32.xlu2 %v9238_v43, %s8328_s25  ;;  %v1114_v3 = vmul.f32 %v9190_v22, %v1078_v41 }
 0x29b   : > { %v1150_v28 = vadd.f32 %v9200_v49, %v1114_v3 }
 0x29c   : > { %2940 = vrot.lane.b32.xlu1 %v9246_v37, %s8327_s19 }
 0x2a1   : > { %4280 = vrot.lane.b32.xlu2 %v9249_v14, %s8328_s25 }
 0x2a9   : > { %2979 = vrot.lane.b32.xlu2 %v9255_v31, %s8327_s19 }
 0x2cc   : > { %v655_v56 = vpop.xlane.xlu0 %654 }
 0x2cd   : > { %v695_v40 = vmul.f32 %v655_v56, %v8531_v13 }
 0x2cf   : > { %v727_v46 = vadd.f32 1e-05, %v695_v40 }
 0x2d1   : > { %7523 = vrsqrt.f32 %v727_v46  ;;  %vm972_vm7 = vweird.f32 %v727_v46 }
 0x2d5   : > { %v657_v18 = vpop.xlane.xlu0 %656 }
 0x2d6   : > { %v696_v30 = vmul.f32 %v657_v18, %v8531_v13 }
 0x2d7   : > { %v7524_v9 = vpop.eup %7523 }
 0x2d8   : > { %v967_v23 = vmul.f32 %v7524_v9, %v727_v46  ;;  %v728_v55 = vadd.f32 1e-05, %v696_v30  ;;  %vm973_vm6 = vweird.f32 %v7524_v9 }
 0x2d9   : > { %vm974_vm8 = vmor %vm972_vm7, %vm973_vm6 }
 0x2da   : > { %v968_v0 = vmul.f32 %v7524_v9, %v967_v23  ;;  %7525 = vrsqrt.f32 %v728_v55  ;;  %vm982_vm10 = vweird.f32 %v728_v55 }
 0x2dc   : > { %v969_v44 = vmul.f32 0.5, %v968_v0  ;;  %v663_v59 = vpop.xlane.xlu2 %662 }
 0x2dd   : > { %v504_v25 = vpop.xlane.xlu0 %503  ;;  %v699_v8 = vmul.f32 %v663_v59, %v8531_v13 }
 0x2de   : > { %v970_v10 = vsub.f32 1.5, %v969_v44  ;;  %v543_v53 = vmul.f32 %v8531_v13, %v504_v25  ;;  %v659_v12 = vpop.xlane.xlu1 %658 }
 0x2df   : > { %v9266_v4 = vadd.f32 1e-05, %v699_v8  ;;  %v697_v7 = vmul.f32 %v659_v12, %v8531_v13 }
 0x2e0   : > { %v971_v39 = vmul.f32 %v7524_v9, %v970_v10  ;;  %v7526_v45 = vpop.eup %7525  ;;  %v9270_v6 = vsub.f32 %v9100_v29, %v543_v53 }
 0x2e1   : > { %v977_v61 = vmul.f32 %v7526_v45, %v728_v55  ;;  %7527 = vrsqrt.f32 %v9266_v4  ;;  %v729_v48 = vadd.f32 1e-05, %v697_v7  ;;  %vm983_vm9 = vweird.f32 %v7526_v45 }
 0x2e2   : > { %v975_v50 = vsel %vm974_vm8, %v7524_v9, %v971_v39  ;;  %v607_v24 = vmul.f32 %v9270_v6, %v9270_v6  ;;  %vm984_vm11 = vmor %vm982_vm10, %vm983_vm9  ;;  %vm1012_vm1 = vweird.f32 %v9266_v4 }
 0x2e3   : > { %v1079_v21 = vmul.f32 %v975_v50, %v9024_v26  ;;  %v978_v35 = vmul.f32 %v7526_v45, %v977_v61  ;;  %7529 = vrsqrt.f32 %v729_v48  ;;  %vm992_vm12 = vweird.f32 %v729_v48 }
 0x2e4   : > { %670 = vadd.xlane.f32.xlu0 %v607_v24 }
 0x2e5   : > { %v979_v56 = vmul.f32 0.5, %v978_v35  ;;  %v1115_v40 = vmul.f32 %v9190_v22, %v1079_v21  ;;  %v665_v29 = vpop.xlane.xlu0 %664 }
 0x2e6   : > { %v661_v46 = vpop.xlane.xlu1 %660  ;;  %v700_v16 = vmul.f32 %v665_v29, %v8531_v13 }
 0x2e7   : > { %v980_v42 = vsub.f32 1.5, %v979_v56  ;;  %v1151_v20 = vadd.f32 %v9200_v49, %v1115_v40  ;;  %v9280_v9 = vpop.eup %7527  ;;  %v698_v26 = vmul.f32 %v661_v46, %v8531_v13 }
 0x2e8   : > { %v1007_v44 = vmul.f32 %v9280_v9, %v9266_v4  ;;  %v9290_v59 = vadd.f32 1e-05, %v700_v16  ;;  %vm1013_vm2 = vweird.f32 %v9280_v9 }
 0x2e9   : > { %v9283_v18 = vpack.c.bf16 %v1151_v20, %v1150_v28  ;;  %v7530_v23 = vpop.eup %7529  ;;  %v730_v30 = vadd.f32 1e-05, %v698_v26  ;;  %v981_v0 = vmul.f32 %v7526_v45, %v980_v42  ;;  %vm1014_vm4 = vmor %vm1012_vm1, %vm1013_vm2  ;;  %vm1775_vm1 = vcmask 261120  }
 0x2ea   : > { %v987_v11 = vmul.f32 %v7530_v23, %v729_v48  ;;  %v1008_v39 = vmul.f32 %v9280_v9, %v1007_v44  ;;  %vm993_vm13 = vweird.f32 %v7530_v23  ;;  %vm1022_vm7 = vweird.f32 %v9290_v59 }
 0x2eb   : > { %1407 = vmatmul.bf16.gmra.mxu0 %v9283_v18  ;;  %1496 = vmatmul.bf16.gmra.mxu2 %v9283_v18  ;;  %7531 = vrsqrt.f32 %v730_v30  ;;  %v985_v25 = vsel %vm984_vm11, %v7526_v45, %v981_v0  ;;  %vm994_vm14 = vmor %vm992_vm12, %vm993_vm13  ;;  %vm1002_vm15 = vweird.f32 %v730_v30 }
 0x2ec   : > { %v988_v10 = vmul.f32 %v7530_v23, %v987_v11  ;;  %7533 = vrsqrt.f32 %v9290_v59  ;;  %v1080_v55 = vmul.f32 %v985_v25, %v9045_v36  ;;  %v1009_v61 = vmul.f32 0.5, %v1008_v39  ;;  %v1467_v25 = vpop.f32.mrf.mxu1 }
 0x2ee   : > { %v989_v8 = vmul.f32 0.5, %v988_v10  ;;  %v667_v53 = vpop.xlane.xlu1 %666  ;;  %v1116_v3 = vmul.f32 %v9190_v22, %v1080_v55  ;;  %v1010_v56 = vsub.f32 1.5, %v1009_v61 }
 0x2ef   : > { %v701_v12 = vmul.f32 %v667_v53, %v8531_v13  ;;  %v7297_v53 = vld [vmem:[#allocation8 + $0xb8] sm:$0xf0] }
 0x2f0   : > { %v990_v41 = vsub.f32 1.5, %v989_v8  ;;  %v1011_v20 = vmul.f32 %v9280_v9, %v1010_v56  ;;  %v7040_v8 = vld [vmem:[#allocation8 + $0xb0] sm:$0xf] }
 0x2f1   : > { %v7532_v50 = vpop.eup %7531  ;;  %v9295_v7 = vadd.f32 1e-05, %v701_v12 }
 0x2f2   : > { %v991_v48 = vmul.f32 %v7530_v23, %v990_v41  ;;  %v997_v21 = vmul.f32 %v7532_v50, %v730_v30  ;;  %vm1003_vm0 = vweird.f32 %v7532_v50  ;;  %v9301_v42 = vpop.eup %7533  ;;  %v1015_v44 = vsel %vm1014_vm4, %v9280_v9, %v1011_v20 }
 0x2f3   : > { %7535 = vrsqrt.f32 %v9295_v7  ;;  %vm1004_vm3 = vmor %vm1002_vm15, %vm1003_vm0  ;;  %v1083_v12 = vmul.f32 %v1015_v44, %v9080_v27  ;;  %v7041_v41 = vor.u32 %v7297_v53, %v7040_v8  ;;  %vm1032_vm5 = vweird.f32 %v9295_v7  ;;  %v6992_v53 = vld [vmem:[#allocation8 + $0x50] sm:$0xf] }
 0x2f4   : > { %v995_v45 = vsel %vm994_vm14, %v7530_v23, %v991_v48  ;;  %v998_v35 = vmul.f32 %v7532_v50, %v997_v21  ;;  %v1017_v23 = vmul.f32 %v9301_v42, %v9290_v59  ;;  %v7028_v48 = vld [vmem:[#allocation8 + $0x98] sm:$0xf]  ;;  %v7294_v21 = vld [vmem:[#allocation8 + $0xa0] sm:$0xf0]  ;;  %vm1023_vm8 = vweird.f32 %v9301_v42 }
 0x2f5   : > { %v1081_v24 = vmul.f32 %v995_v45, %v9108_v63  ;;  %v1152_v63 = vadd.f32 %v9200_v49, %v1116_v3  ;;  %1522 = vmatpush.bf16.msrb.mxu2 %v7041_v41  ;;  %v7029_v9 = vor.u32 %v7294_v21, %v7028_v48  ;;  %vm9343_vm10 = vmor %vm1022_vm7, %vm1023_vm8  ;;  %v7282_v59 = vld [vmem:[#allocation8 + $0x40] sm:$0xf0] }
 0x2f6   : > { %v999_v40 = vmul.f32 0.5, %v998_v35  ;;  %v1018_v11 = vmul.f32 %v9301_v42, %v1017_v23  ;;  %v7016_v35 = vld [vmem:[#allocation8 + $0x80] sm:$0xf] }
 0x2f7   : > { %v1117_v46 = vmul.f32 %v9190_v22, %v1081_v24  ;;  %v7291_v24 = vld [vmem:[#allocation8 + $0x88] sm:$0xf0] }
 0x2f8   : > { %v1000_v36 = vsub.f32 1.5, %v999_v40  ;;  %4278 = vrot.lane.b32.xlu0 %v9246_v37, %s8328_s25  ;;  %v7017_v40 = vor.u32 %v7291_v24, %v7016_v35 }
 0x2f9   : > { %v9308_v29 = vpop.eup %7535  ;;  %v1153_v28 = vadd.f32 %v9200_v49, %v1117_v46  ;;  %1523 = vmatpush.bf16.msrb.mxu2 %v7029_v9 }
 0x2fa   : > { %v1001_v26 = vmul.f32 %v7532_v50, %v1000_v36  ;;  %v1027_v4 = vmul.f32 %v9308_v29, %v9295_v7  ;;  %vm1033_vm6 = vweird.f32 %v9308_v29  ;;  %v7004_v36 = vld [vmem:[#allocation8 + $0x68] sm:$0xf]  ;;  %v669_v7 = vpop.xlane.xlu2 %668 }
 0x2fb   : > { %v9317_v30 = vpack.c.bf16 %v1153_v28, %v1152_v63  ;;  %v7288_v63 = vld [vmem:[#allocation8 + $0x70] sm:$0xf0]  ;;  %v9335_v28 = vpop.f32.mrf.mxu0  ;;  %vm9337_vm9 = vmor %vm1032_vm5, %vm1033_vm6 }
 0x2fc   : > { %v1005_v16 = vsel %vm1004_vm3, %v7532_v50, %v1001_v26  ;;  %v1028_v0 = vmul.f32 %v9308_v29, %v1027_v4  ;;  %v1019_v50 = vmul.f32 0.5, %v1018_v11  ;;  %v1469_v26 = vpop.f32.mrf.mxu1  ;;  %v7005_v11 = vor.u32 %v7288_v63, %v7004_v36 }
 0x2fd   : > { %1412 = vmatmul.bf16.gmra.mxu0 %v9317_v30  ;;  %1501 = vmatmul.bf16.gmra.mxu2 %v9317_v30  ;;  %v1082_v10 = vmul.f32 %v1005_v16, %v9144_v62  ;;  %v1119_v62 = vmul.f32 %v9190_v22, %v1083_v12  ;;  %v7285_v12 = vld [vmem:[#allocation8 + $0x58] sm:$0xf0] }
 0x2fe   : > { %v1029_v39 = vmul.f32 0.5, %v1028_v0  ;;  %v1020_v3 = vsub.f32 1.5, %v1019_v50  ;;  %1524 = vmatpush.bf16.msrb.mxu2 %v7017_v40  ;;  %v1468_v50 = vadd.f32 %v1467_v25, %v9223_v2 }
 0x2ff   : > { %v1118_v61 = vmul.f32 %v9190_v22, %v1082_v10  ;;  %v1155_v20 = vadd.f32 %v9200_v49, %v1119_v62 }
 0x300   : > { %v1030_v45 = vsub.f32 1.5, %v1029_v39  ;;  %v1021_v23 = vmul.f32 %v9301_v42, %v1020_v3  ;;  %v1470_v39 = vadd.f32 %v1469_v26, %v9223_v2  ;;  %v1701_v24 = vpack.c.bf16 %v1468_v50, %v1468_v50 }
 0x301   : > { %v1154_v56 = vadd.f32 %v9200_v49, %v1118_v61 }
 0x302   : > { %v1031_v46 = vmul.f32 %v9308_v29, %v1030_v45  ;;  %v1025_v41 = vsel %vm9343_vm10, %v9301_v42, %v1021_v23  ;;  %1525 = vmatpush.bf16.msrb.mxu2 %v7005_v11  ;;  %v1702_v21 = vpack.c.bf16 %v1470_v39, %v1470_v39  ;;  %v1874_v62 = vunpack.c.l.b16 %v1701_v24  ;;  %v7279_v11 = vld [vmem:[#allocation8 + $0x28] sm:$0xf0]  ;;  %v7276_v24 = vld [vmem:[#allocation8 + $0x10] sm:$0xf0] }
 0x303   : > { %v9347_v0 = vpack.c.bf16 %v1155_v20, %v1154_v56  ;;  %v1084_v9 = vmul.f32 %v1025_v41, %v9139_v32  ;;  %v9364_v35 = vpop.f32.mrf.mxu0  ;;  %v702_v20 = vmul.f32 %v669_v7, %v8531_v13 }
 0x304   : > { %v1492_v55 = vpop.f32.mrf.mxu2  ;;  %v1035_v10 = vsel %vm9337_vm9, %v9308_v29, %v1031_v46  ;;  %v6993_v29 = vor.u32 %v7285_v12, %v6992_v53 }
 0x305   : > { %v1493_v27 = vadd.f32 %v1492_v55, %v9223_v2  ;;  %v1085_v48 = vmul.f32 %v1035_v10, %v9182_v17  ;;  %v1875_v17 = vunpack.c.l.b16 %v1702_v21  ;;  %v1120_v25 = vmul.f32 %v9190_v22, %v1084_v9  ;;  %v6956_v9 = vld [vmem:[#allocation8 + $0x8] sm:$0xf] }
 0x306   : > { %1526 = vmatpush.bf16.msrb.mxu2 %v6993_v29  ;;  %v734_v23 = vadd.f32 1e-05, %v702_v20 }
 0x307   : > { %v1711_v16 = vpack.c.bf16 %v1493_v27, %v1493_v27  ;;  %v1121_v42 = vmul.f32 %v9190_v22, %v1085_v48  ;;  %v9373_v27 = vpack.c.b16 %v1875_v17, %v1874_v62  ;;  %v1156_v32 = vadd.f32 %v9200_v49, %v1120_v25 }
 0x308   : > { %7537 = vrsqrt.f32 %v734_v23  ;;  %vm1042_vm11 = vweird.f32 %v734_v23 }
 0x309   : > { %v2025_v55 = vunpack.c.l.b16 %v1711_v16  ;;  %v1157_v3 = vadd.f32 %v9200_v49, %v1121_v42  ;;  %12823 = vst [vmem:[#allocation24_spill] sm:$0xff] %v9373_v27  ;;  %v6968_v16 = vld [vmem:[#allocation8 + $0x20] sm:$0xf]  ;;  %v6957_v42 = vor.u32 %v7276_v24, %v6956_v9 }
 0x30b   : > { %v9376_v56 = vpack.c.bf16 %v1157_v3, %v1156_v32  ;;  %v9382_v40 = vpop.f32.mrf.mxu0 }
 0x30c   : > { %v1494_v4 = vpop.f32.mrf.mxu2 }
 0x30d   : > { %v1495_v44 = vadd.f32 %v1494_v4, %v9223_v2  ;;  %1417 = vmatmul.bf16.gmra.mxu0 %v9347_v0  ;;  %1506 = vmatmul.bf16.gmra.mxu2 %v9347_v0  ;;  %v6980_v4 = vld [vmem:[#allocation8 + $0x38] sm:$0xf] }
 0x30e   : > { %v7538_v39 = vpop.eup %7537 }
 0x30f   : > { %v1712_v8 = vpack.c.bf16 %v1495_v44, %v1495_v44  ;;  %v6981_v44 = vor.u32 %v7282_v59, %v6980_v4  ;;  %v1037_v53 = vmul.f32 %v7538_v39, %v734_v23  ;;  %vm1043_vm12 = vweird.f32 %v7538_v39 }
 0x310   : > { %vm1044_vm13 = vmor %vm1042_vm11, %vm1043_vm12 }
 0x311   : > { %v2026_v61 = vunpack.c.l.b16 %v1712_v8  ;;  %1527 = vmatpush.bf16.msrb.mxu2 %v6981_v44  ;;  %v6969_v8 = vor.u32 %v7279_v11, %v6968_v16  ;;  %v1038_v41 = vmul.f32 %v7538_v39, %v1037_v53 }
 0x313   : > { %v9361_v45 = vpack.c.b16 %v2026_v61, %v2025_v55  ;;  %v9388_v46 = vpop.f32.mrf.mxu0  ;;  %v1472_v61 = vpop.f32.mrf.mxu1  ;;  %v1039_v29 = vmul.f32 0.5, %v1038_v41 }
 0x315   : > { %12822 = vst [vmem:[#allocation23_spill] sm:$0xff] %v9361_v45  ;;  %3139 = vrot.lane.b32.xlu1 %v9361_v45, %s8327_s19  ;;  %4477 = vrot.lane.b32.xlu0 %v9361_v45, %s8328_s25  ;;  %v1040_v21 = vsub.f32 1.5, %v1039_v29 }
 0x316   : > { %1528 = vmatpush.bf16.msrb.mxu2 %v6969_v8 }
 0x317   : > { %v1041_v62 = vmul.f32 %v7538_v39, %v1040_v21 }
 0x31a   : > { %1529 = vmatpush.bf16.msrb.mxu2 %v6957_v42 }
 0x31b   : > { %v9390_v36 = vpop.f32.mrf.mxu0  ;;  %v1474_v32 = vpop.f32.mrf.mxu1 }
 0x31c   : > { %v1475_v42 = vadd.f32 %v1474_v32, %v9223_v2 }
 0x31d   : > { %2942 = vrot.lane.b32.xlu1 %v9249_v14, %s8327_s19  ;;  %3024 = vrot.lane.b32.xlu0 %v9373_v27, %s8327_s19 }
 0x31e   : > { %1422 = vmatmul.bf16.gmra.mxu0 %v9376_v56  ;;  %1511 = vmatmul.bf16.gmra.mxu2 %v9376_v56 }
 0x323   : > { %v9392_v63 = vpop.f32.mrf.mxu0  ;;  %v1477_v11 = vpop.f32.mrf.mxu1 }
 0x325   : > { %4362 = vrot.lane.b32.xlu0 %v9373_v27, %s8328_s25 }
 0x32b   : > { %v9395_v26 = vpop.f32.mrf.mxu0  ;;  %v1479_v9 = vpop.f32.mrf.mxu1 }
 0x333   : > { %v9397_v10 = vpop.f32.mrf.mxu0 }
 0x33b   : > { %v9399_v12 = vpop.f32.mrf.mxu0 }
 0x343   : > { %v9402_v17 = vpop.f32.mrf.mxu0 }
 0x34b   : > { %v9405_v16 = vpop.f32.mrf.mxu0 }
 0x353   : > { %v9415_v21 = vpop.f32.mrf.mxu0 }
 0x357   : > { %v671_v50 = vpop.xlane.xlu0 %670 }
 0x358   : > { %v703_v55 = vmul.f32 %v671_v50, %v8531_v13  ;;  %v1045_v13 = vsel %vm1044_vm13, %v7538_v39, %v1041_v62 }
 0x359   : > { %v1086_v59 = vmul.f32 %v1045_v13, %v9204_v34 }
 0x35a   : > { %v735_v48 = vadd.f32 1e-05, %v703_v55 }
 0x35b   : > { %v1122_v41 = vmul.f32 %v9190_v22, %v1086_v59 }
 0x35c   : > { %7539 = vrsqrt.f32 %v735_v48  ;;  %vm1052_vm15 = vweird.f32 %v735_v48 }
 0x35d   : > { %v1158_v55 = vadd.f32 %v9200_v49, %v1122_v41 }
 0x362   : > { %v7540_v25 = vpop.eup %7539 }
 0x363   : > { %v1047_v3 = vmul.f32 %v7540_v25, %v735_v48  ;;  %vm1053_vm14 = vweird.f32 %v7540_v25 }
 0x364   : > { %vm1054_vm0 = vmor %vm1052_vm15, %vm1053_vm14 }
 0x365   : > { %v1048_v7 = vmul.f32 %v7540_v25, %v1047_v3  ;;  %v1473_v3 = vadd.f32 %v1472_v61, %v9223_v2 }
 0x367   : > { %v1049_v20 = vmul.f32 0.5, %v1048_v7  ;;  %v1478_v7 = vadd.f32 %v1477_v11, %v9223_v2  ;;  %v1703_v59 = vpack.c.bf16 %v1473_v3, %v1473_v3 }
 0x369   : > { %v1050_v4 = vsub.f32 1.5, %v1049_v20  ;;  %v1704_v20 = vpack.c.bf16 %v1475_v42, %v1475_v42  ;;  %v1705_v32 = vpack.c.bf16 %v1478_v7, %v1478_v7  ;;  %v1923_v61 = vunpack.c.l.b16 %v1703_v59  ;;  %v1482_v42 = vpop.f32.mrf.mxu1 }
 0x36b   : > { %v1051_v44 = vmul.f32 %v7540_v25, %v1050_v4  ;;  %v1925_v41 = vunpack.c.l.b16 %v1705_v32 }
 0x36d   : > { %v1055_v23 = vsel %vm1054_vm0, %v7540_v25, %v1051_v44  ;;  %v1480_v25 = vadd.f32 %v1479_v9, %v9223_v2  ;;  %v9430_v44 = vpop.f32.mrf.mxu0 }
 0x36e   : > { %v1497_v8 = vpop.f32.mrf.mxu2  ;;  %v1087_v53 = vmul.f32 %v1055_v23, %v9270_v6 }
 0x36f   : > { %v1498_v39 = vadd.f32 %v1497_v8, %v9223_v2  ;;  %v1706_v4 = vpack.c.bf16 %v1480_v25, %v1480_v25  ;;  %v1924_v8 = vunpack.c.l.b16 %v1704_v20 }
 0x370   : > { %v1123_v50 = vmul.f32 %v9190_v22, %v1087_v53 }
 0x371   : > { %v1713_v24 = vpack.c.bf16 %v1498_v39, %v1498_v39  ;;  %v1926_v53 = vunpack.c.l.b16 %v1706_v4  ;;  %v9432_v11 = vpack.c.b16 %v1924_v8, %v1923_v61 }
 0x372   : > { %v1159_v34 = vadd.f32 %v9200_v49, %v1123_v50 }
 0x373   : > { %v2027_v62 = vunpack.c.l.b16 %v1713_v24  ;;  %12825 = vst [vmem:[#allocation26_spill] sm:$0xff] %v9432_v11  ;;  %v9434_v50 = vpack.c.b16 %v1926_v53, %v1925_v41 }
 0x374   : > { %v9413_v29 = vpack.c.bf16 %v1159_v34, %v1158_v55 }
 0x375   : > { %12826 = vst [vmem:[#allocation27_spill] sm:$0xff] %v9434_v50  ;;  %v9443_v34 = vpop.f32.mrf.mxu0 }
 0x376   : > { %v1499_v48 = vpop.f32.mrf.mxu2  ;;  %1427 = vmatmul.bf16.gmra.mxu0 %v9413_v29  ;;  %1516 = vmatmul.bf16.gmra.mxu2 %v9413_v29 }
 0x377   : > { %v1500_v6 = vadd.f32 %v1499_v48, %v9223_v2 }
 0x379   : > { %v1714_v22 = vpack.c.bf16 %v1500_v6, %v1500_v6 }
 0x37b   : > { %v2028_v49 = vunpack.c.l.b16 %v1714_v22 }
 0x37d   : > { %v9424_v13 = vpack.c.b16 %v2028_v49, %v2027_v62  ;;  %v1371_v62 = vadd.f32 %v9364_v35, %v9230_v15  ;;  %v1369_v49 = vadd.f32 %v9335_v28, %v9230_v15  ;;  %v9456_v3 = vpop.f32.mrf.mxu0  ;;  %v1484_v35 = vpop.f32.mrf.mxu1 }
 0x37e   : > { %v1485_v53 = vadd.f32 %v1484_v35, %v9223_v2 }
 0x37f   : > { %12824 = vst [vmem:[#allocation25_spill] sm:$0xff] %v9424_v13  ;;  %4479 = vrot.lane.b32.xlu1 %v9424_v13, %s8328_s25  ;;  %3141 = vrot.lane.b32.xlu0 %v9424_v13, %s8327_s19  ;;  %v1666_v7 = vpack.c.bf16 %v1371_v62, %v1371_v62  ;;  %v1665_v4 = vpack.c.bf16 %v1369_v49, %v1369_v49 }
 0x380   : > { %v1502_v23 = vpop.f32.mrf.mxu2 }
 0x381   : > { %v1503_v39 = vadd.f32 %v1502_v23, %v9223_v2  ;;  %v1814_v32 = vunpack.c.l.b16 %v1666_v7  ;;  %v1813_v28 = vunpack.c.l.b16 %v1665_v4 }
 0x383   : > { %v1715_v48 = vpack.c.bf16 %v1503_v39, %v1503_v39  ;;  %v9467_v41 = vpack.c.b16 %v1814_v32, %v1813_v28 }
 0x385   : > { %v2076_v6 = vunpack.c.l.b16 %v1715_v48  ;;  %12828 = vst [vmem:[#allocation29_spill] sm:$0xff] %v9467_v41  ;;  %v9470_v39 = vpop.f32.mrf.mxu0 }
 0x386   : > { %1441 = vmatmul.bf16.vlgmr.msrb.gmra.mxu0 %v8714_v58  ;;  %1530 = vmatmul.bf16.vlgmr.msrb.gmra.mxu2 %v8714_v58 }
 0x387   : > { %3061 = vrot.lane.b32.xlu1 %v9432_v11, %s8327_s19  ;;  %4401 = vrot.lane.b32.xlu0 %v9434_v50, %s8328_s25 }
 0x388   : > { %v1504_v55 = vpop.f32.mrf.mxu2 }
 0x389   : > { %v1505_v9 = vadd.f32 %v1504_v55, %v9223_v2 }
 0x38b   : > { %v1716_v24 = vpack.c.bf16 %v1505_v9, %v1505_v9  ;;  %v1708_v9 = vpack.c.bf16 %v1485_v53, %v1485_v53 }
 0x38d   : > { %v2077_v22 = vunpack.c.l.b16 %v1716_v24  ;;  %v1975_v62 = vunpack.c.l.b16 %v1708_v9  ;;  %v1381_v9 = vadd.f32 %v9392_v63, %v9230_v15 }
 0x38f   : > { %v9446_v25 = vpack.c.b16 %v2077_v22, %v2076_v6  ;;  %4317 = vrot.lane.b32.xlu1 %v9255_v31, %s8328_s25  ;;  %v1376_v22 = vadd.f32 %v9388_v46, %v9230_v15 }
 0x390   : > { %v1507_v58 = vpop.f32.mrf.mxu2 }
 0x391   : > { %12827 = vst [vmem:[#allocation28_spill] sm:$0xff] %v9446_v25  ;;  %3178 = vrot.lane.b32.xlu2 %v9446_v25, %s8327_s19  ;;  %v1508_v20 = vadd.f32 %v1507_v58, %v9223_v2  ;;  %v1668_v49 = vpack.c.bf16 %v1376_v22, %v1376_v22  ;;  %v1670_v22 = vpack.c.bf16 %v1381_v9, %v1381_v9 }
 0x393   : > { %v1717_v23 = vpack.c.bf16 %v1508_v20, %v1508_v20  ;;  %v9484_v20 = vpop.f32.mrf.mxu0  ;;  %v1863_v32 = vunpack.c.l.b16 %v1668_v49  ;;  %v1865_v63 = vunpack.c.l.b16 %v1670_v22  ;;  %v1389_v22 = vadd.f32 %v9399_v12, %v9230_v15 }
 0x395   : > { %v2078_v55 = vunpack.c.l.b16 %v1717_v23 }
 0x396   : > { %1446 = vmatmul.bf16.gmra.mxu0 %v8764_v1  ;;  %1535 = vmatmul.bf16.gmra.mxu2 %v8764_v1  ;;  %v1483_v1 = vadd.f32 %v1482_v42, %v9223_v2  ;;  %v1374_v42 = vadd.f32 %v9382_v40, %v9230_v15 }
 0x397   : > { %4399 = vrot.lane.b32.xlu1 %v9432_v11, %s8328_s25 }
 0x398   : > { %v1509_v59 = vpop.f32.mrf.mxu2  ;;  %v1707_v58 = vpack.c.bf16 %v1483_v1, %v1483_v1  ;;  %v1667_v46 = vpack.c.bf16 %v1374_v42, %v1374_v42 }
 0x399   : > { %v1510_v8 = vadd.f32 %v1509_v59, %v9223_v2  ;;  %4516 = vrot.lane.b32.xlu2 %v9446_v25, %s8328_s25 }
 0x39a   : > { %v1974_v7 = vunpack.c.l.b16 %v1707_v58 }
 0x39b   : > { %v1718_v61 = vpack.c.bf16 %v1510_v8, %v1510_v8  ;;  %v1862_v8 = vunpack.c.l.b16 %v1667_v46 }
 0x39c   : > { %v9489_v35 = vpack.c.b16 %v1975_v62, %v1974_v7 }
 0x39d   : > { %v2079_v48 = vunpack.c.l.b16 %v1718_v61  ;;  %v9498_v53 = vpack.c.b16 %v1863_v32, %v1862_v8 }
 0x39e   : > { %12830 = vst [vmem:[#allocation31_spill] sm:$0xff] %v9489_v35 }
 0x39f   : > { %v9472_v24 = vpack.c.b16 %v2079_v48, %v2078_v55  ;;  %2981 = vrot.lane.b32.xlu1 %v9467_v41, %s8327_s19  ;;  %12831 = vst [vmem:[#allocation32_spill] sm:$0xff] %v9498_v53  ;;  %v9500_v55 = vpop.f32.mrf.mxu0 }
 0x3a1   : > { %12829 = vst [vmem:[#allocation30_spill] sm:$0xff] %v9472_v24  ;;  %v1512_v6 = vpop.f32.mrf.mxu2  ;;  %3063 = vrot.lane.b32.xlu2 %v9434_v50, %s8327_s19  ;;  %4518 = vrot.lane.b32.xlu0 %v9472_v24, %s8328_s25 }
 0x3a2   : > { %v1513_v4 = vadd.f32 %v1512_v6, %v9223_v2  ;;  %v1379_v6 = vadd.f32 %v9390_v36, %v9230_v15  ;;  %v1386_v36 = vadd.f32 %v9397_v10, %v9230_v15 }
 0x3a4   : > { %v1719_v40 = vpack.c.bf16 %v1513_v4, %v1513_v4  ;;  %v1669_v42 = vpack.c.bf16 %v1379_v6, %v1379_v6  ;;  %v1672_v32 = vpack.c.bf16 %v1386_v36, %v1386_v36  ;;  %v1391_v6 = vadd.f32 %v9402_v17, %v9230_v15 }
 0x3a6   : > { %1451 = vmatmul.bf16.gmra.mxu0 %v8783_v54  ;;  %1540 = vmatmul.bf16.gmra.mxu2 %v8783_v54  ;;  %v1487_v54 = vpop.f32.mrf.mxu1  ;;  %v2127_v61 = vunpack.c.l.b16 %v1719_v40  ;;  %v1864_v7 = vunpack.c.l.b16 %v1669_v42 }
 0x3a7   : > { %3180 = vrot.lane.b32.xlu1 %v9472_v24, %s8327_s19  ;;  %v9519_v49 = vpop.f32.mrf.mxu0  ;;  %v1488_v4 = vadd.f32 %v1487_v54, %v9223_v2 }
 0x3a8   : > { %v9526_v46 = vpack.c.b16 %v1865_v63, %v1864_v7 }
 0x3a9   : > { %v1514_v59 = vpop.f32.mrf.mxu2  ;;  %4319 = vrot.lane.b32.xlu2 %v9467_v41, %s8328_s25  ;;  %4438 = vrot.lane.b32.xlu0 %v9489_v35, %s8328_s25  ;;  %v1709_v40 = vpack.c.bf16 %v1488_v4, %v1488_v4 }
 0x3aa   : > { %v1515_v23 = vadd.f32 %v1514_v59, %v9223_v2  ;;  %12833 = vst [vmem:[#allocation34_spill] sm:$0xff] %v9526_v46 }
 0x3ab   : > { %v1976_v10 = vunpack.c.l.b16 %v1709_v40 }
 0x3ac   : > { %v1720_v28 = vpack.c.bf16 %v1515_v23, %v1515_v23 }
 0x3ae   : > { %v2128_v1 = vunpack.c.l.b16 %v1720_v28  ;;  %v1489_v58 = vpop.f32.mrf.mxu1  ;;  %v1914_v28 = vunpack.c.l.b16 %v1672_v32 }
 0x3af   : > { %3018 = vrot.lane.b32.xlu1 %v9498_v53, %s8327_s19  ;;  %v1490_v62 = vadd.f32 %v1489_v58, %v9223_v2  ;;  %v1673_v58 = vpack.c.bf16 %v1389_v22, %v1389_v22 }
 0x3b0   : > { %v9502_v48 = vpack.c.b16 %v2128_v1, %v2127_v61  ;;  %v9534_v61 = vpop.f32.mrf.mxu0 }
 0x3b1   : > { %3100 = vrot.lane.b32.xlu2 %v9489_v35, %s8327_s19  ;;  %v1710_v59 = vpack.c.bf16 %v1490_v62, %v1490_v62  ;;  %v1915_v62 = vunpack.c.l.b16 %v1673_v58 }
 0x3b2   : > { %12832 = vst [vmem:[#allocation33_spill] sm:$0xff] %v9502_v48  ;;  %3217 = vrot.lane.b32.xlu0 %v9502_v48, %s8327_s19 }
 0x3b3   : > { %v1977_v8 = vunpack.c.l.b16 %v1710_v59 }
 0x3b5   : > { %v9536_v1 = vpack.c.b16 %v1977_v8, %v1976_v10 }
 0x3b6   : > { %1456 = vmatmul.bf16.gmra.mxu0 %v8845_v52  ;;  %1545 = vmatmul.bf16.gmra.mxu2 %v8845_v52  ;;  %v1384_v52 = vadd.f32 %v9395_v26, %v9230_v15 }
 0x3b7   : > { %4356 = vrot.lane.b32.xlu1 %v9498_v53, %s8328_s25  ;;  %12834 = vst [vmem:[#allocation35_spill] sm:$0xff] %v9536_v1 }
 0x3b8   : > { %v1671_v23 = vpack.c.bf16 %v1384_v52, %v1384_v52  ;;  %v9545_v9 = vpop.f32.mrf.mxu0 }
 0x3ba   : > { %4555 = vrot.lane.b32.xlu0 %v9502_v48, %s8328_s25  ;;  %v1913_v54 = vunpack.c.l.b16 %v1671_v23 }
 0x3bc   : > { %v9539_v26 = vpack.c.b16 %v1914_v28, %v1913_v54 }
 0x3be   : > { %12835 = vst [vmem:[#allocation36_spill] sm:$0xff] %v9539_v26 }
 0x3bf   : > { %4358 = vrot.lane.b32.xlu1 %v9526_v46, %s8328_s25 }
 0x3c0   : > { %v9554_v42 = vpop.f32.mrf.mxu0 }
 0x3c2   : > { %3020 = vrot.lane.b32.xlu0 %v9526_v46, %s8327_s19 }
 0x3c6   : > { %1550 = vmatmul.bf16.gmra.mxu2 %v8932_v47  ;;  %v1674_v47 = vpack.c.bf16 %v1391_v6, %v1391_v6 }
 0x3c7   : > { %4440 = vrot.lane.b32.xlu1 %v9536_v1, %s8328_s25 }
 0x3c8   : > { %v1916_v63 = vunpack.c.l.b16 %v1674_v47  ;;  %v9562_v17 = vpop.f32.mrf.mxu0 }
 0x3ca   : > { %3057 = vrot.lane.b32.xlu0 %v9539_v26, %s8327_s19  ;;  %v9558_v7 = vpack.c.b16 %v1916_v63, %v1915_v62 }
 0x3cc   : > { %12836 = vst [vmem:[#allocation37_spill] sm:$0xff] %v9558_v7 }
 0x3cf   : > { %3102 = vrot.lane.b32.xlu1 %v9536_v1, %s8327_s19 }
 0x3d0   : > { %v9565_v12 = vpop.f32.mrf.mxu0 }
 0x3d6   : > { %1555 = vmatmul.bf16.gmra.mxu2 %v8978_v19 }
 0x3d7   : > { %4395 = vrot.lane.b32.xlu1 %v9539_v26, %s8328_s25 }
 0x3df   : > { %4397 = vrot.lane.b32.xlu1 %v9558_v7, %s8328_s25 }
 0x3e6   : > { %1560 = vmatmul.bf16.gmra.mxu2 %v9005_v5 }
 0x3f3   : > { %v9567_v19 = vpop.f32.mrf.mxu0 }
 0x3f6   : > { %1565 = vmatmul.bf16.gmra.mxu2 %v9047_v51  ;;  %v9578_v51 = vperm.slane %v9220_v60, 2 }
 0x3f9   : > { %v1517_v36 = vpop.f32.mrf.mxu2 }
 0x3fa   : > { %v1518_v52 = vadd.f32 %v1517_v36, %v9223_v2 }
 0x3fb   : > { %v9570_v4 = vpop.f32.mrf.mxu0 }
 0x3fc   : > { %v1721_v32 = vpack.c.bf16 %v1518_v52, %v1518_v52 }
 0x3fe   : > { %v2129_v28 = vunpack.c.l.b16 %v1721_v32 }
 0x401   : > { %v1519_v59 = vpop.f32.mrf.mxu2 }
 0x402   : > { %v1520_v40 = vadd.f32 %v1519_v59, %v9223_v2 }
 0x403   : > { %v1442_v23 = vpop.f32.mrf.mxu0 }
 0x404   : > { %v1722_v8 = vpack.c.bf16 %v1520_v40, %v1520_v40  ;;  %v1396_v40 = vadd.f32 %v9415_v21, %v9230_v15 }
 0x406   : > { %v2130_v10 = vunpack.c.l.b16 %v1722_v8  ;;  %1570 = vmatmul.bf16.gmra.mxu2 %v9175_v57 }
 0x408   : > { %v9575_v5 = vpack.c.b16 %v2130_v10, %v2129_v28 }
 0x409   : > { %v1531_v54 = vpop.f32.mrf.mxu2 }
 0x40a   : > { %12837 = vst [vmem:[#allocation38_spill] sm:$0xff] %v9575_v5  ;;  %3219 = vrot.lane.b32.xlu2 %v9575_v5, %s8327_s19  ;;  %v1532_v22 = vadd.f32 %v1531_v54, %v9578_v51 }
 0x40b   : > { %v1444_v6 = vpop.f32.mrf.mxu0 }
 0x40c   : > { %v1723_v58 = vpack.c.bf16 %v1532_v22, %v1532_v22  ;;  %v1445_v28 = vadd.f32 %v1444_v6, %v9223_v2  ;;  %v1443_v22 = vadd.f32 %v1442_v23, %v9223_v2 }
 0x40e   : > { %v2562_v36 = vunpack.c.l.b16 %v1723_v58 }
 0x411   : > { %v1533_v47 = vpop.f32.mrf.mxu2 }
 0x412   : > { %v1534_v63 = vadd.f32 %v1533_v47, %v9578_v51  ;;  %4557 = vrot.lane.b32.xlu2 %v9575_v5, %s8328_s25 }
 0x413   : > { %v1447_v57 = vpop.f32.mrf.mxu0 }
 0x414   : > { %v1724_v62 = vpack.c.bf16 %v1534_v63, %v1534_v63  ;;  %v1448_v59 = vadd.f32 %v1447_v57, %v9223_v2  ;;  %v1676_v63 = vpack.c.bf16 %v1396_v40, %v1396_v40  ;;  %v1692_v57 = vpack.c.bf16 %v1445_v28, %v1445_v28 }
 0x416   : > { %v2563_v52 = vunpack.c.l.b16 %v1724_v62  ;;  %1575 = vmatmul.bf16.gmra.mxu2 %v9215_v38  ;;  %v1693_v10 = vpack.c.bf16 %v1448_v59, %v1448_v59  ;;  %v1394_v38 = vadd.f32 %v9405_v16, %v9230_v15  ;;  %v1965_v16 = vunpack.c.l.b16 %v1676_v63 }
 0x417   : > { %v1770_v40 = vunpack.c.l.b16 %v1692_v57 }
 0x418   : > { %v9587_v60 = vpack.c.b16 %v2563_v52, %v2562_v36  ;;  %v1771_v62 = vunpack.c.l.b16 %v1693_v10  ;;  %v1675_v52 = vpack.c.bf16 %v1394_v38, %v1394_v38 }
 0x419   : > { %v1536_v32 = vpop.f32.mrf.mxu2 }
 0x41a   : > { %12838 = vst [vmem:[#allocation39_spill] sm:$0xff] %v9587_v60  ;;  %4984 = vrot.lane.b32.xlu2 %v9587_v60, %s8328_s25  ;;  %v1537_v47 = vadd.f32 %v1536_v32, %v9578_v51  ;;  %v1691_v60 = vpack.c.bf16 %v1443_v22, %v1443_v22  ;;  %v1401_v32 = vadd.f32 %v9443_v34, %v9230_v15  ;;  %v1964_v10 = vunpack.c.l.b16 %v1675_v52 }
 0x41b   : > { %v1449_v8 = vpop.f32.mrf.mxu0 }
 0x41c   : > { %v1450_v54 = vadd.f32 %v1449_v8, %v9223_v2  ;;  %v1725_v48 = vpack.c.bf16 %v1537_v47, %v1537_v47  ;;  %v1769_v38 = vunpack.c.l.b16 %v1691_v60  ;;  %v1678_v63 = vpack.c.bf16 %v1401_v32, %v1401_v32 }
 0x41e   : > { %v1694_v58 = vpack.c.bf16 %v1450_v54, %v1450_v54  ;;  %v1399_v54 = vadd.f32 %v9430_v44, %v9230_v15  ;;  %v2564_v22 = vunpack.c.l.b16 %v1725_v48  ;;  %v1967_v48 = vunpack.c.l.b16 %v1678_v63 }
 0x420   : > { %v1772_v36 = vunpack.c.l.b16 %v1694_v58  ;;  %v9612_v58 = vpack.c.b16 %v1965_v16, %v1964_v10 }
 0x421   : > { %v1538_v21 = vpop.f32.mrf.mxu2 }
 0x422   : > { %v9600_v6 = vpack.c.b16 %v1772_v36, %v1771_v62  ;;  %v1539_v59 = vadd.f32 %v1538_v21, %v9578_v51  ;;  %3059 = vrot.lane.b32.xlu2 %v9558_v7, %s8327_s19  ;;  %12840 = vst [vmem:[#allocation41_spill] sm:$0xff] %v9612_v58  ;;  %v9614_v62 = vpack.c.b16 %v1770_v40, %v1769_v38 }
 0x423   : > { %v1452_v23 = vpop.f32.mrf.mxu0  ;;  %v1677_v36 = vpack.c.bf16 %v1399_v54, %v1399_v54 }
 0x424   : > { %12839 = vst [vmem:[#allocation40_spill] sm:$0xff] %v9600_v6  ;;  %v1726_v8 = vpack.c.bf16 %v1539_v59, %v1539_v59  ;;  %v1786_v28 = vsel %vm1775_vm1, %v9600_v6, 0 }
 0x425   : > { %1794 = vmatpush.bf16.xpose.msra.mxu3 %v1786_v28  ;;  %12841 = vst [vmem:[#allocation42_spill] sm:$0xff] %v9614_v62  ;;  %v1966_v60 = vunpack.c.l.b16 %v1677_v36 }
 0x426   : > { %v2565_v47 = vunpack.c.l.b16 %v1726_v8  ;;  %1580 = vmatmul.bf16.gmra.mxu2 %v9207_v33  ;;  %v1783_v33 = vsel %vm1775_vm1, %v9614_v62, 0 }
 0x427   : > { %v9625_v21 = vpack.c.b16 %v1967_v48, %v1966_v60  ;;  %v1406_v48 = vadd.f32 %v9470_v39, %v9230_v15 }
 0x428   : > { %v9616_v34 = vpack.c.b16 %v2565_v47, %v2564_v22 }
 0x429   : > { %v1541_v57 = vpop.f32.mrf.mxu2  ;;  %12843 = vst [vmem:[#allocation44_spill] sm:$0xff] %v9625_v21 }
 0x42a   : > { %12842 = vst [vmem:[#allocation43_spill] sm:$0xff] %v9616_v34  ;;  %4986 = vrot.lane.b32.xlu0 %v9616_v34, %s8328_s25  ;;  %4434 = vrot.lane.b32.xlu2 %v9612_v58, %s8328_s25  ;;  %v1542_v52 = vadd.f32 %v1541_v57, %v9578_v51 }
 0x42b   : > { %v1454_v44 = vpop.f32.mrf.mxu0 }
 0x42c   : > { %v1727_v16 = vpack.c.bf16 %v1542_v52, %v1542_v52  ;;  %v1455_v63 = vadd.f32 %v1454_v44, %v9223_v2  ;;  %v1404_v52 = vadd.f32 %v9456_v3, %v9230_v15 }
 0x42d   : > { %1795 = vmatpush.bf16.xpose.msra.mxu3 %v1783_v33  ;;  %v1453_v33 = vadd.f32 %v1452_v23, %v9223_v2 }
 0x42e   : > { %v2609_v28 = vunpack.c.l.b16 %v1727_v16 }
 0x42f   : > { %v1695_v44 = vpack.c.bf16 %v1453_v33, %v1453_v33  ;;  %v1414_v33 = vadd.f32 %v9519_v49, %v9230_v15 }
 0x431   : > { %v1543_v59 = vpop.f32.mrf.mxu2 }
 0x432   : > { %v1544_v32 = vadd.f32 %v1543_v59, %v9578_v51  ;;  %3096 = vrot.lane.b32.xlu0 %v9612_v58, %s8327_s19  ;;  %4436 = vrot.lane.b32.xlu2 %v9625_v21, %s8328_s25  ;;  %v1696_v59 = vpack.c.bf16 %v1455_v63, %v1455_v63  ;;  %v1821_v63 = vunpack.c.l.b16 %v1695_v44 }
 0x433   : > { %v1457_v40 = vpop.f32.mrf.mxu0 }
 0x434   : > { %v1728_v8 = vpack.c.bf16 %v1544_v32, %v1544_v32  ;;  %7042 = vmatmul.msk.bf16.vlgmr.msra.gmra.mxu3 %vm1775_vm1, %v9246_v37  ;;  %v1458_v38 = vadd.f32 %v1457_v40, %v9223_v2  ;;  %v1680_v40 = vpack.c.bf16 %v1406_v48, %v1406_v48  ;;  %v1822_v39 = vunpack.c.l.b16 %v1696_v59 }
 0x436   : > { %v2610_v10 = vunpack.c.l.b16 %v1728_v8  ;;  %1585 = vmatmul.bf16.gmra.mxu2 %v9283_v18  ;;  %v1697_v57 = vpack.c.bf16 %v1458_v38, %v1458_v38 }
 0x438   : > { %v9635_v54 = vpack.c.b16 %v2610_v10, %v2609_v28  ;;  %v1823_v16 = vunpack.c.l.b16 %v1697_v57 }
 0x439   : > { %v1546_v22 = vpop.f32.mrf.mxu2 }
 0x43a   : > { %12844 = vst [vmem:[#allocation45_spill] sm:$0xff] %v9635_v54  ;;  %3687 = vrot.lane.b32.xlu0 %v9635_v54, %s8327_s19  ;;  %v1547_v18 = vadd.f32 %v1546_v22, %v9578_v51  ;;  %v2016_v22 = vunpack.c.l.b16 %v1680_v40 }
 0x43b   : > { %v1459_v47 = vpop.f32.mrf.mxu0 }
 0x43c   : > { %v1460_v36 = vadd.f32 %v1459_v47, %v9223_v2  ;;  %v1729_v28 = vpack.c.bf16 %v1547_v18, %v1547_v18  ;;  %v1679_v2 = vpack.c.bf16 %v1404_v52, %v1404_v52  ;;  %v1416_v47 = vadd.f32 %v9534_v61, %v9230_v15 }
 0x43d   : > { %v9662_v18 = vpack.c.b16 %v1822_v39, %v1821_v63  ;;  %v1683_v61 = vpack.c.bf16 %v1414_v33, %v1414_v33  ;;  %v1411_v39 = vadd.f32 %v9500_v55, %v9230_v15 }
 0x43e   : > { %v1698_v60 = vpack.c.bf16 %v1460_v36, %v1460_v36  ;;  %v2611_v57 = vunpack.c.l.b16 %v1729_v28  ;;  %v2015_v48 = vunpack.c.l.b16 %v1679_v2  ;;  %v1684_v59 = vpack.c.bf16 %v1416_v47, %v1416_v47 }
 0x43f   : > { %12846 = vst [vmem:[#allocation47_spill] sm:$0xff] %v9662_v18  ;;  %v1682_v55 = vpack.c.bf16 %v1411_v39, %v1411_v39 }
 0x440   : > { %v1824_v32 = vunpack.c.l.b16 %v1698_v60  ;;  %v9666_v52 = vpack.c.b16 %v2016_v22, %v2015_v48  ;;  %v2067_v49 = vunpack.c.l.b16 %v1684_v59  ;;  %v1409_v22 = vadd.f32 %v9484_v20, %v9230_v15 }
 0x441   : > { %v1548_v8 = vpop.f32.mrf.mxu2  ;;  %v2018_v59 = vunpack.c.l.b16 %v1682_v55 }
 0x442   : > { %v9648_v10 = vpack.c.b16 %v1824_v32, %v1823_v16  ;;  %v1549_v38 = vadd.f32 %v1548_v8, %v9578_v51  ;;  %3098 = vrot.lane.b32.xlu0 %v9625_v21, %s8327_s19  ;;  %12848 = vst [vmem:[#allocation49_spill] sm:$0xff] %v9666_v52  ;;  %v1888_v32 = vsel %vm1775_vm1, %v9373_v27, 0  ;;  %v2066_v8 = vunpack.c.l.b16 %v1683_v61 }
 0x443   : > { %v1681_v33 = vpack.c.bf16 %v1409_v22, %v1409_v22 }
 0x444   : > { %12845 = vst [vmem:[#allocation46_spill] sm:$0xff] %v9648_v10  ;;  %v1730_v23 = vpack.c.bf16 %v1549_v38, %v1549_v38  ;;  %7043 = vmatmul.msk.bf16.gmra.mxu3 %vm1775_vm1, %v9249_v14  ;;  %v1837_v3 = vsel %vm1775_vm1, %v9648_v10, 0  ;;  %v9679_v44 = vpack.c.b16 %v2067_v49, %v2066_v8 }
 0x445   : > { %1845 = vmatpush.bf16.xpose.msrb.mxu3 %v1837_v3  ;;  %v1885_v3 = vsel %vm1775_vm1, %v9238_v43, 0 }
 0x446   : > { %v2612_v36 = vunpack.c.l.b16 %v1730_v23  ;;  %1590 = vmatmul.bf16.gmra.mxu2 %v9317_v30  ;;  %v1834_v30 = vsel %vm1775_vm1, %v9662_v18, 0  ;;  %12849 = vst [vmem:[#allocation50_spill] sm:$0xff] %v9679_v44 }
 0x448   : > { %v9664_v60 = vpack.c.b16 %v2612_v36, %v2611_v57  ;;  %v1939_v57 = vsel %vm1775_vm1, %v9434_v50, 0 }
 0x449   : > { %v1551_v16 = vpop.f32.mrf.mxu2 }
 0x44a   : > { %12847 = vst [vmem:[#allocation48_spill] sm:$0xff] %v9664_v60  ;;  %3689 = vrot.lane.b32.xlu1 %v9664_v60, %s8327_s19  ;;  %2629 = vmatpush.bf16.msra.mxu0 %v9664_v60  ;;  %v1552_v40 = vadd.f32 %v1551_v16, %v9578_v51  ;;  %v2017_v16 = vunpack.c.l.b16 %v1681_v33 }
 0x44b   : > { %3135 = vrot.lane.b32.xlu0 %v9666_v52, %s8327_s19 }
 0x44c   : > { %v1731_v38 = vpack.c.bf16 %v1552_v40, %v1552_v40  ;;  %v9704_v61 = vpack.c.b16 %v2018_v59, %v2017_v16  ;;  %v1421_v40 = vadd.f32 %v9554_v42, %v9230_v15  ;;  %v1990_v59 = vsel %vm1775_vm1, %v9536_v1, 0 }
 0x44d   : > { %1846 = vmatpush.bf16.xpose.msrb.mxu3 %v1834_v30  ;;  %v1424_v16 = vadd.f32 %v9562_v17, %v9230_v15  ;;  %v1431_v17 = vadd.f32 %v9570_v4, %v9230_v15 }
 0x44e   : > { %2630 = vmatpush.bf16.msra.mxu0 %v9635_v54  ;;  %v2656_v47 = vunpack.c.l.b16 %v1731_v38  ;;  %12851 = vst [vmem:[#allocation52_spill] sm:$0xff] %v9704_v61  ;;  %v1686_v39 = vpack.c.bf16 %v1421_v40, %v1421_v40 }
 0x450   : > { %v2069_v42 = vunpack.c.l.b16 %v1686_v39  ;;  %v9756_v39 = vpop.permute.xlu1 %3022 }
 0x451   : > { %v1553_v28 = vpop.f32.mrf.mxu2 }
 0x452   : > { %v1554_v2 = vadd.f32 %v1553_v28, %v9578_v51  ;;  %4473 = vrot.lane.b32.xlu1 %v9666_v52, %s8328_s25  ;;  %v1419_v28 = vadd.f32 %v9545_v9, %v9230_v15 }
 0x453   : > { %4512 = vrot.lane.b32.xlu0 %v9679_v44, %s8328_s25 }
 0x454   : > { %v1732_v23 = vpack.c.bf16 %v1554_v2, %v1554_v2  ;;  %7044 = vmatmul.msk.bf16.vlgmr.msrb.gmra.mxu3 %vm1775_vm1, %v9255_v31  ;;  %v1685_v22 = vpack.c.bf16 %v1419_v28, %v1419_v28 }
 0x455   : > { %1896 = vmatpush.bf16.xpose.msra.mxu3 %v1888_v32 }
 0x456   : > { %v2657_v63 = vunpack.c.l.b16 %v1732_v23  ;;  %1595 = vmatmul.bf16.gmra.mxu2 %v9347_v0  ;;  %v1936_v0 = vsel %vm1775_vm1, %v9432_v11, 0 }
 0x458   : > { %v9697_v36 = vpack.c.b16 %v2657_v63, %v2656_v47  ;;  %v2068_v47 = vunpack.c.l.b16 %v1685_v22 }
 0x459   : > { %v1556_v48 = vpop.f32.mrf.mxu2 }
 0x45a   : > { %12850 = vst [vmem:[#allocation51_spill] sm:$0xff] %v9697_v36  ;;  %3728 = vrot.lane.b32.xlu1 %v9697_v36, %s8327_s19  ;;  %v1557_v20 = vadd.f32 %v1556_v48, %v9578_v51  ;;  %v1426_v48 = vadd.f32 %v9565_v12, %v9230_v15  ;;  %v1687_v12 = vpack.c.bf16 %v1424_v16, %v1424_v16 }
 0x45c   : > { %v1733_v49 = vpack.c.bf16 %v1557_v20, %v1557_v20 }
 0x45d   : > { %1897 = vmatpush.bf16.xpose.msra.mxu3 %v1885_v3 }
 0x45e   : > { %v2658_v38 = vunpack.c.l.b16 %v1733_v49 }
 0x461   : > { %v1558_v30 = vpop.f32.mrf.mxu2 }
 0x462   : > { %v1559_v32 = vadd.f32 %v1558_v30, %v9578_v51  ;;  %3137 = vrot.lane.b32.xlu1 %v9704_v61, %s8327_s19  ;;  %v1688_v30 = vpack.c.bf16 %v1426_v48, %v1426_v48 }
 0x464   : > { %v1734_v8 = vpack.c.bf16 %v1559_v32, %v1559_v32  ;;  %7045 = vmatmul.msk.bf16.gmra.mxu3 %vm1775_vm1, %v9467_v41  ;;  %v2118_v40 = vunpack.c.l.b16 %v1688_v30  ;;  %v12888_v41 = vld [vmem:[#allocation39_spill] sm:$0xff] }
 0x465   : > { %1947 = vmatpush.bf16.xpose.msrb.mxu3 %v1939_v57 }
 0x466   : > { %v2659_v2 = vunpack.c.l.b16 %v1734_v8  ;;  %1600 = vmatmul.bf16.gmra.mxu2 %v9376_v56  ;;  %v9725_v56 = vpack.c.b16 %v2069_v42, %v2068_v47  ;;  %v1987_v8 = vsel %vm1775_vm1, %v9489_v35, 0 }
 0x468   : > { %v9716_v23 = vpack.c.b16 %v2659_v2, %v2658_v38  ;;  %12853 = vst [vmem:[#allocation54_spill] sm:$0xff] %v9725_v56  ;;  %v1429_v38 = vadd.f32 %v9567_v19, %v9230_v15 }
 0x469   : > { %v1561_v3 = vpop.f32.mrf.mxu2 }
 0x46a   : > { %12852 = vst [vmem:[#allocation53_spill] sm:$0xff] %v9716_v23  ;;  %2676 = vmatpush.bf16.msrb.mxu1 %v9716_v23  ;;  %4475 = vrot.lane.b32.xlu1 %v9704_v61, %s8328_s25  ;;  %v1562_v9 = vadd.f32 %v1561_v3, %v9578_v51  ;;  %v1690_v3 = vpack.c.bf16 %v1431_v17, %v1431_v17 }
 0x46b   : > { %3730 = vrot.lane.b32.xlu2 %v9716_v23, %s8327_s19  ;;  %v1689_v4 = vpack.c.bf16 %v1429_v38, %v1429_v38 }
 0x46c   : > { %v1735_v57 = vpack.c.bf16 %v1562_v9, %v1562_v9  ;;  %v2120_v15 = vunpack.c.l.b16 %v1690_v3 }
 0x46d   : > { %1948 = vmatpush.bf16.xpose.msrb.mxu3 %v1936_v0 }
 0x46e   : > { %2677 = vmatpush.bf16.msrb.mxu1 %v9697_v36  ;;  %v2703_v20 = vunpack.c.l.b16 %v1735_v57  ;;  %v2119_v57 = vunpack.c.l.b16 %v1689_v4 }
 0x470   : > { %v9767_v48 = vpack.c.b16 %v2120_v15, %v2119_v57 }
 0x471   : > { %v1563_v63 = vpop.f32.mrf.mxu2 }
 0x472   : > { %v1564_v55 = vadd.f32 %v1563_v63, %v9578_v51  ;;  %3176 = vrot.lane.b32.xlu1 %v9725_v56, %s8327_s19  ;;  %12857 = vst [vmem:[#allocation58_spill] sm:$0xff] %v9767_v48 }
 0x473   : > { %3174 = vrot.lane.b32.xlu2 %v9679_v44, %s8327_s19 }
 0x474   : > { %v1736_v33 = vpack.c.bf16 %v1564_v55, %v1564_v55  ;;  %7046 = vmatmul.msk.bf16.vlgmr.msra.gmra.mxu3 %vm1775_vm1, %v9498_v53 }
 0x475   : > { %1998 = vmatpush.bf16.xpose.msra.mxu3 %v1990_v59  ;;  %v9774_v59 = vpop.permute.xlu1 %2940 }
 0x476   : > { %v2704_v0 = vunpack.c.l.b16 %v1736_v33  ;;  %1605 = vmatmul.bf16.gmra.mxu2 %v9413_v29  ;;  %v2117_v29 = vunpack.c.l.b16 %v1687_v12  ;;  %12858 = vst [vmem:[#allocation59_spill] sm:$0xff] %v9774_v59 }
 0x478   : > { %v9741_v49 = vpack.c.b16 %v2704_v0, %v2703_v20  ;;  %v9754_v2 = vpack.c.b16 %v2118_v40, %v2117_v29  ;;  %v2041_v0 = vsel %vm1775_vm1, %v9424_v13, 0  ;;  %v9807_v29 = vpop.permute.xlu2 %4360 }
 0x479   : > { %v1566_v32 = vpop.f32.mrf.mxu2  ;;  %12862 = vst [vmem:[#allocation63_spill] sm:$0xff] %v9807_v29 }
 0x47a   : > { %12854 = vst [vmem:[#allocation55_spill] sm:$0xff] %v9741_v49  ;;  %4514 = vrot.lane.b32.xlu1 %v9725_v56, %s8328_s25  ;;  %3769 = vrot.lane.b32.xlu0 %v9741_v49, %s8327_s19  ;;  %v1567_v28 = vadd.f32 %v1566_v32, %v9578_v51  ;;  %v2038_v32 = vsel %vm1775_vm1, %v9361_v45, 0 }
 0x47b   : > { %12855 = vst [vmem:[#allocation56_spill] sm:$0xff] %v9754_v2 }
 0x47c   : > { %v1737_v42 = vpack.c.bf16 %v1567_v28, %v1567_v28 }
 0x47d   : > { %1999 = vmatpush.bf16.xpose.msra.mxu3 %v1987_v8  ;;  %v9785_v20 = vpop.permute.xlu1 %3139 }
 0x47e   : > { %v2705_v19 = vunpack.c.l.b16 %v1737_v42  ;;  %12859 = vst [vmem:[#allocation60_spill] sm:$0xff] %v9785_v20 }
 0x480   : > { %v9821_v57 = vpop.permute.xlu2 %4280 }
 0x481   : > { %v1568_v22 = vpop.f32.mrf.mxu2  ;;  %12864 = vst [vmem:[#allocation65_spill] sm:$0xff] %v9821_v57 }
 0x482   : > { %v1569_v47 = vadd.f32 %v1568_v22, %v9578_v51  ;;  %3213 = vrot.lane.b32.xlu0 %v9754_v2, %s8327_s19  ;;  %4282 = vrot.lane.b32.xlu1 %v9614_v62, %s8328_s25 }
 0x484   : > { %v1738_v9 = vpack.c.bf16 %v1569_v47, %v1569_v47  ;;  %7047 = vmatmul.msk.bf16.gmra.mxu3 %vm1775_vm1, %v9526_v46  ;;  %v9813_v47 = vpop.permute.xlu0 %4278 }
 0x485   : > { %v9799_v12 = vpop.permute.xlu1 %2942  ;;  %12863 = vst [vmem:[#allocation64_spill] sm:$0xff] %v9813_v47 }
 0x486   : > { %v2706_v63 = vunpack.c.l.b16 %v1738_v9  ;;  %12860 = vst [vmem:[#allocation61_spill] sm:$0xff] %v9799_v12  ;;  %v2092_v9 = vsel %vm1775_vm1, %v9472_v24, 0 }
 0x488   : > { %v9765_v55 = vpack.c.b16 %v2706_v63, %v2705_v19 }
 0x489   : > { %v9769_v33 = vpop.f32.mrf.mxu2 }
 0x48a   : > { %12856 = vst [vmem:[#allocation57_spill] sm:$0xff] %v9765_v55  ;;  %2723 = vmatpush.bf16.msra.mxu2 %v9765_v55  ;;  %3771 = vrot.lane.b32.xlu2 %v9765_v55, %s8327_s19 }
 0x48b   : > { %2944 = vrot.lane.b32.xlu1 %v9614_v62, %s8327_s19  ;;  %3215 = vrot.lane.b32.xlu0 %v9767_v48, %s8327_s19 }
 0x48d   : > { %v9805_v8 = vpop.permute.xlu1 %4479 }
 0x48e   : > { %2724 = vmatpush.bf16.msra.mxu2 %v9741_v49  ;;  %12861 = vst [vmem:[#allocation62_spill] sm:$0xff] %v9805_v8 }
 0x491   : > { %v9781_v16 = vpop.f32.mrf.mxu2 }
 0x492   : > { %4551 = vrot.lane.b32.xlu2 %v9754_v2, %s8328_s25 }
 0x493   : > { %2946 = vrot.lane.b32.xlu1 %v9600_v6, %s8327_s19  ;;  %4553 = vrot.lane.b32.xlu0 %v9767_v48, %s8328_s25 }
 0x494   : > { %7048 = vmatmul.msk.bf16.vlgmr.msrb.gmra.mxu3 %vm1775_vm1, %v9539_v26 }
 0x495   : > { %2049 = vmatpush.bf16.xpose.msrb.mxu3 %v2041_v0  ;;  %v9810_v38 = vpop.permute.xlu1 %3061 }
 0x499   : > { %v9795_v30 = vpop.f32.mrf.mxu2 }
 0x49d   : > { %2050 = vmatpush.bf16.xpose.msrb.mxu3 %v2038_v32  ;;  %v9825_v32 = vpop.permute.xlu1 %4317 }
 0x49e   : > { %12866 = vst [vmem:[#allocation67_spill] sm:$0xff] %v9825_v32 }
 0x4a1   : > { %v9801_v40 = vpop.f32.mrf.mxu2 }
 0x4a4   : > { %7049 = vmatmul.msk.bf16.gmra.mxu3 %vm1775_vm1, %v9558_v7 }
 0x4a5   : > { %v9841_v24 = vpop.permute.xlu1 %4399 }
 0x4a6   : > { %12869 = vst [vmem:[#allocation70_spill] sm:$0xff] %v9841_v24 }
 0x4a9   : > { %v1581_v17 = vpop.f32.mrf.mxu2 }
 0x4aa   : > { %v1582_v28 = vadd.f32 %v1581_v17, %v9578_v51 }
 0x4ac   : > { %v1743_v22 = vpack.c.bf16 %v1582_v28, %v1582_v28  ;;  %v9829_v28 = vpop.permute.xlu0 %4477 }
 0x4ad   : > { %12867 = vst [vmem:[#allocation68_spill] sm:$0xff] %v9829_v28 }
 0x4ae   : > { %v2797_v15 = vunpack.c.l.b16 %v1743_v22 }
 0x4b1   : > { %v1583_v3 = vpop.f32.mrf.mxu2 }
 0x4b2   : > { %v1584_v42 = vadd.f32 %v1583_v3, %v9578_v51  ;;  %v2089_v3 = vsel %vm1775_vm1, %v9446_v25, 0 }
 0x4b4   : > { %v1744_v4 = vpack.c.bf16 %v1584_v42, %v1584_v42  ;;  %7050 = vmatmul.msk.bf16.vlgmr.msra.gmra.mxu3 %vm1775_vm1, %v9612_v58 }
 0x4b5   : > { %2100 = vmatpush.bf16.xpose.msra.mxu3 %v2092_v9  ;;  %v9836_v9 = vpop.permute.xlu2 %2979 }
 0x4b6   : > { %v2798_v19 = vunpack.c.l.b16 %v1744_v4  ;;  %12868 = vst [vmem:[#allocation69_spill] sm:$0xff] %v9836_v9 }
 0x4b7   : > { %v9819_v63 = vpop.f32.mrf.mxu3 }
 0x4b8   : > { %v9823_v0 = vpack.c.b16 %v2798_v19, %v2797_v15 }
 0x4b9   : > { %v1586_v17 = vpop.f32.mrf.mxu2 }
 0x4ba   : > { %12865 = vst [vmem:[#allocation66_spill] sm:$0xff] %v9823_v0  ;;  %3851 = vrot.lane.b32.xlu2 %v9823_v0, %s8327_s19  ;;  %v1587_v22 = vadd.f32 %v1586_v17, %v9578_v51 }
 0x4bc   : > { %v1745_v15 = vpack.c.bf16 %v1587_v22, %v1587_v22 }
 0x4bd   : > { %2101 = vmatpush.bf16.xpose.msra.mxu3 %v2089_v3  ;;  %v9845_v3 = vpop.permute.xlu0 %3024  ;;  %v9851_v58 = vpop.permute.xlu2 %3178 }
 0x4be   : > { %v2799_v17 = vunpack.c.l.b16 %v1745_v15  ;;  %12871 = vst [vmem:[#allocation72_spill] sm:$0xff] %v9851_v58 }
 0x4bf   : > { %v9834_v42 = vpop.f32.mrf.mxu3 }
 0x4c1   : > { %v1588_v4 = vpop.f32.mrf.mxu2 }
 0x4c2   : > { %v1589_v19 = vadd.f32 %v1588_v4, %v9578_v51  ;;  %4284 = vrot.lane.b32.xlu2 %v9600_v6, %s8328_s25  ;;  %v9858_v4 = vpop.permute.xlu1 %2981 }
 0x4c3   : > { %12872 = vst [vmem:[#allocation73_spill] sm:$0xff] %v9858_v4 }
 0x4c4   : > { %v1746_v7 = vpack.c.bf16 %v1589_v19, %v1589_v19  ;;  %7051 = vmatmul.msk.bf16.gmra.mxu3 %vm1775_vm1, %v9625_v21 }
 0x4c5   : > { %v9871_v32 = vpop.permute.xlu2 %4516 }
 0x4c6   : > { %v2800_v25 = vunpack.c.l.b16 %v1746_v7  ;;  %12874 = vst [vmem:[#allocation75_spill] sm:$0xff] %v9871_v32 }
 0x4c7   : > { %v9847_v26 = vpop.f32.mrf.mxu3 }
 0x4c8   : > { %v9849_v28 = vpack.c.b16 %v2800_v25, %v2799_v17  ;;  %v9864_v25 = vpop.permute.xlu0 %4362 }
 0x4c9   : > { %v1591_v22 = vpop.f32.mrf.mxu2  ;;  %12873 = vst [vmem:[#allocation74_spill] sm:$0xff] %v9864_v25 }
 0x4ca   : > { %12870 = vst [vmem:[#allocation71_spill] sm:$0xff] %v9849_v28  ;;  %2817 = vmatpush.bf16.msrb.mxu0 %v9849_v28  ;;  %4321 = vrot.lane.b32.xlu2 %v9662_v18, %s8328_s25  ;;  %v1592_v15 = vadd.f32 %v1591_v22, %v9578_v51  ;;  %v2143_v22 = vsel %vm1775_vm1, %v9575_v5, 0  ;;  %v9877_v35 = vpop.permute.xlu1 %3180 }
 0x4cb   : > { %3853 = vrot.lane.b32.xlu0 %v9849_v28, %s8327_s19  ;;  %12875 = vst [vmem:[#allocation76_spill] sm:$0xff] %v9877_v35 }
 0x4cc   : > { %v1747_v17 = vpack.c.bf16 %v1592_v15, %v1592_v15 }
 0x4ce   : > { %2818 = vmatpush.bf16.msrb.mxu0 %v9823_v0  ;;  %v2844_v24 = vunpack.c.l.b16 %v1747_v17 }
 0x4cf   : > { %v9862_v7 = vpop.f32.mrf.mxu3 }
 0x4d0   : > { %v9881_v57 = vpop.permute.xlu0 %3141 }
 0x4d1   : > { %v1593_v19 = vpop.f32.mrf.mxu2  ;;  %12876 = vst [vmem:[#allocation77_spill] sm:$0xff] %v9881_v57 }
 0x4d2   : > { %v1594_v21 = vadd.f32 %v1593_v19, %v9578_v51  ;;  %4323 = vrot.lane.b32.xlu2 %v9648_v10, %s8328_s25  ;;  %v9896_v32 = vpop.permute.xlu1 %3018 }
 0x4d3   : > { %2983 = vrot.lane.b32.xlu0 %v9662_v18, %s8327_s19  ;;  %12879 = vst [vmem:[#allocation79_spill] sm:$0xff] %v9896_v32  ;;  %v7340_v18 = vld [vmem:[#allocation11 + $0x8] sm:$0xff]  }
 0x4d4   : > { %v1748_v8 = vpack.c.bf16 %v1594_v21, %v1594_v21  ;;  %7052 = vmatmul.msk.bf16.vlgmr.msrb.gmra.mxu3 %vm1775_vm1, %v9666_v52  ;;  %v12878_v21 = vld [vmem:[#allocation33_spill] sm:$0xff] }
 0x4d5   : > { %2151 = vmatpush.bf16.xpose.msrb.mxu3 %v2143_v22  ;;  %v2140_v22 = vsel %vm1775_vm1, %v12878_v21, 0 }
 0x4d6   : > { %v2845_v15 = vunpack.c.l.b16 %v1748_v8  ;;  %v9891_v8 = vpop.permute.xlu2 %3063 }
 0x4d7   : > { %v9879_v19 = vpop.f32.mrf.mxu3 }
 0x4d8   : > { %v9883_v1 = vpack.c.b16 %v2845_v15, %v2844_v24  ;;  %v9898_v15 = vpop.permute.xlu0 %4401 }
 0x4d9   : > { %v1596_v11 = vpop.f32.mrf.mxu2  ;;  %12880 = vst [vmem:[#allocation80_spill] sm:$0xff] %v9898_v15 }
 0x4da   : > { %12877 = vst [vmem:[#allocation78_spill] sm:$0xff] %v9883_v1  ;;  %3892 = vrot.lane.b32.xlu1 %v9883_v1, %s8327_s19  ;;  %v1597_v17 = vadd.f32 %v1596_v11, %v9578_v51 }
 0x4db   : > { %2985 = vrot.lane.b32.xlu0 %v9648_v10, %s8327_s19  ;;  %v1579_v10 = vadd.f32 %v9801_v40, %v9578_v51  ;;  %v1572_v40 = vadd.f32 %v9769_v33, %v9578_v51 }
 0x4dc   : > { %v1749_v52 = vpack.c.bf16 %v1597_v17, %v1597_v17 }
 0x4dd   : > { %2152 = vmatpush.bf16.xpose.msrb.mxu3 %v2140_v22 }
 0x4de   : > { %v2846_v21 = vunpack.c.l.b16 %v1749_v52  ;;  %v9905_v50 = vpop.permute.xlu2 %4319 }
 0x4df   : > { %v9894_v5 = vpop.f32.mrf.mxu3  ;;  %12881 = vst [vmem:[#allocation81_spill] sm:$0xff] %v9905_v50 }
 0x4e0   : > { %v9909_v53 = vpop.permute.xlu0 %4518 }
 0x4e1   : > { %v1598_v24 = vpop.f32.mrf.mxu2  ;;  %12883 = vst [vmem:[#allocation83_spill] sm:$0xff] %v9909_v53 }
 0x4e2   : > { %v1599_v47 = vadd.f32 %v1598_v24, %v9578_v51 }
 0x4e4   : > { %v1750_v45 = vpack.c.bf16 %v1599_v47, %v1599_v47  ;;  %7053 = vmatmul.msk.bf16.gmra.mxu3 %vm1775_vm1, %v9704_v61  ;;  %v9914_v47 = vpop.permute.xlu1 %4356 }
 0x4e5   : > { %12884 = vst [vmem:[#allocation84_spill] sm:$0xff] %v9914_v47 }
 0x4e6   : > { %v2847_v22 = vunpack.c.l.b16 %v1750_v45  ;;  %v9920_v24 = vpop.permute.xlu2 %3100 }
 0x4e7   : > { %v9903_v13 = vpop.f32.mrf.mxu3 }
 0x4e8   : > { %v9907_v11 = vpack.c.b16 %v2847_v22, %v2846_v21  ;;  %v9923_v61 = vpop.permute.xlu0 %4438 }
 0x4e9   : > { %v1601_v46 = vpop.f32.mrf.mxu2  ;;  %12885 = vst [vmem:[#allocation85_spill] sm:$0xff] %v9923_v61 }
 0x4ea   : > { %12882 = vst [vmem:[#allocation82_spill] sm:$0xff] %v9907_v11  ;;  %2864 = vmatpush.bf16.msra.mxu1 %v9907_v11  ;;  %3894 = vrot.lane.b32.xlu2 %v9907_v11, %s8327_s19  ;;  %v1602_v17 = vadd.f32 %v1601_v46, %v9578_v51 }
 0x4ec   : > { %v1751_v21 = vpack.c.bf16 %v1602_v17, %v1602_v17  ;;  %v9927_v53 = vpop.permute.xlu1 %4358 }
 0x4ed   : > { %12886 = vst [vmem:[#allocation86_spill] sm:$0xff] %v9927_v53 }
 0x4ee   : > { %2865 = vmatpush.bf16.msra.mxu1 %v9883_v1  ;;  %v2891_v46 = vunpack.c.l.b16 %v1751_v21 }
 0x4ef   : > { %v9918_v45 = vpop.f32.mrf.mxu3 }
 0x4f1   : > { %v1603_v52 = vpop.f32.mrf.mxu2 }
 0x4f2   : > { %v1604_v22 = vadd.f32 %v1603_v52, %v9578_v51  ;;  %v9935_v52 = vpop.permute.xlu2 %3219 }
 0x4f3   : > { %12889 = vst [vmem:[#allocation88_spill] sm:$0xff] %v9935_v52 }
 0x4f4   : > { %v1752_v50 = vpack.c.bf16 %v1604_v22, %v1604_v22  ;;  %7054 = vmatmul.msk.bf16.vlgmr.msra.gmra.mxu3 %vm1775_vm1, %v9679_v44  ;;  %v9939_v22 = vpop.permute.xlu0 %3217  ;;  %v9942_v53 = vpop.permute.xlu1 %4440 }
 0x4f5   : > { %2582 = vmatpush.bf16.msra.mxu3 %v9616_v34  ;;  %12890 = vst [vmem:[#allocation89_spill] sm:$0xff] %v9939_v22 }
 0x4f6   : > { %v2892_v47 = vunpack.c.l.b16 %v1752_v50  ;;  %12891 = vst [vmem:[#allocation90_spill] sm:$0xff] %v9942_v53 }
 0x4f7   : > { %v9930_v15 = vpop.f32.mrf.mxu3 }
 0x4f8   : > { %v9932_v27 = vpack.c.b16 %v2892_v47, %v2891_v46 }
 0x4f9   : > { %2583 = vmatpush.bf16.msra.mxu3 %v12888_v41  ;;  %v1606_v17 = vpop.f32.mrf.mxu2 }
 0x4fa   : > { %12887 = vst [vmem:[#allocation87_spill] sm:$0xff] %v9932_v27  ;;  %3933 = vrot.lane.b32.xlu1 %v9932_v27, %s8327_s19  ;;  %v1607_v44 = vadd.f32 %v1606_v17, %v9578_v51  ;;  %v9947_v46 = vpop.permute.xlu2 %4557 }
 0x4fb   : > { %12892 = vst [vmem:[#allocation91_spill] sm:$0xff] %v9947_v46 }
 0x4fc   : > { %v1753_v61 = vpack.c.bf16 %v1607_v44, %v1607_v44  ;;  %v9953_v17 = vpop.permute.xlu0 %4555  ;;  %v9957_v31 = vpop.permute.xlu1 %3102  ;;  %v1577_v44 = vadd.f32 %v9795_v30, %v9578_v51 }
 0x4fd   : > { %12893 = vst [vmem:[#allocation92_spill] sm:$0xff] %v9953_v17 }
 0x4fe   : > { %v2893_v25 = vunpack.c.l.b16 %v1753_v61  ;;  %v1574_v61 = vadd.f32 %v9781_v16, %v9578_v51 }
 0x4ff   : > { %v9944_v21 = vpop.f32.mrf.mxu3 }
 0x501   : > { %v1608_v50 = vpop.f32.mrf.mxu2 }
 0x502   : > { %v1609_v47 = vadd.f32 %v1608_v50, %v9578_v51  ;;  %v7309_v50 = vld [vmem:[#allocation11] sm:$0xff]  }
 0x504   : > { %v1754_v29 = vpack.c.bf16 %v1609_v47, %v1609_v47  ;;  %7055 = vmatmul.msk.bf16.gmra.mxu3 %vm1775_vm1, %v9725_v56  ;;  %v9963_v47 = vunpack.c.h.bf16 %v7309_v50  ;;  %v1740_v56 = vpack.c.bf16 %v1574_v61, %v1574_v61  ;;  %v9979_v37 = vpop.permute.xlu0 %3020  ;;  %v9985_v33 = vpop.permute.xlu1 %4395 }
 0x505   : > { %12896 = vst [vmem:[#allocation95_spill] sm:$0xff] %v9979_v37 }
 0x506   : > { %v2894_v43 = vunpack.c.l.b16 %v1754_v29  ;;  %v1741_v29 = vpack.c.bf16 %v1577_v44, %v1577_v44  ;;  %v9976_v30 = vadd.f32 %v9963_v47, %v9834_v42  ;;  %12897 = vst [vmem:[#allocation96_spill] sm:$0xff] %v9985_v33  ;;  %v2751_v16 = vunpack.c.l.b16 %v1740_v56 }
 0x507   : > { %v9961_v46 = vpop.f32.mrf.mxu3  ;;  %v10005_v56 = vunpack.c.h.bf16 %v7340_v18 }
 0x508   : > { %v9955_v53 = vpack.c.b16 %v2894_v43, %v2893_v25  ;;  %v1742_v43 = vpack.c.bf16 %v1579_v10, %v1579_v10  ;;  %v9972_v25 = vpop.permute.xlu2 %4984  ;;  %v2752_v1 = vunpack.c.l.b16 %v1741_v29  ;;  %v9981_v10 = vunpack.c.l.bf16 %v7340_v18 }
 0x509   : > { %12895 = vst [vmem:[#allocation94_spill] sm:$0xff] %v9972_v25  ;;  %v2167_v51 = vsel %vm1775_vm1, %v9976_v30, -inf  ;;  %v10098_v14 = vadd.f32 %v10005_v56, %v9918_v45 }
 0x50a   : > { %12894 = vst [vmem:[#allocation93_spill] sm:$0xff] %v9955_v53  ;;  %2911 = vmatpush.bf16.msrb.mxu2 %v9955_v53  ;;  %3935 = vrot.lane.b32.xlu0 %v9955_v53, %s8327_s19  ;;  %v2753_v17 = vunpack.c.l.b16 %v1742_v43  ;;  %v1739_v53 = vpack.c.bf16 %v1572_v40, %v1572_v40  ;;  %v9996_v43 = vadd.f32 %v9981_v10, %v9847_v26 }
 0x50c   : > { %v9987_v44 = vpack.c.b16 %v2753_v17, %v2752_v1  ;;  %v2750_v61 = vunpack.c.l.b16 %v1739_v53  ;;  %v2170_v1 = vsel %vm1775_vm1, %v9996_v43, -inf  ;;  %v10007_v17 = vpop.permute.xlu0 %3057  ;;  %v10009_v53 = vunpack.c.l.bf16 %v7309_v50 }
 0x50d   : > { %12901 = vst [vmem:[#allocation100_spill] sm:$0xff] %v10007_v17 }
 0x50e   : > { %2912 = vmatpush.bf16.msrb.mxu2 %v9932_v27  ;;  %12898 = vst [vmem:[#allocation97_spill] sm:$0xff] %v9987_v44  ;;  %v9998_v40 = vpack.c.b16 %v2751_v16, %v2750_v61  ;;  %v10015_v16 = vadd.f32 %v10009_v53, %v9879_v19  ;;  %v10019_v61 = vadd.f32 %v10005_v56, %v9862_v7 }
 0x50f   : > { %v9989_v42 = vpop.f32.mrf.mxu3  ;;  %v10035_v7 = vadd.f32 %v9981_v10, %v9903_v13  ;;  %v10051_v13 = vadd.f32 %v9963_v47, %v9944_v21 }
 0x510   : > { %12899 = vst [vmem:[#allocation98_spill] sm:$0xff] %v9998_v40  ;;  %v10000_v29 = vpop.permute.xlu2 %3059  ;;  %v2176_v18 = vsel %vm1775_vm1, %v10015_v16, -inf  ;;  %v2173_v50 = vsel %vm1775_vm1, %v10019_v61, -inf }
 0x511   : > { %12900 = vst [vmem:[#allocation99_spill] sm:$0xff] %v10000_v29  ;;  %v2182_v33 = vsel %vm1775_vm1, %v10035_v7, -inf }
 0x513   : > { %2168 = vmax.xlane.f32.xlu2 %v2167_v51  ;;  %v10011_v51 = vpop.permute.xlu1 %4397 }
 0x514   : > { %7056 = vmatmul.msk.bf16.vlgmr.msrb.gmra.mxu3 %vm1775_vm1, %v9754_v2  ;;  %12902 = vst [vmem:[#allocation101_spill] sm:$0xff] %v10011_v51  ;;  %v10039_v51 = vadd.f32 %v10009_v53, %v9930_v15  ;;  %v10055_v15 = vadd.f32 %v10009_v53, %v9819_v63  ;;  %v10072_v63 = vadd.f32 %v9981_v10, %v9961_v46 }
 0x515   : > { %2770 = vmatpush.bf16.msrb.mxu3 %v9987_v44 }
 0x516   : > { %v2164_v21 = vsel %vm1775_vm1, %v10055_v15, -inf  ;;  %v2194_v28 = vsel %vm1775_vm1, %v10072_v63, -inf }
 0x517   : > { %v1950_v26 = vpop.f32.mrf.mxu3 }
 0x518   : > { %v10021_v2 = vpop.permute.xlu2 %4434 }
 0x519   : > { %2771 = vmatpush.bf16.msrb.mxu3 %v9998_v40  ;;  %12903 = vst [vmem:[#allocation102_spill] sm:$0xff] %v10021_v2 }
 0x51b   : > { %2171 = vmax.xlane.f32.xlu2 %v2170_v1  ;;  %v10027_v1 = vpop.permute.xlu0 %4986  ;;  %v10031_v19 = vpop.permute.xlu1 %3689 }
 0x51c   : > { %12904 = vst [vmem:[#allocation103_spill] sm:$0xff] %v10027_v1 }
 0x51d   : > { %12905 = vst [vmem:[#allocation104_spill] sm:$0xff] %v10031_v19 }
 0x520   : > { %v10045_v25 = vpop.permute.xlu2 %4436 }
 0x521   : > { %12906 = vst [vmem:[#allocation105_spill] sm:$0xff] %v10045_v25  ;;  %v2191_v25 = vsel %vm1775_vm1, %v10051_v13, -inf }
 0x523   : > { %2177 = vmax.xlane.f32.xlu2 %v2176_v18  ;;  %v1952_v18 = vpop.f32.mrf.mxu3  ;;  %v10057_v1 = vpop.permute.xlu1 %4473 }
 0x524   : > { %2174 = vmax.xlane.f32.xlu1 %v2173_v50  ;;  %7057 = vmatmul.msk.bf16.gmra.mxu3 %vm1775_vm1, %v9767_v48  ;;  %v2188_v50 = vsel %vm1775_vm1, %v10039_v51, -inf  ;;  %v10047_v48 = vpop.permute.xlu0 %3096  ;;  %12908 = vst [vmem:[#allocation107_spill] sm:$0xff] %v10057_v1 }
 0x525   : > { %12907 = vst [vmem:[#allocation106_spill] sm:$0xff] %v10047_v48 }
 0x528   : > { %v10068_v27 = vpop.permute.xlu2 %3730 }
 0x529   : > { %12909 = vst [vmem:[#allocation108_spill] sm:$0xff] %v10068_v27 }
 0x52b   : > { %2183 = vmax.xlane.f32.xlu2 %v2182_v33  ;;  %v10060_v33 = vadd.f32 %v9963_v47, %v1952_v18  ;;  %v1955_v2 = vpop.f32.mrf.mxu3  ;;  %v10076_v18 = vadd.f32 %v9963_v47, %v9894_v5  ;;  %v10083_v62 = vpop.permute.xlu1 %3728 }
 0x52c   : > { %2189 = vmax.xlane.f32.xlu1 %v2188_v50  ;;  %v10081_v1 = vpop.permute.xlu0 %3687  ;;  %12911 = vst [vmem:[#allocation110_spill] sm:$0xff] %v10083_v62 }
 0x52d   : > { %v2203_v50 = vsel %vm1775_vm1, %v10060_v33, -inf  ;;  %12910 = vst [vmem:[#allocation109_spill] sm:$0xff] %v10081_v1 }
 0x530   : > { %v10091_v5 = vpop.permute.xlu2 %3174 }
 0x531   : > { %12912 = vst [vmem:[#allocation111_spill] sm:$0xff] %v10091_v5 }
 0x533   : > { %2192 = vmax.xlane.f32.xlu2 %v2191_v25  ;;  %v10079_v25 = vadd.f32 %v9981_v10, %v1955_v2  ;;  %v10104_v0 = vpop.permute.xlu1 %3137 }
 0x534   : > { %2204 = vmax.xlane.f32.xlu1 %v2203_v50  ;;  %2165 = vmax.xlane.f32.xlu0 %v2164_v21  ;;  %v1957_v50 = vpop.f32.mrf.mxu3  ;;  %v2179_v21 = vsel %vm1775_vm1, %v10076_v18, -inf  ;;  %v10100_v11 = vpop.permute.xlu0 %3098  ;;  %12914 = vst [vmem:[#allocation113_spill] sm:$0xff] %v10104_v0 }
 0x535   : > { %v2206_v46 = vsel %vm1775_vm1, %v10079_v25, -inf  ;;  %v10094_v2 = vadd.f32 %v10005_v56, %v1957_v50  ;;  %12913 = vst [vmem:[#allocation112_spill] sm:$0xff] %v10100_v11  ;;  %v10112_v50 = vadd.f32 %v10005_v56, %v9989_v42 }
 0x537   : > { %v2197_v29 = vsel %vm1775_vm1, %v10112_v50, -inf }
 0x53b   : > { %2195 = vmax.xlane.f32.xlu2 %v2194_v28  ;;  %v2209_v28 = vsel %vm1775_vm1, %v10094_v2, -inf  ;;  %v10118_v17 = vpop.permute.xlu1 %4475 }
 0x53c   : > { %2207 = vmax.xlane.f32.xlu1 %v2206_v46  ;;  %2180 = vmax.xlane.f32.xlu0 %v2179_v21  ;;  %v2185_v46 = vsel %vm1775_vm1, %v10098_v14, -inf  ;;  %v10108_v21 = vpop.permute.xlu2 %3771  ;;  %v2001_v45 = vpop.f32.mrf.mxu3  ;;  %12917 = vst [vmem:[#allocation116_spill] sm:$0xff] %v10118_v17 }
 0x53d   : > { %12915 = vst [vmem:[#allocation114_spill] sm:$0xff] %v10108_v21  ;;  %v10116_v5 = vpop.permute.xlu0 %3135  ;;  %v10132_v27 = vadd.f32 %v10009_v53, %v2001_v45 }
 0x53e   : > { %12916 = vst [vmem:[#allocation115_spill] sm:$0xff] %v10116_v5 }
 0x543   : > { %2210 = vmax.xlane.f32.xlu2 %v2209_v28  ;;  %v10121_v28 = vadd.f32 %v10009_v53, %v1950_v26  ;;  %v10129_v62 = vpop.permute.xlu1 %3176  ;;  %v2212_v26 = vsel %vm1775_vm1, %v10132_v27, -inf }
 0x544   : > { %2186 = vmax.xlane.f32.xlu0 %v2185_v46  ;;  %v10123_v37 = vpop.permute.xlu2 %4551  ;;  %v2003_v46 = vpop.f32.mrf.mxu3  ;;  %12920 = vst [vmem:[#allocation119_spill] sm:$0xff] %v10129_v62 }
 0x545   : > { %12918 = vst [vmem:[#allocation117_spill] sm:$0xff] %v10123_v37  ;;  %v2200_v21 = vsel %vm1775_vm1, %v10121_v28, -inf  ;;  %v10127_v42 = vpop.permute.xlu0 %4512 }
 0x546   : > { %12919 = vst [vmem:[#allocation118_spill] sm:$0xff] %v10127_v42 }
 0x54b   : > { %v10140_v22 = vpop.permute.xlu1 %4514 }
 0x54c   : > { %2198 = vmax.xlane.f32.xlu0 %v2197_v29  ;;  %v10134_v29 = vpop.permute.xlu2 %3851  ;;  %v2006_v17 = vpop.f32.mrf.mxu3  ;;  %12923 = vst [vmem:[#allocation122_spill] sm:$0xff] %v10140_v22 }
 0x54d   : > { %12921 = vst [vmem:[#allocation120_spill] sm:$0xff] %v10134_v29  ;;  %v10138_v37 = vpop.permute.xlu0 %3769 }
 0x54e   : > { %12922 = vst [vmem:[#allocation121_spill] sm:$0xff] %v10138_v37 }
 0x553   : > { %v10148_v62 = vpop.permute.xlu1 %4282 }
 0x554   : > { %2201 = vmax.xlane.f32.xlu0 %v2200_v21  ;;  %v10142_v32 = vpop.permute.xlu2 %4284  ;;  %v10144_v21 = vpop.f32.mrf.mxu3  ;;  %12926 = vst [vmem:[#allocation125_spill] sm:$0xff] %v10148_v62 }
 0x555   : > { %12924 = vst [vmem:[#allocation123_spill] sm:$0xff] %v10142_v32  ;;  %v10146_v42 = vpop.permute.xlu0 %3213 }
 0x556   : > { %12925 = vst [vmem:[#allocation124_spill] sm:$0xff] %v10146_v42 }
 0x55b   : > { %v10156_v35 = vpop.permute.xlu1 %2944 }
 0x55c   : > { %2213 = vmax.xlane.f32.xlu0 %v2212_v26  ;;  %v10150_v45 = vpop.permute.xlu2 %4321  ;;  %v10152_v52 = vpop.f32.mrf.mxu3 }
 0x55d   : > { %12927 = vst [vmem:[#allocation126_spill] sm:$0xff] %v10150_v45  ;;  %v10154_v58 = vpop.permute.xlu0 %3215 }
 0x55e   : > { %12928 = vst [vmem:[#allocation127_spill] sm:$0xff] %v10154_v58 }
 0x563   : > { %v10164_v0 = vpop.permute.xlu1 %2946 }
 0x564   : > { %v10158_v26 = vpop.permute.xlu2 %4323  ;;  %v2054_v37 = vpop.f32.mrf.mxu3 }
 0x565   : > { %12929 = vst [vmem:[#allocation128_spill] sm:$0xff] %v10158_v26  ;;  %v10160_v22 = vpop.permute.xlu0 %4553 }
 0x566   : > { %12930 = vst [vmem:[#allocation129_spill] sm:$0xff] %v10160_v22 }
 0x56b   : > { %v10170_v29 = vpop.permute.xlu1 %3892 }
 0x56c   : > { %v10162_v32 = vpop.permute.xlu2 %3894  ;;  %v10166_v42 = vpop.f32.mrf.mxu3  ;;  %12933 = vst [vmem:[#allocation132_spill] sm:$0xff] %v10170_v29 }
 0x56d   : > { %12931 = vst [vmem:[#allocation130_spill] sm:$0xff] %v10162_v32  ;;  %v10168_v62 = vpop.permute.xlu0 %3853 }
 0x56e   : > { %12932 = vst [vmem:[#allocation131_spill] sm:$0xff] %v10168_v62 }
 0x573   : > { %v10177_v4 = vpop.permute.xlu1 %3933 }
 0x574   : > { %v10173_v11 = vpop.f32.mrf.mxu3  ;;  %12934 = vst [vmem:[#allocation133_spill] sm:$0xff] %v10177_v4 }
 0x575   : > { %v10175_v26 = vpop.permute.xlu0 %2983 }
 0x57d   : > { %v10191_v29 = vpop.permute.xlu0 %2985 }
 0x585   : > { %v10204_v9 = vpop.permute.xlu0 %3935 }
 0x586   : > { %v2169_v45 = vpop.xlane.xlu2 %2168  ;;  %12935 = vst [vmem:[#allocation134_spill] sm:$0xff] %v10204_v9 }
 0x587   : > { %v2261_v58 = vsub.f32 %v9976_v30, %v2169_v45 }
 0x589   : > { %v2294_v5 = vmul.f32 1.442695, %v2261_v58  ;;  %v10185_v58 = vadd.f32 %v9963_v47, %v2003_v46 }
 0x58b   : > { %7541 = vpow2.f32 %v2294_v5  ;;  %v10189_v5 = vpop.f32.mrf.mxu3 }
 0x58e   : > { %v2172_v22 = vpop.xlane.xlu2 %2171 }
 0x58f   : > { %v2262_v32 = vsub.f32 %v9996_v43, %v2172_v22 }
 0x591   : > { %v10180_v1 = vpop.eup %7541  ;;  %v2296_v19 = vmul.f32 1.442695, %v2262_v32  ;;  %v2215_v32 = vsel %vm1775_vm1, %v10185_v58, -inf }
 0x592   : > { %v2359_v62 = vsel %vm1775_vm1, %v10180_v1, 0.0 }
 0x593   : > { %7543 = vpow2.f32 %v2296_v19  ;;  %2360 = vadd.xlane.f32.xlu1 %v2359_v62  ;;  %v10201_v19 = vadd.f32 %v9981_v10, %v2006_v17  ;;  %v2105_v12 = vpop.f32.mrf.mxu3 }
 0x594   : > { %v10222_v59 = vadd.f32 %v9963_v47, %v2105_v12 }
 0x596   : > { %v10187_v30 = vpop.xlane.xlu2 %2177 }
 0x597   : > { %v2175_v45 = vpop.xlane.xlu1 %2174 }
 0x598   : > { %v2263_v22 = vsub.f32 %v10019_v61, %v2175_v45  ;;  %v2218_v45 = vsel %vm1775_vm1, %v10201_v19, -inf }
 0x599   : > { %v10193_v4 = vpop.eup %7543 }
 0x59a   : > { %v2362_v62 = vsel %vm1775_vm1, %v10193_v4, 0.0  ;;  %v2298_v43 = vmul.f32 1.442695, %v2263_v22 }
 0x59b   : > { %2216 = vmax.xlane.f32.xlu1 %v2215_v32  ;;  %2363 = vadd.xlane.f32.xlu0 %v2362_v62 }
 0x59c   : > { %7545 = vpow2.f32 %v2298_v43  ;;  %v2108_v43 = vpop.f32.mrf.mxu3 }
 0x59e   : > { %v2184_v46 = vpop.xlane.xlu2 %2183 }
 0x59f   : > { %v2266_v48 = vsub.f32 %v10035_v7, %v2184_v46 }
 0x5a1   : > { %v2304_v61 = vmul.f32 1.442695, %v2266_v48 }
 0x5a2   : > { %v10208_v32 = vpop.eup %7545 }
 0x5a3   : > { %7547 = vpow2.f32 %v2304_v61  ;;  %2219 = vmax.xlane.f32.xlu0 %v2218_v45  ;;  %v2365_v48 = vsel %vm1775_vm1, %v10208_v32, 0.0  ;;  %v10219_v45 = vadd.f32 %v9963_v47, %v2054_v37 }
 0x5a4   : > { %v10233_v12 = vpop.f32.mrf.mxu3 }
 0x5a6   : > { %v2193_v20 = vpop.xlane.xlu2 %2192 }
 0x5a7   : > { %v2166_v22 = vpop.xlane.xlu0 %2165  ;;  %v2269_v17 = vsub.f32 %v10051_v13, %v2193_v20 }
 0x5a8   : > { %v2260_v7 = vsub.f32 %v10055_v15, %v2166_v22  ;;  %v2239_v15 = vsel %vm1775_vm1, %v10222_v59, -inf  ;;  %v2227_v22 = vsel %vm1775_vm1, %v10219_v45, -inf }
 0x5a9   : > { %v10210_v62 = vpop.eup %7547  ;;  %v2310_v61 = vmul.f32 1.442695, %v2269_v17 }
 0x5aa   : > { %v2374_v46 = vsel %vm1775_vm1, %v10210_v62, 0.0  ;;  %v2292_v9 = vmul.f32 1.442695, %v2260_v7 }
 0x5ab   : > { %2375 = vadd.xlane.f32.xlu1 %v2374_v46  ;;  %2366 = vadd.xlane.f32.xlu0 %v2365_v48  ;;  %v10239_v46 = vadd.f32 %v10005_v56, %v10144_v21 }
 0x5ac   : > { %7549 = vpow2.f32 %v2292_v9  ;;  %v2190_v9 = vpop.xlane.xlu1 %2189 }
 0x5ad   : > { %7551 = vpow2.f32 %v2310_v61  ;;  %v2264_v61 = vsub.f32 %v10015_v16, %v10187_v30  ;;  %v10257_v30 = vpop.f32.mrf.mxu3 }
 0x5af   : > { %v2181_v20 = vpop.xlane.xlu0 %2180  ;;  %v2300_v16 = vmul.f32 1.442695, %v2264_v61 }
 0x5b0   : > { %v2265_v13 = vsub.f32 %v10076_v18, %v2181_v20 }
 0x5b2   : > { %v10229_v7 = vpop.eup %7549  ;;  %v2302_v17 = vmul.f32 1.442695, %v2265_v13 }
 0x5b3   : > { %2240 = vmax.xlane.f32.xlu1 %v2239_v15  ;;  %2228 = vmax.xlane.f32.xlu0 %v2227_v22  ;;  %v2356_v37 = vsel %vm1775_vm1, %v10229_v7, 0.0  ;;  %v10235_v18 = vpop.eup %7551  ;;  %v2268_v15 = vsub.f32 %v10039_v51, %v2190_v9  ;;  %v2221_v22 = vsel %vm1775_vm1, %v10239_v46, -inf  ;;  %v10263_v51 = vadd.f32 %v10009_v53, %v10152_v52 }
 0x5b4   : > { %7553 = vpow2.f32 %v2302_v17  ;;  %2357 = vadd.xlane.f32.xlu2 %v2356_v37  ;;  %v2383_v20 = vsel %vm1775_vm1, %v10235_v18, 0.0  ;;  %v10255_v17 = vadd.f32 %v9981_v10, %v2108_v43  ;;  %v10259_v41 = vpop.xlane.xlu1 %2204  ;;  %v10267_v9 = vadd.f32 %v10009_v53, %v10189_v5 }
 0x5b5   : > { %v2308_v37 = vmul.f32 1.442695, %v2268_v15  ;;  %7555 = vpow2.f32 %v2300_v16  ;;  %v2224_v52 = vsel %vm1775_vm1, %v10263_v51, -inf }
 0x5b6   : > { %v2242_v43 = vsel %vm1775_vm1, %v10255_v17, -inf  ;;  %v2236_v5 = vsel %vm1775_vm1, %v10267_v9, -inf }
 0x5b7   : > { %v10241_v48 = vpop.xlane.xlu0 %2186  ;;  %7557 = vpow2.f32 %v2308_v37  ;;  %v2156_v37 = vpop.f32.mrf.mxu3 }
 0x5ba   : > { %v10247_v13 = vpop.eup %7553 }
 0x5bb   : > { %2384 = vadd.xlane.f32.xlu1 %v2383_v20  ;;  %v2371_v21 = vsel %vm1775_vm1, %v10247_v13, 0.0  ;;  %v2196_v20 = vpop.xlane.xlu2 %2195 }
 0x5bc   : > { %2222 = vmax.xlane.f32.xlu2 %v2221_v22  ;;  %2372 = vadd.xlane.f32.xlu0 %v2371_v21  ;;  %v2270_v61 = vsub.f32 %v10072_v63, %v2196_v20  ;;  %v2208_v49 = vpop.xlane.xlu1 %2207 }
 0x5be   : > { %v2312_v57 = vmul.f32 1.442695, %v2270_v61 }
 0x5bf   : > { %v2199_v22 = vpop.xlane.xlu0 %2198 }
 0x5c0   : > { %v2271_v21 = vsub.f32 %v10112_v50, %v2199_v22  ;;  %v10277_v50 = vpop.eup %7555 }
 0x5c1   : > { %v10279_v22 = vpop.eup %7557 }
 0x5c2   : > { %v2314_v15 = vmul.f32 1.442695, %v2271_v21  ;;  %v2380_v61 = vsel %vm1775_vm1, %v10279_v22, 0.0 }
 0x5c3   : > { %2243 = vmax.xlane.f32.xlu1 %v2242_v43  ;;  %v2274_v43 = vsub.f32 %v10079_v25, %v2208_v49 }
 0x5c4   : > { %7559 = vpow2.f32 %v2314_v15  ;;  %2225 = vmax.xlane.f32.xlu2 %v2224_v52  ;;  %2237 = vmax.xlane.f32.xlu0 %v2236_v5  ;;  %v2368_v15 = vsel %vm1775_vm1, %v10277_v50, 0.0 }
 0x5c5   : > { %7561 = vpow2.f32 %v2312_v57  ;;  %v2320_v57 = vmul.f32 1.442695, %v2274_v43 }
 0x5c7   : > { %v2202_v16 = vpop.xlane.xlu0 %2201 }
 0x5c8   : > { %v2272_v63 = vsub.f32 %v10121_v28, %v2202_v16  ;;  %v10293_v28 = vadd.f32 %v9981_v10, %v10166_v42  ;;  %v2159_v16 = vpop.f32.mrf.mxu3 }
 0x5ca   : > { %v10282_v20 = vpop.eup %7559  ;;  %v2316_v21 = vmul.f32 1.442695, %v2272_v63  ;;  %v2267_v63 = vsub.f32 %v10098_v14, %v10241_v48  ;;  %v10313_v14 = vadd.f32 %v9963_v47, %v2156_v37 }
 0x5cb   : > { %v2389_v52 = vsel %vm1775_vm1, %v10282_v20, 0.0  ;;  %v10295_v5 = vpop.eup %7561 }
 0x5cc   : > { %7563 = vpow2.f32 %v2316_v21  ;;  %2369 = vadd.xlane.f32.xlu2 %v2368_v15  ;;  %2381 = vadd.xlane.f32.xlu0 %v2380_v61  ;;  %v2230_v21 = vsel %vm1775_vm1, %v10293_v28, -inf  ;;  %v2386_v42 = vsel %vm1775_vm1, %v10295_v5, 0.0  ;;  %v2306_v61 = vmul.f32 1.442695, %v2267_v63 }
 0x5cd   : > { %2390 = vadd.xlane.f32.xlu1 %v2389_v52  ;;  %7565 = vpow2.f32 %v2320_v57  ;;  %v10310_v52 = vadd.f32 %v10005_v56, %v10173_v11 }
 0x5ce   : > { %7567 = vpow2.f32 %v2306_v61  ;;  %v10338_v61 = vadd.f32 %v10005_v56, %v10233_v12 }
 0x5cf   : > { %v2214_v49 = vpop.xlane.xlu0 %2213 }
 0x5d0   : > { %v2276_v15 = vsub.f32 %v10132_v27, %v2214_v49  ;;  %v2233_v27 = vsel %vm1775_vm1, %v10310_v52, -inf  ;;  %v2251_v49 = vsel %vm1775_vm1, %v10313_v14, -inf  ;;  %12936 = vst [vmem:[#allocation135_spill] sm:$0xff] %v10338_v61 }
 0x5d2   : > { %v10297_v25 = vpop.eup %7563  ;;  %v2324_v48 = vmul.f32 1.442695, %v2276_v15 }
 0x5d3   : > { %v2392_v43 = vsel %vm1775_vm1, %v10297_v25, 0.0  ;;  %v10315_v57 = vpop.eup %7565 }
 0x5d4   : > { %2231 = vmax.xlane.f32.xlu2 %v2230_v21  ;;  %2387 = vadd.xlane.f32.xlu0 %v2386_v42  ;;  %7569 = vpow2.f32 %v2324_v48  ;;  %v2161_v21 = vpop.f32.mrf.mxu3  ;;  %v2398_v11 = vsel %vm1775_vm1, %v10315_v57, 0.0  ;;  %v10326_v37 = vpop.eup %7567  ;;  %v2273_v48 = vsub.f32 %v10060_v33, %v10259_v41 }
 0x5d5   : > { %2393 = vadd.xlane.f32.xlu1 %v2392_v43  ;;  %v10324_v47 = vadd.f32 %v10005_v56, %v2161_v21  ;;  %v2377_v42 = vsel %vm1775_vm1, %v10326_v37, 0.0  ;;  %v10346_v21 = vadd.f32 %v10009_v53, %v10257_v30 }
 0x5d7   : > { %v2257_v15 = vsel %vm1775_vm1, %v10324_v47, -inf  ;;  %12937 = vst [vmem:[#allocation136_spill] sm:$0xff] %v10346_v21 }
 0x5da   : > { %v10328_v63 = vpop.eup %7569 }
 0x5db   : > { %v2404_v43 = vsel %vm1775_vm1, %v10328_v63, 0.0 }
 0x5dc   : > { %2234 = vmax.xlane.f32.xlu2 %v2233_v27  ;;  %2252 = vmax.xlane.f32.xlu0 %v2251_v49  ;;  %v2245_v27 = vsel %vm1775_vm1, %v10338_v61, -inf  ;;  %v2318_v49 = vmul.f32 1.442695, %v2273_v48 }
 0x5dd   : > { %2399 = vadd.xlane.f32.xlu1 %v2398_v11  ;;  %v2248_v11 = vsel %vm1775_vm1, %v10346_v21, -inf }
 0x5de   : > { %7571 = vpow2.f32 %v2318_v49 }
 0x5e4   : > { %2258 = vmax.xlane.f32.xlu0 %v2257_v15  ;;  %2378 = vadd.xlane.f32.xlu2 %v2377_v42  ;;  %v2211_v15 = vpop.xlane.xlu2 %2210  ;;  %v10350_v56 = vpop.eup %7571  ;;  %v10356_v42 = vadd.f32 %v9981_v10, %v2159_v16 }
 0x5e5   : > { %2405 = vadd.xlane.f32.xlu1 %v2404_v43  ;;  %v2275_v12 = vsub.f32 %v10094_v2, %v2211_v15  ;;  %v2395_v41 = vsel %vm1775_vm1, %v10350_v56, 0.0 }
 0x5e6   : > { %12938 = vst [vmem:[#allocation137_spill] sm:$0xff] %v10356_v42  ;;  %v2254_v53 = vsel %vm1775_vm1, %v10356_v42, -inf }
 0x5e7   : > { %v2322_v33 = vmul.f32 1.442695, %v2275_v12 }
 0x5e9   : > { %7573 = vpow2.f32 %v2322_v33 }
 0x5ec   : > { %2246 = vmax.xlane.f32.xlu2 %v2245_v27 }
 0x5ef   : > { %v10360_v43 = vpop.eup %7573 }
 0x5f0   : > { %v2401_v48 = vsel %vm1775_vm1, %v10360_v43, 0.0 }
 0x5f4   : > { %2249 = vmax.xlane.f32.xlu2 %v2248_v11 }
 0x5fc   : > { %2396 = vadd.xlane.f32.xlu2 %v2395_v41 }
 0x604   : > { %2255 = vmax.xlane.f32.xlu2 %v2254_v53 }
 0x606   : > { %v2361_v30 = vpop.xlane.xlu1 %2360 }
 0x60c   : > { %2402 = vadd.xlane.f32.xlu2 %v2401_v48 }
 0x60e   : > { %v2217_v2 = vpop.xlane.xlu1 %2216  ;;  %v2364_v27 = vpop.xlane.xlu0 %2363 }
 0x60f   : > { %v2277_v49 = vsub.f32 %v10185_v58, %v2217_v2 }
 0x611   : > { %v2326_v11 = vmul.f32 1.442695, %v2277_v49 }
 0x613   : > { %7575 = vpow2.f32 %v2326_v11 }
 0x616   : > { %v2220_v10 = vpop.xlane.xlu0 %2219 }
 0x617   : > { %v2278_v16 = vsub.f32 %v10201_v19, %v2220_v10 }
 0x619   : > { %v10366_v15 = vpop.eup %7575  ;;  %v2328_v12 = vmul.f32 1.442695, %v2278_v16 }
 0x61a   : > { %v2407_v41 = vsel %vm1775_vm1, %v10366_v15, 0.0 }
 0x61b   : > { %7577 = vpow2.f32 %v2328_v12  ;;  %2408 = vadd.xlane.f32.xlu0 %v2407_v41 }
 0x61c   : > { %7579 = vrcp.f32 %v2361_v30 }
 0x61e   : > { %v2367_v33 = vpop.xlane.xlu0 %2366  ;;  %v10372_v48 = vpop.xlane.xlu1 %2375 }
 0x621   : > { %v10370_v53 = vpop.eup %7577 }
 0x622   : > { %v2410_v58 = vsel %vm1775_vm1, %v10370_v53, 0.0  ;;  %v7580_v11 = vpop.eup %7579 }
 0x623   : > { %2411 = vadd.xlane.f32.xlu2 %v2410_v58  ;;  %v2485_v12 = vmul.f32 %v7580_v11, %v10180_v1 }
 0x625   : > { %v2517_v42 = vpack.c.bf16 %v2485_v12, %v2485_v12 }
 0x626   : > { %v2229_v2 = vpop.xlane.xlu0 %2228  ;;  %v10377_v16 = vpop.xlane.xlu1 %2240 }
 0x627   : > { %v2281_v19 = vsub.f32 %v10219_v45, %v2229_v2  ;;  %v2358_v49 = vpop.xlane.xlu2 %2357 }
 0x628   : > { %7581 = vrcp.f32 %v2358_v49  ;;  %v2553_v49 = vunpack.c.l.b16 %v2517_v42 }
 0x629   : > { %v2334_v10 = vmul.f32 1.442695, %v2281_v19 }
 0x62b   : > { %7583 = vpow2.f32 %v2334_v10 }
 0x62c   : > { %7585 = vrcp.f32 %v2367_v33  ;;  %v2958_v33 = vsel %vm1775_vm1, %v10164_v0, 0 }
 0x62d   : > { %7587 = vrcp.f32 %v2364_v27 }
 0x62e   : > { %v7582_v41 = vpop.eup %7581  ;;  %v2385_v11 = vpop.xlane.xlu1 %2384 }
 0x62f   : > { %v2484_v21 = vmul.f32 %v7582_v41, %v10229_v7  ;;  %v2223_v61 = vpop.xlane.xlu2 %2222  ;;  %v2373_v6 = vpop.xlane.xlu0 %2372 }
 0x630   : > { %v2279_v30 = vsub.f32 %v10239_v46, %v2223_v61 }
 0x631   : > { %v10382_v58 = vpop.eup %7583  ;;  %v2516_v45 = vpack.c.bf16 %v2484_v21, %v2484_v21 }
 0x632   : > { %v2330_v2 = vmul.f32 1.442695, %v2279_v30  ;;  %v2419_v19 = vsel %vm1775_vm1, %v10382_v58, 0.0  ;;  %v7586_v7 = vpop.eup %7585 }
 0x633   : > { %v2552_v1 = vunpack.c.l.b16 %v2516_v45  ;;  %2420 = vadd.xlane.f32.xlu1 %v2419_v19  ;;  %v7588_v21 = vpop.eup %7587  ;;  %v2487_v12 = vmul.f32 %v7586_v7, %v10208_v32 }
 0x634   : > { %7589 = vpow2.f32 %v2330_v2  ;;  %v2486_v45 = vmul.f32 %v7588_v21, %v10193_v4 }
 0x635   : > { %v2556_v10 = vpack.c.b16 %v2553_v49, %v2552_v1  ;;  %7591 = vrcp.f32 %v2373_v6  ;;  %v2519_v2 = vpack.c.bf16 %v2487_v12, %v2487_v12  ;;  %v2955_v6 = vsel %vm1775_vm1, %v10156_v35, 0 }
 0x636   : > { %7593 = vrcp.f32 %v2385_v11  ;;  %v10397_v49 = vpop.xlane.xlu1 %2243  ;;  %v2518_v32 = vpack.c.bf16 %v2486_v45, %v2486_v45 }
 0x637   : > { %7058 = vmatmul.msk.bf16.vlgmr.msra.gmra.mxu3 %vm1775_vm1, %v2556_v10  ;;  %v2226_v46 = vpop.xlane.xlu2 %2225  ;;  %v2238_v61 = vpop.xlane.xlu0 %2237  ;;  %v2555_v11 = vunpack.c.l.b16 %v2519_v2 }
 0x638   : > { %2966 = vmatpush.bf16.xpose.msra.mxu3 %v2958_v33  ;;  %v2280_v27 = vsub.f32 %v10263_v51, %v2226_v46  ;;  %v2284_v42 = vsub.f32 %v10267_v9, %v2238_v61  ;;  %v2554_v46 = vunpack.c.l.b16 %v2518_v32 }
 0x63a   : > { %v10392_v41 = vpop.eup %7589  ;;  %v2332_v30 = vmul.f32 1.442695, %v2280_v27  ;;  %v2340_v19 = vmul.f32 1.442695, %v2284_v42  ;;  %v2557_v35 = vpack.c.b16 %v2555_v11, %v2554_v46 }
 0x63b   : > { %v2413_v0 = vsel %vm1775_vm1, %v10392_v41, 0.0  ;;  %v7592_v51 = vpop.eup %7591 }
 0x63c   : > { %7595 = vpow2.f32 %v2332_v30  ;;  %2414 = vadd.xlane.f32.xlu0 %v2413_v0  ;;  %v7594_v4 = vpop.eup %7593  ;;  %v2489_v7 = vmul.f32 %v7592_v51, %v10247_v13 }
 0x63d   : > { %v2493_v61 = vmul.f32 %v7594_v4, %v10235_v18 }
 0x63e   : > { %v2521_v27 = vpack.c.bf16 %v2489_v7, %v2489_v7 }
 0x63f   : > { %v2370_v9 = vpop.xlane.xlu2 %2369  ;;  %v2382_v1 = vpop.xlane.xlu0 %2381 }
 0x640   : > { %2967 = vmatpush.bf16.xpose.msra.mxu3 %v2955_v6  ;;  %7597 = vrcp.f32 %v2370_v9  ;;  %v2391_v0 = vpop.xlane.xlu1 %2390  ;;  %v2600_v18 = vunpack.c.l.b16 %v2521_v27 }
 0x641   : > { %7599 = vpow2.f32 %v2340_v19  ;;  %v2525_v19 = vpack.c.bf16 %v2493_v61, %v2493_v61 }
 0x642   : > { %v10401_v10 = vpop.eup %7595  ;;  %7601 = vrcp.f32 %v2382_v1 }
 0x643   : > { %v2416_v33 = vsel %vm1775_vm1, %v10401_v10, 0.0  ;;  %v2647_v7 = vunpack.c.l.b16 %v2525_v19 }
 0x644   : > { %2417 = vadd.xlane.f32.xlu0 %v2416_v33 }
 0x646   : > { %v7598_v21 = vpop.eup %7597 }
 0x647   : > { %v10407_v12 = vpop.eup %7599  ;;  %v2488_v42 = vmul.f32 %v7598_v21, %v10277_v50  ;;  %v2232_v30 = vpop.xlane.xlu2 %2231  ;;  %7059 = vmatmul.msk.bf16.gmra.mxu3 %vm1775_vm1, %v2557_v35  ;;  %v3036_v21 = vsel %vm1775_vm1, %v9845_v3, 0  ;;  %v2994_v3 = vsel %vm1775_vm1, %v10175_v26, 0 }
 0x648   : > { %v2388_v45 = vpop.xlane.xlu0 %2387  ;;  %v7602_v13 = vpop.eup %7601  ;;  %v2282_v2 = vsub.f32 %v10293_v28, %v2232_v30  ;;  %v2428_v50 = vsel %vm1775_vm1, %v10407_v12, 0.0  ;;  %v2997_v28 = vsel %vm1775_vm1, %v10191_v29, 0 }
 0x649   : > { %v2520_v51 = vpack.c.bf16 %v2488_v42, %v2488_v42  ;;  %v2492_v32 = vmul.f32 %v7602_v13, %v10279_v22  ;;  %7603 = vrcp.f32 %v2388_v45 }
 0x64a   : > { %v2336_v6 = vmul.f32 1.442695, %v2282_v2  ;;  %7605 = vrcp.f32 %v2391_v0 }
 0x64b   : > { %v2599_v9 = vunpack.c.l.b16 %v2520_v51  ;;  %v2524_v1 = vpack.c.bf16 %v2492_v32, %v2492_v32 }
 0x64c   : > { %7607 = vpow2.f32 %v2336_v6  ;;  %2429 = vadd.xlane.f32.xlu0 %v2428_v50 }
 0x64d   : > { %v2603_v4 = vpack.c.b16 %v2600_v18, %v2599_v9  ;;  %v2646_v11 = vunpack.c.l.b16 %v2524_v1  ;;  %7609 = vrcp.f32 %v10372_v48  ;;  %v3033_v48 = vsel %vm1775_vm1, %v9756_v39, 0 }
 0x64f   : > { %v2235_v33 = vpop.xlane.xlu2 %2234  ;;  %7060 = vmatmul.msk.bf16.vlgmr.msra.gmra.mxu0 %vm1775_vm1, %v2603_v4  ;;  %v2650_v22 = vpack.c.b16 %v2647_v7, %v2646_v11  ;;  %v7604_v46 = vpop.eup %7603 }
 0x650   : > { %v2283_v61 = vsub.f32 %v10310_v52, %v2235_v33  ;;  %3005 = vmatpush.bf16.xpose.msra.mxu0 %v2997_v28  ;;  %v7606_v35 = vpop.eup %7605  ;;  %v2494_v30 = vmul.f32 %v7604_v46, %v10295_v5  ;;  %v2394_v11 = vpop.xlane.xlu1 %2393  ;;  %v2286_v46 = vsub.f32 %v10255_v17, %v10397_v49 }
 0x651   : > { %7062 = vmatmul.msk.bf16.vlgmr.msrb.gmra.mxu1 %vm1775_vm1, %v2650_v22  ;;  %v2495_v52 = vmul.f32 %v7606_v35, %v10282_v20 }
 0x652   : > { %v10422_v27 = vpop.eup %7607  ;;  %v2338_v42 = vmul.f32 1.442695, %v2283_v61  ;;  %3044 = vmatpush.bf16.xpose.msrb.mxu1 %v3036_v21  ;;  %v2526_v13 = vpack.c.bf16 %v2494_v30, %v2494_v30  ;;  %v2344_v30 = vmul.f32 1.442695, %v2286_v46 }
 0x653   : > { %v2422_v29 = vsel %vm1775_vm1, %v10422_v27, 0.0  ;;  %v7610_v0 = vpop.eup %7609  ;;  %v2527_v2 = vpack.c.bf16 %v2495_v52, %v2495_v52  ;;  %v2253_v52 = vpop.xlane.xlu0 %2252 }
 0x654   : > { %7611 = vpow2.f32 %v2338_v42  ;;  %2423 = vadd.xlane.f32.xlu2 %v2422_v29  ;;  %v2490_v5 = vmul.f32 %v7610_v0, %v10210_v62  ;;  %v2648_v51 = vunpack.c.l.b16 %v2526_v13  ;;  %v3075_v13 = vsel %vm1775_vm1, %v9891_v8, 0 }
 0x655   : > { %v2649_v32 = vunpack.c.l.b16 %v2527_v2  ;;  %v3072_v8 = vsel %vm1775_vm1, %v9810_v38, 0 }
 0x656   : > { %v2522_v18 = vpack.c.bf16 %v2490_v5, %v2490_v5 }
 0x657   : > { %v2379_v45 = vpop.xlane.xlu2 %2378  ;;  %v2651_v1 = vpack.c.b16 %v2649_v32, %v2648_v51 }
 0x658   : > { %7613 = vrcp.f32 %v2379_v45  ;;  %3006 = vmatpush.bf16.xpose.msra.mxu0 %v2994_v3  ;;  %v2601_v62 = vunpack.c.l.b16 %v2522_v18  ;;  %v2400_v35 = vpop.xlane.xlu1 %2399 }
 0x659   : > { %7615 = vrcp.f32 %v2394_v11 }
 0x65a   : > { %v10433_v19 = vpop.eup %7611  ;;  %3045 = vmatpush.bf16.xpose.msrb.mxu1 %v3033_v48 }
 0x65b   : > { %v2425_v20 = vsel %vm1775_vm1, %v10433_v19, 0.0  ;;  %v2259_v2 = vpop.xlane.xlu0 %2258 }
 0x65c   : > { %2426 = vadd.xlane.f32.xlu1 %v2425_v20  ;;  %v2291_v11 = vsub.f32 %v10324_v47, %v2259_v2  ;;  %v3114_v47 = vsel %vm1775_vm1, %v9957_v31, 0  ;;  %v3111_v31 = vsel %vm1775_vm1, %v9920_v24, 0 }
 0x65e   : > { %v7614_v26 = vpop.eup %7613 }
 0x65f   : > { %v2491_v6 = vmul.f32 %v7614_v26, %v10326_v37  ;;  %v10439_v9 = vpop.xlane.xlu2 %2246  ;;  %v7616_v28 = vpop.eup %7615 }
 0x660   : > { %5027 = vrot.lane.b32.xlu0 %v9664_v60, %s8328_s25  ;;  %v2496_v33 = vmul.f32 %v7616_v28, %v10297_v25  ;;  %v2406_v48 = vpop.xlane.xlu1 %2405 }
 0x661   : > { %v2523_v39 = vpack.c.bf16 %v2491_v6, %v2491_v6  ;;  %7063 = vmatmul.msk.bf16.gmra.mxu1 %vm1775_vm1, %v2651_v1  ;;  %v2285_v1 = vsub.f32 %v10222_v59, %v10377_v16 }
 0x662   : > { %v2528_v61 = vpack.c.bf16 %v2496_v33, %v2496_v33  ;;  %v2354_v33 = vmul.f32 1.442695, %v2291_v11 }
 0x663   : > { %v2602_v50 = vunpack.c.l.b16 %v2523_v39  ;;  %v2342_v38 = vmul.f32 1.442695, %v2285_v1  ;;  %v12941_v1 = vld [vmem:[#allocation77_spill] sm:$0xff] }
 0x664   : > { %v2693_v25 = vunpack.c.l.b16 %v2528_v61 }
 0x665   : > { %v2604_v4 = vpack.c.b16 %v2602_v50, %v2601_v62 }
 0x667   : > { %v10444_v7 = vpop.xlane.xlu2 %2249  ;;  %7061 = vmatmul.msk.bf16.gmra.mxu0 %vm1775_vm1, %v2604_v4 }
 0x66c   : > { %5068 = vrot.lane.b32.xlu2 %v9716_v23, %s8328_s25 }
 0x66f   : > { %v2397_v37 = vpop.xlane.xlu2 %2396 }
 0x670   : > { %7617 = vrcp.f32 %v2397_v37 }
 0x671   : > { %7619 = vrcp.f32 %v2400_v35 }
 0x672   : > { %7621 = vpow2.f32 %v2344_v30 }
 0x674   : > { %5148 = vrot.lane.b32.xlu2 %v9998_v40, %s8328_s25 }
 0x675   : > { %5025 = vrot.lane.b32.xlu1 %v9635_v54, %s8328_s25 }
 0x676   : > { %v7618_v22 = vpop.eup %7617 }
 0x677   : > { %v2497_v21 = vmul.f32 %v7618_v22, %v10350_v56  ;;  %v10457_v42 = vpop.xlane.xlu2 %2255  ;;  %v7620_v17 = vpop.eup %7619 }
 0x678   : > { %v2498_v56 = vmul.f32 %v7620_v17, %v10315_v57  ;;  %v10463_v49 = vpop.eup %7621  ;;  %v2289_v57 = vsub.f32 %v10313_v14, %v2253_v52 }
 0x679   : > { %v2529_v29 = vpack.c.bf16 %v2497_v21, %v2497_v21  ;;  %v2434_v26 = vsel %vm1775_vm1, %v10463_v49, 0.0 }
 0x67a   : > { %v2530_v20 = vpack.c.bf16 %v2498_v56, %v2498_v56  ;;  %v2350_v50 = vmul.f32 1.442695, %v2289_v57 }
 0x67b   : > { %v2694_v45 = vunpack.c.l.b16 %v2529_v29 }
 0x67c   : > { %v2695_v18 = vunpack.c.l.b16 %v2530_v20 }
 0x67d   : > { %v2697_v3 = vpack.c.b16 %v2694_v45, %v2693_v25 }
 0x67f   : > { %v2403_v0 = vpop.xlane.xlu2 %2402  ;;  %7064 = vmatmul.msk.bf16.vlgmr.msra.gmra.mxu2 %vm1775_vm1, %v2697_v3 }
 0x680   : > { %7623 = vrcp.f32 %v2403_v0  ;;  %3083 = vmatpush.bf16.xpose.msra.mxu2 %v3075_v13 }
 0x681   : > { %7625 = vrcp.f32 %v2406_v48 }
 0x686   : > { %v7624_v5 = vpop.eup %7623 }
 0x687   : > { %v2499_v51 = vmul.f32 %v7624_v5, %v10360_v43  ;;  %v7626_v43 = vpop.eup %7625 }
 0x688   : > { %3084 = vmatpush.bf16.xpose.msra.mxu2 %v3072_v8  ;;  %v2500_v4 = vmul.f32 %v7626_v43, %v10328_v63  ;;  %v12942_v43 = vld [vmem:[#allocation39_spill] sm:$0xff] }
 0x689   : > { %v2531_v32 = vpack.c.bf16 %v2499_v51, %v2499_v51  ;;  %v12939_v51 = vld [vmem:[#allocation40_spill] sm:$0xff] }
 0x68a   : > { %2435 = vadd.xlane.f32.xlu0 %v2434_v26  ;;  %v2532_v14 = vpack.c.bf16 %v2500_v4, %v2500_v4  ;;  %v12940_v26 = vld [vmem:[#allocation55_spill] sm:$0xff] }
 0x68b   : > { %v2696_v6 = vunpack.c.l.b16 %v2531_v32 }
 0x68c   : > { %v2740_v22 = vunpack.c.l.b16 %v2532_v14 }
 0x68d   : > { %v2698_v62 = vpack.c.b16 %v2696_v6, %v2695_v18 }
 0x68e   : > { %v2409_v39 = vpop.xlane.xlu0 %2408 }
 0x68f   : > { %7627 = vrcp.f32 %v2409_v39  ;;  %7065 = vmatmul.msk.bf16.gmra.mxu2 %vm1775_vm1, %v2698_v62  ;;  %v3153_v39 = vsel %vm1775_vm1, %v12941_v1, 0  ;;  %v12960_v1 = vld [vmem:[#allocation120_spill] sm:$0xff] }
 0x690   : > { %7629 = vpow2.f32 %v2350_v50  ;;  %v12943_v50 = vld [vmem:[#allocation59_spill] sm:$0xff] }
 0x691   : > { %7631 = vpow2.f32 %v2342_v38  ;;  %v12944_v38 = vld [vmem:[#allocation60_spill] sm:$0xff] }
 0x692   : > { %7633 = vpow2.f32 %v2354_v33  ;;  %v3150_v4 = vsel %vm1775_vm1, %v12944_v38, 0 }
 0x695   : > { %v7628_v37 = vpop.eup %7627 }
 0x696   : > { %v2501_v28 = vmul.f32 %v7628_v37, %v10366_v15  ;;  %v10477_v16 = vpop.eup %7629  ;;  %v2412_v30 = vpop.xlane.xlu2 %2411 }
 0x697   : > { %v10479_v61 = vpop.eup %7631  ;;  %v2443_v63 = vsel %vm1775_vm1, %v10477_v16, 0.0  ;;  %7635 = vrcp.f32 %v2412_v30 }
 0x698   : > { %v2533_v59 = vpack.c.bf16 %v2501_v28, %v2501_v28  ;;  %v2431_v15 = vsel %vm1775_vm1, %v10479_v61, 0.0  ;;  %v10490_v21 = vpop.eup %7633 }
 0x699   : > { %v2449_v29 = vsel %vm1775_vm1, %v10490_v21, 0.0 }
 0x69a   : > { %v2741_v46 = vunpack.c.l.b16 %v2533_v59 }
 0x69c   : > { %v2744_v35 = vpack.c.b16 %v2741_v46, %v2740_v22 }
 0x69d   : > { %2444 = vadd.xlane.f32.xlu2 %v2443_v63  ;;  %v7636_v45 = vpop.eup %7635  ;;  %v12945_v63 = vld [vmem:[#allocation61_spill] sm:$0xff] }
 0x69e   : > { %7066 = vmatmul.msk.bf16.vlgmr.msrb.gmra.mxu3 %vm1775_vm1, %v2744_v35  ;;  %5066 = vrot.lane.b32.xlu0 %v9697_v36, %s8328_s25  ;;  %v2502_v3 = vmul.f32 %v7636_v45, %v10370_v53  ;;  %v12950_v45 = vld [vmem:[#allocation137_spill] sm:$0xff] }
 0x69f   : > { %3122 = vmatpush.bf16.xpose.msrb.mxu3 %v3114_v47  ;;  %2432 = vadd.xlane.f32.xlu1 %v2431_v15  ;;  %v12946_v47 = vld [vmem:[#allocation135_spill] sm:$0xff] }
 0x6a0   : > { %v2534_v0 = vpack.c.bf16 %v2502_v3, %v2502_v3  ;;  %v2287_v15 = vsub.f32 %v12946_v47, %v10439_v9  ;;  %v2290_v3 = vsub.f32 %v12950_v45, %v10457_v42  ;;  %v12953_v42 = vld [vmem:[#allocation73_spill] sm:$0xff] }
 0x6a2   : > { %v2742_v5 = vunpack.c.l.b16 %v2534_v0  ;;  %v12952_v0 = vld [vmem:[#allocation109_spill] sm:$0xff] }
 0x6a5   : > { %2450 = vadd.xlane.f32.xlu2 %v2449_v29  ;;  %v2346_v29 = vmul.f32 1.442695, %v2287_v15 }
 0x6a6   : > { %5150 = vrot.lane.b32.xlu0 %v9987_v44, %s8328_s25  ;;  %v2421_v25 = vpop.xlane.xlu1 %2420 }
 0x6a7   : > { %3123 = vmatpush.bf16.xpose.msrb.mxu3 %v3111_v31 }
 0x6ae   : > { %3648 = vrot.lane.b32.xlu0 %v9616_v34, %s8327_s19 }
 0x6af   : > { %v2415_v52 = vpop.xlane.xlu0 %2414 }
 0x6b0   : > { %7637 = vrcp.f32 %v2415_v52  ;;  %v12949_v52 = vld [vmem:[#allocation106_spill] sm:$0xff] }
 0x6b1   : > { %7639 = vrcp.f32 %v2421_v25 }
 0x6b6   : > { %v7638_v13 = vpop.eup %7637 }
 0x6b7   : > { %v2503_v24 = vmul.f32 %v7638_v13, %v10392_v41  ;;  %v2418_v17 = vpop.xlane.xlu0 %2417  ;;  %v7640_v56 = vpop.eup %7639  ;;  %v12951_v13 = vld [vmem:[#allocation104_spill] sm:$0xff] }
 0x6b8   : > { %7641 = vrcp.f32 %v2418_v17  ;;  %5109 = vrot.lane.b32.xlu1 %v9765_v55, %s8328_s25  ;;  %v2505_v2 = vmul.f32 %v7640_v56, %v10382_v58 }
 0x6b9   : > { %v2535_v48 = vpack.c.bf16 %v2503_v24, %v2503_v24 }
 0x6ba   : > { %v2537_v32 = vpack.c.bf16 %v2505_v2, %v2505_v2  ;;  %v12954_v2 = vld [vmem:[#allocation112_spill] sm:$0xff] }
 0x6bb   : > { %v2743_v20 = vunpack.c.l.b16 %v2535_v48 }
 0x6bc   : > { %v2788_v18 = vunpack.c.l.b16 %v2537_v32  ;;  %v12957_v32 = vld [vmem:[#allocation115_spill] sm:$0xff] }
 0x6bd   : > { %5505 = vrot.lane.b32.xlu2 %v12939_v51, %s8329_s14  ;;  %v2745_v53 = vpack.c.b16 %v2743_v20, %v2742_v5 }
 0x6be   : > { %v7642_v8 = vpop.eup %7641 }
 0x6bf   : > { %v2504_v41 = vmul.f32 %v7642_v8, %v10401_v10  ;;  %7067 = vmatmul.msk.bf16.gmra.mxu3 %vm1775_vm1, %v2745_v53  ;;  %v2430_v17 = vpop.xlane.xlu0 %2429  ;;  %v10555_v53 = vpop.f32.mrf.mxu3 }
 0x6c0   : > { %5107 = vrot.lane.b32.xlu1 %v12940_v26, %s8328_s25 }
 0x6c1   : > { %v2536_v57 = vpack.c.bf16 %v2504_v41, %v2504_v41  ;;  %v12958_v41 = vld [vmem:[#allocation131_spill] sm:$0xff] }
 0x6c3   : > { %v2787_v6 = vunpack.c.l.b16 %v2536_v57 }
 0x6c5   : > { %v2791_v58 = vpack.c.b16 %v2788_v18, %v2787_v6 }
 0x6c7   : > { %v2424_v62 = vpop.xlane.xlu2 %2423  ;;  %7068 = vmatmul.msk.bf16.vlgmr.msrb.gmra.mxu0 %vm1775_vm1, %v2791_v58  ;;  %v10564_v58 = vpop.f32.mrf.mxu3 }
 0x6c8   : > { %3161 = vmatpush.bf16.xpose.msrb.mxu0 %v3153_v39  ;;  %3646 = vrot.lane.b32.xlu1 %v12942_v43, %s8327_s19  ;;  %7643 = vrcp.f32 %v2424_v62 }
 0x6ce   : > { %v7644_v11 = vpop.eup %7643 }
 0x6cf   : > { %v2427_v10 = vpop.xlane.xlu1 %2426  ;;  %7074 = vmatmul.msk.bf16.vlgmr.msra.gmra.mxu3 %vm1775_vm1, %v12943_v50  ;;  %v2506_v37 = vmul.f32 %v7644_v11, %v10422_v27  ;;  %v12947_v27 = vld [vmem:[#allocation136_spill] sm:$0xff] }
 0x6d0   : > { %7645 = vrcp.f32 %v2427_v10  ;;  %3162 = vmatpush.bf16.xpose.msrb.mxu0 %v3150_v4  ;;  %v2288_v31 = vsub.f32 %v12947_v27, %v10444_v7  ;;  %v2352_v7 = vmul.f32 1.442695, %v2290_v3 }
 0x6d1   : > { %v2538_v28 = vpack.c.bf16 %v2506_v37, %v2506_v37  ;;  %7647 = vpow2.f32 %v2346_v29  ;;  %v10571_v37 = vpop.f32.mrf.mxu3 }
 0x6d2   : > { %v2348_v30 = vmul.f32 1.442695, %v2288_v31  ;;  %v10551_v5 = vpop.permute.xlu0 %5027 }
 0x6d3   : > { %v2789_v22 = vunpack.c.l.b16 %v2538_v28  ;;  %12955 = vst [vmem:[#allocation40_spill] sm:$0xff] %v10551_v5  ;;  %v12962_v28 = vld [vmem:[#allocation113_spill] sm:$0xff] }
 0x6d4   : > { %7649 = vpow2.f32 %v2348_v30 }
 0x6d5   : > { %7651 = vpow2.f32 %v2352_v7 }
 0x6d6   : > { %v7646_v14 = vpop.eup %7645  ;;  %7653 = vrcp.f32 %v2430_v17  ;;  %v10606_v17 = vpop.permute.xlu2 %5068 }
 0x6d7   : > { %v2507_v33 = vmul.f32 %v7646_v14, %v10433_v19  ;;  %v10529_v25 = vpop.eup %7647  ;;  %v12948_v19 = vld [vmem:[#allocation69_spill] sm:$0xff]  ;;  %12972 = vst [vmem:[#allocation109_spill] sm:$0xff] %v10606_v17 }
 0x6d8   : > { %v2437_v9 = vsel %vm1775_vm1, %v10529_v25, 0.0 }
 0x6d9   : > { %v2539_v59 = vpack.c.bf16 %v2507_v33, %v2507_v33 }
 0x6da   : > { %v10541_v24 = vpop.eup %7649 }
 0x6db   : > { %v2790_v46 = vunpack.c.l.b16 %v2539_v59  ;;  %v2440_v56 = vsel %vm1775_vm1, %v10541_v24, 0.0  ;;  %v10545_v48 = vpop.eup %7651 }
 0x6dc   : > { %v2446_v20 = vsel %vm1775_vm1, %v10545_v48, 0.0  ;;  %v7654_v6 = vpop.eup %7653 }
 0x6dd   : > { %v2792_v35 = vpack.c.b16 %v2790_v46, %v2789_v22  ;;  %v2508_v39 = vmul.f32 %v7654_v6, %v10407_v12  ;;  %v12963_v22 = vld [vmem:[#allocation76_spill] sm:$0xff]  ;;  %v10578_v46 = vpop.f32.mrf.mxu0  ;;  %v7342_v6 = vld [vmem:[#allocation11 + $0x18] sm:$0xff]  }
 0x6de   : > { %v3192_v12 = vsel %vm1775_vm1, %v12963_v22, 0 }
 0x6df   : > { %7069 = vmatmul.msk.bf16.gmra.mxu0 %vm1775_vm1, %v2792_v35  ;;  %7075 = vmatmul.msk.bf16.gmra.mxu3 %vm1775_vm1, %v12945_v63  ;;  %v2540_v50 = vpack.c.bf16 %v2508_v39, %v2508_v39  ;;  %v12965_v63 = vld [vmem:[#allocation72_spill] sm:$0xff] }
 0x6e0   : > { %v3189_v47 = vsel %vm1775_vm1, %v12965_v63, 0 }
 0x6e1   : > { %v2834_v11 = vunpack.c.l.b16 %v2540_v50 }
 0x6e5   : > { %v10586_v15 = vpop.f32.mrf.mxu0 }
 0x6e7   : > { %v10557_v8 = vpop.permute.xlu1 %5025 }
 0x6e8   : > { %12956 = vst [vmem:[#allocation77_spill] sm:$0xff] %v10557_v8 }
 0x6ed   : > { %v10592_v31 = vpop.f32.mrf.mxu0 }
 0x6ef   : > { %7076 = vmatmul.msk.bf16.vlgmr.msra.gmra.mxu0 %vm1775_vm1, %v12948_v19  ;;  %7082 = vmatmul.msk.bf16.vlgmr.msrb.gmra.mxu3 %vm1775_vm1, %v12949_v52 }
 0x6f0   : > { %3705 = vmatpush.bf16.msra.mxu0 %v12951_v13 }
 0x6f2   : > { %2438 = vadd.xlane.f32.xlu1 %v2437_v9  ;;  %v7341_v9 = vld [vmem:[#allocation11 + $0x10] sm:$0xff]  }
 0x6f3   : > { %v10604_v7 = vunpack.c.l.bf16 %v7341_v9 }
 0x6f4   : > { %3706 = vmatpush.bf16.msra.mxu0 %v12952_v0 }
 0x6f5   : > { %v10596_v52 = vpop.f32.mrf.mxu0 }
 0x6fa   : > { %2441 = vadd.xlane.f32.xlu1 %v2440_v56 }
 0x6fd   : > { %v2436_v51 = vpop.xlane.xlu0 %2435 }
 0x6ff   : > { %7077 = vmatmul.msk.bf16.gmra.mxu0 %vm1775_vm1, %v12953_v42  ;;  %7083 = vmatmul.msk.bf16.gmra.mxu3 %vm1775_vm1, %v12954_v2 }
 0x702   : > { %2447 = vadd.xlane.f32.xlu1 %v2446_v20  ;;  %v10615_v20 = vunpack.c.h.bf16 %v7341_v9 }
 0x70f   : > { %7084 = vmatmul.msk.bf16.vlgmr.msrb.gmra.mxu0 %vm1775_vm1, %v12957_v32 }
 0x710   : > { %3869 = vmatpush.bf16.msrb.mxu0 %v12958_v41  ;;  %v10562_v57 = vpop.permute.xlu0 %5066 }
 0x711   : > { %12959 = vst [vmem:[#allocation59_spill] sm:$0xff] %v10562_v57 }
 0x712   : > { %v2433_v18 = vpop.xlane.xlu1 %2432 }
 0x713   : > { %7655 = vrcp.f32 %v2433_v18 }
 0x714   : > { %3870 = vmatpush.bf16.msrb.mxu0 %v12960_v1  ;;  %v10622_v1 = vpop.permute.xlu2 %5148  ;;  %7657 = vrcp.f32 %v2436_v51 }
 0x715   : > { %12975 = vst [vmem:[#allocation115_spill] sm:$0xff] %v10622_v1 }
 0x718   : > { %v10568_v62 = vpop.permute.xlu0 %5150 }
 0x719   : > { %12961 = vst [vmem:[#allocation60_spill] sm:$0xff] %v10568_v62  ;;  %v7656_v10 = vpop.eup %7655 }
 0x71a   : > { %v2509_v38 = vmul.f32 %v7656_v10, %v10479_v61  ;;  %v10580_v61 = vpop.f32.mrf.mxu3  ;;  %v10626_v10 = vunpack.c.l.bf16 %v7342_v6 }
 0x71c   : > { %v2541_v4 = vpack.c.bf16 %v2509_v38, %v2509_v38 }
 0x71e   : > { %v2835_v14 = vunpack.c.l.b16 %v2541_v4 }
 0x71f   : > { %7085 = vmatmul.msk.bf16.gmra.mxu0 %vm1775_vm1, %v12962_v28 }
 0x720   : > { %v2838_v33 = vpack.c.b16 %v2835_v14, %v2834_v11  ;;  %v3649_v59 = vpop.permute.xlu0 %3648  ;;  %v2445_v11 = vpop.xlane.xlu2 %2444 }
 0x721   : > { %3664 = vmatpush.bf16.msra.mxu3 %v3649_v59  ;;  %v10635_v59 = vunpack.c.h.bf16 %v7342_v6 }
 0x722   : > { %7070 = vmatmul.msk.bf16.vlgmr.msra.gmra.mxu1 %vm1775_vm1, %v2838_v33  ;;  %v10588_v29 = vpop.f32.mrf.mxu3  ;;  %v7658_v33 = vpop.eup %7657 }
 0x723   : > { %3200 = vmatpush.bf16.xpose.msra.mxu1 %v3192_v12  ;;  %12966 = vst [vmem:[#allocation135_spill] sm:$0xff] %v10588_v29  ;;  %v2510_v22 = vmul.f32 %v7658_v33, %v10463_v49 }
 0x728   : > { %v2451_v23 = vpop.xlane.xlu2 %2450 }
 0x72a   : > { %v10582_v35 = vpop.permute.xlu1 %5109  ;;  %v10594_v30 = vpop.f32.mrf.mxu3 }
 0x72b   : > { %12964 = vst [vmem:[#allocation61_spill] sm:$0xff] %v10582_v35  ;;  %3201 = vmatpush.bf16.xpose.msra.mxu1 %v3189_v47 }
 0x72c   : > { %12968 = vst [vmem:[#allocation69_spill] sm:$0xff] %v10594_v30 }
 0x730   : > { %v10771_v8 = vpop.permute.xlu2 %5505 }
 0x732   : > { %v10590_v27 = vpop.permute.xlu1 %5107 }
 0x733   : > { %12967 = vst [vmem:[#allocation136_spill] sm:$0xff] %v10590_v27 }
 0x73a   : > { %v3647_v19 = vpop.permute.xlu1 %3646 }
 0x73b   : > { %3665 = vmatpush.bf16.msra.mxu3 %v3647_v19 }
 0x742   : > { %v10598_v45 = vpop.f32.mrf.mxu3 }
 0x743   : > { %12969 = vst [vmem:[#allocation106_spill] sm:$0xff] %v10598_v45 }
 0x744   : > { %v10600_v3 = vpop.f32.mrf.mxu0 }
 0x745   : > { %12970 = vst [vmem:[#allocation137_spill] sm:$0xff] %v10600_v3 }
 0x74a   : > { %v10602_v13 = vpop.f32.mrf.mxu3 }
 0x74b   : > { %12971 = vst [vmem:[#allocation104_spill] sm:$0xff] %v10602_v13 }
 0x74c   : > { %v10611_v42 = vpop.f32.mrf.mxu0 }
 0x74d   : > { %12973 = vst [vmem:[#allocation73_spill] sm:$0xff] %v10611_v42 }
 0x752   : > { %v2969_v0 = vpop.f32.mrf.mxu3 }
 0x753   : > { %v10609_v56 = vadd.f32 %v10604_v7, %v2969_v0 }
 0x755   : > { %v3252_v2 = vsel %vm1775_vm1, %v10609_v56, -inf }
 0x756   : > { %3253 = vmax.xlane.f32.xlu1 %v3252_v2 }
 0x75a   : > { %v2971_v32 = vpop.f32.mrf.mxu3 }
 0x75b   : > { %v10618_v41 = vadd.f32 %v10615_v20, %v2971_v32  ;;  %v2542_v32 = vpack.c.bf16 %v2510_v22, %v2510_v22 }
 0x75c   : > { %v10620_v18 = vpop.f32.mrf.mxu0 }
 0x75d   : > { %12974 = vst [vmem:[#allocation112_spill] sm:$0xff] %v10620_v18  ;;  %v3255_v39 = vsel %vm1775_vm1, %v10618_v41, -inf }
 0x75e   : > { %3256 = vmax.xlane.f32.xlu1 %v3255_v39 }
 0x762   : > { %v2974_v50 = vpop.f32.mrf.mxu3 }
 0x763   : > { %v10629_v38 = vadd.f32 %v10626_v10, %v2974_v50 }
 0x764   : > { %v10631_v4 = vpop.f32.mrf.mxu0 }
 0x765   : > { %12976 = vst [vmem:[#allocation131_spill] sm:$0xff] %v10631_v4  ;;  %v2439_v14 = vpop.xlane.xlu1 %2438  ;;  %v3258_v28 = vsel %vm1775_vm1, %v10629_v38, -inf }
 0x766   : > { %7659 = vrcp.f32 %v2439_v14  ;;  %3259 = vmax.xlane.f32.xlu1 %v3258_v28 }
 0x767   : > { %7661 = vrcp.f32 %v2445_v11  ;;  %v2836_v11 = vunpack.c.l.b16 %v2542_v32 }
 0x76a   : > { %v2976_v51 = vpop.f32.mrf.mxu3 }
 0x76b   : > { %v10639_v12 = vadd.f32 %v10635_v59, %v2976_v51 }
 0x76c   : > { %v7660_v63 = vpop.eup %7659  ;;  %v3008_v47 = vpop.f32.mrf.mxu0 }
 0x76d   : > { %v10642_v19 = vadd.f32 %v10604_v7, %v3008_v47  ;;  %v2442_v9 = vpop.xlane.xlu1 %2441  ;;  %v3261_v0 = vsel %vm1775_vm1, %v10639_v12, -inf  ;;  %v2511_v2 = vmul.f32 %v7660_v63, %v10529_v25  ;;  %v7662_v6 = vpop.eup %7661 }
 0x76e   : > { %7663 = vrcp.f32 %v2442_v9  ;;  %3262 = vmax.xlane.f32.xlu2 %v3261_v0  ;;  %v2513_v50 = vmul.f32 %v7662_v6, %v10477_v16 }
 0x76f   : > { %v3264_v49 = vsel %vm1775_vm1, %v10642_v19, -inf  ;;  %v2543_v39 = vpack.c.bf16 %v2511_v2, %v2511_v2 }
 0x770   : > { %3265 = vmax.xlane.f32.xlu0 %v3264_v49  ;;  %v2545_v47 = vpack.c.bf16 %v2513_v50, %v2513_v50 }
 0x771   : > { %v2837_v14 = vunpack.c.l.b16 %v2543_v39  ;;  %v12977_v39 = vld [vmem:[#allocation88_spill] sm:$0xff] }
 0x772   : > { %v2882_v0 = vunpack.c.l.b16 %v2545_v47 }
 0x773   : > { %v2839_v28 = vpack.c.b16 %v2837_v14, %v2836_v11 }
 0x774   : > { %v7664_v33 = vpop.eup %7663  ;;  %v3010_v51 = vpop.f32.mrf.mxu0 }
 0x775   : > { %v2512_v25 = vmul.f32 %v7664_v33, %v10541_v24  ;;  %v10652_v22 = vadd.f32 %v10615_v20, %v3010_v51  ;;  %v2448_v63 = vpop.xlane.xlu1 %2447  ;;  %7071 = vmatmul.msk.bf16.gmra.mxu1 %vm1775_vm1, %v2839_v28  ;;  %v3231_v24 = vsel %vm1775_vm1, %v12977_v39, 0 }
 0x776   : > { %7665 = vrcp.f32 %v2448_v63  ;;  %v12978_v63 = vld [vmem:[#allocation79_spill] sm:$0xff] }
 0x777   : > { %v2544_v9 = vpack.c.bf16 %v2512_v25, %v2512_v25  ;;  %v3267_v16 = vsel %vm1775_vm1, %v10652_v22, -inf  ;;  %7667 = vrcp.f32 %v2451_v23 }
 0x778   : > { %3268 = vmax.xlane.f32.xlu0 %v3267_v16 }
 0x779   : > { %v2881_v2 = vunpack.c.l.b16 %v2544_v9  ;;  %v12979_v9 = vld [vmem:[#allocation89_spill] sm:$0xff] }
 0x77a   : > { %v3228_v16 = vsel %vm1775_vm1, %v12979_v9, 0  ;;  %v12987_v9 = vld [vmem:[#allocation130_spill] sm:$0xff] }
 0x77b   : > { %v2885_v32 = vpack.c.b16 %v2882_v0, %v2881_v2 }
 0x77c   : > { %v7666_v6 = vpop.eup %7665  ;;  %v3013_v49 = vpop.f32.mrf.mxu0 }
 0x77d   : > { %v10660_v50 = vadd.f32 %v10626_v10, %v3013_v49  ;;  %7072 = vmatmul.msk.bf16.vlgmr.msrb.gmra.mxu2 %vm1775_vm1, %v2885_v32  ;;  %v7668_v11 = vpop.eup %7667  ;;  %v2514_v14 = vmul.f32 %v7666_v6, %v10545_v48  ;;  %v12980_v48 = vld [vmem:[#allocation108_spill] sm:$0xff]  ;;  %v12981_v32 = vld [vmem:[#allocation110_spill] sm:$0xff] }
 0x77e   : > { %3239 = vmatpush.bf16.xpose.msrb.mxu2 %v3231_v24  ;;  %v2515_v28 = vmul.f32 %v7668_v11, %v10490_v21 }
 0x77f   : > { %v3270_v23 = vsel %vm1775_vm1, %v10660_v50, -inf  ;;  %v2546_v33 = vpack.c.bf16 %v2514_v14, %v2514_v14 }
 0x780   : > { %3271 = vmax.xlane.f32.xlu1 %v3270_v23  ;;  %v2547_v47 = vpack.c.bf16 %v2515_v28, %v2515_v28  ;;  %v12982_v23 = vld [vmem:[#allocation95_spill] sm:$0xff] }
 0x781   : > { %v2883_v2 = vunpack.c.l.b16 %v2546_v33  ;;  %v12983_v33 = vld [vmem:[#allocation100_spill] sm:$0xff] }
 0x782   : > { %v2884_v21 = vunpack.c.l.b16 %v2547_v47  ;;  %v12985_v47 = vld [vmem:[#allocation121_spill] sm:$0xff] }
 0x784   : > { %v3015_v51 = vpop.f32.mrf.mxu0  ;;  %v2886_v6 = vpack.c.b16 %v2884_v21, %v2883_v2  ;;  %v10703_v2 = vpop.f32.mrf.mxu1  ;;  %v12992_v21 = vld [vmem:[#allocation124_spill] sm:$0xff] }
 0x785   : > { %v10668_v25 = vadd.f32 %v10635_v59, %v3015_v51  ;;  %7078 = vmatmul.msk.bf16.vlgmr.msrb.gmra.mxu1 %vm1775_vm1, %v12978_v63  ;;  %v12984_v51 = vld [vmem:[#allocation114_spill] sm:$0xff]  ;;  %v12986_v63 = vld [vmem:[#allocation111_spill] sm:$0xff]  ;;  %12991 = vst [vmem:[#allocation120_spill] sm:$0xff] %v10703_v2 }
 0x786   : > { %3240 = vmatpush.bf16.xpose.msrb.mxu2 %v3228_v16  ;;  %3746 = vmatpush.bf16.msrb.mxu1 %v12980_v48  ;;  %v12988_v16 = vld [vmem:[#allocation132_spill] sm:$0xff]  ;;  %v12989_v48 = vld [vmem:[#allocation99_spill] sm:$0xff] }
 0x787   : > { %v3273_v0 = vsel %vm1775_vm1, %v10668_v25, -inf }
 0x788   : > { %3274 = vmax.xlane.f32.xlu2 %v3273_v0  ;;  %v12990_v0 = vld [vmem:[#allocation119_spill] sm:$0xff] }
 0x78a   : > { %3747 = vmatpush.bf16.msrb.mxu1 %v12981_v32  ;;  %v12993_v32 = vld [vmem:[#allocation134_spill] sm:$0xff] }
 0x78c   : > { %v3164_v49 = vpop.f32.mrf.mxu0 }
 0x78d   : > { %v10679_v39 = vadd.f32 %v10604_v7, %v3164_v49  ;;  %7073 = vmatmul.msk.bf16.gmra.mxu2 %vm1775_vm1, %v2886_v6  ;;  %v12994_v6 = vld [vmem:[#allocation133_spill] sm:$0xff]  ;;  %v10709_v49 = vpop.f32.mrf.mxu1 }
 0x78e   : > { %12995 = vst [vmem:[#allocation113_spill] sm:$0xff] %v10709_v49 }
 0x78f   : > { %v3312_v24 = vsel %vm1775_vm1, %v10679_v39, -inf }
 0x790   : > { %3313 = vmax.xlane.f32.xlu0 %v3312_v24  ;;  %v12996_v24 = vld [vmem:[#allocation127_spill] sm:$0xff] }
 0x794   : > { %v3166_v11 = vpop.f32.mrf.mxu0 }
 0x795   : > { %v10685_v14 = vadd.f32 %v10615_v20, %v3166_v11  ;;  %7079 = vmatmul.msk.bf16.gmra.mxu1 %vm1775_vm1, %v12982_v23  ;;  %v10713_v11 = vpop.f32.mrf.mxu1 }
 0x796   : > { %12997 = vst [vmem:[#allocation76_spill] sm:$0xff] %v10713_v11 }
 0x797   : > { %v3315_v28 = vsel %vm1775_vm1, %v10685_v14, -inf }
 0x798   : > { %3316 = vmax.xlane.f32.xlu2 %v3315_v28  ;;  %v10717_v28 = vpop.f32.mrf.mxu2 }
 0x799   : > { %12999 = vst [vmem:[#allocation88_spill] sm:$0xff] %v10717_v28 }
 0x79d   : > { %7080 = vmatmul.msk.bf16.vlgmr.msra.gmra.mxu2 %vm1775_vm1, %v12983_v33  ;;  %v10715_v23 = vpop.f32.mrf.mxu1 }
 0x79e   : > { %3787 = vmatpush.bf16.msra.mxu2 %v12984_v51  ;;  %12998 = vst [vmem:[#allocation72_spill] sm:$0xff] %v10715_v23 }
 0x7a0   : > { %v10721_v51 = vpop.f32.mrf.mxu2 }
 0x7a1   : > { %13001 = vst [vmem:[#allocation89_spill] sm:$0xff] %v10721_v51 }
 0x7a2   : > { %3788 = vmatpush.bf16.msra.mxu2 %v12985_v47 }
 0x7a5   : > { %7086 = vmatmul.msk.bf16.vlgmr.msra.gmra.mxu1 %vm1775_vm1, %v12986_v63  ;;  %v10719_v33 = vpop.f32.mrf.mxu1 }
 0x7a6   : > { %3910 = vmatpush.bf16.msra.mxu1 %v12987_v9  ;;  %13000 = vst [vmem:[#allocation79_spill] sm:$0xff] %v10719_v33 }
 0x7a8   : > { %v10725_v63 = vpop.f32.mrf.mxu2 }
 0x7a9   : > { %13003 = vst [vmem:[#allocation110_spill] sm:$0xff] %v10725_v63  ;;  %v13015_v63 = vld [vmem:[#allocation42_spill] sm:$0xff] }
 0x7aa   : > { %3911 = vmatpush.bf16.msra.mxu1 %v12988_v16 }
 0x7ad   : > { %7081 = vmatmul.msk.bf16.gmra.mxu2 %vm1775_vm1, %v12989_v48  ;;  %v10723_v47 = vpop.f32.mrf.mxu1 }
 0x7ae   : > { %13002 = vst [vmem:[#allocation108_spill] sm:$0xff] %v10723_v47 }
 0x7b0   : > { %v10729_v16 = vpop.f32.mrf.mxu2 }
 0x7b1   : > { %13005 = vst [vmem:[#allocation100_spill] sm:$0xff] %v10729_v16 }
 0x7b5   : > { %7087 = vmatmul.msk.bf16.gmra.mxu1 %vm1775_vm1, %v12990_v0 }
 0x7bd   : > { %7088 = vmatmul.msk.bf16.vlgmr.msrb.gmra.mxu2 %vm1775_vm1, %v12992_v21 }
 0x7be   : > { %3951 = vmatpush.bf16.msrb.mxu2 %v12993_v32 }
 0x7c2   : > { %3952 = vmatpush.bf16.msrb.mxu2 %v12994_v6 }
 0x7cd   : > { %7089 = vmatmul.msk.bf16.gmra.mxu2 %vm1775_vm1, %v12996_v24  ;;  %v3169_v24 = vpop.f32.mrf.mxu0 }
 0x7ce   : > { %v10743_v26 = vadd.f32 %v10626_v10, %v3169_v24 }
 0x7d5   : > { %v3171_v1 = vpop.f32.mrf.mxu0 }
 0x7d6   : > { %v10762_v62 = vadd.f32 %v10635_v59, %v3171_v1 }
 0x7e3   : > { %v3266_v47 = vpop.xlane.xlu0 %3265 }
 0x7f2   : > { %v10727_v9 = vpop.f32.mrf.mxu1 }
 0x7f3   : > { %13004 = vst [vmem:[#allocation95_spill] sm:$0xff] %v10727_v9 }
 0x7fa   : > { %v10731_v48 = vpop.f32.mrf.mxu1 }
 0x7fb   : > { %13006 = vst [vmem:[#allocation114_spill] sm:$0xff] %v10731_v48 }
 0x800   : > { %v10733_v0 = vpop.f32.mrf.mxu2 }
 0x801   : > { %13007 = vst [vmem:[#allocation121_spill] sm:$0xff] %v10733_v0 }
 0x802   : > { %v3047_v21 = vpop.f32.mrf.mxu1 }
 0x803   : > { %v10736_v32 = vadd.f32 %v10604_v7, %v3047_v21  ;;  %v3318_v21 = vsel %vm1775_vm1, %v10743_v26, -inf }
 0x805   : > { %v3276_v6 = vsel %vm1775_vm1, %v10736_v32, -inf }
 0x806   : > { %3277 = vmax.xlane.f32.xlu1 %v3276_v6 }
 0x808   : > { %v10740_v54 = vpop.f32.mrf.mxu2 }
 0x809   : > { %13008 = vst [vmem:[#allocation111_spill] sm:$0xff] %v10740_v54 }
 0x80a   : > { %v3049_v55 = vpop.f32.mrf.mxu1 }
 0x80b   : > { %v10746_v60 = vadd.f32 %v10615_v20, %v3049_v55 }
 0x80d   : > { %v3279_v36 = vsel %vm1775_vm1, %v10746_v60, -inf }
 0x80e   : > { %3280 = vmax.xlane.f32.xlu0 %v3279_v36  ;;  %3319 = vmax.xlane.f32.xlu1 %v3318_v21 }
 0x810   : > { %v10752_v43 = vpop.f32.mrf.mxu2 }
 0x811   : > { %13009 = vst [vmem:[#allocation130_spill] sm:$0xff] %v10752_v43 }
 0x812   : > { %v3052_v6 = vpop.f32.mrf.mxu1 }
 0x813   : > { %v10755_v34 = vadd.f32 %v10626_v10, %v3052_v6  ;;  %v3321_v6 = vsel %vm1775_vm1, %v10762_v62, -inf }
 0x815   : > { %v3282_v24 = vsel %vm1775_vm1, %v10755_v34, -inf }
 0x816   : > { %3283 = vmax.xlane.f32.xlu0 %v3282_v24 }
 0x818   : > { %v10759_v55 = vpop.f32.mrf.mxu2 }
 0x819   : > { %13010 = vst [vmem:[#allocation132_spill] sm:$0xff] %v10759_v55 }
 0x81a   : > { %v3054_v27 = vpop.f32.mrf.mxu1 }
 0x81b   : > { %v10765_v36 = vadd.f32 %v10635_v59, %v3054_v27 }
 0x81d   : > { %v3285_v21 = vsel %vm1775_vm1, %v10765_v36, -inf }
 0x81e   : > { %3286 = vmax.xlane.f32.xlu2 %v3285_v21  ;;  %3322 = vmax.xlane.f32.xlu0 %v3321_v6  ;;  %v3263_v6 = vpop.xlane.xlu2 %3262 }
 0x81f   : > { %v3351_v0 = vsub.f32 %v10639_v12, %v3263_v6 }
 0x820   : > { %v3086_v35 = vpop.f32.mrf.mxu2 }
 0x821   : > { %v10774_v24 = vadd.f32 %v10604_v7, %v3086_v35  ;;  %v3386_v48 = vmul.f32 1.442695, %v3351_v0 }
 0x822   : > { %v3203_v1 = vpop.f32.mrf.mxu1 }
 0x823   : > { %v10777_v55 = vadd.f32 %v10604_v7, %v3203_v1  ;;  %v3288_v27 = vsel %vm1775_vm1, %v10774_v24, -inf  ;;  %7669 = vpow2.f32 %v3386_v48 }
 0x824   : > { %3289 = vmax.xlane.f32.xlu1 %v3288_v27 }
 0x825   : > { %v3324_v43 = vsel %vm1775_vm1, %v10777_v55, -inf }
 0x826   : > { %3325 = vmax.xlane.f32.xlu2 %v3324_v43  ;;  %v3254_v43 = vpop.xlane.xlu1 %3253  ;;  %v3275_v13 = vpop.xlane.xlu2 %3274 }
 0x827   : > { %v3348_v57 = vsub.f32 %v10609_v56, %v3254_v43 }
 0x828   : > { %v3088_v21 = vpop.f32.mrf.mxu2 }
 0x829   : > { %v10784_v5 = vadd.f32 %v10615_v20, %v3088_v21 }
 0x82a   : > { %v3205_v54 = vpop.f32.mrf.mxu1 }
 0x82b   : > { %v10787_v35 = vadd.f32 %v10615_v20, %v3205_v54  ;;  %v3291_v1 = vsel %vm1775_vm1, %v10784_v5, -inf }
 0x82c   : > { %3292 = vmax.xlane.f32.xlu0 %v3291_v1  ;;  %v3380_v1 = vmul.f32 1.442695, %v3348_v57 }
 0x82d   : > { %v3327_v27 = vsel %vm1775_vm1, %v10787_v35, -inf }
 0x82e   : > { %3328 = vmax.xlane.f32.xlu1 %v3327_v27  ;;  %v10808_v27 = vpop.eup %7669  ;;  %7671 = vpow2.f32 %v3380_v1 }
 0x830   : > { %v3091_v9 = vpop.f32.mrf.mxu2 }
 0x831   : > { %v10795_v21 = vadd.f32 %v10626_v10, %v3091_v9 }
 0x832   : > { %v3208_v54 = vpop.f32.mrf.mxu1 }
 0x833   : > { %v10799_v17 = vadd.f32 %v10626_v10, %v3208_v54  ;;  %v3294_v12 = vsel %vm1775_vm1, %v10795_v21, -inf  ;;  %v3257_v54 = vpop.xlane.xlu1 %3256 }
 0x834   : > { %3295 = vmax.xlane.f32.xlu0 %v3294_v12  ;;  %v3453_v12 = vsel %vm1775_vm1, %v10808_v27, 0.0 }
 0x835   : > { %v3330_v6 = vsel %vm1775_vm1, %v10799_v17, -inf }
 0x836   : > { %3331 = vmax.xlane.f32.xlu1 %v3330_v6  ;;  %v10819_v6 = vpop.eup %7671 }
 0x838   : > { %v3093_v0 = vpop.f32.mrf.mxu2 }
 0x839   : > { %v10806_v9 = vadd.f32 %v10635_v59, %v3093_v0 }
 0x83a   : > { %v3210_v56 = vpop.f32.mrf.mxu1 }
 0x83b   : > { %v10811_v43 = vadd.f32 %v10635_v59, %v3210_v56  ;;  %v3297_v48 = vsel %vm1775_vm1, %v10806_v9, -inf  ;;  %v3349_v56 = vsub.f32 %v10618_v41, %v3257_v54 }
 0x83c   : > { %3298 = vmax.xlane.f32.xlu2 %v3297_v48  ;;  %v3444_v48 = vsel %vm1775_vm1, %v10819_v6, 0.0 }
 0x83d   : > { %v3333_v57 = vsel %vm1775_vm1, %v10811_v43, -inf  ;;  %v3382_v4 = vmul.f32 1.442695, %v3349_v56  ;;  %v3352_v56 = vsub.f32 %v10642_v19, %v3266_v47  ;;  %v3355_v47 = vsub.f32 %v10668_v25, %v3275_v13 }
 0x83e   : > { %3334 = vmax.xlane.f32.xlu0 %v3333_v57  ;;  %3454 = vadd.xlane.f32.xlu1 %v3453_v12  ;;  %v3260_v57 = vpop.xlane.xlu1 %3259 }
 0x83f   : > { %7673 = vpow2.f32 %v3382_v4 }
 0x840   : > { %v3242_v1 = vpop.f32.mrf.mxu2 }
 0x841   : > { %v10822_v0 = vadd.f32 %v10604_v7, %v3242_v1  ;;  %v3350_v1 = vsub.f32 %v10629_v38, %v3260_v57  ;;  %v3388_v57 = vmul.f32 1.442695, %v3352_v56 }
 0x843   : > { %v3336_v33 = vsel %vm1775_vm1, %v10822_v0, -inf  ;;  %v3384_v54 = vmul.f32 1.442695, %v3350_v1 }
 0x844   : > { %3445 = vadd.xlane.f32.xlu2 %v3444_v48  ;;  %v3269_v48 = vpop.xlane.xlu0 %3268 }
 0x845   : > { %v10835_v42 = vpop.eup %7673  ;;  %7675 = vpow2.f32 %v3384_v54 }
 0x846   : > { %3337 = vmax.xlane.f32.xlu0 %v3336_v33  ;;  %v3447_v38 = vsel %vm1775_vm1, %v10835_v42, 0.0  ;;  %7677 = vpow2.f32 %v3388_v57 }
 0x848   : > { %v3244_v12 = vpop.f32.mrf.mxu2 }
 0x849   : > { %v10830_v18 = vadd.f32 %v10615_v20, %v3244_v12  ;;  %v3353_v12 = vsub.f32 %v10652_v22, %v3269_v48 }
 0x84b   : > { %v3339_v41 = vsel %vm1775_vm1, %v10830_v18, -inf  ;;  %v3390_v1 = vmul.f32 1.442695, %v3353_v12  ;;  %v10846_v45 = vpop.eup %7675  ;;  %v3394_v12 = vmul.f32 1.442695, %v3355_v47 }
 0x84c   : > { %3340 = vmax.xlane.f32.xlu2 %v3339_v41  ;;  %v3272_v41 = vpop.xlane.xlu1 %3271  ;;  %v3450_v48 = vsel %vm1775_vm1, %v10846_v45, 0.0 }
 0x84d   : > { %7679 = vpow2.f32 %v3390_v1 }
 0x850   : > { %v3247_v3 = vpop.f32.mrf.mxu2 }
 0x851   : > { %v10839_v33 = vadd.f32 %v10626_v10, %v3247_v3  ;;  %v3354_v3 = vsub.f32 %v10660_v50, %v3272_v41 }
 0x853   : > { %v3342_v4 = vsel %vm1775_vm1, %v10839_v33, -inf  ;;  %v3392_v56 = vmul.f32 1.442695, %v3354_v3 }
 0x854   : > { %3448 = vadd.xlane.f32.xlu2 %v3447_v38  ;;  %3343 = vmax.xlane.f32.xlu0 %v3342_v4  ;;  %v10857_v38 = vpop.eup %7677  ;;  %v3314_v4 = vpop.xlane.xlu0 %3313 }
 0x855   : > { %v10859_v50 = vpop.eup %7679  ;;  %7681 = vpow2.f32 %v3392_v56  ;;  %v3368_v57 = vsub.f32 %v10679_v39, %v3314_v4  ;;  %v3456_v13 = vsel %vm1775_vm1, %v10857_v38, 0.0 }
 0x856   : > { %7683 = vpow2.f32 %v3394_v12  ;;  %v3459_v25 = vsel %vm1775_vm1, %v10859_v50, 0.0 }
 0x857   : > { %v3420_v1 = vmul.f32 1.442695, %v3368_v57 }
 0x858   : > { %v3249_v19 = vpop.f32.mrf.mxu2 }
 0x859   : > { %v10850_v22 = vadd.f32 %v10635_v59, %v3249_v19  ;;  %7685 = vpow2.f32 %v3420_v1 }
 0x85b   : > { %v3345_v54 = vsel %vm1775_vm1, %v10850_v22, -inf  ;;  %v10866_v41 = vpop.eup %7681 }
 0x85c   : > { %3346 = vmax.xlane.f32.xlu2 %v3345_v54  ;;  %3451 = vadd.xlane.f32.xlu0 %v3450_v48  ;;  %v10868_v19 = vpop.eup %7683  ;;  %v3462_v3 = vsel %vm1775_vm1, %v10866_v41, 0.0  ;;  %v3317_v48 = vpop.xlane.xlu2 %3316 }
 0x85d   : > { %v3465_v39 = vsel %vm1775_vm1, %v10868_v19, 0.0  ;;  %v3369_v4 = vsub.f32 %v10685_v14, %v3317_v48 }
 0x85f   : > { %v10874_v47 = vpop.eup %7685 }
 0x860   : > { %v3504_v54 = vsel %vm1775_vm1, %v10874_v47, 0.0 }
 0x864   : > { %3457 = vadd.xlane.f32.xlu0 %v3456_v13  ;;  %3460 = vadd.xlane.f32.xlu2 %v3459_v25  ;;  %v3422_v13 = vmul.f32 1.442695, %v3369_v4 }
 0x86c   : > { %3463 = vadd.xlane.f32.xlu0 %v3462_v3  ;;  %3466 = vadd.xlane.f32.xlu2 %v3465_v39 }
 0x874   : > { %3505 = vadd.xlane.f32.xlu0 %v3504_v54 }
 0x879   : > { %v3278_v56 = vpop.xlane.xlu1 %3277 }
 0x87a   : > { %v3356_v12 = vsub.f32 %v10736_v32, %v3278_v56 }
 0x87c   : > { %v3396_v57 = vmul.f32 1.442695, %v3356_v12 }
 0x87e   : > { %7687 = vpow2.f32 %v3396_v57 }
 0x87f   : > { %7689 = vpow2.f32 %v3422_v13 }
 0x881   : > { %v3281_v25 = vpop.xlane.xlu0 %3280  ;;  %v3320_v32 = vpop.xlane.xlu1 %3319 }
 0x882   : > { %v3357_v1 = vsub.f32 %v10746_v60, %v3281_v25  ;;  %v3370_v60 = vsub.f32 %v10743_v26, %v3320_v32 }
 0x884   : > { %v10881_v3 = vpop.eup %7687  ;;  %v3398_v39 = vmul.f32 1.442695, %v3357_v1  ;;  %v3424_v4 = vmul.f32 1.442695, %v3370_v60 }
 0x885   : > { %v3468_v30 = vsel %vm1775_vm1, %v10881_v3, 0.0  ;;  %v10885_v29 = vpop.eup %7689 }
 0x886   : > { %3469 = vadd.xlane.f32.xlu1 %v3468_v30  ;;  %7691 = vpow2.f32 %v3398_v39  ;;  %v3507_v12 = vsel %vm1775_vm1, %v10885_v29, 0.0 }
 0x889   : > { %v3284_v54 = vpop.xlane.xlu0 %3283 }
 0x88a   : > { %v3358_v14 = vsub.f32 %v10755_v34, %v3284_v54 }
 0x88c   : > { %v3400_v48 = vmul.f32 1.442695, %v3358_v14  ;;  %v10888_v56 = vpop.eup %7691 }
 0x88d   : > { %v3471_v30 = vsel %vm1775_vm1, %v10888_v56, 0.0 }
 0x88e   : > { %7693 = vpow2.f32 %v3400_v48  ;;  %3508 = vadd.xlane.f32.xlu1 %v3507_v12  ;;  %3472 = vadd.xlane.f32.xlu0 %v3471_v30 }
 0x88f   : > { %7695 = vpow2.f32 %v3424_v4 }
 0x891   : > { %v3287_v57 = vpop.xlane.xlu2 %3286  ;;  %v3323_v13 = vpop.xlane.xlu0 %3322 }
 0x892   : > { %v3359_v25 = vsub.f32 %v10765_v36, %v3287_v57  ;;  %v3371_v34 = vsub.f32 %v10762_v62, %v3323_v13 }
 0x894   : > { %v10897_v1 = vpop.eup %7693  ;;  %v3402_v39 = vmul.f32 1.442695, %v3359_v25  ;;  %v3426_v26 = vmul.f32 1.442695, %v3371_v34 }
 0x895   : > { %v3474_v54 = vsel %vm1775_vm1, %v10897_v1, 0.0  ;;  %v10902_v60 = vpop.eup %7695 }
 0x896   : > { %7697 = vpow2.f32 %v3402_v39  ;;  %3475 = vadd.xlane.f32.xlu0 %v3474_v54  ;;  %v3510_v57 = vsel %vm1775_vm1, %v10902_v60, 0.0 }
 0x897   : > { %7699 = vpow2.f32 %v3426_v26  ;;  %v3290_v32 = vpop.xlane.xlu1 %3289 }
 0x898   : > { %v3360_v30 = vsub.f32 %v10774_v24, %v3290_v32 }
 0x899   : > { %v3326_v14 = vpop.xlane.xlu2 %3325 }
 0x89a   : > { %v3372_v48 = vsub.f32 %v10777_v55, %v3326_v14  ;;  %v3404_v13 = vmul.f32 1.442695, %v3360_v30 }
 0x89c   : > { %v10904_v36 = vpop.eup %7697  ;;  %v3428_v62 = vmul.f32 1.442695, %v3372_v48 }
 0x89d   : > { %v10906_v12 = vpop.eup %7699  ;;  %v3477_v4 = vsel %vm1775_vm1, %v10904_v36, 0.0 }
 0x89e   : > { %7701 = vpow2.f32 %v3428_v62  ;;  %3478 = vadd.xlane.f32.xlu1 %v3477_v4  ;;  %v3513_v55 = vsel %vm1775_vm1, %v10906_v12, 0.0  ;;  %3511 = vadd.xlane.f32.xlu0 %v3510_v57 }
 0x89f   : > { %3514 = vadd.xlane.f32.xlu2 %v3513_v55  ;;  %v3293_v34 = vpop.xlane.xlu0 %3292  ;;  %7703 = vpow2.f32 %v3404_v13 }
 0x8a0   : > { %v3361_v54 = vsub.f32 %v10784_v5, %v3293_v34 }
 0x8a1   : > { %v3329_v25 = vpop.xlane.xlu1 %3328 }
 0x8a2   : > { %v3373_v39 = vsub.f32 %v10787_v35, %v3329_v25  ;;  %v3406_v14 = vmul.f32 1.442695, %v3361_v54  ;;  %v13011_v25 = vld [vmem:[#allocation66_spill] sm:$0xff] }
 0x8a4   : > { %v10916_v26 = vpop.eup %7701  ;;  %v3430_v24 = vmul.f32 1.442695, %v3373_v39 }
 0x8a5   : > { %v3516_v32 = vsel %vm1775_vm1, %v10916_v26, 0.0  ;;  %v10921_v48 = vpop.eup %7703 }
 0x8a6   : > { %7705 = vpow2.f32 %v3430_v24  ;;  %3517 = vadd.xlane.f32.xlu0 %v3516_v32  ;;  %v3480_v5 = vsel %vm1775_vm1, %v10921_v48, 0.0  ;;  %v13012_v24 = vld [vmem:[#allocation82_spill] sm:$0xff] }
 0x8a7   : > { %7707 = vpow2.f32 %v3406_v14  ;;  %v10925_v30 = vpop.xlane.xlu0 %3295  ;;  %v13013_v14 = vld [vmem:[#allocation21_spill] sm:$0xff] }
 0x8a9   : > { %v10943_v32 = vpop.xlane.xlu1 %3331 }
 0x8ac   : > { %v10923_v62 = vpop.eup %7705 }
 0x8ad   : > { %v3519_v35 = vsel %vm1775_vm1, %v10923_v62, 0.0  ;;  %v10933_v57 = vpop.eup %7707 }
 0x8ae   : > { %3520 = vadd.xlane.f32.xlu1 %v3519_v35  ;;  %3481 = vadd.xlane.f32.xlu0 %v3480_v5  ;;  %v3483_v13 = vsel %vm1775_vm1, %v10933_v57, 0.0  ;;  %v13014_v5 = vld [vmem:[#allocation71_spill] sm:$0xff] }
 0x8af   : > { %v10931_v4 = vpop.xlane.xlu2 %3298 }
 0x8b1   : > { %v3335_v55 = vpop.xlane.xlu0 %3334 }
 0x8b6   : > { %3484 = vadd.xlane.f32.xlu0 %v3483_v13 }
 0x8b7   : > { %5189 = vrot.lane.b32.xlu2 %v13011_v25, %s8328_s25  ;;  %v3446_v34 = vpop.xlane.xlu2 %3445 }
 0x8b8   : > { %7709 = vrcp.f32 %v3446_v34  ;;  %v3455_v34 = vpop.xlane.xlu1 %3454 }
 0x8b9   : > { %v10939_v39 = vpop.xlane.xlu0 %3337 }
 0x8be   : > { %v7710_v13 = vpop.eup %7709 }
 0x8bf   : > { %5232 = vrot.lane.b32.xlu2 %v13012_v24, %s8328_s25  ;;  %v3341_v54 = vpop.xlane.xlu2 %3340  ;;  %v3572_v25 = vmul.f32 %v7710_v13, %v10819_v6 }
 0x8c1   : > { %v3604_v40 = vpack.c.bf16 %v3572_v25, %v3572_v25 }
 0x8c7   : > { %5501 = vrot.lane.b32.xlu2 %v13013_v14, %s8329_s14  ;;  %v3449_v35 = vpop.xlane.xlu2 %3448  ;;  %5191 = vrot.lane.b32.xlu1 %v13014_v5, %s8328_s25  ;;  %v10949_v16 = vpop.xlane.xlu0 %3343  ;;  %v13016_v14 = vld [vmem:[#allocation20_spill] sm:$0xff] }
 0x8c8   : > { %7711 = vrcp.f32 %v3449_v35  ;;  %v3640_v35 = vunpack.c.l.b16 %v3604_v40 }
 0x8ca   : > { %5503 = vrot.lane.b32.xlu0 %v13015_v63, %s8329_s14  ;;  %v13017_v63 = vld [vmem:[#allocation78_spill] sm:$0xff] }
 0x8ce   : > { %v7712_v24 = vpop.eup %7711 }
 0x8cf   : > { %v3573_v51 = vmul.f32 %v7712_v24, %v10835_v42  ;;  %v10955_v28 = vpop.xlane.xlu2 %3346  ;;  %5499 = vrot.lane.b32.xlu1 %v13016_v14, %s8329_s14  ;;  %v3452_v5 = vpop.xlane.xlu0 %3451 }
 0x8d0   : > { %7713 = vrcp.f32 %v3452_v5 }
 0x8d1   : > { %v3605_v44 = vpack.c.bf16 %v3573_v51, %v3573_v51  ;;  %7715 = vrcp.f32 %v3455_v34 }
 0x8d3   : > { %v3641_v23 = vunpack.c.l.b16 %v3605_v44  ;;  %v3375_v44 = vsub.f32 %v10811_v43, %v3335_v55  ;;  %v3377_v43 = vsub.f32 %v10830_v18, %v3341_v54  ;;  %v3374_v54 = vsub.f32 %v10799_v17, %v10943_v32  ;;  %v7298_v17 = vld [vmem:[#allocation10] sm:$0xff] }
 0x8d5   : > { %v3644_v6 = vpack.c.b16 %v3641_v23, %v3640_v35 }
 0x8d6   : > { %v7714_v13 = vpop.eup %7713 }
 0x8d7   : > { %5230 = vrot.lane.b32.xlu1 %v13017_v63, %s8328_s25  ;;  %7090 = vmatmul.msk.bf16.vlgmr.msra.gmra.mxu3 %vm1775_vm1, %v3644_v6  ;;  %v3461_v25 = vpop.xlane.xlu2 %3460  ;;  %v3458_v42 = vpop.xlane.xlu0 %3457  ;;  %v3574_v11 = vmul.f32 %v7714_v13, %v10846_v45  ;;  %v3434_v45 = vmul.f32 1.442695, %v3375_v44 }
 0x8d8   : > { %v7716_v24 = vpop.eup %7715  ;;  %7717 = vrcp.f32 %v3461_v25 }
 0x8d9   : > { %7719 = vrcp.f32 %v3458_v42  ;;  %v3575_v5 = vmul.f32 %v7716_v24, %v10808_v27  ;;  %v3606_v51 = vpack.c.bf16 %v3574_v11, %v3574_v11 }
 0x8db   : > { %v3607_v23 = vpack.c.bf16 %v3575_v5, %v3575_v5  ;;  %v3642_v25 = vunpack.c.l.b16 %v3606_v51 }
 0x8dd   : > { %v3643_v27 = vunpack.c.l.b16 %v3607_v23 }
 0x8de   : > { %v7718_v34 = vpop.eup %7717 }
 0x8df   : > { %v7720_v40 = vpop.eup %7719  ;;  %v3577_v14 = vmul.f32 %v7718_v34, %v10859_v50  ;;  %v3467_v35 = vpop.xlane.xlu2 %3466  ;;  %v3645_v24 = vpack.c.b16 %v3643_v27, %v3642_v25 }
 0x8e0   : > { %v3464_v63 = vpop.xlane.xlu0 %3463  ;;  %v3576_v6 = vmul.f32 %v7720_v40, %v10857_v38  ;;  %7721 = vrcp.f32 %v3467_v35  ;;  %v3438_v38 = vmul.f32 1.442695, %v3377_v43  ;;  %v3125_v34 = vpop.f32.mrf.mxu3  ;;  %v3363_v43 = vsub.f32 %v10806_v9, %v10931_v4 }
 0x8e1   : > { %v3609_v49 = vpack.c.bf16 %v3577_v14, %v3577_v14  ;;  %7723 = vrcp.f32 %v3464_v63 }
 0x8e2   : > { %v3608_v13 = vpack.c.bf16 %v3576_v6, %v3576_v6  ;;  %7725 = vpow2.f32 %v3434_v45  ;;  %v3362_v6 = vsub.f32 %v10795_v21, %v10925_v30  ;;  %v3378_v45 = vsub.f32 %v10839_v33, %v10949_v16 }
 0x8e3   : > { %v3682_v42 = vunpack.c.l.b16 %v3609_v49  ;;  %v3376_v49 = vsub.f32 %v10822_v0, %v10939_v39  ;;  %7727 = vpow2.f32 %v3438_v38  ;;  %v3432_v0 = vmul.f32 1.442695, %v3374_v54  ;;  %v7299_v39 = vld [vmem:[#allocation10 + $0x8] sm:$0xff] }
 0x8e4   : > { %v3681_v11 = vunpack.c.l.b16 %v3608_v13  ;;  %v3408_v27 = vmul.f32 1.442695, %v3362_v6 }
 0x8e5   : > { %v3436_v40 = vmul.f32 1.442695, %v3376_v49 }
 0x8e6   : > { %v7722_v2 = vpop.eup %7721  ;;  %v3685_v55 = vpack.c.b16 %v3682_v42, %v3681_v11 }
 0x8e7   : > { %v7724_v50 = vpop.eup %7723  ;;  %7091 = vmatmul.msk.bf16.gmra.mxu3 %vm1775_vm1, %v3645_v24  ;;  %v3579_v63 = vmul.f32 %v7722_v2, %v10868_v19  ;;  %v10981_v2 = vadd.f32 %v10604_v7, %v3125_v34  ;;  %7729 = vpow2.f32 %v3436_v40  ;;  %v3440_v24 = vmul.f32 1.442695, %v3378_v45 }
 0x8e8   : > { %7092 = vmatmul.msk.bf16.vlgmr.msra.gmra.mxu0 %vm1775_vm1, %v3685_v55  ;;  %v3578_v5 = vmul.f32 %v7724_v50, %v10866_v41  ;;  %v10974_v51 = vpop.eup %7725  ;;  %7731 = vpow2.f32 %v3432_v0  ;;  %v3506_v13 = vpop.xlane.xlu0 %3505 }
 0x8e9   : > { %v3611_v44 = vpack.c.bf16 %v3579_v63, %v3579_v63  ;;  %v3525_v23 = vsel %vm1775_vm1, %v10974_v51, 0.0  ;;  %v10983_v14 = vpop.eup %7727  ;;  %v3300_v35 = vsel %vm1775_vm1, %v10981_v2, -inf  ;;  %4195 = vmatpush.bf16.msra.mxu0 %v7299_v39  ;;  %7733 = vrcp.f32 %v3506_v13  ;;  %v3127_v11 = vpop.f32.mrf.mxu3  ;;  %v13018_v13 = vld [vmem:[#allocation87_spill] sm:$0xff] }
 0x8ea   : > { %v3610_v18 = vpack.c.bf16 %v3578_v5, %v3578_v5  ;;  %v3531_v7 = vsel %vm1775_vm1, %v10983_v14, 0.0  ;;  %v11003_v16 = vadd.f32 %v10615_v20, %v3127_v11  ;;  %v3410_v5 = vmul.f32 1.442695, %v3363_v43  ;;  %v13019_v11 = vld [vmem:[#allocation123_spill] sm:$0xff] }
 0x8eb   : > { %v3684_v19 = vunpack.c.l.b16 %v3611_v44 }
 0x8ec   : > { %v3683_v41 = vunpack.c.l.b16 %v3610_v18  ;;  %v3303_v49 = vsel %vm1775_vm1, %v11003_v16, -inf }
 0x8ed   : > { %v10992_v25 = vpop.eup %7729  ;;  %4196 = vmatpush.bf16.msra.mxu0 %v7298_v17 }
 0x8ee   : > { %v3686_v32 = vpack.c.b16 %v3684_v19, %v3683_v41  ;;  %v3528_v21 = vsel %vm1775_vm1, %v10992_v25, 0.0  ;;  %v10998_v30 = vpop.eup %7731 }
 0x8ef   : > { %v3522_v33 = vsel %vm1775_vm1, %v10998_v30, 0.0  ;;  %v7734_v50 = vpop.eup %7733 }
 0x8f0   : > { %3526 = vadd.xlane.f32.xlu2 %v3525_v23  ;;  %v3592_v20 = vmul.f32 %v7734_v50, %v10874_v47  ;;  %v13020_v50 = vld [vmem:[#allocation47_spill] sm:$0xff] }
 0x8f2   : > { %v3624_v40 = vpack.c.bf16 %v3592_v20, %v3592_v20 }
 0x8f4   : > { %3301 = vmax.xlane.f32.xlu0 %v3300_v35  ;;  %v3845_v17 = vunpack.c.l.b16 %v3624_v40 }
 0x8f8   : > { %3532 = vadd.xlane.f32.xlu2 %v3531_v7  ;;  %7093 = vmatmul.msk.bf16.gmra.mxu0 %vm1775_vm1, %v3686_v32 }
 0x8f9   : > { %v3470_v42 = vpop.xlane.xlu1 %3469 }
 0x8fa   : > { %7735 = vrcp.f32 %v3470_v42  ;;  %v5517_v42 = vsel %vm1775_vm1, %v10771_v8, 0 }
 0x8fb   : > { %7737 = vpow2.f32 %v3408_v27 }
 0x8fc   : > { %3529 = vadd.xlane.f32.xlu0 %v3528_v21  ;;  %7739 = vpow2.f32 %v3440_v24  ;;  %v4296_v24 = vsel %vm1775_vm1, %v13019_v11, 0 }
 0x900   : > { %v7736_v63 = vpop.eup %7735 }
 0x901   : > { %3523 = vadd.xlane.f32.xlu1 %v3522_v33  ;;  %v3509_v55 = vpop.xlane.xlu1 %3508  ;;  %v3473_v38 = vpop.xlane.xlu0 %3472  ;;  %v3580_v9 = vmul.f32 %v7736_v63, %v10881_v3 }
 0x902   : > { %7741 = vrcp.f32 %v3509_v55  ;;  %v11009_v34 = vpop.eup %7737 }
 0x903   : > { %7743 = vrcp.f32 %v3473_v38  ;;  %v11013_v4 = vpop.eup %7739  ;;  %v3486_v18 = vsel %vm1775_vm1, %v11009_v34, 0.0  ;;  %v3612_v41 = vpack.c.bf16 %v3580_v9, %v3580_v9  ;;  %v13021_v9 = vld [vmem:[#allocation125_spill] sm:$0xff] }
 0x904   : > { %3304 = vmax.xlane.f32.xlu0 %v3303_v49  ;;  %7745 = vpow2.f32 %v3410_v5  ;;  %v3534_v3 = vsel %vm1775_vm1, %v11013_v4, 0.0 }
 0x905   : > { %v3722_v6 = vunpack.c.l.b16 %v3612_v41 }
 0x908   : > { %v7742_v44 = vpop.eup %7741 }
 0x909   : > { %v7744_v54 = vpop.eup %7743  ;;  %v3593_v23 = vmul.f32 %v7742_v44, %v10885_v29  ;;  %3487 = vadd.xlane.f32.xlu1 %v3486_v18  ;;  %v3476_v0 = vpop.xlane.xlu0 %3475  ;;  %v4293_v44 = vsel %vm1775_vm1, %v13021_v9, 0 }
 0x90a   : > { %v3581_v19 = vmul.f32 %v7744_v54, %v10888_v56  ;;  %7747 = vrcp.f32 %v3476_v0  ;;  %v11021_v35 = vpop.eup %7745 }
 0x90b   : > { %v3625_v47 = vpack.c.bf16 %v3593_v23, %v3593_v23  ;;  %v3489_v56 = vsel %vm1775_vm1, %v11021_v35, 0.0 }
 0x90c   : > { %v3613_v39 = vpack.c.bf16 %v3581_v19, %v3581_v19  ;;  %3535 = vadd.xlane.f32.xlu0 %v3534_v3 }
 0x90d   : > { %v3846_v32 = vunpack.c.l.b16 %v3625_v47 }
 0x90e   : > { %v3723_v7 = vunpack.c.l.b16 %v3613_v39 }
 0x90f   : > { %v3849_v45 = vpack.c.b16 %v3846_v32, %v3845_v17 }
 0x910   : > { %v3726_v29 = vpack.c.b16 %v3723_v7, %v3722_v6  ;;  %5271 = vrot.lane.b32.xlu2 %v13018_v13, %s8328_s25  ;;  %v7748_v21 = vpop.eup %7747  ;;  %v13123_v13 = vld [vmem:[#allocation61_spill] sm:$0xff] }
 0x911   : > { %v3479_v27 = vpop.xlane.xlu1 %3478  ;;  %3490 = vadd.xlane.f32.xlu1 %v3489_v56  ;;  %7100 = vmatmul.msk.bf16.vlgmr.msrb.gmra.mxu0 %vm1775_vm1, %v3849_v45  ;;  %v3512_v33 = vpop.xlane.xlu0 %3511  ;;  %v3582_v55 = vmul.f32 %v7748_v21, %v10897_v1 }
 0x912   : > { %7749 = vrcp.f32 %v3479_v27  ;;  %v3515_v43 = vpop.xlane.xlu2 %3514  ;;  %7094 = vmatmul.msk.bf16.vlgmr.msrb.gmra.mxu1 %vm1775_vm1, %v3726_v29  ;;  %5525 = vmatpush.bf16.xpose.msrb.mxu0 %v5517_v42  ;;  %v13023_v29 = vld [vmem:[#allocation22_spill] sm:$0xff] }
 0x913   : > { %7751 = vrcp.f32 %v3515_v43  ;;  %4304 = vmatpush.bf16.xpose.msrb.mxu1 %v4296_v24  ;;  %v3614_v63 = vpack.c.bf16 %v3582_v55, %v3582_v55  ;;  %v13024_v42 = vld [vmem:[#allocation46_spill] sm:$0xff] }
 0x914   : > { %7753 = vrcp.f32 %v3512_v33 }
 0x915   : > { %v3724_v41 = vunpack.c.l.b16 %v3614_v63 }
 0x918   : > { %v7750_v8 = vpop.eup %7749  ;;  %5542 = vrot.lane.b32.xlu2 %v13020_v50, %s8329_s14  ;;  %v13026_v50 = vld [vmem:[#allocation74_spill] sm:$0xff] }
 0x919   : > { %v7752_v38 = vpop.eup %7751  ;;  %v3583_v5 = vmul.f32 %v7750_v8, %v10904_v36  ;;  %v3518_v18 = vpop.xlane.xlu0 %3517  ;;  %v13022_v36 = vld [vmem:[#allocation93_spill] sm:$0xff]  ;;  %v13025_v8 = vld [vmem:[#allocation19_spill] sm:$0xff] }
 0x91a   : > { %v7754_v49 = vpop.eup %7753  ;;  %v3595_v20 = vmul.f32 %v7752_v38, %v10906_v12  ;;  %7755 = vrcp.f32 %v3518_v18  ;;  %v4374_v38 = vsel %vm1775_vm1, %v13026_v50, 0 }
 0x91b   : > { %v3615_v54 = vpack.c.bf16 %v3583_v5, %v3583_v5  ;;  %v3594_v40 = vmul.f32 %v7754_v49, %v10902_v60  ;;  %4305 = vmatpush.bf16.xpose.msrb.mxu1 %v4293_v44  ;;  %v13027_v44 = vld [vmem:[#allocation128_spill] sm:$0xff] }
 0x91c   : > { %v3627_v1 = vpack.c.bf16 %v3595_v20, %v3595_v20  ;;  %v4335_v18 = vsel %vm1775_vm1, %v13027_v44, 0  ;;  %v13037_v44 = vld [vmem:[#allocation72_spill] sm:$0xff] }
 0x91d   : > { %v3626_v23 = vpack.c.bf16 %v3594_v40, %v3594_v40  ;;  %v3725_v19 = vunpack.c.l.b16 %v3615_v54  ;;  %v13028_v54 = vld [vmem:[#allocation63_spill] sm:$0xff] }
 0x91e   : > { %v3848_v0 = vunpack.c.l.b16 %v3627_v1 }
 0x91f   : > { %v3727_v47 = vpack.c.b16 %v3725_v19, %v3724_v41  ;;  %v3847_v39 = vunpack.c.l.b16 %v3626_v23  ;;  %v13029_v19 = vld [vmem:[#allocation126_spill] sm:$0xff] }
 0x920   : > { %5273 = vrot.lane.b32.xlu0 %v13022_v36, %s8328_s25  ;;  %v7756_v17 = vpop.eup %7755  ;;  %v7301_v36 = vld [vmem:[#allocation10 + $0x18] sm:$0xff]  ;;  %s8255_s25 = scalar_lea.hbm %s12710_s8, 512 }
 0x921   : > { %v3521_v12 = vpop.xlane.xlu1 %3520  ;;  %v3850_v3 = vpack.c.b16 %v3848_v0, %v3847_v39  ;;  %v3482_v32 = vpop.xlane.xlu0 %3481  ;;  %v3596_v60 = vmul.f32 %v7756_v17, %v10916_v26  ;;  %v4332_v0 = vsel %vm1775_vm1, %v13029_v19, 0  ;;  %p8257_p7 = scmp.lt.s32.totalorder %s8255_s25, %s8251_s1 }
 0x922   : > { %7757 = vrcp.f32 %v3521_v12  ;;  %7095 = vmatmul.msk.bf16.gmra.mxu1 %vm1775_vm1, %v3727_v47  ;;  %v3130_v26 = vpop.f32.mrf.mxu3  ;;  %v11086_v12 = vpop.permute.xlu2 %5189 }
 0x923   : > { %7101 = vmatmul.msk.bf16.gmra.mxu0 %vm1775_vm1, %v3850_v3  ;;  %7759 = vrcp.f32 %v3482_v32  ;;  %v3628_v7 = vpack.c.bf16 %v3596_v60, %v3596_v60  ;;  %v11084_v39 = vadd.f32 %v10626_v10, %v3130_v26  ;;  %v2927_v32 = vpack.c.bf16 %v10596_v52, %v10592_v31  ;;  %v13030_v10 = vld [vmem:[#allocation29_spill] sm:$0xff]  ;;  %v13031_v31 = vld [vmem:[#allocation24_spill] sm:$0xff]  ;;  %p8258_p8 = por %p8257_p7, %p8256_p13 }
 0x925   : > { %v3886_v11 = vunpack.c.l.b16 %v3628_v7  ;;  %p8259_p9 = pnand %p8258_p8, %p8254_p4 }
 0x928   : > { %v7758_v6 = vpop.eup %7757  ;;  %5538 = vrot.lane.b32.xlu0 %v13023_v29, %s8329_s14 }
 0x929   : > { %v3597_v45 = vmul.f32 %v7758_v6, %v10923_v62  ;;  %v3485_v56 = vpop.xlane.xlu0 %3484  ;;  %v7760_v27 = vpop.eup %7759  ;;  %v2924_v62 = vpack.c.bf16 %v10564_v58, %v10555_v53  ;;  %v3379_v53 = vsub.f32 %v10850_v22, %v10955_v28  ;;  %v2925_v22 = vpack.c.bf16 %v10580_v61, %v10571_v37 }
 0x92a   : > { %5544 = vrot.lane.b32.xlu1 %v13024_v42, %s8329_s14  ;;  %7761 = vrcp.f32 %v3485_v56  ;;  %v3584_v43 = vmul.f32 %v7760_v27, %v10921_v48  ;;  %v3132_v9 = vpop.f32.mrf.mxu3  ;;  %v2926_v37 = vpack.c.bf16 %v10586_v15, %v10578_v46  ;;  %v3306_v61 = vsel %vm1775_vm1, %v11084_v39, -inf  ;;  %v11095_v17 = vpop.permute.xlu2 %5232  ;;  %v13032_v42 = vld [vmem:[#allocation120_spill] sm:$0xff]  ;;  %v13033_v27 = vld [vmem:[#allocation113_spill] sm:$0xff] }
 0x92b   : > { %v3629_v21 = vpack.c.bf16 %v3597_v45, %v3597_v45  ;;  %v3442_v40 = vmul.f32 1.442695, %v3379_v53  ;;  %v11069_v1 = vadd.f32 %v10635_v59, %v3132_v9 }
 0x92c   : > { %v3616_v63 = vpack.c.bf16 %v3584_v43, %v3584_v43 }
 0x92d   : > { %v3887_v24 = vunpack.c.l.b16 %v3629_v21  ;;  %7763 = vpow2.f32 %v3442_v40  ;;  %v3309_v28 = vsel %vm1775_vm1, %v11069_v1, -inf  ;;  %v2928_v21 = vpack.c.bf16 %v13033_v27, %v13032_v42 }
 0x92e   : > { %v3763_v49 = vunpack.c.l.b16 %v3616_v63 }
 0x92f   : > { %v3890_v33 = vpack.c.b16 %v3887_v24, %v3886_v11 }
 0x930   : > { %v7762_v55 = vpop.eup %7761  ;;  %5581 = vrot.lane.b32.xlu0 %v13025_v8, %s8329_s14 }
 0x931   : > { %v3585_v5 = vmul.f32 %v7762_v55, %v10933_v57  ;;  %v4371_v57 = vsel %vm1775_vm1, %v13028_v54, 0 }
 0x932   : > { %7102 = vmatmul.msk.bf16.vlgmr.msra.gmra.mxu1 %vm1775_vm1, %v3890_v33  ;;  %v11104_v46 = vpop.permute.xlu2 %5501  ;;  %v13034_v33 = vld [vmem:[#allocation32_spill] sm:$0xff] }
 0x933   : > { %7138 = vmatmul.msk.bf16.vlgmr.msra.gmra.mxu0 %vm1775_vm1, %v2924_v62  ;;  %4382 = vmatpush.bf16.xpose.msra.mxu1 %v4374_v38  ;;  %v3617_v48 = vpack.c.bf16 %v3585_v5, %v3585_v5  ;;  %v11079_v59 = vpop.eup %7763 }
 0x934   : > { %v3537_v47 = vsel %vm1775_vm1, %v11079_v59, 0.0 }
 0x935   : > { %v3764_v20 = vunpack.c.l.b16 %v3617_v48 }
 0x937   : > { %v3767_v58 = vpack.c.b16 %v3764_v20, %v3763_v49  ;;  %v13035_v20 = vld [vmem:[#allocation34_spill] sm:$0xff] }
 0x939   : > { %7096 = vmatmul.msk.bf16.vlgmr.msra.gmra.mxu2 %vm1775_vm1, %v3767_v58  ;;  %v11093_v3 = vpop.permute.xlu1 %5191 }
 0x93a   : > { %4343 = vmatpush.bf16.xpose.msra.mxu2 %v4335_v18 }
 0x93b   : > { %4383 = vmatpush.bf16.xpose.msra.mxu1 %v4371_v57  ;;  %v13038_v57 = vld [vmem:[#allocation27_spill] sm:$0xff] }
 0x93c   : > { %v5504_v23 = vpop.permute.xlu0 %5503 }
 0x93d   : > { %v5514_v41 = vsel %vm1775_vm1, %v5504_v23, 0 }
 0x93e   : > { %5526 = vmatpush.bf16.xpose.msrb.mxu0 %v5514_v41 }
 0x941   : > { %3310 = vmax.xlane.f32.xlu2 %v3309_v28  ;;  %v11101_v60 = vpop.permute.xlu1 %5499  ;;  %v13039_v28 = vld [vmem:[#allocation25_spill] sm:$0xff] }
 0x942   : > { %4344 = vmatpush.bf16.xpose.msra.mxu2 %v4332_v0 }
 0x943   : > { %7139 = vmatmul.msk.bf16.gmra.mxu0 %vm1775_vm1, %v2925_v22 }
 0x949   : > { %3538 = vadd.xlane.f32.xlu2 %v3537_v47  ;;  %v11109_v29 = vpop.permute.xlu1 %5230 }
 0x953   : > { %7140 = vmatmul.msk.bf16.gmra.mxu0 %vm1775_vm1, %v2926_v37 }
 0x954   : > { %3307 = vmax.xlane.f32.xlu1 %v3306_v61  ;;  %v13040_v61 = vld [vmem:[#allocation97_spill] sm:$0xff] }
 0x961   : > { %5540 = vrot.lane.b32.xlu2 %v13030_v10, %s8329_s14 }
 0x963   : > { %7141 = vmatmul.msk.bf16.gmra.mxu0 %vm1775_vm1, %v2927_v32  ;;  %v3527_v56 = vpop.xlane.xlu2 %3526 }
 0x965   : > { %v11106_v15 = vpop.f32.mrf.mxu0 }
 0x967   : > { %v3302_v6 = vpop.xlane.xlu0 %3301 }
 0x968   : > { %v3364_v7 = vsub.f32 %v10981_v2, %v3302_v6 }
 0x96a   : > { %v3412_v45 = vmul.f32 1.442695, %v3364_v7  ;;  %v13041_v7 = vld [vmem:[#allocation88_spill] sm:$0xff] }
 0x96b   : > { %v3533_v0 = vpop.xlane.xlu2 %3532 }
 0x96c   : > { %7765 = vpow2.f32 %v3412_v45  ;;  %v13042_v45 = vld [vmem:[#allocation89_spill] sm:$0xff] }
 0x96d   : > { %5583 = vrot.lane.b32.xlu1 %v13031_v31, %s8329_s14  ;;  %7767 = vrcp.f32 %v3527_v56  ;;  %v11115_v11 = vpop.f32.mrf.mxu0  ;;  %v2930_v56 = vpack.c.bf16 %v13042_v45, %v13041_v7  ;;  %v13043_v31 = vld [vmem:[#allocation23_spill] sm:$0xff] }
 0x96f   : > { %v3530_v52 = vpop.xlane.xlu0 %3529 }
 0x972   : > { %v11117_v24 = vpop.eup %7765 }
 0x973   : > { %7142 = vmatmul.msk.bf16.gmra.mxu0 %vm1775_vm1, %v2928_v21  ;;  %v3492_v43 = vsel %vm1775_vm1, %v11117_v24, 0.0  ;;  %v7768_v26 = vpop.eup %7767  ;;  %v13045_v21 = vld [vmem:[#allocation64_spill] sm:$0xff] }
 0x974   : > { %v3524_v2 = vpop.xlane.xlu1 %3523  ;;  %3493 = vadd.xlane.f32.xlu0 %v3492_v43  ;;  %v3599_v55 = vmul.f32 %v7768_v26, %v10974_v51  ;;  %v13036_v51 = vld [vmem:[#allocation76_spill] sm:$0xff]  ;;  %v13046_v43 = vld [vmem:[#allocation98_spill] sm:$0xff] }
 0x975   : > { %7769 = vrcp.f32 %v3524_v2  ;;  %5577 = vrot.lane.b32.xlu1 %v13034_v33, %s8329_s14  ;;  %v11127_v5 = vpop.f32.mrf.mxu0  ;;  %v2929_v18 = vpack.c.bf16 %v13037_v44, %v13036_v51 }
 0x976   : > { %v3631_v38 = vpack.c.bf16 %v3599_v55, %v3599_v55 }
 0x977   : > { %v3305_v62 = vpop.xlane.xlu0 %3304 }
 0x978   : > { %v3365_v8 = vsub.f32 %v11003_v16, %v3305_v62  ;;  %v3889_v9 = vunpack.c.l.b16 %v3631_v38 }
 0x97a   : > { %v3414_v48 = vmul.f32 1.442695, %v3365_v8  ;;  %v13047_v8 = vld [vmem:[#allocation49_spill] sm:$0xff] }
 0x97b   : > { %v7770_v50 = vpop.eup %7769 }
 0x97c   : > { %v3598_v63 = vmul.f32 %v7770_v50, %v10998_v30  ;;  %v3488_v49 = vpop.xlane.xlu1 %3487 }
 0x97d   : > { %5579 = vrot.lane.b32.xlu1 %v13035_v20, %s8329_s14  ;;  %7771 = vrcp.f32 %v3488_v49  ;;  %v11139_v23 = vpop.f32.mrf.mxu0  ;;  %v13049_v49 = vld [vmem:[#allocation26_spill] sm:$0xff] }
 0x97e   : > { %v3630_v53 = vpack.c.bf16 %v3598_v63, %v3598_v63  ;;  %7773 = vpow2.f32 %v3414_v48  ;;  %v13048_v63 = vld [vmem:[#allocation85_spill] sm:$0xff] }
 0x97f   : > { %v4449_v48 = vsel %vm1775_vm1, %v13048_v63, 0  ;;  %v3536_v7 = vpop.xlane.xlu0 %3535 }
 0x980   : > { %v3888_v58 = vunpack.c.l.b16 %v3630_v53 }
 0x982   : > { %v3891_v16 = vpack.c.b16 %v3889_v9, %v3888_v58  ;;  %v13050_v58 = vld [vmem:[#allocation110_spill] sm:$0xff]  ;;  %v13051_v9 = vld [vmem:[#allocation100_spill] sm:$0xff] }
 0x983   : > { %7143 = vmatmul.msk.bf16.gmra.mxu0 %vm1775_vm1, %v2929_v18  ;;  %v7772_v30 = vpop.eup %7771  ;;  %v2931_v51 = vpack.c.bf16 %v13051_v9, %v13050_v58  ;;  %v11181_v18 = vpop.permute.xlu2 %5271 }
 0x984   : > { %v3491_v54 = vpop.xlane.xlu1 %3490  ;;  %7103 = vmatmul.msk.bf16.gmra.mxu1 %vm1775_vm1, %v3891_v16  ;;  %v11137_v40 = vpop.eup %7773  ;;  %v3586_v41 = vmul.f32 %v7772_v30, %v11009_v34  ;;  %13053 = vst [vmem:[#allocation99_spill] sm:$0xff] %v11181_v18  ;;  %v13054_v16 = vld [vmem:[#allocation80_spill] sm:$0xff]  ;;  %v13055_v30 = vld [vmem:[#allocation65_spill] sm:$0xff] }
 0x985   : > { %7775 = vrcp.f32 %v3491_v54  ;;  %5622 = vrot.lane.b32.xlu1 %v13038_v57, %s8329_s14  ;;  %v3495_v22 = vsel %vm1775_vm1, %v11137_v40, 0.0  ;;  %v4413_v54 = vsel %vm1775_vm1, %v13054_v16, 0 }
 0x986   : > { %v3618_v47 = vpack.c.bf16 %v3586_v41, %v3586_v41  ;;  %7777 = vrcp.f32 %v3530_v52  ;;  %v13117_v41 = vld [vmem:[#allocation77_spill] sm:$0xff] }
 0x987   : > { %7779 = vrcp.f32 %v3533_v0 }
 0x988   : > { %5700 = vrot.lane.b32.xlu0 %v13039_v28, %s8329_s14  ;;  %v3765_v34 = vunpack.c.l.b16 %v3618_v47  ;;  %v13056_v28 = vld [vmem:[#allocation31_spill] sm:$0xff]  ;;  %7781 = vrcp.f32 %v3536_v7 }
 0x989   : > { %v13059_v47 = vld [vmem:[#allocation135_spill] sm:$0xff] }
 0x98a   : > { %3496 = vadd.xlane.f32.xlu2 %v3495_v22 }
 0x98b   : > { %v7776_v19 = vpop.eup %7775  ;;  %v11195_v22 = vpop.permute.xlu2 %5542 }
 0x98c   : > { %v3587_v37 = vmul.f32 %v7776_v19, %v11021_v35  ;;  %v7778_v27 = vpop.eup %7777  ;;  %v13044_v35 = vld [vmem:[#allocation90_spill] sm:$0xff]  ;;  %13057 = vst [vmem:[#allocation119_spill] sm:$0xff] %v11195_v22 }
 0x98d   : > { %3812 = vrot.lane.b32.xlu1 %v13040_v61, %s8327_s19  ;;  %v4452_v52 = vsel %vm1775_vm1, %v13044_v35, 0  ;;  %v7780_v2 = vpop.eup %7779  ;;  %v3600_v26 = vmul.f32 %v7778_v27, %v10992_v25  ;;  %v13058_v19 = vld [vmem:[#allocation70_spill] sm:$0xff]  ;;  %v13063_v35 = vld [vmem:[#allocation75_spill] sm:$0xff] }
 0x98e   : > { %v3619_v32 = vpack.c.bf16 %v3587_v37, %v3587_v37  ;;  %v11149_v10 = vpop.f32.mrf.mxu0  ;;  %v3601_v62 = vmul.f32 %v7780_v2, %v10983_v14  ;;  %v13052_v14 = vld [vmem:[#allocation35_spill] sm:$0xff]  ;;  %v4410_v0 = vsel %vm1775_vm1, %v13058_v19, 0  ;;  %v13060_v37 = vld [vmem:[#allocation69_spill] sm:$0xff] }
 0x98f   : > { %v3632_v50 = vpack.c.bf16 %v3600_v26, %v3600_v26  ;;  %v11222_v58 = vpop.f32.mrf.mxu1 }
 0x990   : > { %v3766_v6 = vunpack.c.l.b16 %v3619_v32  ;;  %5698 = vrot.lane.b32.xlu0 %v13043_v31, %s8329_s14  ;;  %v3633_v38 = vpack.c.bf16 %v3601_v62, %v3601_v62  ;;  %v2932_v32 = vpack.c.bf16 %v13060_v37, %v13059_v47  ;;  %v13064_v62 = vld [vmem:[#allocation106_spill] sm:$0xff]  ;;  %v13071_v37 = vld [vmem:[#allocation103_spill] sm:$0xff] }
 0x991   : > { %v3927_v25 = vunpack.c.l.b16 %v3632_v50  ;;  %v13070_v47 = vld [vmem:[#allocation102_spill] sm:$0xff] }
 0x992   : > { %v3768_v42 = vpack.c.b16 %v3766_v6, %v3765_v34  ;;  %v3928_v20 = vunpack.c.l.b16 %v3633_v38  ;;  %v13061_v34 = vld [vmem:[#allocation83_spill] sm:$0xff] }
 0x993   : > { %7144 = vmatmul.msk.bf16.gmra.mxu0 %vm1775_vm1, %v2930_v56  ;;  %v4530_v6 = vsel %vm1775_vm1, %v13061_v34, 0  ;;  %v13062_v56 = vld [vmem:[#allocation84_spill] sm:$0xff]  ;;  %v11242_v34 = vpop.permute.xlu0 %5273 }
 0x994   : > { %7097 = vmatmul.msk.bf16.gmra.mxu2 %vm1775_vm1, %v3768_v42  ;;  %7154 = vmatmul.msk.bf16.vlgmr.msrb.gmra.mxu1 %vm1775_vm1, %v13045_v21  ;;  %v3931_v44 = vpack.c.b16 %v3928_v20, %v3927_v25  ;;  %v7782_v21 = vpop.eup %7781  ;;  %13073 = vst [vmem:[#allocation133_spill] sm:$0xff] %v11242_v34 }
 0x995   : > { %4460 = vmatpush.bf16.xpose.msrb.mxu1 %v4452_v52  ;;  %3810 = vrot.lane.b32.xlu1 %v13046_v43, %s8327_s19  ;;  %v4527_v52 = vsel %vm1775_vm1, %v13063_v35, 0  ;;  %v3602_v26 = vmul.f32 %v7782_v21, %v11013_v4  ;;  %v13079_v35 = vld [vmem:[#allocation112_spill] sm:$0xff] }
 0x996   : > { %v11164_v33 = vpop.f32.mrf.mxu0 }
 0x997   : > { %v3634_v63 = vpack.c.bf16 %v3602_v26, %v3602_v26  ;;  %v11230_v19 = vpop.f32.mrf.mxu1 }
 0x998   : > { %5694 = vrot.lane.b32.xlu0 %v13047_v8, %s8329_s14  ;;  %v13065_v8 = vld [vmem:[#allocation104_spill] sm:$0xff] }
 0x999   : > { %v2933_v50 = vpack.c.bf16 %v13065_v8, %v13064_v62  ;;  %v13083_v8 = vld [vmem:[#allocation68_spill] sm:$0xff] }
 0x99b   : > { %v11259_v62 = vpop.permute.xlu0 %5538 }
 0x99c   : > { %v11209_v2 = vpop.permute.xlu1 %5544  ;;  %13082 = vst [vmem:[#allocation42_spill] sm:$0xff] %v11259_v62 }
 0x99d   : > { %4461 = vmatpush.bf16.xpose.msrb.mxu1 %v4449_v48  ;;  %5620 = vrot.lane.b32.xlu1 %v13049_v49, %s8329_s14  ;;  %v13066_v49 = vld [vmem:[#allocation86_spill] sm:$0xff] }
 0x99f   : > { %v11245_v7 = vpop.f32.mrf.mxu1 }
 0x9a0   : > { %v11175_v53 = vpop.f32.mrf.mxu0  ;;  %5661 = vrot.lane.b32.xlu0 %v13052_v14, %s8329_s14 }
 0x9a3   : > { %7145 = vmatmul.msk.bf16.gmra.mxu0 %vm1775_vm1, %v2931_v51  ;;  %v3929_v51 = vunpack.c.l.b16 %v3634_v63 }
 0x9a4   : > { %7104 = vmatmul.msk.bf16.vlgmr.msrb.gmra.mxu2 %vm1775_vm1, %v3931_v44  ;;  %7155 = vmatmul.msk.bf16.gmra.mxu1 %vm1775_vm1, %v13055_v30  ;;  %v13069_v30 = vld [vmem:[#allocation73_spill] sm:$0xff] }
 0x9a5   : > { %4421 = vmatpush.bf16.xpose.msrb.mxu2 %v4413_v54  ;;  %v13068_v54 = vld [vmem:[#allocation137_spill] sm:$0xff] }
 0x9a7   : > { %v11266_v63 = vpop.f32.mrf.mxu1 }
 0x9a8   : > { %v11189_v57 = vpop.f32.mrf.mxu0  ;;  %5659 = vrot.lane.b32.xlu0 %v13056_v28, %s8329_s14  ;;  %v2934_v28 = vpack.c.bf16 %v13069_v30, %v13068_v54  ;;  %v13094_v30 = vld [vmem:[#allocation118_spill] sm:$0xff] }
 0x9ad   : > { %4422 = vmatpush.bf16.xpose.msrb.mxu2 %v4410_v0 }
 0x9b3   : > { %7146 = vmatmul.msk.bf16.gmra.mxu0 %vm1775_vm1, %v2932_v32 }
 0x9b4   : > { %v3311_v45 = vpop.xlane.xlu2 %3310  ;;  %7158 = vmatmul.msk.bf16.vlgmr.msra.gmra.mxu1 %vm1775_vm1, %v13062_v56 }
 0x9b5   : > { %v3367_v31 = vsub.f32 %v11069_v1, %v3311_v45  ;;  %4538 = vmatpush.bf16.xpose.msra.mxu1 %v4530_v6  ;;  %v13074_v6 = vld [vmem:[#allocation94_spill] sm:$0xff] }
 0x9b6   : > { %v13075_v45 = vld [vmem:[#allocation62_spill] sm:$0xff] }
 0x9b7   : > { %v3418_v42 = vmul.f32 1.442695, %v3367_v31  ;;  %v4491_v56 = vsel %vm1775_vm1, %v13075_v45, 0  ;;  %v13076_v31 = vld [vmem:[#allocation67_spill] sm:$0xff] }
 0x9b9   : > { %7783 = vpow2.f32 %v3418_v42 }
 0x9bc   : > { %v3539_v27 = vpop.xlane.xlu2 %3538 }
 0x9bd   : > { %7785 = vrcp.f32 %v3539_v27  ;;  %4539 = vmatpush.bf16.xpose.msra.mxu1 %v4527_v52  ;;  %v13078_v27 = vld [vmem:[#allocation41_spill] sm:$0xff]  ;;  %v13080_v52 = vld [vmem:[#allocation131_spill] sm:$0xff] }
 0x9be   : > { %v2935_v21 = vpack.c.bf16 %v13080_v52, %v13079_v35  ;;  %v13100_v52 = vld [vmem:[#allocation96_spill] sm:$0xff] }
 0x9bf   : > { %v11214_v38 = vpop.eup %7783 }
 0x9c0   : > { %v3501_v20 = vsel %vm1775_vm1, %v11214_v38, 0.0 }
 0x9c3   : > { %v7786_v1 = vpop.eup %7785  ;;  %7147 = vmatmul.msk.bf16.gmra.mxu0 %vm1775_vm1, %v2933_v50  ;;  %v4488_v50 = vsel %vm1775_vm1, %v13083_v8, 0 }
 0x9c4   : > { %v3603_v48 = vmul.f32 %v7786_v1, %v11079_v59  ;;  %7159 = vmatmul.msk.bf16.gmra.mxu1 %vm1775_vm1, %v13066_v49  ;;  %v11226_v59 = vpop.f32.mrf.mxu0  ;;  %v13084_v1 = vld [vmem:[#allocation105_spill] sm:$0xff]  ;;  %v11285_v54 = vpop.permute.xlu2 %5540 }
 0x9c5   : > { %13067 = vst [vmem:[#allocation124_spill] sm:$0xff] %v11226_v59  ;;  %v3667_v59 = vpop.f32.mrf.mxu3 }
 0x9c6   : > { %v3635_v25 = vpack.c.bf16 %v3603_v48, %v3603_v48  ;;  %13093 = vst [vmem:[#allocation22_spill] sm:$0xff] %v11285_v54 }
 0x9c7   : > { %v3308_v4 = vpop.xlane.xlu1 %3307  ;;  %3502 = vadd.xlane.f32.xlu1 %v3501_v20  ;;  %v13088_v20 = vld [vmem:[#allocation36_spill] sm:$0xff] }
 0x9c8   : > { %v3366_v9 = vsub.f32 %v11084_v39, %v3308_v4  ;;  %v3930_v14 = vunpack.c.l.b16 %v3635_v25  ;;  %v13087_v25 = vld [vmem:[#allocation81_spill] sm:$0xff]  ;;  %v11276_v4 = vpop.permute.xlu0 %5581 }
 0x9c9   : > { %13089 = vst [vmem:[#allocation47_spill] sm:$0xff] %v11276_v4 }
 0x9ca   : > { %v3416_v44 = vmul.f32 1.442695, %v3366_v9  ;;  %v3932_v16 = vpack.c.b16 %v3930_v14, %v3929_v51  ;;  %v11278_v9 = vpop.f32.mrf.mxu1  ;;  %v13091_v14 = vld [vmem:[#allocation79_spill] sm:$0xff] }
 0x9cc   : > { %7787 = vpow2.f32 %v3416_v44  ;;  %7105 = vmatmul.msk.bf16.gmra.mxu2 %vm1775_vm1, %v3932_v16  ;;  %v11240_v32 = vpop.f32.mrf.mxu0  ;;  %v13092_v44 = vld [vmem:[#allocation108_spill] sm:$0xff] }
 0x9cd   : > { %13072 = vst [vmem:[#allocation134_spill] sm:$0xff] %v11240_v32  ;;  %v2936_v16 = vpack.c.bf16 %v13092_v44, %v13091_v14  ;;  %v13104_v14 = vld [vmem:[#allocation114_spill] sm:$0xff] }
 0x9d2   : > { %v11232_v0 = vpop.eup %7787 }
 0x9d3   : > { %7148 = vmatmul.msk.bf16.gmra.mxu0 %vm1775_vm1, %v2934_v28  ;;  %v3498_v39 = vsel %vm1775_vm1, %v11232_v0, 0.0  ;;  %v13095_v28 = vld [vmem:[#allocation37_spill] sm:$0xff] }
 0x9d4   : > { %7162 = vmatmul.msk.bf16.vlgmr.msrb.gmra.mxu1 %vm1775_vm1, %v13070_v47  ;;  %3499 = vadd.xlane.f32.xlu2 %v3498_v39  ;;  %v11257_v26 = vpop.f32.mrf.mxu0 }
 0x9d5   : > { %5002 = vmatpush.bf16.msrb.mxu1 %v13071_v37  ;;  %13081 = vst [vmem:[#allocation21_spill] sm:$0xff] %v11257_v26  ;;  %v13097_v37 = vld [vmem:[#allocation109_spill] sm:$0xff] }
 0x9d9   : > { %5003 = vmatpush.bf16.msrb.mxu1 %v13074_v6 }
 0x9dc   : > { %7156 = vmatmul.msk.bf16.vlgmr.msra.gmra.mxu2 %vm1775_vm1, %v13076_v31  ;;  %v11270_v49 = vpop.f32.mrf.mxu0  ;;  %v13098_v31 = vld [vmem:[#allocation59_spill] sm:$0xff] }
 0x9dd   : > { %4499 = vmatpush.bf16.xpose.msra.mxu2 %v4491_v56  ;;  %13086 = vst [vmem:[#allocation123_spill] sm:$0xff] %v11270_v49  ;;  %v11295_v56 = vpop.f32.mrf.mxu1 }
 0x9df   : > { %v11251_v42 = vpop.permute.xlu1 %5583 }
 0x9e0   : > { %13077 = vst [vmem:[#allocation127_spill] sm:$0xff] %v11251_v42  ;;  %5655 = vrot.lane.b32.xlu1 %v13078_v27, %s8329_s14  ;;  %v13099_v27 = vld [vmem:[#allocation91_spill] sm:$0xff] }
 0x9e1   : > { %v4569_v35 = vsel %vm1775_vm1, %v13099_v27, 0 }
 0x9e3   : > { %7149 = vmatmul.msk.bf16.gmra.mxu0 %vm1775_vm1, %v2935_v21  ;;  %v13101_v21 = vld [vmem:[#allocation52_spill] sm:$0xff] }
 0x9e4   : > { %7163 = vmatmul.msk.bf16.gmra.mxu1 %vm1775_vm1, %v13084_v1  ;;  %v11291_v39 = vpop.f32.mrf.mxu0 }
 0x9e5   : > { %4500 = vmatpush.bf16.xpose.msra.mxu2 %v4488_v50  ;;  %13096 = vst [vmem:[#allocation46_spill] sm:$0xff] %v11291_v39 }
 0x9e7   : > { %v11268_v48 = vpop.permute.xlu1 %5577  ;;  %v3494_v47 = vpop.xlane.xlu0 %3493 }
 0x9e8   : > { %13085 = vst [vmem:[#allocation20_spill] sm:$0xff] %v11268_v48  ;;  %7789 = vrcp.f32 %v3494_v47  ;;  %v13105_v47 = vld [vmem:[#allocation92_spill] sm:$0xff] }
 0x9ec   : > { %7157 = vmatmul.msk.bf16.gmra.mxu2 %vm1775_vm1, %v13087_v25  ;;  %5616 = vrot.lane.b32.xlu2 %v13088_v20, %s8329_s14  ;;  %v11304_v1 = vpop.f32.mrf.mxu0  ;;  %v13103_v20 = vld [vmem:[#allocation95_spill] sm:$0xff] }
 0x9ed   : > { %13102 = vst [vmem:[#allocation19_spill] sm:$0xff] %v11304_v1  ;;  %v2937_v44 = vpack.c.bf16 %v13104_v14, %v13103_v20  ;;  %v13108_v20 = vld [vmem:[#allocation101_spill] sm:$0xff] }
 0x9ee   : > { %v7790_v50 = vpop.eup %7789 }
 0x9ef   : > { %v11280_v51 = vpop.permute.xlu1 %5579 }
 0x9f0   : > { %13090 = vst [vmem:[#allocation125_spill] sm:$0xff] %v11280_v51 }
 0x9f3   : > { %7150 = vmatmul.msk.bf16.gmra.mxu0 %vm1775_vm1, %v2936_v16  ;;  %v3588_v16 = vmul.f32 %v7790_v50, %v11117_v24 }
 0x9f4   : > { %7166 = vmatmul.msk.bf16.vlgmr.msra.gmra.mxu1 %vm1775_vm1, %v13094_v30  ;;  %5618 = vrot.lane.b32.xlu2 %v13095_v28, %s8329_s14 }
 0x9f5   : > { %5084 = vmatpush.bf16.msra.mxu1 %v13097_v37  ;;  %v4566_v37 = vsel %vm1775_vm1, %v13105_v47, 0 }
 0x9f7   : > { %v5623_v6 = vpop.permute.xlu1 %5622 }
 0x9f8   : > { %v5634_v45 = vsel %vm1775_vm1, %v5623_v6, 0  ;;  %v13106_v6 = vld [vmem:[#allocation122_spill] sm:$0xff] }
 0x9f9   : > { %5085 = vmatpush.bf16.msra.mxu1 %v13098_v31  ;;  %5642 = vmatpush.bf16.xpose.msra.mxu0 %v5634_v45  ;;  %v3620_v45 = vpack.c.bf16 %v3588_v16, %v3588_v16  ;;  %v13109_v16 = vld [vmem:[#allocation121_spill] sm:$0xff] }
 0x9fb   : > { %v3804_v24 = vunpack.c.l.b16 %v3620_v45 }
 0x9fc   : > { %7160 = vmatmul.msk.bf16.vlgmr.msrb.gmra.mxu2 %vm1775_vm1, %v13100_v52  ;;  %5696 = vrot.lane.b32.xlu2 %v13101_v21, %s8329_s14  ;;  %v11317_v52 = vpop.f32.mrf.mxu0 }
 0x9fd   : > { %4577 = vmatpush.bf16.xpose.msrb.mxu2 %v4569_v35  ;;  %v3497_v8 = vpop.xlane.xlu2 %3496  ;;  %13107 = vst [vmem:[#allocation74_spill] sm:$0xff] %v11317_v52 }
 0x9fe   : > { %7791 = vrcp.f32 %v3497_v8 }
 0x9ff   : > { %v3813_v25 = vpop.permute.xlu1 %3812 }
 0xa00   : > { %3828 = vmatpush.bf16.msrb.mxu3 %v3813_v25  ;;  %v7343_v25 = vld [vmem:[#allocation11 + $0x20] sm:$0xff]  }
 0xa01   : > { %v11309_v30 = vpop.f32.mrf.mxu1  ;;  %v11324_v14 = vunpack.c.l.bf16 %v7343_v25 }
 0xa03   : > { %7151 = vmatmul.msk.bf16.gmra.mxu0 %vm1775_vm1, %v2937_v44 }
 0xa04   : > { %v7792_v28 = vpop.eup %7791  ;;  %7167 = vmatmul.msk.bf16.gmra.mxu1 %vm1775_vm1, %v13106_v6  ;;  %v11332_v45 = vpop.f32.mrf.mxu0 }
 0xa05   : > { %v3589_v31 = vmul.f32 %v7792_v28, %v11137_v40  ;;  %4578 = vmatpush.bf16.xpose.msrb.mxu2 %v4566_v37  ;;  %v13110_v28 = vld [vmem:[#allocation111_spill] sm:$0xff]  ;;  %13111 = vst [vmem:[#allocation128_spill] sm:$0xff] %v11332_v45 }
 0xa06   : > { %v2938_v47 = vpack.c.bf16 %v13110_v28, %v13109_v16  ;;  %v13115_v28 = vld [vmem:[#allocation130_spill] sm:$0xff] }
 0xa07   : > { %v3621_v27 = vpack.c.bf16 %v3589_v31, %v3589_v31  ;;  %v3811_v35 = vpop.permute.xlu1 %3810 }
 0xa08   : > { %3829 = vmatpush.bf16.msrb.mxu3 %v3811_v35 }
 0xa09   : > { %v3805_v21 = vunpack.c.l.b16 %v3621_v27  ;;  %v11319_v8 = vpop.f32.mrf.mxu1  ;;  %v11337_v27 = vpop.f32.mrf.mxu2 }
 0xa0b   : > { %v3808_v50 = vpack.c.b16 %v3805_v21, %v3804_v24  ;;  %v7344_v24 = vld [vmem:[#allocation11 + $0x28] sm:$0xff]   ;;  %v11339_v21 = vunpack.c.h.bf16 %v7343_v25 }
 0xa0c   : > { %7161 = vmatmul.msk.bf16.gmra.mxu2 %vm1775_vm1, %v13108_v20  ;;  %v11343_v20 = vpop.f32.mrf.mxu0  ;;  %4046 = vmatpush.bf16.msra.mxu3 %v7301_v36  ;;  %v13126_v36 = vld [vmem:[#allocation129_spill] sm:$0xff] }
 0xa0d   : > { %7098 = vmatmul.msk.bf16.vlgmr.msrb.gmra.mxu3 %vm1775_vm1, %v3808_v50  ;;  %v13112_v50 = vld [vmem:[#allocation107_spill] sm:$0xff]  ;;  %13113 = vst [vmem:[#allocation63_spill] sm:$0xff] %v11343_v20  ;;  %v13119_v20 = vld [vmem:[#allocation116_spill] sm:$0xff] }
 0xa0f   : > { %v5621_v40 = vpop.permute.xlu1 %5620 }
 0xa10   : > { %v5631_v44 = vsel %vm1775_vm1, %v5621_v40, 0  ;;  %v13114_v40 = vld [vmem:[#allocation40_spill] sm:$0xff] }
 0xa11   : > { %v4307_v37 = vpop.f32.mrf.mxu1  ;;  %5643 = vmatpush.bf16.xpose.msra.mxu0 %v5631_v44  ;;  %v11346_v44 = vunpack.c.l.bf16 %v7344_v24 }
 0xa12   : > { %v11330_v6 = vadd.f32 %v11324_v14, %v4307_v37 }
 0xa13   : > { %7152 = vmatmul.msk.bf16.gmra.mxu0 %vm1775_vm1, %v2938_v47  ;;  %v13116_v47 = vld [vmem:[#allocation132_spill] sm:$0xff] }
 0xa14   : > { %v4590_v31 = vsel %vm1775_vm1, %v11330_v6, -inf  ;;  %v2939_v37 = vpack.c.bf16 %v13116_v47, %v13115_v28  ;;  %v11366_v28 = vpop.f32.mrf.mxu0 }
 0xa15   : > { %4591 = vmax.xlane.f32.xlu1 %v4590_v31  ;;  %v11353_v31 = vpop.f32.mrf.mxu2  ;;  %13118 = vst [vmem:[#allocation126_spill] sm:$0xff] %v11366_v28 }
 0xa19   : > { %v4309_v35 = vpop.f32.mrf.mxu1 }
 0xa1a   : > { %v11349_v16 = vadd.f32 %v11339_v21, %v4309_v35 }
 0xa1c   : > { %7164 = vmatmul.msk.bf16.vlgmr.msra.gmra.mxu2 %vm1775_vm1, %v13112_v50  ;;  %v4593_v35 = vsel %vm1775_vm1, %v11349_v16, -inf  ;;  %v11377_v49 = vpop.f32.mrf.mxu0 }
 0xa1d   : > { %5043 = vmatpush.bf16.msra.mxu2 %v13114_v40  ;;  %v11364_v40 = vunpack.c.h.bf16 %v7344_v24  ;;  %v11368_v47 = vpop.f32.mrf.mxu2  ;;  %13120 = vst [vmem:[#allocation29_spill] sm:$0xff] %v11377_v49  ;;  %v13122_v49 = vld [vmem:[#allocation117_spill] sm:$0xff] }
 0xa21   : > { %5044 = vmatpush.bf16.msra.mxu2 %v13117_v41  ;;  %v4312_v25 = vpop.f32.mrf.mxu1 }
 0xa22   : > { %v11357_v55 = vadd.f32 %v11346_v44, %v4312_v25 }
 0xa23   : > { %7153 = vmatmul.msk.bf16.gmra.mxu0 %vm1775_vm1, %v2939_v37 }
 0xa24   : > { %v4596_v50 = vsel %vm1775_vm1, %v11357_v55, -inf }
 0xa25   : > { %4597 = vmax.xlane.f32.xlu0 %v4596_v50  ;;  %4594 = vmax.xlane.f32.xlu2 %v4593_v35  ;;  %v11382_v35 = vpop.f32.mrf.mxu2 }
 0xa29   : > { %v4314_v41 = vpop.f32.mrf.mxu1 }
 0xa2a   : > { %v11371_v25 = vadd.f32 %v11364_v40, %v4314_v41 }
 0xa2c   : > { %7165 = vmatmul.msk.bf16.gmra.mxu2 %vm1775_vm1, %v13119_v20  ;;  %v4599_v37 = vsel %vm1775_vm1, %v11371_v25, -inf }
 0xa2d   : > { %4600 = vmax.xlane.f32.xlu2 %v4599_v37  ;;  %v11391_v37 = vpop.f32.mrf.mxu0  ;;  %v11397_v32 = vpop.f32.mrf.mxu2 }
 0xa2e   : > { %13121 = vst [vmem:[#allocation24_spill] sm:$0xff] %v11391_v37 }
 0xa31   : > { %v4385_v50 = vpop.f32.mrf.mxu1 }
 0xa32   : > { %v11380_v24 = vadd.f32 %v11324_v14, %v4385_v50 }
 0xa33   : > { %7210 = vmatmul.msk.bf16.vlgmr.msrb.gmra.mxu0 %vm1775_vm1, %v11101_v60 }
 0xa34   : > { %v4614_v41 = vsel %vm1775_vm1, %v11380_v24, -inf }
 0xa35   : > { %4615 = vmax.xlane.f32.xlu1 %v4614_v41  ;;  %v13124_v41 = vld [vmem:[#allocation136_spill] sm:$0xff]  ;;  %v11408_v61 = vpop.f32.mrf.mxu0 }
 0xa36   : > { %13125 = vst [vmem:[#allocation120_spill] sm:$0xff] %v11408_v61 }
 0xa39   : > { %v4387_v20 = vpop.f32.mrf.mxu1 }
 0xa3a   : > { %v11389_v28 = vadd.f32 %v11339_v21, %v4387_v20  ;;  %v3503_v60 = vpop.xlane.xlu1 %3502 }
 0xa3b   : > { %7793 = vrcp.f32 %v3503_v60 }
 0xa3c   : > { %7168 = vmatmul.msk.bf16.vlgmr.msrb.gmra.mxu2 %vm1775_vm1, %v13122_v49  ;;  %v4617_v50 = vsel %vm1775_vm1, %v11389_v28, -inf  ;;  %v7300_v49 = vld [vmem:[#allocation10 + $0x10] sm:$0xff] }
 0xa3d   : > { %5125 = vmatpush.bf16.msrb.mxu2 %v13123_v13  ;;  %4618 = vmax.xlane.f32.xlu0 %v4617_v50  ;;  %v11410_v13 = vpop.f32.mrf.mxu2  ;;  %v11415_v45 = vpop.f32.mrf.mxu0 }
 0xa3e   : > { %4047 = vmatpush.bf16.msra.mxu3 %v7300_v49  ;;  %13127 = vst [vmem:[#allocation113_spill] sm:$0xff] %v11415_v45  ;;  %v3669_v45 = vpop.f32.mrf.mxu3 }
 0xa41   : > { %5126 = vmatpush.bf16.msrb.mxu2 %v13124_v41  ;;  %v4390_v43 = vpop.f32.mrf.mxu1  ;;  %v7794_v41 = vpop.eup %7793 }
 0xa42   : > { %v11402_v20 = vadd.f32 %v11346_v44, %v4390_v43  ;;  %v3591_v43 = vmul.f32 %v7794_v41, %v11214_v38 }
 0xa43   : > { %7211 = vmatmul.msk.bf16.gmra.mxu0 %vm1775_vm1, %v11104_v46 }
 0xa44   : > { %v4620_v37 = vsel %vm1775_vm1, %v11402_v20, -inf  ;;  %v3623_v52 = vpack.c.bf16 %v3591_v43, %v3591_v43 }
 0xa45   : > { %4621 = vmax.xlane.f32.xlu0 %v4620_v37 }
 0xa46   : > { %v3807_v26 = vunpack.c.l.b16 %v3623_v52 }
 0xa47   : > { %v3500_v50 = vpop.xlane.xlu2 %3499 }
 0xa48   : > { %7795 = vrcp.f32 %v3500_v50 }
 0xa49   : > { %v4392_v60 = vpop.f32.mrf.mxu1 }
 0xa4c   : > { %7169 = vmatmul.msk.bf16.gmra.mxu2 %vm1775_vm1, %v13126_v36  ;;  %v11424_v36 = vpop.f32.mrf.mxu0 }
 0xa4d   : > { %13128 = vst [vmem:[#allocation32_spill] sm:$0xff] %v11424_v36 }
 0xa4e   : > { %v7796_v46 = vpop.eup %7795 }
 0xa4f   : > { %v3590_v1 = vmul.f32 %v7796_v46, %v11232_v0  ;;  %v11418_v61 = vpop.f32.mrf.mxu2  ;;  %v5617_v37 = vpop.permute.xlu2 %5616 }
 0xa51   : > { %v3622_v49 = vpack.c.bf16 %v3590_v1, %v3590_v1  ;;  %v4463_v39 = vpop.f32.mrf.mxu1 }
 0xa53   : > { %7216 = vmatmul.msk.bf16.vlgmr.msra.gmra.mxu0 %vm1775_vm1, %v5617_v37  ;;  %v3806_v50 = vunpack.c.l.b16 %v3622_v49 }
 0xa54   : > { %v11431_v52 = vpop.f32.mrf.mxu0 }
 0xa55   : > { %v3809_v38 = vpack.c.b16 %v3807_v26, %v3806_v50  ;;  %13129 = vst [vmem:[#allocation34_spill] sm:$0xff] %v11431_v52  ;;  %v3964_v26 = vpack.c.bf16 %v3669_v45, %v3667_v59  ;;  %v3672_v50 = vpop.f32.mrf.mxu3  ;;  %v11446_v59 = vadd.f32 %v11364_v40, %v4392_v60 }
 0xa57   : > { %v11421_v41 = vpop.f32.mrf.mxu2  ;;  %7099 = vmatmul.msk.bf16.gmra.mxu3 %vm1775_vm1, %v3809_v38  ;;  %v5619_v51 = vpop.permute.xlu2 %5618 }
 0xa59   : > { %v4465_v43 = vpop.f32.mrf.mxu1 }
 0xa5f   : > { %v4346_v0 = vpop.f32.mrf.mxu2 }
 0xa60   : > { %v11427_v46 = vadd.f32 %v11324_v14, %v4346_v0 }
 0xa61   : > { %v4468_v1 = vpop.f32.mrf.mxu1 }
 0xa62   : > { %v4602_v37 = vsel %vm1775_vm1, %v11427_v46, -inf }
 0xa63   : > { %7217 = vmatmul.msk.bf16.gmra.mxu0 %vm1775_vm1, %v5619_v51  ;;  %4603 = vmax.xlane.f32.xlu1 %v4602_v37 }
 0xa67   : > { %v4348_v49 = vpop.f32.mrf.mxu2  ;;  %7114 = vmatmul.msk.bf16.vlgmr.msra.gmra.mxu3 %vm1775_vm1, %v3964_v26  ;;  %v3674_v26 = vpop.f32.mrf.mxu3 }
 0xa68   : > { %v11436_v38 = vadd.f32 %v11339_v21, %v4348_v49  ;;  %v4623_v49 = vsel %vm1775_vm1, %v11446_v59, -inf }
 0xa69   : > { %v4470_v0 = vpop.f32.mrf.mxu1 }
 0xa6a   : > { %v11439_v36 = vadd.f32 %v11364_v40, %v4470_v0  ;;  %v4605_v48 = vsel %vm1775_vm1, %v11436_v38, -inf  ;;  %v3965_v0 = vpack.c.bf16 %v3674_v26, %v3672_v50  ;;  %v11472_v26 = vadd.f32 %v11339_v21, %v4465_v43 }
 0xa6b   : > { %4606 = vmax.xlane.f32.xlu2 %v4605_v48 }
 0xa6c   : > { %v4647_v51 = vsel %vm1775_vm1, %v11439_v36, -inf }
 0xa6d   : > { %4648 = vmax.xlane.f32.xlu0 %v4647_v51 }
 0xa6f   : > { %v4351_v45 = vpop.f32.mrf.mxu2 }
 0xa70   : > { %v11451_v52 = vadd.f32 %v11346_v44, %v4351_v45  ;;  %v11466_v45 = vpop.permute.xlu0 %5700 }
 0xa71   : > { %v4541_v37 = vpop.f32.mrf.mxu1  ;;  %13130 = vst [vmem:[#allocation76_spill] sm:$0xff] %v11466_v45 }
 0xa72   : > { %v4608_v62 = vsel %vm1775_vm1, %v11451_v52, -inf }
 0xa73   : > { %4624 = vmax.xlane.f32.xlu2 %v4623_v49 }
 0xa77   : > { %v4353_v54 = vpop.f32.mrf.mxu2  ;;  %7115 = vmatmul.msk.bf16.gmra.mxu3 %vm1775_vm1, %v3965_v0 }
 0xa78   : > { %v11455_v48 = vadd.f32 %v11364_v40, %v4353_v54  ;;  %v11469_v54 = vadd.f32 %v11324_v14, %v4463_v39  ;;  %v11487_v45 = vpop.permute.xlu0 %5698 }
 0xa79   : > { %v4543_v51 = vpop.f32.mrf.mxu1  ;;  %13131 = vst [vmem:[#allocation72_spill] sm:$0xff] %v11487_v45 }
 0xa7a   : > { %v11458_v60 = vadd.f32 %v11339_v21, %v4543_v51  ;;  %v4611_v49 = vsel %vm1775_vm1, %v11455_v48, -inf  ;;  %v4638_v51 = vsel %vm1775_vm1, %v11469_v54, -inf }
 0xa7b   : > { %4609 = vmax.xlane.f32.xlu2 %v4608_v62  ;;  %4612 = vmax.xlane.f32.xlu1 %v4611_v49  ;;  %v4641_v62 = vsel %vm1775_vm1, %v11472_v26, -inf  ;;  %v3966_v49 = vpack.c.bf16 %v11115_v11, %v11106_v15 }
 0xa7c   : > { %v4665_v50 = vsel %vm1775_vm1, %v11458_v60, -inf }
 0xa7d   : > { %4666 = vmax.xlane.f32.xlu0 %v4665_v50  ;;  %v11481_v50 = vadd.f32 %v11346_v44, %v4468_v1 }
 0xa7f   : > { %v4424_v0 = vpop.f32.mrf.mxu2 }
 0xa80   : > { %v11484_v39 = vadd.f32 %v11324_v14, %v4424_v0  ;;  %v11499_v0 = vpop.permute.xlu0 %5694 }
 0xa81   : > { %13132 = vst [vmem:[#allocation27_spill] sm:$0xff] %v11499_v0  ;;  %v4546_v42 = vpop.f32.mrf.mxu1 }
 0xa82   : > { %v4626_v4 = vsel %vm1775_vm1, %v11484_v39, -inf }
 0xa83   : > { %4639 = vmax.xlane.f32.xlu2 %v4638_v51  ;;  %4642 = vmax.xlane.f32.xlu1 %v4641_v62  ;;  %v4644_v51 = vsel %vm1775_vm1, %v11481_v50, -inf }
 0xa87   : > { %v4426_v43 = vpop.f32.mrf.mxu2  ;;  %7116 = vmatmul.msk.bf16.gmra.mxu3 %vm1775_vm1, %v3966_v49 }
 0xa88   : > { %v11494_v15 = vadd.f32 %v11339_v21, %v4426_v43  ;;  %v11508_v43 = vadd.f32 %v11324_v14, %v4541_v37  ;;  %v11513_v0 = vpop.permute.xlu0 %5661 }
 0xa89   : > { %13133 = vst [vmem:[#allocation25_spill] sm:$0xff] %v11513_v0 }
 0xa8a   : > { %v4629_v49 = vsel %vm1775_vm1, %v11494_v15, -inf }
 0xa8b   : > { %4627 = vmax.xlane.f32.xlu2 %v4626_v4  ;;  %4645 = vmax.xlane.f32.xlu1 %v4644_v51  ;;  %v3967_v4 = vpack.c.bf16 %v11139_v23, %v11127_v5  ;;  %v3968_v23 = vpack.c.bf16 %v11230_v19, %v11222_v58  ;;  %v4548_v19 = vpop.f32.mrf.mxu1 }
 0xa8f   : > { %v4429_v11 = vpop.f32.mrf.mxu2 }
 0xa90   : > { %v11497_v1 = vadd.f32 %v11346_v44, %v4429_v11  ;;  %v4662_v11 = vsel %vm1775_vm1, %v11508_v43, -inf  ;;  %v11524_v37 = vpop.permute.xlu0 %5659 }
 0xa91   : > { %13135 = vst [vmem:[#allocation89_spill] sm:$0xff] %v11524_v37 }
 0xa92   : > { %v4632_v62 = vsel %vm1775_vm1, %v11497_v1, -inf }
 0xa93   : > { %4633 = vmax.xlane.f32.xlu2 %v4632_v62  ;;  %4630 = vmax.xlane.f32.xlu1 %v4629_v49  ;;  %v11518_v62 = vpop.permute.xlu1 %5655 }
 0xa94   : > { %13134 = vst [vmem:[#allocation88_spill] sm:$0xff] %v11518_v62 }
 0xa97   : > { %v4431_v51 = vpop.f32.mrf.mxu2  ;;  %7117 = vmatmul.msk.bf16.gmra.mxu3 %vm1775_vm1, %v3967_v4  ;;  %v11526_v4 = vpop.permute.xlu2 %5696 }
 0xa98   : > { %v11516_v45 = vadd.f32 %v11364_v40, %v4431_v51  ;;  %13136 = vst [vmem:[#allocation23_spill] sm:$0xff] %v11526_v4  ;;  %v4598_v37 = vpop.xlane.xlu0 %4597 }
 0xa9a   : > { %v4635_v5 = vsel %vm1775_vm1, %v11516_v45, -inf }
 0xa9b   : > { %4663 = vmax.xlane.f32.xlu1 %v4662_v11  ;;  %v4592_v51 = vpop.xlane.xlu1 %4591 }
 0xa9c   : > { %v4686_v18 = vsub.f32 %v11330_v6, %v4592_v51  ;;  %v4688_v51 = vsub.f32 %v11357_v55, %v4598_v37 }
 0xa9e   : > { %v4718_v4 = vmul.f32 1.442695, %v4686_v18  ;;  %v3969_v18 = vpack.c.bf16 %v11266_v63, %v11245_v7 }
 0xa9f   : > { %v4502_v49 = vpop.f32.mrf.mxu2 }
 0xaa0   : > { %v11529_v11 = vadd.f32 %v11324_v14, %v4502_v49  ;;  %v11541_v49 = vadd.f32 %v11346_v44, %v4546_v42  ;;  %7797 = vpow2.f32 %v4718_v4 }
 0xaa2   : > { %v4650_v58 = vsel %vm1775_vm1, %v11529_v11, -inf }
 0xaa3   : > { %4636 = vmax.xlane.f32.xlu1 %v4635_v5 }
 0xaa6   : > { %v11558_v55 = vpop.eup %7797 }
 0xaa7   : > { %v4504_v0 = vpop.f32.mrf.mxu2  ;;  %7118 = vmatmul.msk.bf16.gmra.mxu3 %vm1775_vm1, %v3968_v23  ;;  %v11544_v23 = vadd.f32 %v11364_v40, %v4548_v19  ;;  %v4782_v63 = vsel %vm1775_vm1, %v11558_v55, 0.0 }
 0xaa8   : > { %v11533_v62 = vadd.f32 %v11339_v21, %v4504_v0  ;;  %v4595_v0 = vpop.xlane.xlu2 %4594 }
 0xaa9   : > { %v4687_v6 = vsub.f32 %v11349_v16, %v4595_v0  ;;  %v4671_v22 = vsel %vm1775_vm1, %v11544_v23, -inf  ;;  %v4616_v16 = vpop.xlane.xlu1 %4615 }
 0xaaa   : > { %v4653_v5 = vsel %vm1775_vm1, %v11533_v62, -inf }
 0xaab   : > { %4654 = vmax.xlane.f32.xlu2 %v4653_v5  ;;  %4651 = vmax.xlane.f32.xlu1 %v4650_v58  ;;  %v4668_v5 = vsel %vm1775_vm1, %v11541_v49, -inf  ;;  %v4720_v42 = vmul.f32 1.442695, %v4687_v6  ;;  %v4722_v58 = vmul.f32 1.442695, %v4688_v51 }
 0xaad   : > { %7799 = vpow2.f32 %v4720_v42 }
 0xaae   : > { %7801 = vpow2.f32 %v4722_v58 }
 0xaaf   : > { %v4507_v34 = vpop.f32.mrf.mxu2 }
 0xab0   : > { %v11555_v19 = vadd.f32 %v11346_v44, %v4507_v34  ;;  %v4619_v0 = vpop.xlane.xlu0 %4618  ;;  %v4601_v6 = vpop.xlane.xlu2 %4600 }
 0xab1   : > { %v4689_v58 = vsub.f32 %v11371_v25, %v4601_v6 }
 0xab2   : > { %v4656_v34 = vsel %vm1775_vm1, %v11555_v19, -inf }
 0xab3   : > { %4672 = vmax.xlane.f32.xlu2 %v4671_v22  ;;  %4669 = vmax.xlane.f32.xlu1 %v4668_v5  ;;  %v4694_v22 = vsub.f32 %v11380_v24, %v4616_v16  ;;  %v11570_v5 = vpop.eup %7799 }
 0xab4   : > { %v11574_v42 = vpop.eup %7801  ;;  %v4785_v16 = vsel %vm1775_vm1, %v11570_v5, 0.0 }
 0xab5   : > { %v4734_v51 = vmul.f32 1.442695, %v4694_v22  ;;  %v3970_v22 = vpack.c.bf16 %v11353_v31, %v11337_v27 }
 0xab7   : > { %v4509_v4 = vpop.f32.mrf.mxu2  ;;  %7119 = vmatmul.msk.bf16.gmra.mxu3 %vm1775_vm1, %v3969_v18  ;;  %v11572_v18 = vpop.f32.mrf.mxu0  ;;  %7803 = vpow2.f32 %v4734_v51 }
 0xab8   : > { %v11561_v37 = vadd.f32 %v11364_v40, %v4509_v4  ;;  %13137 = vst [vmem:[#allocation90_spill] sm:$0xff] %v11572_v18  ;;  %v4788_v4 = vsel %vm1775_vm1, %v11574_v42, 0.0 }
 0xaba   : > { %v4659_v7 = vsel %vm1775_vm1, %v11561_v37, -inf }
 0xabb   : > { %4660 = vmax.xlane.f32.xlu0 %v4659_v7  ;;  %4657 = vmax.xlane.f32.xlu2 %v4656_v34  ;;  %v4724_v7 = vmul.f32 1.442695, %v4689_v58  ;;  %v4622_v34 = vpop.xlane.xlu0 %4621 }
 0xabc   : > { %4783 = vadd.xlane.f32.xlu1 %v4782_v63 }
 0xabd   : > { %v11587_v25 = vpop.eup %7803  ;;  %7805 = vpow2.f32 %v4724_v7 }
 0xabe   : > { %v4806_v31 = vsel %vm1775_vm1, %v11587_v25, 0.0 }
 0xabf   : > { %v4580_v24 = vpop.f32.mrf.mxu2  ;;  %v11592_v51 = vpop.f32.mrf.mxu0 }
 0xac0   : > { %v11584_v63 = vadd.f32 %v11324_v14, %v4580_v24 }
 0xac2   : > { %v4674_v27 = vsel %vm1775_vm1, %v11584_v63, -inf }
 0xac3   : > { %4786 = vadd.xlane.f32.xlu0 %v4785_v16  ;;  %v4696_v16 = vsub.f32 %v11402_v20, %v4622_v34  ;;  %v4695_v20 = vsub.f32 %v11389_v28, %v4619_v0  ;;  %v3971_v34 = vpack.c.bf16 %v11382_v35, %v11368_v47 }
 0xac4   : > { %4789 = vadd.xlane.f32.xlu1 %v4788_v4 }
 0xac5   : > { %v4738_v24 = vmul.f32 1.442695, %v4696_v16  ;;  %v4736_v16 = vmul.f32 1.442695, %v4695_v20 }
 0xac7   : > { %v4582_v18 = vpop.f32.mrf.mxu2  ;;  %7120 = vmatmul.msk.bf16.gmra.mxu3 %vm1775_vm1, %v3970_v22  ;;  %7807 = vpow2.f32 %v4738_v24  ;;  %v11611_v7 = vpop.f32.mrf.mxu0 }
 0xac8   : > { %v11590_v6 = vadd.f32 %v11339_v21, %v4582_v18  ;;  %v11601_v21 = vpop.eup %7805  ;;  %7809 = vpow2.f32 %v4736_v16 }
 0xac9   : > { %v4791_v4 = vsel %vm1775_vm1, %v11601_v21, 0.0 }
 0xaca   : > { %v4677_v14 = vsel %vm1775_vm1, %v11590_v6, -inf }
 0xacb   : > { %4675 = vmax.xlane.f32.xlu0 %v4674_v27  ;;  %4678 = vmax.xlane.f32.xlu2 %v4677_v14  ;;  %v3831_v27 = vpop.f32.mrf.mxu3 }
 0xacc   : > { %4807 = vadd.xlane.f32.xlu1 %v4806_v31 }
 0xacd   : > { %v11615_v14 = vpop.eup %7807 }
 0xace   : > { %v4812_v47 = vsel %vm1775_vm1, %v11615_v14, 0.0  ;;  %v11628_v20 = vpop.eup %7809 }
 0xacf   : > { %v4585_v18 = vpop.f32.mrf.mxu2  ;;  %v11626_v35 = vpop.f32.mrf.mxu0 }
 0xad0   : > { %v11604_v58 = vadd.f32 %v11346_v44, %v4585_v18  ;;  %13138 = vst [vmem:[#allocation64_spill] sm:$0xff] %v11626_v35 }
 0xad2   : > { %v4680_v22 = vsel %vm1775_vm1, %v11604_v58, -inf }
 0xad3   : > { %4792 = vadd.xlane.f32.xlu0 %v4791_v4  ;;  %4681 = vmax.xlane.f32.xlu2 %v4680_v22 }
 0xad6   : > { %v4604_v44 = vpop.xlane.xlu1 %4603 }
 0xad7   : > { %v4690_v28 = vsub.f32 %v11427_v46, %v4604_v44  ;;  %v4587_v0 = vpop.f32.mrf.mxu2  ;;  %7121 = vmatmul.msk.bf16.gmra.mxu3 %vm1775_vm1, %v3971_v34  ;;  %v4809_v44 = vsel %vm1775_vm1, %v11628_v20, 0.0 }
 0xad8   : > { %v11620_v31 = vadd.f32 %v11364_v40, %v4587_v0  ;;  %v3833_v40 = vpop.f32.mrf.mxu3 }
 0xad9   : > { %v4726_v24 = vmul.f32 1.442695, %v4690_v28  ;;  %v3972_v28 = vpack.c.bf16 %v3833_v40, %v3831_v27 }
 0xada   : > { %v4683_v18 = vsel %vm1775_vm1, %v11620_v31, -inf }
 0xadb   : > { %7811 = vpow2.f32 %v4726_v24  ;;  %4684 = vmax.xlane.f32.xlu0 %v4683_v18  ;;  %4813 = vadd.xlane.f32.xlu2 %v4812_v47  ;;  %v11637_v24 = vpop.f32.mrf.mxu0 }
 0xadc   : > { %13139 = vst [vmem:[#allocation49_spill] sm:$0xff] %v11637_v24 }
 0xade   : > { %v4607_v46 = vpop.xlane.xlu2 %4606 }
 0xadf   : > { %v4691_v4 = vsub.f32 %v11436_v38, %v4607_v46 }
 0xae0   : > { %v3836_v38 = vpop.f32.mrf.mxu3 }
 0xae1   : > { %v11631_v22 = vpop.eup %7811  ;;  %v4728_v34 = vmul.f32 1.442695, %v4691_v4 }
 0xae2   : > { %v4794_v16 = vsel %vm1775_vm1, %v11631_v22, 0.0 }
 0xae3   : > { %7813 = vpow2.f32 %v4728_v34  ;;  %4795 = vadd.xlane.f32.xlu1 %v4794_v16  ;;  %4810 = vadd.xlane.f32.xlu0 %v4809_v44 }
 0xae6   : > { %v4625_v0 = vpop.xlane.xlu2 %4624 }
 0xae7   : > { %v4697_v18 = vsub.f32 %v11446_v59, %v4625_v0  ;;  %7122 = vmatmul.msk.bf16.gmra.mxu3 %vm1775_vm1, %v3972_v28  ;;  %v11649_v59 = vpop.f32.mrf.mxu0 }
 0xae8   : > { %13140 = vst [vmem:[#allocation85_spill] sm:$0xff] %v11649_v59  ;;  %v3838_v24 = vpop.f32.mrf.mxu3 }
 0xae9   : > { %v11641_v47 = vpop.eup %7813  ;;  %v4740_v46 = vmul.f32 1.442695, %v4697_v18 }
 0xaea   : > { %v4797_v4 = vsel %vm1775_vm1, %v11641_v47, 0.0 }
 0xaeb   : > { %7815 = vpow2.f32 %v4740_v46  ;;  %4798 = vadd.xlane.f32.xlu1 %v4797_v4  ;;  %v3973_v46 = vpack.c.bf16 %v3838_v24, %v3836_v38 }
 0xaee   : > { %v4610_v34 = vpop.xlane.xlu2 %4609  ;;  %v4613_v16 = vpop.xlane.xlu1 %4612 }
 0xaef   : > { %v4692_v27 = vsub.f32 %v11451_v52, %v4610_v34  ;;  %v4693_v40 = vsub.f32 %v11455_v48, %v4613_v16 }
 0xaf1   : > { %v11647_v44 = vpop.eup %7815  ;;  %v4730_v28 = vmul.f32 1.442695, %v4692_v27  ;;  %v4732_v0 = vmul.f32 1.442695, %v4693_v40 }
 0xaf2   : > { %v4815_v18 = vsel %vm1775_vm1, %v11647_v44, 0.0 }
 0xaf3   : > { %7817 = vpow2.f32 %v4730_v28  ;;  %4816 = vadd.xlane.f32.xlu1 %v4815_v18  ;;  %v11662_v18 = vpop.f32.mrf.mxu0 }
 0xaf4   : > { %7819 = vpow2.f32 %v4732_v0  ;;  %13141 = vst [vmem:[#allocation26_spill] sm:$0xff] %v11662_v18 }
 0xaf6   : > { %v4640_v4 = vpop.xlane.xlu2 %4639  ;;  %v4643_v35 = vpop.xlane.xlu1 %4642 }
 0xaf7   : > { %v4702_v52 = vsub.f32 %v11469_v54, %v4640_v4  ;;  %v4703_v48 = vsub.f32 %v11472_v26, %v4643_v35  ;;  %7123 = vmatmul.msk.bf16.gmra.mxu3 %vm1775_vm1, %v3973_v46 }
 0xaf9   : > { %v11656_v34 = vpop.eup %7817  ;;  %v4750_v16 = vmul.f32 1.442695, %v4702_v52  ;;  %v4752_v27 = vmul.f32 1.442695, %v4703_v48 }
 0xafa   : > { %v11658_v40 = vpop.eup %7819  ;;  %v4800_v28 = vsel %vm1775_vm1, %v11656_v34, 0.0 }
 0xafb   : > { %7821 = vpow2.f32 %v4750_v16  ;;  %4801 = vadd.xlane.f32.xlu0 %v4800_v28  ;;  %v4803_v54 = vsel %vm1775_vm1, %v11658_v40, 0.0 }
 0xafc   : > { %7823 = vpow2.f32 %v4752_v27  ;;  %4804 = vadd.xlane.f32.xlu2 %v4803_v54  ;;  %v11676_v27 = vpop.f32.mrf.mxu0  ;;  %v13143_v54 = vpack.c.bf16 %v11164_v33, %v11149_v10 }
 0xafd   : > { %13142 = vst [vmem:[#allocation110_spill] sm:$0xff] %v11676_v27 }
 0xafe   : > { %v4628_v26 = vpop.xlane.xlu2 %4627  ;;  %v4646_v35 = vpop.xlane.xlu1 %4645 }
 0xaff   : > { %v4698_v24 = vsub.f32 %v11484_v39, %v4628_v26  ;;  %v4704_v38 = vsub.f32 %v11481_v50, %v4646_v35  ;;  %v4649_v39 = vpop.xlane.xlu0 %4648 }
 0xb01   : > { %v11668_v0 = vpop.eup %7821  ;;  %v4742_v46 = vmul.f32 1.442695, %v4698_v24  ;;  %v4754_v4 = vmul.f32 1.442695, %v4704_v38  ;;  %v4705_v38 = vsub.f32 %v11439_v36, %v4649_v39 }
 0xb02   : > { %v11670_v52 = vpop.eup %7823  ;;  %v4830_v48 = vsel %vm1775_vm1, %v11668_v0, 0.0 }
 0xb03   : > { %7825 = vpow2.f32 %v4742_v46  ;;  %4831 = vadd.xlane.f32.xlu1 %v4830_v48  ;;  %v4833_v16 = vsel %vm1775_vm1, %v11670_v52, 0.0 }
 0xb04   : > { %7827 = vpow2.f32 %v4754_v4  ;;  %4834 = vadd.xlane.f32.xlu2 %v4833_v16  ;;  %v11692_v48 = vpop.f32.mrf.mxu0 }
 0xb05   : > { %13144 = vst [vmem:[#allocation100_spill] sm:$0xff] %v11692_v48 }
 0xb06   : > { %v4631_v50 = vpop.xlane.xlu1 %4630  ;;  %v4634_v16 = vpop.xlane.xlu2 %4633 }
 0xb07   : > { %v4699_v28 = vsub.f32 %v11494_v15, %v4631_v50  ;;  %7124 = vmatmul.msk.bf16.gmra.mxu3 %vm1775_vm1, %v13143_v54  ;;  %v4756_v15 = vmul.f32 1.442695, %v4705_v38  ;;  %v4667_v10 = vpop.xlane.xlu0 %4666 }
 0xb08   : > { %v4711_v36 = vsub.f32 %v11458_v60, %v4667_v10 }
 0xb09   : > { %v11683_v26 = vpop.eup %7825  ;;  %v4744_v35 = vmul.f32 1.442695, %v4699_v28  ;;  %v11695_v28 = vpop.f32.mrf.mxu3 }
 0xb0a   : > { %v11685_v24 = vpop.eup %7827  ;;  %v4818_v46 = vsel %vm1775_vm1, %v11683_v26, 0.0  ;;  %v4768_v38 = vmul.f32 1.442695, %v4711_v36 }
 0xb0b   : > { %4819 = vadd.xlane.f32.xlu1 %v4818_v46  ;;  %v4836_v4 = vsel %vm1775_vm1, %v11685_v24, 0.0  ;;  %7829 = vpow2.f32 %v4744_v35  ;;  %v4700_v46 = vsub.f32 %v11497_v1, %v4634_v16 }
 0xb0c   : > { %4837 = vadd.xlane.f32.xlu0 %v4836_v4  ;;  %7831 = vpow2.f32 %v4756_v15  ;;  %v11712_v1 = vpop.f32.mrf.mxu0 }
 0xb0d   : > { %v4746_v4 = vmul.f32 1.442695, %v4700_v46  ;;  %13146 = vst [vmem:[#allocation35_spill] sm:$0xff] %v11712_v1 }
 0xb0e   : > { %v4664_v33 = vpop.xlane.xlu1 %4663 }
 0xb0f   : > { %v4710_v50 = vsub.f32 %v11508_v43, %v4664_v33  ;;  %v13145_v33 = vpack.c.bf16 %v11189_v57, %v11175_v53 }
 0xb11   : > { %v4766_v39 = vmul.f32 1.442695, %v4710_v50  ;;  %v11698_v54 = vpop.eup %7829  ;;  %v11716_v50 = vpop.f32.mrf.mxu3 }
 0xb12   : > { %v4821_v35 = vsel %vm1775_vm1, %v11698_v54, 0.0  ;;  %v11708_v60 = vpop.eup %7831 }
 0xb13   : > { %7833 = vpow2.f32 %v4766_v39  ;;  %4822 = vadd.xlane.f32.xlu2 %v4821_v35  ;;  %v4839_v53 = vsel %vm1775_vm1, %v11708_v60, 0.0 }
 0xb14   : > { %7835 = vpow2.f32 %v4768_v38 }
 0xb15   : > { %7837 = vpow2.f32 %v4746_v4 }
 0xb16   : > { %v4637_v48 = vpop.xlane.xlu1 %4636 }
 0xb17   : > { %v4701_v43 = vsub.f32 %v11516_v45, %v4637_v48  ;;  %7125 = vmatmul.msk.bf16.gmra.mxu3 %vm1775_vm1, %v13145_v33 }
 0xb19   : > { %v11710_v15 = vpop.eup %7833  ;;  %v4748_v10 = vmul.f32 1.442695, %v4701_v43 }
 0xb1a   : > { %v4854_v16 = vsel %vm1775_vm1, %v11710_v15, 0.0  ;;  %v11720_v48 = vpop.eup %7835 }
 0xb1b   : > { %7839 = vpow2.f32 %v4748_v10  ;;  %4855 = vadd.xlane.f32.xlu0 %v4854_v16  ;;  %4840 = vadd.xlane.f32.xlu2 %v4839_v53  ;;  %v11724_v46 = vpop.eup %7837  ;;  %v4857_v33 = vsel %vm1775_vm1, %v11720_v48, 0.0  ;;  %v11732_v10 = vpop.f32.mrf.mxu0 }
 0xb1c   : > { %13147 = vst [vmem:[#allocation80_spill] sm:$0xff] %v11732_v10  ;;  %v11738_v16 = vpop.f32.mrf.mxu3 }
 0xb1e   : > { %v4655_v57 = vpop.xlane.xlu2 %4654  ;;  %v4652_v45 = vpop.xlane.xlu1 %4651 }
 0xb1f   : > { %v4707_v36 = vsub.f32 %v11533_v62, %v4655_v57  ;;  %v4706_v39 = vsub.f32 %v11529_v11, %v4652_v45  ;;  %v4824_v62 = vsel %vm1775_vm1, %v11724_v46, 0.0  ;;  %v3976_v11 = vpack.c.bf16 %v11295_v56, %v11278_v9 }
 0xb21   : > { %v11726_v35 = vpop.eup %7839  ;;  %v4760_v38 = vmul.f32 1.442695, %v4707_v36  ;;  %v4758_v4 = vmul.f32 1.442695, %v4706_v39 }
 0xb22   : > { %v4827_v43 = vsel %vm1775_vm1, %v11726_v35, 0.0 }
 0xb23   : > { %7841 = vpow2.f32 %v4760_v38  ;;  %4828 = vadd.xlane.f32.xlu1 %v4827_v43  ;;  %4858 = vadd.xlane.f32.xlu0 %v4857_v33  ;;  %v11751_v56 = vpop.f32.mrf.mxu0 }
 0xb24   : > { %7843 = vpow2.f32 %v4758_v4  ;;  %4825 = vadd.xlane.f32.xlu2 %v4824_v62  ;;  %13148 = vst [vmem:[#allocation65_spill] sm:$0xff] %v11751_v56  ;;  %v11753_v62 = vpop.f32.mrf.mxu3 }
 0xb26   : > { %v4673_v53 = vpop.xlane.xlu2 %4672  ;;  %v4670_v57 = vpop.xlane.xlu1 %4669 }
 0xb27   : > { %v4713_v45 = vsub.f32 %v11544_v23, %v4673_v53  ;;  %v4712_v36 = vsub.f32 %v11541_v49, %v4670_v57  ;;  %7126 = vmatmul.msk.bf16.gmra.mxu3 %vm1775_vm1, %v3976_v11 }
 0xb29   : > { %v11743_v39 = vpop.eup %7841  ;;  %v4772_v38 = vmul.f32 1.442695, %v4713_v45  ;;  %v4770_v43 = vmul.f32 1.442695, %v4712_v36 }
 0xb2a   : > { %v11745_v33 = vpop.eup %7843  ;;  %v4845_v4 = vsel %vm1775_vm1, %v11743_v39, 0.0 }
 0xb2b   : > { %7845 = vpow2.f32 %v4772_v38  ;;  %v4842_v9 = vsel %vm1775_vm1, %v11745_v33, 0.0  ;;  %4846 = vadd.xlane.f32.xlu0 %v4845_v4 }
 0xb2c   : > { %7847 = vpow2.f32 %v4770_v43  ;;  %4843 = vadd.xlane.f32.xlu2 %v4842_v9 }
 0xb2e   : > { %v4658_v49 = vpop.xlane.xlu2 %4657  ;;  %v4661_v23 = vpop.xlane.xlu0 %4660 }
 0xb2f   : > { %v4708_v11 = vsub.f32 %v11555_v19, %v4658_v49  ;;  %v4784_v53 = vpop.xlane.xlu1 %4783  ;;  %v4709_v57 = vsub.f32 %v11561_v37, %v4661_v23  ;;  %v3977_v19 = vpack.c.bf16 %v11319_v8, %v11309_v30  ;;  %v11770_v23 = vpop.f32.mrf.mxu0 }
 0xb30   : > { %7849 = vrcp.f32 %v4784_v53  ;;  %13149 = vst [vmem:[#allocation31_spill] sm:$0xff] %v11770_v23 }
 0xb31   : > { %v11757_v45 = vpop.eup %7845  ;;  %v4762_v36 = vmul.f32 1.442695, %v4708_v11  ;;  %v4764_v38 = vmul.f32 1.442695, %v4709_v57  ;;  %v11772_v11 = vpop.f32.mrf.mxu3 }
 0xb32   : > { %v11759_v10 = vpop.eup %7847  ;;  %v4863_v43 = vsel %vm1775_vm1, %v11757_v45, 0.0 }
 0xb33   : > { %7851 = vpow2.f32 %v4762_v36  ;;  %v4860_v4 = vsel %vm1775_vm1, %v11759_v10, 0.0  ;;  %4864 = vadd.xlane.f32.xlu0 %v4863_v43 }
 0xb34   : > { %7853 = vpow2.f32 %v4764_v38  ;;  %4861 = vadd.xlane.f32.xlu1 %v4860_v4 }
 0xb36   : > { %v4787_v37 = vpop.xlane.xlu0 %4786  ;;  %v7850_v9 = vpop.eup %7849 }
 0xb37   : > { %7855 = vrcp.f32 %v4787_v37  ;;  %7127 = vmatmul.msk.bf16.gmra.mxu3 %vm1775_vm1, %v3977_v19  ;;  %v4910_v57 = vmul.f32 %v7850_v9, %v11558_v55  ;;  %v4790_v38 = vpop.xlane.xlu1 %4789  ;;  %v11784_v18 = vpop.f32.mrf.mxu0 }
 0xb38   : > { %7857 = vrcp.f32 %v4790_v38  ;;  %13150 = vst [vmem:[#allocation70_spill] sm:$0xff] %v11784_v18 }
 0xb39   : > { %v11768_v49 = vpop.eup %7851  ;;  %v4942_v43 = vpack.c.bf16 %v4910_v57, %v4910_v57 }
 0xb3a   : > { %v11774_v53 = vpop.eup %7853  ;;  %v4848_v36 = vsel %vm1775_vm1, %v11768_v49, 0.0 }
 0xb3b   : > { %4849 = vadd.xlane.f32.xlu0 %v4848_v36  ;;  %v4851_v30 = vsel %vm1775_vm1, %v11774_v53, 0.0  ;;  %v4978_v36 = vunpack.c.l.b16 %v4942_v43 }
 0xb3c   : > { %4852 = vadd.xlane.f32.xlu2 %v4851_v30  ;;  %v11786_v30 = vpop.f32.mrf.mxu3 }
 0xb3d   : > { %v7856_v8 = vpop.eup %7855 }
 0xb3e   : > { %v4911_v4 = vmul.f32 %v7856_v8, %v11570_v5  ;;  %v4679_v19 = vpop.xlane.xlu2 %4678  ;;  %v4676_v37 = vpop.xlane.xlu0 %4675  ;;  %v3978_v5 = vpack.c.bf16 %v11410_v13, %v11397_v32  ;;  %v13152_v13 = vld [vmem:[#allocation115_spill] sm:$0xff] }
 0xb3f   : > { %v4715_v23 = vsub.f32 %v11590_v6, %v4679_v19  ;;  %v4714_v56 = vsub.f32 %v11584_v63, %v4676_v37  ;;  %v7858_v6 = vpop.eup %7857  ;;  %v11804_v19 = vpop.f32.mrf.mxu0 }
 0xb40   : > { %v4943_v55 = vpack.c.bf16 %v4911_v4, %v4911_v4  ;;  %13153 = vst [vmem:[#allocation135_spill] sm:$0xff] %v11804_v19 }
 0xb41   : > { %v4776_v9 = vmul.f32 1.442695, %v4715_v23  ;;  %v4774_v1 = vmul.f32 1.442695, %v4714_v56  ;;  %v13151_v56 = vld [vmem:[#allocation60_spill] sm:$0xff] }
 0xb42   : > { %v4979_v27 = vunpack.c.l.b16 %v4943_v55  ;;  %v13154_v55 = vld [vmem:[#allocation28_spill] sm:$0xff] }
 0xb43   : > { %7859 = vpow2.f32 %v4776_v9  ;;  %v4808_v9 = vpop.xlane.xlu1 %4807 }
 0xb44   : > { %v4982_v57 = vpack.c.b16 %v4979_v27, %v4978_v36  ;;  %7861 = vpow2.f32 %v4774_v1  ;;  %v4912_v1 = vmul.f32 %v7858_v6, %v11574_v42  ;;  %v11806_v37 = vpop.f32.mrf.mxu3 }
 0xb46   : > { %v4682_v8 = vpop.xlane.xlu2 %4681  ;;  %7170 = vmatmul.msk.bf16.vlgmr.msrb.gmra.mxu1 %vm1775_vm1, %v4982_v57  ;;  %v4793_v63 = vpop.xlane.xlu0 %4792  ;;  %v4944_v42 = vpack.c.bf16 %v4912_v1, %v4912_v1  ;;  %v13155_v1 = vld [vmem:[#allocation50_spill] sm:$0xff] }
 0xb47   : > { %v4716_v23 = vsub.f32 %v11604_v58, %v4682_v8  ;;  %5166 = vmatpush.bf16.msrb.mxu1 %v13151_v56  ;;  %7863 = vrcp.f32 %v4793_v63  ;;  %7128 = vmatmul.msk.bf16.gmra.mxu3 %vm1775_vm1, %v3978_v5 }
 0xb48   : > { %v4980_v63 = vunpack.c.l.b16 %v4944_v42 }
 0xb49   : > { %v11794_v38 = vpop.eup %7859  ;;  %v4778_v43 = vmul.f32 1.442695, %v4716_v23 }
 0xb4a   : > { %v11796_v27 = vpop.eup %7861  ;;  %v4869_v32 = vsel %vm1775_vm1, %v11794_v38, 0.0 }
 0xb4b   : > { %7865 = vpow2.f32 %v4778_v43  ;;  %5167 = vmatpush.bf16.msrb.mxu1 %v13152_v13  ;;  %4870 = vadd.xlane.f32.xlu0 %v4869_v32  ;;  %v4866_v58 = vsel %vm1775_vm1, %v11796_v27, 0.0  ;;  %v3979_v43 = vpack.c.bf16 %v11421_v41, %v11418_v61 }
 0xb4c   : > { %4867 = vadd.xlane.f32.xlu2 %v4866_v58  ;;  %7867 = vrcp.f32 %v4808_v9  ;;  %v11822_v13 = vpop.f32.mrf.mxu3 }
 0xb4d   : > { %v7864_v4 = vpop.eup %7863  ;;  %5737 = vrot.lane.b32.xlu1 %v13154_v55, %s8329_s14 }
 0xb4e   : > { %v4913_v36 = vmul.f32 %v7864_v4, %v11601_v21  ;;  %v11811_v57 = vpop.xlane.xlu0 %4684  ;;  %v11825_v4 = vpop.f32.mrf.mxu0 }
 0xb4f   : > { %13156 = vst [vmem:[#allocation69_spill] sm:$0xff] %v11825_v4  ;;  %v4814_v61 = vpop.xlane.xlu2 %4813 }
 0xb50   : > { %v4945_v5 = vpack.c.bf16 %v4913_v36, %v4913_v36 }
 0xb51   : > { %v11813_v8 = vpop.eup %7865 }
 0xb52   : > { %v4981_v6 = vunpack.c.l.b16 %v4945_v5  ;;  %v4872_v23 = vsel %vm1775_vm1, %v11813_v8, 0.0  ;;  %v7868_v58 = vpop.eup %7867 }
 0xb53   : > { %v4918_v55 = vmul.f32 %v7868_v58, %v11587_v25 }
 0xb54   : > { %4873 = vadd.xlane.f32.xlu2 %v4872_v23  ;;  %v4983_v56 = vpack.c.b16 %v4981_v6, %v4980_v63  ;;  %v13157_v63 = vld [vmem:[#allocation30_spill] sm:$0xff] }
 0xb55   : > { %5733 = vrot.lane.b32.xlu1 %v13155_v1, %s8329_s14  ;;  %v4950_v36 = vpack.c.bf16 %v4918_v55, %v4918_v55 }
 0xb56   : > { %v4796_v21 = vpop.xlane.xlu1 %4795  ;;  %7171 = vmatmul.msk.bf16.gmra.mxu1 %vm1775_vm1, %v4983_v56  ;;  %v4811_v32 = vpop.xlane.xlu0 %4810 }
 0xb57   : > { %7129 = vmatmul.msk.bf16.gmra.mxu3 %vm1775_vm1, %v3979_v43  ;;  %7869 = vrcp.f32 %v4811_v32  ;;  %v11831_v23 = vpop.f32.mrf.mxu0  ;;  %v11834_v43 = vpop.f32.mrf.mxu3  ;;  %v5060_v25 = vunpack.c.l.b16 %v4950_v36 }
 0xb58   : > { %7871 = vrcp.f32 %v4796_v21 }
 0xb5d   : > { %v7870_v42 = vpop.eup %7869 }
 0xb5e   : > { %v4799_v41 = vpop.xlane.xlu1 %4798  ;;  %v7872_v9 = vpop.eup %7871  ;;  %v4919_v5 = vmul.f32 %v7870_v42, %v11628_v20 }
 0xb5f   : > { %7873 = vrcp.f32 %v4799_v41  ;;  %5739 = vrot.lane.b32.xlu0 %v13157_v63, %s8329_s14  ;;  %v4914_v56 = vmul.f32 %v7872_v9, %v11631_v22  ;;  %v13158_v63 = vld [vmem:[#allocation44_spill] sm:$0xff] }
 0xb60   : > { %7875 = vrcp.f32 %v4814_v61  ;;  %v4951_v6 = vpack.c.bf16 %v4919_v5, %v4919_v5  ;;  %v11840_v5 = vpop.f32.mrf.mxu0 }
 0xb61   : > { %v4946_v58 = vpack.c.bf16 %v4914_v56, %v4914_v56 }
 0xb62   : > { %v5061_v1 = vunpack.c.l.b16 %v4951_v6  ;;  %v11845_v6 = vpop.f32.mrf.mxu3 }
 0xb63   : > { %v5019_v22 = vunpack.c.l.b16 %v4946_v58 }
 0xb64   : > { %v5064_v32 = vpack.c.b16 %v5061_v1, %v5060_v25 }
 0xb65   : > { %v7874_v21 = vpop.eup %7873 }
 0xb66   : > { %v4915_v55 = vmul.f32 %v7874_v21, %v11641_v47  ;;  %v4817_v20 = vpop.xlane.xlu1 %4816  ;;  %v7876_v42 = vpop.eup %7875  ;;  %7174 = vmatmul.msk.bf16.vlgmr.msra.gmra.mxu1 %vm1775_vm1, %v5064_v32  ;;  %v11850_v32 = vld [vmem:[#allocation11 + $0x38] sm:$0xff]  }
 0xb67   : > { %7877 = vrcp.f32 %v4817_v20  ;;  %5248 = vmatpush.bf16.msra.mxu1 %v11095_v17  ;;  %v4920_v41 = vmul.f32 %v7876_v42, %v11615_v14 }
 0xb68   : > { %v4947_v61 = vpack.c.bf16 %v4915_v55, %v4915_v55  ;;  %v5533_v42 = vpop.f32.mrf.mxu0 }
 0xb69   : > { %v4952_v56 = vpack.c.bf16 %v4920_v41, %v4920_v41 }
 0xb6a   : > { %v5020_v9 = vunpack.c.l.b16 %v4947_v61  ;;  %v11857_v41 = vpop.f32.mrf.mxu3 }
 0xb6b   : > { %5249 = vmatpush.bf16.msra.mxu1 %v11109_v29  ;;  %v5062_v21 = vunpack.c.l.b16 %v4952_v56 }
 0xb6c   : > { %v5023_v36 = vpack.c.b16 %v5020_v9, %v5019_v22  ;;  %5657 = vrot.lane.b32.xlu2 %v13158_v63, %s8329_s14  ;;  %v4717_v22 = vsub.f32 %v11620_v31, %v11811_v57 }
 0xb6d   : > { %v7878_v47 = vpop.eup %7877 }
 0xb6e   : > { %v4921_v25 = vmul.f32 %v7878_v47, %v11647_v44  ;;  %7172 = vmatmul.msk.bf16.vlgmr.msra.gmra.mxu2 %vm1775_vm1, %v5023_v36  ;;  %v4802_v17 = vpop.xlane.xlu0 %4801  ;;  %v11854_v44 = vunpack.c.l.bf16 %v11850_v32 }
 0xb6f   : > { %5207 = vmatpush.bf16.msra.mxu2 %v11093_v3  ;;  %v4805_v14 = vpop.xlane.xlu2 %4804  ;;  %7879 = vrcp.f32 %v4802_v17 }
 0xb70   : > { %v4953_v1 = vpack.c.bf16 %v4921_v25, %v4921_v25  ;;  %7881 = vrcp.f32 %v4805_v14  ;;  %v11864_v47 = vadd.f32 %v11854_v44, %v5533_v42 }
 0xb72   : > { %v5063_v29 = vunpack.c.l.b16 %v4953_v1 }
 0xb73   : > { %5208 = vmatpush.bf16.msra.mxu2 %v11086_v12 }
 0xb74   : > { %v5065_v58 = vpack.c.b16 %v5063_v29, %v5062_v21 }
 0xb75   : > { %v7880_v55 = vpop.eup %7879 }
 0xb76   : > { %v7882_v20 = vpop.eup %7881  ;;  %v4916_v61 = vmul.f32 %v7880_v55, %v11656_v34  ;;  %v4832_v3 = vpop.xlane.xlu1 %4831  ;;  %7175 = vmatmul.msk.bf16.gmra.mxu1 %vm1775_vm1, %v5065_v58  ;;  %v4780_v34 = vmul.f32 1.442695, %v4717_v22  ;;  %v5556_v22 = vsel %vm1775_vm1, %v11209_v2, 0 }
 0xb77   : > { %v4917_v9 = vmul.f32 %v7882_v20, %v11658_v40  ;;  %7883 = vrcp.f32 %v4832_v3  ;;  %v4835_v36 = vpop.xlane.xlu2 %4834  ;;  %v5817_v40 = vsel %vm1775_vm1, %v11864_v47, -inf  ;;  %v11871_v58 = vpop.f32.mrf.mxu3 }
 0xb78   : > { %v4948_v12 = vpack.c.bf16 %v4916_v61, %v4916_v61  ;;  %7885 = vrcp.f32 %v4835_v36 }
 0xb79   : > { %v4949_v63 = vpack.c.bf16 %v4917_v9, %v4917_v9  ;;  %7887 = vpow2.f32 %v4780_v34  ;;  %v7345_v9 = vld [vmem:[#allocation11 + $0x30] sm:$0xff]  }
 0xb7a   : > { %v5021_v56 = vunpack.c.l.b16 %v4948_v12  ;;  %v11878_v12 = vunpack.c.h.bf16 %v7345_v9 }
 0xb7b   : > { %v5022_v25 = vunpack.c.l.b16 %v4949_v63 }
 0xb7c   : > { %v11889_v2 = vadd.f32 %v11878_v12, %v11840_v5 }
 0xb7d   : > { %v7884_v17 = vpop.eup %7883  ;;  %v5024_v14 = vpack.c.b16 %v5022_v25, %v5021_v56  ;;  %v11885_v25 = vunpack.c.l.bf16 %v7345_v9 }
 0xb7e   : > { %v7886_v1 = vpop.eup %7885  ;;  %v4926_v31 = vmul.f32 %v7884_v17, %v11668_v0  ;;  %v4820_v21 = vpop.xlane.xlu1 %4819 }
 0xb7f   : > { %v4927_v57 = vmul.f32 %v7886_v1, %v11670_v52  ;;  %5818 = vmax.xlane.f32.xlu1 %v5817_v40  ;;  %7173 = vmatmul.msk.bf16.gmra.mxu2 %vm1775_vm1, %v5024_v14  ;;  %7889 = vrcp.f32 %v4820_v21  ;;  %v11873_v61 = vpop.eup %7887  ;;  %v4838_v3 = vpop.xlane.xlu0 %4837 }
 0xb80   : > { %v4958_v29 = vpack.c.bf16 %v4926_v31, %v4926_v31  ;;  %v4875_v63 = vsel %vm1775_vm1, %v11873_v61, 0.0  ;;  %v11882_v56 = vpop.f32.mrf.mxu3 }
 0xb81   : > { %v4959_v55 = vpack.c.bf16 %v4927_v57, %v4927_v57  ;;  %v13159_v57 = vld [vmem:[#allocation119_spill] sm:$0xff] }
 0xb82   : > { %v5142_v20 = vunpack.c.l.b16 %v4958_v29  ;;  %v5553_v21 = vsel %vm1775_vm1, %v13159_v57, 0 }
 0xb83   : > { %v5143_v42 = vunpack.c.l.b16 %v4959_v55  ;;  %v11896_v55 = vadd.f32 %v11885_v25, %v11831_v23 }
 0xb85   : > { %v5146_v0 = vpack.c.b16 %v5143_v42, %v5142_v20  ;;  %v7890_v36 = vpop.eup %7889 }
 0xb86   : > { %v4823_v52 = vpop.xlane.xlu2 %4822  ;;  %v4922_v34 = vmul.f32 %v7890_v36, %v11683_v26  ;;  %v5814_v26 = vsel %vm1775_vm1, %v11889_v2, -inf }
 0xb87   : > { %7178 = vmatmul.msk.bf16.vlgmr.msrb.gmra.mxu1 %vm1775_vm1, %v5146_v0  ;;  %7891 = vrcp.f32 %v4823_v52  ;;  %v11902_v0 = vunpack.c.h.bf16 %v11850_v32 }
 0xb88   : > { %5564 = vmatpush.bf16.xpose.msrb.mxu1 %v5556_v22  ;;  %7893 = vrcp.f32 %v4838_v3  ;;  %v4954_v1 = vpack.c.bf16 %v4922_v34, %v4922_v34  ;;  %v5811_v3 = vsel %vm1775_vm1, %v11896_v55, -inf  ;;  %v5535_v22 = vpop.f32.mrf.mxu0  ;;  %v11906_v23 = vpop.f32.mrf.mxu3 }
 0xb89   : > { %4876 = vadd.xlane.f32.xlu0 %v4875_v63  ;;  %v11911_v32 = vadd.f32 %v11902_v0, %v5535_v22 }
 0xb8a   : > { %v5101_v20 = vunpack.c.l.b16 %v4954_v1  ;;  %v13160_v1 = vld [vmem:[#allocation133_spill] sm:$0xff] }
 0xb8d   : > { %v7892_v17 = vpop.eup %7891 }
 0xb8e   : > { %v4856_v14 = vpop.xlane.xlu0 %4855  ;;  %v4923_v31 = vmul.f32 %v7892_v17, %v11698_v54  ;;  %v4841_v40 = vpop.xlane.xlu2 %4840 }
 0xb8f   : > { %v7894_v29 = vpop.eup %7893  ;;  %7895 = vrcp.f32 %v4841_v40 }
 0xb90   : > { %5565 = vmatpush.bf16.xpose.msrb.mxu1 %v5553_v21  ;;  %v4955_v5 = vpack.c.bf16 %v4923_v31, %v4923_v31  ;;  %v4928_v42 = vmul.f32 %v7894_v29, %v11685_v24  ;;  %v13161_v31 = vld [vmem:[#allocation56_spill] sm:$0xff]  ;;  %v13162_v29 = vld [vmem:[#allocation99_spill] sm:$0xff]  ;;  %v11920_v22 = vpop.f32.mrf.mxu3 }
 0xb91   : > { %5815 = vmax.xlane.f32.xlu0 %v5814_v26 }
 0xb92   : > { %v5102_v54 = vunpack.c.l.b16 %v4955_v5  ;;  %v4960_v34 = vpack.c.bf16 %v4928_v42, %v4928_v42 }
 0xb94   : > { %v5105_v9 = vpack.c.b16 %v5102_v54, %v5101_v20  ;;  %v5144_v57 = vunpack.c.l.b16 %v4960_v34 }
 0xb95   : > { %5812 = vmax.xlane.f32.xlu2 %v5811_v3  ;;  %v7896_v52 = vpop.eup %7895 }
 0xb96   : > { %v4829_v36 = vpop.xlane.xlu1 %4828  ;;  %v4859_v63 = vpop.xlane.xlu0 %4858  ;;  %v4929_v17 = vmul.f32 %v7896_v52, %v11708_v60  ;;  %7176 = vmatmul.msk.bf16.vlgmr.msrb.gmra.mxu2 %vm1775_vm1, %v5105_v9  ;;  %v5820_v60 = vsel %vm1775_vm1, %v11911_v32, -inf }
 0xb97   : > { %7897 = vrcp.f32 %v4829_v36  ;;  %v4826_v24 = vpop.xlane.xlu2 %4825  ;;  %5289 = vmatpush.bf16.msrb.mxu2 %v13160_v1 }
 0xb98   : > { %7899 = vrcp.f32 %v4826_v24  ;;  %5772 = vrot.lane.b32.xlu1 %v13161_v31, %s8329_s14  ;;  %v4961_v40 = vpack.c.bf16 %v4929_v17, %v4929_v17 }
 0xb99   : > { %7901 = vrcp.f32 %v4859_v63  ;;  %v13163_v63 = vld [vmem:[#allocation58_spill] sm:$0xff] }
 0xb9a   : > { %7903 = vrcp.f32 %v4856_v14  ;;  %v5145_v21 = vunpack.c.l.b16 %v4961_v40 }
 0xb9b   : > { %5290 = vmatpush.bf16.msrb.mxu2 %v13162_v29 }
 0xb9c   : > { %v5147_v5 = vpack.c.b16 %v5145_v21, %v5144_v57 }
 0xb9d   : > { %v7898_v26 = vpop.eup %7897  ;;  %5821 = vmax.xlane.f32.xlu2 %v5820_v60 }
 0xb9e   : > { %v7900_v20 = vpop.eup %7899  ;;  %v4925_v42 = vmul.f32 %v7898_v26, %v11726_v35  ;;  %v4847_v54 = vpop.xlane.xlu0 %4846  ;;  %7179 = vmatmul.msk.bf16.gmra.mxu1 %vm1775_vm1, %v5147_v5 }
 0xb9f   : > { %v7902_v3 = vpop.eup %7901  ;;  %v4924_v9 = vmul.f32 %v7900_v20, %v11724_v46  ;;  %v4844_v14 = vpop.xlane.xlu2 %4843  ;;  %7905 = vrcp.f32 %v4847_v54  ;;  %v13164_v46 = vld [vmem:[#allocation54_spill] sm:$0xff] }
 0xba0   : > { %v7904_v52 = vpop.eup %7903  ;;  %v4957_v36 = vpack.c.bf16 %v4925_v42, %v4925_v42  ;;  %7907 = vrcp.f32 %v4844_v14  ;;  %5774 = vrot.lane.b32.xlu1 %v13163_v63, %s8329_s14  ;;  %v4935_v17 = vmul.f32 %v7902_v3, %v11720_v48  ;;  %v11931_v5 = vpop.f32.mrf.mxu3  ;;  %v7303_v63 = vld [vmem:[#allocation10 + $0x28] sm:$0xff] }
 0xba1   : > { %v4956_v34 = vpack.c.bf16 %v4924_v9, %v4924_v9  ;;  %v4934_v24 = vmul.f32 %v7904_v52, %v11710_v15  ;;  %v11935_v54 = vpop.f32.mrf.mxu0  ;;  %5384 = vmatpush.bf16.msrb.mxu3 %v7303_v63 }
 0xba2   : > { %v5104_v35 = vunpack.c.l.b16 %v4957_v36  ;;  %v4967_v40 = vpack.c.bf16 %v4935_v17, %v4935_v17  ;;  %v13165_v36 = vld [vmem:[#allocation43_spill] sm:$0xff] }
 0xba3   : > { %v5103_v1 = vunpack.c.l.b16 %v4956_v34  ;;  %v4966_v60 = vpack.c.bf16 %v4934_v24, %v4934_v24 }
 0xba4   : > { %v5225_v48 = vunpack.c.l.b16 %v4967_v40 }
 0xba5   : > { %v7906_v31 = vpop.eup %7905  ;;  %5735 = vrot.lane.b32.xlu0 %v13164_v46, %s8329_s14  ;;  %v5106_v57 = vpack.c.b16 %v5104_v35, %v5103_v1  ;;  %v5224_v42 = vunpack.c.l.b16 %v4966_v60  ;;  %v13166_v35 = vld [vmem:[#allocation25_spill] sm:$0xff]  ;;  %v7302_v46 = vld [vmem:[#allocation10 + $0x20] sm:$0xff] }
 0xba6   : > { %v7908_v21 = vpop.eup %7907  ;;  %v4865_v29 = vpop.xlane.xlu0 %4864  ;;  %v4931_v20 = vmul.f32 %v7906_v31, %v11743_v39  ;;  %v5673_v24 = vsel %vm1775_vm1, %v13166_v35, 0  ;;  %5385 = vmatpush.bf16.msrb.mxu3 %v7302_v46  ;;  %v13170_v35 = vld [vmem:[#allocation33_spill] sm:$0xff] }
 0xba7   : > { %v4862_v26 = vpop.xlane.xlu1 %4861  ;;  %7177 = vmatmul.msk.bf16.gmra.mxu2 %vm1775_vm1, %v5106_v57  ;;  %7909 = vrcp.f32 %v4865_v29  ;;  %v4930_v15 = vmul.f32 %v7908_v21, %v11745_v33  ;;  %v5228_v9 = vpack.c.b16 %v5225_v48, %v5224_v42  ;;  %v13167_v48 = vld [vmem:[#allocation38_spill] sm:$0xff]  ;;  %v13168_v42 = vld [vmem:[#allocation127_spill] sm:$0xff] }
 0xba8   : > { %7911 = vrcp.f32 %v4862_v26  ;;  %v4963_v52 = vpack.c.bf16 %v4931_v20, %v4931_v20  ;;  %v11944_v57 = vpop.f32.mrf.mxu3 }
 0xba9   : > { %v4962_v14 = vpack.c.bf16 %v4930_v15, %v4930_v15  ;;  %v11948_v20 = vpop.f32.mrf.mxu0 }
 0xbaa   : > { %v5184_v33 = vunpack.c.l.b16 %v4963_v52 }
 0xbab   : > { %v5183_v39 = vunpack.c.l.b16 %v4962_v14 }
 0xbad   : > { %v7910_v3 = vpop.eup %7909  ;;  %6207 = vrot.lane.b32.xlu0 %v13165_v36, %s8329_s14  ;;  %v5187_v29 = vpack.c.b16 %v5184_v33, %v5183_v39  ;;  %v13171_v33 = vld [vmem:[#allocation47_spill] sm:$0xff] }
 0xbae   : > { %v7912_v34 = vpop.eup %7911  ;;  %v4850_v17 = vpop.xlane.xlu0 %4849  ;;  %7182 = vmatmul.msk.bf16.vlgmr.msra.gmra.mxu1 %vm1775_vm1, %v5228_v9  ;;  %v4937_v40 = vmul.f32 %v7910_v3, %v11757_v45  ;;  %v5595_v9 = vsel %vm1775_vm1, %v13168_v42, 0 }
 0xbaf   : > { %v4853_v1 = vpop.xlane.xlu2 %4852  ;;  %7913 = vrcp.f32 %v4850_v17  ;;  %5681 = vmatpush.bf16.xpose.msra.mxu1 %v5673_v24  ;;  %v4936_v31 = vmul.f32 %v7912_v34, %v11759_v10  ;;  %v13169_v10 = vld [vmem:[#allocation89_spill] sm:$0xff] }
 0xbb0   : > { %7915 = vrcp.f32 %v4853_v1  ;;  %v4969_v26 = vpack.c.bf16 %v4937_v40, %v4937_v40  ;;  %v5670_v45 = vsel %vm1775_vm1, %v13169_v10, 0  ;;  %v11957_v63 = vpop.f32.mrf.mxu3 }
 0xbb1   : > { %v4968_v60 = vpack.c.bf16 %v4936_v31, %v4936_v31  ;;  %v5592_v31 = vsel %vm1775_vm1, %v13171_v33, 0  ;;  %v5650_v40 = vpop.f32.mrf.mxu0 }
 0xbb2   : > { %v5227_v14 = vunpack.c.l.b16 %v4969_v26 }
 0xbb3   : > { %v5226_v3 = vunpack.c.l.b16 %v4968_v60  ;;  %v13172_v60 = vld [vmem:[#allocation39_spill] sm:$0xff] }
 0xbb5   : > { %v7914_v21 = vpop.eup %7913  ;;  %5778 = vrot.lane.b32.xlu2 %v13167_v48, %s8329_s14  ;;  %v5229_v24 = vpack.c.b16 %v5227_v14, %v5226_v3 }
 0xbb6   : > { %v7916_v15 = vpop.eup %7915  ;;  %v4932_v36 = vmul.f32 %v7914_v21, %v11768_v49 }
 0xbb7   : > { %7180 = vmatmul.msk.bf16.vlgmr.msra.gmra.mxu2 %vm1775_vm1, %v5187_v29  ;;  %5682 = vmatpush.bf16.xpose.msra.mxu1 %v5670_v45  ;;  %v4933_v52 = vmul.f32 %v7916_v15, %v11774_v53  ;;  %v11965_v29 = vadd.f32 %v11854_v44, %v5650_v40 }
 0xbb8   : > { %5603 = vmatpush.bf16.xpose.msra.mxu2 %v5595_v9  ;;  %v4964_v17 = vpack.c.bf16 %v4932_v36, %v4932_v36  ;;  %v11969_v15 = vpop.f32.mrf.mxu3 }
 0xbb9   : > { %v4965_v34 = vpack.c.bf16 %v4933_v52, %v4933_v52  ;;  %v5853_v10 = vsel %vm1775_vm1, %v11965_v29, -inf  ;;  %v5652_v45 = vpop.f32.mrf.mxu0 }
 0xbba   : > { %v5185_v53 = vunpack.c.l.b16 %v4964_v17  ;;  %v11977_v52 = vadd.f32 %v11902_v0, %v5652_v45  ;;  %v13173_v17 = vld [vmem:[#allocation42_spill] sm:$0xff] }
 0xbbb   : > { %v5186_v49 = vunpack.c.l.b16 %v4965_v34 }
 0xbbd   : > { %5776 = vrot.lane.b32.xlu2 %v13170_v35, %s8329_s14  ;;  %v5188_v26 = vpack.c.b16 %v5186_v49, %v5185_v53  ;;  %v13175_v53 = vld [vmem:[#allocation76_spill] sm:$0xff] }
 0xbbe   : > { %v4871_v1 = vpop.xlane.xlu0 %4870  ;;  %7183 = vmatmul.msk.bf16.gmra.mxu1 %vm1775_vm1, %v5229_v24  ;;  %v5856_v24 = vsel %vm1775_vm1, %v11977_v52, -inf }
 0xbbf   : > { %v4868_v39 = vpop.xlane.xlu2 %4867  ;;  %7917 = vrcp.f32 %v4871_v1 }
 0xbc0   : > { %7919 = vrcp.f32 %v4868_v39  ;;  %5604 = vmatpush.bf16.xpose.msra.mxu2 %v5592_v31  ;;  %v11988_v39 = vadd.f32 %v11885_v25, %v11935_v54 }
 0xbc2   : > { %v5847_v49 = vsel %vm1775_vm1, %v11988_v39, -inf }
 0xbc3   : > { %v5005_v46 = vpop.f32.mrf.mxu1 }
 0xbc5   : > { %v7918_v21 = vpop.eup %7917  ;;  %6205 = vrot.lane.b32.xlu2 %v13172_v60, %s8329_s14 }
 0xbc6   : > { %v7920_v48 = vpop.eup %7919  ;;  %v4939_v9 = vmul.f32 %v7918_v21, %v11794_v38  ;;  %v5738_v21 = vpop.permute.xlu1 %5737 }
 0xbc7   : > { %7181 = vmatmul.msk.bf16.gmra.mxu2 %vm1775_vm1, %v5188_v26  ;;  %v4938_v42 = vmul.f32 %v7920_v48, %v11796_v27  ;;  %v11982_v27 = vpop.f32.mrf.mxu3  ;;  %v5748_v54 = vsel %vm1775_vm1, %v5738_v21, 0  ;;  %v13186_v21 = vld [vmem:[#allocation55_spill] sm:$0xff] }
 0xbc8   : > { %v4971_v34 = vpack.c.bf16 %v4939_v9, %v4939_v9  ;;  %13174 = vst [vmem:[#allocation83_spill] sm:$0xff] %v11982_v27  ;;  %v13178_v9 = vld [vmem:[#allocation72_spill] sm:$0xff] }
 0xbc9   : > { %v4970_v36 = vpack.c.bf16 %v4938_v42, %v4938_v42  ;;  %v13177_v42 = vld [vmem:[#allocation22_spill] sm:$0xff] }
 0xbca   : > { %5854 = vmax.xlane.f32.xlu1 %v5853_v10  ;;  %v5266_v35 = vunpack.c.l.b16 %v4971_v34  ;;  %v5709_v10 = vsel %vm1775_vm1, %v13178_v9, 0  ;;  %v13180_v34 = vld [vmem:[#allocation51_spill] sm:$0xff] }
 0xbcb   : > { %v5007_v3 = vpop.f32.mrf.mxu1  ;;  %v5265_v38 = vunpack.c.l.b16 %v4970_v36  ;;  %v12011_v36 = vadd.f32 %v11878_v12, %v11948_v20  ;;  %v13184_v20 = vld [vmem:[#allocation57_spill] sm:$0xff] }
 0xbcc   : > { %v5302_v14 = vpack.c.bf16 %v5007_v3, %v5005_v46  ;;  %v5712_v46 = vsel %vm1775_vm1, %v13175_v53, 0 }
 0xbcd   : > { %v5269_v40 = vpack.c.b16 %v5266_v35, %v5265_v38  ;;  %v5850_v35 = vsel %vm1775_vm1, %v12011_v36, -inf }
 0xbce   : > { %7194 = vmatmul.msk.bf16.vlgmr.msrb.gmra.mxu3 %vm1775_vm1, %v5302_v14  ;;  %7212 = vmatmul.msk.bf16.vlgmr.msrb.gmra.mxu1 %vm1775_vm1, %v13173_v17  ;;  %v5734_v45 = vpop.permute.xlu1 %5733  ;;  %v13181_v17 = vld [vmem:[#allocation48_spill] sm:$0xff] }
 0xbcf   : > { %v11997_v60 = vpop.f32.mrf.mxu3 }
 0xbd0   : > { %13176 = vst [vmem:[#allocation84_spill] sm:$0xff] %v11997_v60 }
 0xbd1   : > { %v5740_v1 = vpop.permute.xlu0 %5739 }
 0xbd2   : > { %5857 = vmax.xlane.f32.xlu1 %v5856_v24  ;;  %v5751_v33 = vsel %vm1775_vm1, %v5740_v1, 0  ;;  %v13183_v1 = vld [vmem:[#allocation88_spill] sm:$0xff] }
 0xbd3   : > { %v5010_v31 = vpop.f32.mrf.mxu1  ;;  %5759 = vmatpush.bf16.xpose.msrb.mxu0 %v5751_v33 }
 0xbd7   : > { %7184 = vmatmul.msk.bf16.vlgmr.msrb.gmra.mxu2 %vm1775_vm1, %v5269_v40  ;;  %5848 = vmax.xlane.f32.xlu0 %v5847_v49  ;;  %v12007_v14 = vpop.f32.mrf.mxu3 }
 0xbd8   : > { %5720 = vmatpush.bf16.xpose.msrb.mxu2 %v5712_v46  ;;  %13179 = vst [vmem:[#allocation75_spill] sm:$0xff] %v12007_v14  ;;  %v13206_v14 = vld [vmem:[#allocation128_spill] sm:$0xff] }
 0xbd9   : > { %v4216_v60 = vadd.f32 %v13206_v14, %v11822_v13 }
 0xbdb   : > { %v5012_v26 = vpop.f32.mrf.mxu1  ;;  %5760 = vmatpush.bf16.xpose.msrb.mxu0 %v5748_v54 }
 0xbdc   : > { %v5303_v48 = vpack.c.bf16 %v5012_v26, %v5010_v31  ;;  %v4874_v31 = vpop.xlane.xlu2 %4873 }
 0xbdd   : > { %7921 = vrcp.f32 %v4874_v31 }
 0xbde   : > { %7195 = vmatmul.msk.bf16.gmra.mxu3 %vm1775_vm1, %v5303_v48  ;;  %7213 = vmatmul.msk.bf16.gmra.mxu1 %vm1775_vm1, %v13177_v42 }
 0xbdf   : > { %v12021_v24 = vpop.f32.mrf.mxu3 }
 0xbe0   : > { %5721 = vmatpush.bf16.xpose.msrb.mxu2 %v5709_v10  ;;  %13182 = vst [vmem:[#allocation106_spill] sm:$0xff] %v12021_v24 }
 0xbe2   : > { %7222 = vmatmul.msk.bf16.vlgmr.msrb.gmra.mxu0 %vm1775_vm1, %v5734_v45 }
 0xbe3   : > { %v12005_v3 = vpop.f32.mrf.mxu1  ;;  %v7922_v26 = vpop.eup %7921 }
 0xbe4   : > { %v5658_v48 = vpop.permute.xlu2 %5657  ;;  %v4940_v42 = vmul.f32 %v7922_v26, %v11813_v8 }
 0xbe7   : > { %v12029_v49 = vpop.f32.mrf.mxu3 }
 0xbe8   : > { %13185 = vst [vmem:[#allocation104_spill] sm:$0xff] %v12029_v49 }
 0xbeb   : > { %6287 = vrot.lane.b32.xlu1 %v13180_v34, %s8329_s14  ;;  %6248 = vrot.lane.b32.xlu0 %v13181_v17, %s8329_s14  ;;  %v12017_v38 = vpop.f32.mrf.mxu1  ;;  %v4972_v17 = vpack.c.bf16 %v4940_v42, %v4940_v42 }
 0xbee   : > { %5851 = vmax.xlane.f32.xlu2 %v5850_v35  ;;  %7218 = vmatmul.msk.bf16.vlgmr.msra.gmra.mxu1 %vm1775_vm1, %v13183_v1 }
 0xbef   : > { %v12038_v34 = vpop.f32.mrf.mxu3 }
 0xbf0   : > { %13187 = vst [vmem:[#allocation86_spill] sm:$0xff] %v12038_v34 }
 0xbf1   : > { %v5046_v33 = vpop.f32.mrf.mxu2 }
 0xbf3   : > { %6330 = vrot.lane.b32.xlu0 %v13184_v20, %s8329_s14  ;;  %v12027_v40 = vpop.f32.mrf.mxu1  ;;  %v5267_v20 = vunpack.c.l.b16 %v4972_v17  ;;  %v5819_v17 = vpop.xlane.xlu1 %5818 }
 0xbf7   : > { %v12047_v42 = vpop.f32.mrf.mxu3 }
 0xbf8   : > { %13189 = vst [vmem:[#allocation137_spill] sm:$0xff] %v12047_v42 }
 0xbf9   : > { %v5048_v53 = vpop.f32.mrf.mxu2 }
 0xbfa   : > { %v5304_v46 = vpack.c.bf16 %v5048_v53, %v5046_v33  ;;  %v13188_v33 = vld [vmem:[#allocation45_spill] sm:$0xff] }
 0xbfb   : > { %6328 = vrot.lane.b32.xlu0 %v13186_v21, %s8329_s14  ;;  %v12036_v9 = vpop.f32.mrf.mxu1 }
 0xbfc   : > { %7196 = vmatmul.msk.bf16.gmra.mxu3 %vm1775_vm1, %v5304_v46  ;;  %v4877_v54 = vpop.xlane.xlu0 %4876 }
 0xbfd   : > { %7923 = vrcp.f32 %v4877_v54 }
 0xbfe   : > { %7219 = vmatmul.msk.bf16.gmra.mxu1 %vm1775_vm1, %v5658_v48 }
 0xc02   : > { %v5051_v10 = vpop.f32.mrf.mxu2 }
 0xc03   : > { %v7924_v45 = vpop.eup %7923 }
 0xc04   : > { %v4941_v35 = vmul.f32 %v7924_v45, %v11873_v61  ;;  %v12044_v21 = vpop.f32.mrf.mxu1  ;;  %v13190_v61 = vld [vmem:[#allocation53_spill] sm:$0xff]  ;;  %v5816_v45 = vpop.xlane.xlu0 %5815 }
 0xc06   : > { %v4973_v1 = vpack.c.bf16 %v4941_v35, %v4941_v35  ;;  %6246 = vrot.lane.b32.xlu2 %v13188_v33, %s8329_s14 }
 0xc08   : > { %v5268_v31 = vunpack.c.l.b16 %v4973_v1  ;;  %v5813_v53 = vpop.xlane.xlu2 %5812  ;;  %v5909_v1 = vsub.f32 %v11864_v47, %v5819_v17 }
 0xc09   : > { %v5907_v46 = vsub.f32 %v11896_v55, %v5813_v53 }
 0xc0a   : > { %v5053_v8 = vpop.f32.mrf.mxu2  ;;  %v5270_v54 = vpack.c.b16 %v5268_v31, %v5267_v20  ;;  %v12059_v20 = vpop.f32.mrf.mxu3  ;;  %v5943_v31 = vmul.f32 1.442695, %v5909_v1 }
 0xc0b   : > { %v5939_v26 = vmul.f32 1.442695, %v5907_v46  ;;  %v5305_v48 = vpack.c.bf16 %v5053_v8, %v5051_v10  ;;  %13191 = vst [vmem:[#allocation73_spill] sm:$0xff] %v12059_v20 }
 0xc0c   : > { %7185 = vmatmul.msk.bf16.gmra.mxu2 %vm1775_vm1, %v5270_v54  ;;  %v12055_v33 = vpop.f32.mrf.mxu1  ;;  %v5306_v54 = vpack.c.bf16 %v12017_v38, %v12005_v3  ;;  %v5908_v38 = vsub.f32 %v11889_v2, %v5816_v45 }
 0xc0d   : > { %7925 = vpow2.f32 %v5939_v26  ;;  %7197 = vmatmul.msk.bf16.gmra.mxu3 %vm1775_vm1, %v5305_v48  ;;  %v13192_v26 = vld [vmem:[#allocation20_spill] sm:$0xff] }
 0xc0e   : > { %6289 = vrot.lane.b32.xlu2 %v13190_v61, %s8329_s14  ;;  %7927 = vpow2.f32 %v5943_v31  ;;  %v5773_v31 = vpop.permute.xlu1 %5772 }
 0xc10   : > { %v5822_v35 = vpop.xlane.xlu2 %5821 }
 0xc11   : > { %v5910_v2 = vsub.f32 %v11911_v32, %v5822_v35 }
 0xc12   : > { %v12072_v1 = vpop.f32.mrf.mxu3 }
 0xc13   : > { %v12052_v55 = vpop.eup %7925  ;;  %13193 = vst [vmem:[#allocation102_spill] sm:$0xff] %v12072_v1  ;;  %v5945_v45 = vmul.f32 1.442695, %v5910_v2  ;;  %v13200_v1 = vld [vmem:[#allocation23_spill] sm:$0xff] }
 0xc14   : > { %v6003_v10 = vsel %vm1775_vm1, %v12052_v55, 0.0  ;;  %v12070_v17 = vpop.eup %7927 }
 0xc15   : > { %6004 = vadd.xlane.f32.xlu1 %v6003_v10  ;;  %v6009_v3 = vsel %vm1775_vm1, %v12070_v17, 0.0 }
 0xc17   : > { %v5736_v53 = vpop.permute.xlu0 %5735 }
 0xc18   : > { %v5779_v46 = vpop.permute.xlu2 %5778  ;;  %7223 = vmatmul.msk.bf16.gmra.mxu0 %vm1775_vm1, %v5736_v53 }
 0xc19   : > { %v5790_v8 = vsel %vm1775_vm1, %v5779_v46, 0 }
 0xc1a   : > { %5798 = vmatpush.bf16.xpose.msrb.mxu1 %v5790_v8  ;;  %v5941_v8 = vmul.f32 1.442695, %v5908_v38 }
 0xc1b   : > { %v12065_v47 = vpop.f32.mrf.mxu1 }
 0xc1c   : > { %7214 = vmatmul.msk.bf16.vlgmr.msra.gmra.mxu2 %vm1775_vm1, %v13192_v26  ;;  %v12081_v26 = vpop.f32.mrf.mxu3  ;;  %7929 = vpow2.f32 %v5941_v8 }
 0xc1d   : > { %7198 = vmatmul.msk.bf16.gmra.mxu3 %vm1775_vm1, %v5306_v54  ;;  %v5128_v54 = vpop.f32.mrf.mxu2  ;;  %13194 = vst [vmem:[#allocation103_spill] sm:$0xff] %v12081_v26  ;;  %7931 = vpow2.f32 %v5945_v45 }
 0xc1f   : > { %v6208_v48 = vpop.permute.xlu0 %6207 }
 0xc20   : > { %v5777_v61 = vpop.permute.xlu2 %5776  ;;  %6223 = vmatpush.bf16.msra.mxu2 %v6208_v48  ;;  %v5307_v48 = vpack.c.bf16 %v12036_v9, %v12027_v40  ;;  %v5775_v40 = vpop.permute.xlu1 %5774 }
 0xc21   : > { %v5787_v10 = vsel %vm1775_vm1, %v5777_v61, 0 }
 0xc22   : > { %5799 = vmatpush.bf16.xpose.msrb.mxu1 %v5787_v10  ;;  %v13195_v10 = vld [vmem:[#allocation125_spill] sm:$0xff] }
 0xc23   : > { %v12075_v53 = vpop.f32.mrf.mxu1 }
 0xc25   : > { %6010 = vadd.xlane.f32.xlu0 %v6009_v3  ;;  %v12091_v3 = vpop.eup %7929  ;;  %v5130_v38 = vpop.f32.mrf.mxu2 }
 0xc26   : > { %v6006_v9 = vsel %vm1775_vm1, %v12091_v3, 0.0  ;;  %v12100_v8 = vpop.eup %7931  ;;  %v5308_v32 = vpack.c.bf16 %v5130_v38, %v5128_v54 }
 0xc27   : > { %v6012_v45 = vsel %vm1775_vm1, %v12100_v8, 0.0 }
 0xc28   : > { %v6206_v46 = vpop.permute.xlu2 %6205 }
 0xc29   : > { %7224 = vmatmul.msk.bf16.vlgmr.msrb.gmra.mxu1 %vm1775_vm1, %v5773_v31  ;;  %6224 = vmatpush.bf16.msra.mxu2 %v6206_v46  ;;  %v12095_v46 = vpop.f32.mrf.mxu3 }
 0xc2a   : > { %13196 = vst [vmem:[#allocation94_spill] sm:$0xff] %v12095_v46 }
 0xc2b   : > { %v12085_v61 = vpop.f32.mrf.mxu1 }
 0xc2c   : > { %7215 = vmatmul.msk.bf16.gmra.mxu2 %vm1775_vm1, %v13195_v10 }
 0xc2d   : > { %7199 = vmatmul.msk.bf16.gmra.mxu3 %vm1775_vm1, %v5307_v48  ;;  %v13197_v48 = vld [vmem:[#allocation27_spill] sm:$0xff]  ;;  %v5133_v2 = vpop.f32.mrf.mxu2 }
 0xc31   : > { %v12109_v4 = vpop.f32.mrf.mxu3 }
 0xc32   : > { %13198 = vst [vmem:[#allocation62_spill] sm:$0xff] %v12109_v4 }
 0xc33   : > { %v12093_v31 = vpop.f32.mrf.mxu1 }
 0xc35   : > { %v5135_v38 = vpop.f32.mrf.mxu2 }
 0xc36   : > { %v5309_v46 = vpack.c.bf16 %v5135_v38, %v5133_v2 }
 0xc37   : > { %6007 = vadd.xlane.f32.xlu2 %v6006_v9 }
 0xc39   : > { %7225 = vmatmul.msk.bf16.gmra.mxu1 %vm1775_vm1, %v5775_v40  ;;  %v12114_v18 = vpop.f32.mrf.mxu3 }
 0xc3a   : > { %13199 = vst [vmem:[#allocation67_spill] sm:$0xff] %v12114_v18 }
 0xc3b   : > { %v12102_v35 = vpop.f32.mrf.mxu1 }
 0xc3c   : > { %7220 = vmatmul.msk.bf16.vlgmr.msrb.gmra.mxu2 %vm1775_vm1, %v13197_v48 }
 0xc3d   : > { %v5855_v10 = vpop.xlane.xlu1 %5854  ;;  %7200 = vmatmul.msk.bf16.gmra.mxu3 %vm1775_vm1, %v5308_v32 }
 0xc3f   : > { %6013 = vadd.xlane.f32.xlu2 %v6012_v45  ;;  %v5921_v45 = vsub.f32 %v11965_v29, %v5855_v10  ;;  %v5210_v29 = vpop.f32.mrf.mxu2 }
 0xc43   : > { %v12111_v9 = vpop.f32.mrf.mxu1 }
 0xc45   : > { %v5858_v40 = vpop.xlane.xlu1 %5857 }
 0xc46   : > { %v5922_v54 = vsub.f32 %v11977_v52, %v5858_v40  ;;  %v13201_v40 = vld [vmem:[#allocation124_spill] sm:$0xff] }
 0xc48   : > { %v5969_v19 = vmul.f32 1.442695, %v5922_v54  ;;  %v4199_v54 = vadd.f32 %v13201_v40, %v11695_v28 }
 0xc4a   : > { %7933 = vpow2.f32 %v5969_v19  ;;  %v5849_v48 = vpop.xlane.xlu0 %5848  ;;  %v5967_v19 = vmul.f32 1.442695, %v5921_v45 }
 0xc4b   : > { %v5919_v32 = vsub.f32 %v11988_v39, %v5849_v48  ;;  %v5567_v26 = vpop.f32.mrf.mxu1  ;;  %v5310_v48 = vpack.c.bf16 %v12055_v33, %v12044_v21 }
 0xc4c   : > { %7221 = vmatmul.msk.bf16.gmra.mxu2 %vm1775_vm1, %v13200_v1 }
 0xc4d   : > { %v5963_v4 = vmul.f32 1.442695, %v5919_v32  ;;  %7201 = vmatmul.msk.bf16.gmra.mxu3 %vm1775_vm1, %v5309_v46 }
 0xc4f   : > { %7935 = vpow2.f32 %v5963_v4 }
 0xc50   : > { %v12121_v52 = vpop.eup %7933  ;;  %7937 = vpow2.f32 %v5967_v19  ;;  %v13202_v19 = vld [vmem:[#allocation21_spill] sm:$0xff] }
 0xc51   : > { %v5387_v18 = vpop.f32.mrf.mxu3  ;;  %v6048_v39 = vsel %vm1775_vm1, %v12121_v52, 0.0 }
 0xc52   : > { %v12127_v2 = vadd.f32 %v5387_v18, %v4199_v54  ;;  %6049 = vadd.xlane.f32.xlu1 %v6048_v39  ;;  %v5212_v54 = vpop.f32.mrf.mxu2  ;;  %v4204_v39 = vadd.f32 %v13202_v19, %v11738_v16 }
 0xc53   : > { %v5569_v1 = vpop.f32.mrf.mxu1 }
 0xc54   : > { %v12132_v4 = vadd.f32 %v11878_v12, %v5569_v1 }
 0xc55   : > { %v12129_v38 = vpop.eup %7935 }
 0xc56   : > { %v6039_v46 = vsel %vm1775_vm1, %v12129_v38, 0.0  ;;  %v5826_v10 = vsel %vm1775_vm1, %v12132_v4, -inf  ;;  %v12140_v18 = vpop.eup %7937 }
 0xc57   : > { %6040 = vadd.xlane.f32.xlu2 %v6039_v46  ;;  %v6045_v40 = vsel %vm1775_vm1, %v12140_v18, 0.0 }
 0xc59   : > { %v12136_v28 = vpop.f32.mrf.mxu3 }
 0xc5a   : > { %5827 = vmax.xlane.f32.xlu1 %v5826_v10  ;;  %v5215_v42 = vpop.f32.mrf.mxu2 }
 0xc5b   : > { %v5572_v32 = vpop.f32.mrf.mxu1 }
 0xc5d   : > { %7202 = vmatmul.msk.bf16.gmra.mxu3 %vm1775_vm1, %v5310_v48  ;;  %v6249_v45 = vpop.permute.xlu0 %6248 }
 0xc5e   : > { %6264 = vmatpush.bf16.msra.mxu0 %v6249_v45 }
 0xc5f   : > { %6046 = vadd.xlane.f32.xlu2 %v6045_v40 }
 0xc61   : > { %v5852_v1 = vpop.xlane.xlu2 %5851  ;;  %v5392_v46 = vpop.f32.mrf.mxu3 }
 0xc62   : > { %v5920_v10 = vsub.f32 %v12011_v36, %v5852_v1  ;;  %v12150_v20 = vadd.f32 %v5392_v46, %v4204_v39  ;;  %v5311_v36 = vpack.c.bf16 %v12075_v53, %v12065_v47  ;;  %v12170_v47 = vadd.f32 %v11885_v25, %v5567_v26 }
 0xc63   : > { %v5574_v33 = vpop.f32.mrf.mxu1 }
 0xc64   : > { %v5965_v21 = vmul.f32 1.442695, %v5920_v10  ;;  %v12153_v48 = vadd.f32 %v11902_v0, %v5574_v33  ;;  %v5217_v33 = vpop.f32.mrf.mxu2 }
 0xc65   : > { %v6331_v45 = vpop.permute.xlu0 %6330 }
 0xc66   : > { %7939 = vpow2.f32 %v5965_v21  ;;  %6346 = vmatpush.bf16.msrb.mxu2 %v6331_v45  ;;  %v5832_v40 = vsel %vm1775_vm1, %v12153_v48, -inf }
 0xc67   : > { %5833 = vmax.xlane.f32.xlu1 %v5832_v40  ;;  %v6288_v40 = vpop.permute.xlu1 %6287 }
 0xc69   : > { %v6247_v16 = vpop.permute.xlu2 %6246 }
 0xc6a   : > { %6265 = vmatpush.bf16.msra.mxu0 %v6247_v16  ;;  %v5823_v16 = vsel %vm1775_vm1, %v12170_v47, -inf }
 0xc6b   : > { %v5684_v39 = vpop.f32.mrf.mxu1 }
 0xc6c   : > { %v12159_v19 = vpop.eup %7939  ;;  %v12162_v1 = vadd.f32 %v11885_v25, %v5684_v39  ;;  %v12177_v39 = vadd.f32 %v11854_v44, %v5572_v32 }
 0xc6d   : > { %7203 = vmatmul.msk.bf16.gmra.mxu3 %vm1775_vm1, %v5311_v36  ;;  %v6042_v46 = vsel %vm1775_vm1, %v12159_v19, 0.0  ;;  %v6329_v10 = vpop.permute.xlu0 %6328  ;;  %v12174_v36 = vpop.f32.mrf.mxu3 }
 0xc6e   : > { %6043 = vadd.xlane.f32.xlu0 %v6042_v46  ;;  %6347 = vmatpush.bf16.msrb.mxu2 %v6329_v10  ;;  %v5859_v21 = vsel %vm1775_vm1, %v12162_v1, -inf  ;;  %v5312_v46 = vpack.c.bf16 %v5212_v54, %v5210_v29 }
 0xc6f   : > { %5860 = vmax.xlane.f32.xlu1 %v5859_v21  ;;  %v12179_v21 = vpop.f32.mrf.mxu2 }
 0xc71   : > { %v6290_v53 = vpop.permute.xlu2 %6289 }
 0xc72   : > { %6305 = vmatpush.bf16.msra.mxu1 %v6290_v53  ;;  %v5829_v53 = vsel %vm1775_vm1, %v12177_v39, -inf }
 0xc73   : > { %v5686_v45 = vpop.f32.mrf.mxu1 }
 0xc74   : > { %v12194_v54 = vadd.f32 %v11878_v12, %v5686_v45 }
 0xc76   : > { %6306 = vmatpush.bf16.msra.mxu1 %v6288_v40  ;;  %5824 = vmax.xlane.f32.xlu0 %v5823_v16  ;;  %v13203_v40 = vld [vmem:[#allocation46_spill] sm:$0xff] }
 0xc77   : > { %v4209_v16 = vadd.f32 %v13203_v40, %v11772_v11  ;;  %v5294_v24 = vpop.f32.mrf.mxu2  ;;  %v5313_v40 = vpack.c.bf16 %v5217_v33, %v5215_v42 }
 0xc7b   : > { %v5689_v10 = vpop.f32.mrf.mxu1 }
 0xc7c   : > { %v12182_v26 = vadd.f32 %v11854_v44, %v5689_v10  ;;  %v13204_v10 = vld [vmem:[#allocation19_spill] sm:$0xff] }
 0xc7d   : > { %7204 = vmatmul.msk.bf16.gmra.mxu3 %vm1775_vm1, %v5312_v46  ;;  %v5862_v46 = vsel %vm1775_vm1, %v12194_v54, -inf  ;;  %v4211_v49 = vadd.f32 %v13204_v10, %v11786_v30 }
 0xc7e   : > { %5830 = vmax.xlane.f32.xlu0 %v5829_v53  ;;  %v5865_v32 = vsel %vm1775_vm1, %v12182_v26, -inf }
 0xc7f   : > { %v5397_v34 = vpop.f32.mrf.mxu3  ;;  %5866 = vmax.xlane.f32.xlu1 %v5865_v32 }
 0xc80   : > { %v12191_v29 = vadd.f32 %v5397_v34, %v4209_v16  ;;  %v13205_v34 = vld [vmem:[#allocation74_spill] sm:$0xff] }
 0xc81   : > { %v4214_v16 = vadd.f32 %v13205_v34, %v11806_v37 }
 0xc86   : > { %5863 = vmax.xlane.f32.xlu0 %v5862_v46 }
 0xc87   : > { %v5399_v11 = vpop.f32.mrf.mxu3 }
 0xc88   : > { %v12200_v53 = vadd.f32 %v5399_v11, %v4211_v49  ;;  %v5314_v49 = vpack.c.bf16 %v12093_v31, %v12085_v61  ;;  %v6005_v33 = vpop.xlane.xlu1 %6004 }
 0xc89   : > { %7941 = vrcp.f32 %v6005_v33 }
 0xc8d   : > { %7205 = vmatmul.msk.bf16.gmra.mxu3 %vm1775_vm1, %v5313_v40  ;;  %v5691_v40 = vpop.f32.mrf.mxu1 }
 0xc8e   : > { %v12224_v13 = vadd.f32 %v11902_v0, %v5691_v40 }
 0xc8f   : > { %v12205_v32 = vpop.f32.mrf.mxu2 }
 0xc90   : > { %v5402_v45 = vpop.f32.mrf.mxu3  ;;  %v5868_v34 = vsel %vm1775_vm1, %v12224_v13, -inf }
 0xc91   : > { %v12207_v59 = vadd.f32 %v5402_v45, %v4214_v16  ;;  %v7942_v16 = vpop.eup %7941  ;;  %v5315_v45 = vpack.c.bf16 %v12111_v9, %v12102_v35 }
 0xc97   : > { %v12211_v30 = vpop.f32.mrf.mxu2 }
 0xc98   : > { %v5404_v46 = vpop.f32.mrf.mxu3  ;;  %v6011_v40 = vpop.xlane.xlu0 %6010 }
 0xc99   : > { %v12213_v10 = vadd.f32 %v5404_v46, %v4216_v60  ;;  %v6131_v46 = vmul.f32 %v7942_v16, %v12052_v55 }
 0xc9d   : > { %7206 = vmatmul.msk.bf16.gmra.mxu3 %vm1775_vm1, %v5314_v49 }
 0xc9f   : > { %v5606_v42 = vpop.f32.mrf.mxu2 }
 0xca0   : > { %v12219_v37 = vadd.f32 %v11885_v25, %v5606_v42 }
 0xca2   : > { %v5835_v11 = vsel %vm1775_vm1, %v12219_v37, -inf }
 0xca3   : > { %5836 = vmax.xlane.f32.xlu0 %v5835_v11  ;;  %v6163_v11 = vpack.c.bf16 %v6131_v46, %v6131_v46 }
 0xca7   : > { %v5608_v60 = vpop.f32.mrf.mxu2 }
 0xca8   : > { %v12227_v14 = vadd.f32 %v11878_v12, %v5608_v60 }
 0xcaa   : > { %v6008_v61 = vpop.xlane.xlu2 %6007  ;;  %v5838_v31 = vsel %vm1775_vm1, %v12227_v14, -inf }
 0xcab   : > { %7943 = vrcp.f32 %v6008_v61  ;;  %5839 = vmax.xlane.f32.xlu1 %v5838_v31  ;;  %5869 = vmax.xlane.f32.xlu0 %v5868_v34  ;;  %v6199_v61 = vunpack.c.l.b16 %v6163_v11 }
 0xcad   : > { %7207 = vmatmul.msk.bf16.gmra.mxu3 %vm1775_vm1, %v5315_v45 }
 0xcaf   : > { %v5611_v49 = vpop.f32.mrf.mxu2 }
 0xcb0   : > { %v12238_v42 = vadd.f32 %v11854_v44, %v5611_v49  ;;  %v5316_v49 = vpack.c.bf16 %v5294_v24, %v12179_v21 }
 0xcb1   : > { %v7944_v33 = vpop.eup %7943 }
 0xcb2   : > { %v6132_v60 = vmul.f32 %v7944_v33, %v12091_v3  ;;  %v6014_v27 = vpop.xlane.xlu2 %6013  ;;  %v5841_v35 = vsel %vm1775_vm1, %v12238_v42, -inf }
 0xcb3   : > { %7945 = vrcp.f32 %v6014_v27  ;;  %5842 = vmax.xlane.f32.xlu0 %v5841_v35 }
 0xcb4   : > { %v6164_v9 = vpack.c.bf16 %v6132_v60, %v6132_v60  ;;  %7947 = vrcp.f32 %v6011_v40 }
 0xcb6   : > { %v6200_v31 = vunpack.c.l.b16 %v6164_v9 }
 0xcb7   : > { %v5613_v55 = vpop.f32.mrf.mxu2 }
 0xcb8   : > { %v6203_v34 = vpack.c.b16 %v6200_v31, %v6199_v61  ;;  %v12244_v16 = vadd.f32 %v11902_v0, %v5613_v55 }
 0xcb9   : > { %v7946_v45 = vpop.eup %7945 }
 0xcba   : > { %7226 = vmatmul.msk.bf16.vlgmr.msra.gmra.mxu2 %vm1775_vm1, %v6203_v34  ;;  %v5844_v3 = vsel %vm1775_vm1, %v12244_v16, -inf  ;;  %v7948_v46 = vpop.eup %7947  ;;  %v6134_v27 = vmul.f32 %v7946_v45, %v12100_v8  ;;  %v5317_v34 = vpack.c.bf16 %v12211_v30, %v12205_v32 }
 0xcbb   : > { %5845 = vmax.xlane.f32.xlu2 %v5844_v3  ;;  %v6133_v33 = vmul.f32 %v7948_v46, %v12070_v17 }
 0xcbc   : > { %v6166_v40 = vpack.c.bf16 %v6134_v27, %v6134_v27 }
 0xcbd   : > { %7208 = vmatmul.msk.bf16.gmra.mxu3 %vm1775_vm1, %v5316_v49  ;;  %v6165_v35 = vpack.c.bf16 %v6133_v33, %v6133_v33 }
 0xcbe   : > { %v6202_v61 = vunpack.c.l.b16 %v6166_v40 }
 0xcbf   : > { %v5723_v11 = vpop.f32.mrf.mxu2  ;;  %v6201_v24 = vunpack.c.l.b16 %v6165_v35 }
 0xcc0   : > { %v12254_v60 = vadd.f32 %v11885_v25, %v5723_v11 }
 0xcc1   : > { %v6204_v55 = vpack.c.b16 %v6202_v61, %v6201_v24 }
 0xcc2   : > { %v5871_v9 = vsel %vm1775_vm1, %v12254_v60, -inf }
 0xcc3   : > { %5872 = vmax.xlane.f32.xlu1 %v5871_v9 }
 0xcc5   : > { %v6050_v31 = vpop.xlane.xlu1 %6049 }
 0xcc7   : > { %v5725_v21 = vpop.f32.mrf.mxu2 }
 0xcc8   : > { %v12259_v8 = vadd.f32 %v11878_v12, %v5725_v21 }
 0xcca   : > { %7227 = vmatmul.msk.bf16.gmra.mxu2 %vm1775_vm1, %v6204_v55  ;;  %v5874_v17 = vsel %vm1775_vm1, %v12259_v8, -inf  ;;  %v6041_v30 = vpop.xlane.xlu2 %6040 }
 0xccb   : > { %5875 = vmax.xlane.f32.xlu2 %v5874_v17 }
 0xccd   : > { %v5828_v45 = vpop.xlane.xlu1 %5827  ;;  %7209 = vmatmul.msk.bf16.gmra.mxu3 %vm1775_vm1, %v5317_v34 }
 0xcce   : > { %v5912_v3 = vsub.f32 %v12132_v4, %v5828_v45 }
 0xccf   : > { %v5728_v46 = vpop.f32.mrf.mxu2 }
 0xcd0   : > { %v5949_v49 = vmul.f32 1.442695, %v5912_v3  ;;  %v12269_v27 = vadd.f32 %v11854_v44, %v5728_v46 }
 0xcd2   : > { %7949 = vpow2.f32 %v5949_v49  ;;  %v5877_v33 = vsel %vm1775_vm1, %v12269_v27, -inf  ;;  %v6047_v21 = vpop.xlane.xlu2 %6046 }
 0xcd3   : > { %5878 = vmax.xlane.f32.xlu1 %v5877_v33  ;;  %7951 = vrcp.f32 %v6041_v30 }
 0xcd7   : > { %v5730_v11 = vpop.f32.mrf.mxu2 }
 0xcd8   : > { %v12273_v40 = vpop.eup %7949  ;;  %v12276_v32 = vadd.f32 %v11902_v0, %v5730_v11 }
 0xcd9   : > { %v6018_v4 = vsel %vm1775_vm1, %v12273_v40, 0.0  ;;  %v7952_v61 = vpop.eup %7951 }
 0xcda   : > { %6019 = vadd.xlane.f32.xlu2 %v6018_v4  ;;  %v5880_v35 = vsel %vm1775_vm1, %v12276_v32, -inf  ;;  %v6143_v24 = vmul.f32 %v7952_v61, %v12129_v38  ;;  %v5834_v55 = vpop.xlane.xlu1 %5833 }
 0xcdb   : > { %5881 = vmax.xlane.f32.xlu0 %v5880_v35  ;;  %v5914_v33 = vsub.f32 %v12153_v48, %v5834_v55 }
 0xcdc   : > { %v6175_v34 = vpack.c.bf16 %v6143_v24, %v6143_v24 }
 0xcde   : > { %v6322_v30 = vunpack.c.l.b16 %v6175_v34 }
 0xce1   : > { %v6044_v9 = vpop.xlane.xlu0 %6043 }
 0xce2   : > { %7953 = vrcp.f32 %v6044_v9  ;;  %v5953_v9 = vmul.f32 1.442695, %v5914_v33  ;;  %v5861_v61 = vpop.xlane.xlu1 %5860 }
 0xce3   : > { %7955 = vrcp.f32 %v6047_v21  ;;  %v5923_v55 = vsub.f32 %v12162_v1, %v5861_v61 }
 0xce4   : > { %7957 = vrcp.f32 %v6050_v31 }
 0xce8   : > { %v7954_v17 = vpop.eup %7953 }
 0xce9   : > { %v6144_v45 = vmul.f32 %v7954_v17, %v12159_v19  ;;  %v5825_v3 = vpop.xlane.xlu0 %5824  ;;  %v7956_v38 = vpop.eup %7955 }
 0xcea   : > { %v5911_v46 = vsub.f32 %v12170_v47, %v5825_v3  ;;  %v7958_v19 = vpop.eup %7957  ;;  %v13207_v47 = vld [vmem:[#allocation71_spill] sm:$0xff]  ;;  %v6145_v31 = vmul.f32 %v7956_v38, %v12140_v18 }
 0xceb   : > { %v6176_v49 = vpack.c.bf16 %v6144_v45, %v6144_v45  ;;  %v6146_v34 = vmul.f32 %v7958_v19, %v12121_v52 }
 0xcec   : > { %v5947_v11 = vmul.f32 1.442695, %v5911_v46  ;;  %v6177_v3 = vpack.c.bf16 %v6145_v31, %v6145_v31 }
 0xced   : > { %v6323_v4 = vunpack.c.l.b16 %v6176_v49  ;;  %v6178_v46 = vpack.c.bf16 %v6146_v34, %v6146_v34 }
 0xcee   : > { %7959 = vpow2.f32 %v5947_v11  ;;  %v6324_v18 = vunpack.c.l.b16 %v6177_v3 }
 0xcef   : > { %v6326_v35 = vpack.c.b16 %v6323_v4, %v6322_v30  ;;  %7961 = vpow2.f32 %v5953_v9  ;;  %v6325_v30 = vunpack.c.l.b16 %v6178_v46 }
 0xcf1   : > { %7232 = vmatmul.msk.bf16.vlgmr.msrb.gmra.mxu2 %vm1775_vm1, %v6326_v35  ;;  %v5831_v24 = vpop.xlane.xlu0 %5830  ;;  %v6327_v35 = vpack.c.b16 %v6325_v30, %v6324_v18 }
 0xcf2   : > { %v5913_v21 = vsub.f32 %v12177_v39, %v5831_v24  ;;  %6412 = vrot.lane.b32.xlu2 %v13207_v47, %s8329_s14  ;;  %v5971_v39 = vmul.f32 1.442695, %v5923_v55  ;;  %v5762_v24 = vpop.f32.mrf.mxu0  ;;  %v5867_v55 = vpop.xlane.xlu1 %5866 }
 0xcf4   : > { %v12291_v48 = vpop.eup %7959  ;;  %v5951_v17 = vmul.f32 1.442695, %v5913_v21  ;;  %v12316_v21 = vadd.f32 %v11885_v25, %v5762_v24 }
 0xcf5   : > { %v6015_v45 = vsel %vm1775_vm1, %v12291_v48, 0.0  ;;  %v12297_v33 = vpop.eup %7961 }
 0xcf6   : > { %7963 = vpow2.f32 %v5951_v17  ;;  %6016 = vadd.xlane.f32.xlu0 %v6015_v45  ;;  %v6024_v52 = vsel %vm1775_vm1, %v12297_v33, 0.0  ;;  %v5883_v31 = vsel %vm1775_vm1, %v12316_v21, -inf }
 0xcf7   : > { %7965 = vpow2.f32 %v5971_v39 }
 0xcf9   : > { %v5864_v49 = vpop.xlane.xlu0 %5863 }
 0xcfa   : > { %v5924_v1 = vsub.f32 %v12194_v54, %v5864_v49  ;;  %v5764_v47 = vpop.f32.mrf.mxu0 }
 0xcfb   : > { %v12322_v45 = vadd.f32 %v11878_v12, %v5764_v47 }
 0xcfc   : > { %v12299_v11 = vpop.eup %7963  ;;  %v5973_v38 = vmul.f32 1.442695, %v5924_v1 }
 0xcfd   : > { %v6021_v4 = vsel %vm1775_vm1, %v12299_v11, 0.0  ;;  %v12307_v9 = vpop.eup %7965  ;;  %v5886_v39 = vsel %vm1775_vm1, %v12322_v45, -inf }
 0xcfe   : > { %6025 = vadd.xlane.f32.xlu0 %v6024_v52  ;;  %6022 = vadd.xlane.f32.xlu1 %v6021_v4  ;;  %7967 = vpow2.f32 %v5973_v38  ;;  %v6051_v61 = vsel %vm1775_vm1, %v12307_v9, 0.0 }
 0xd01   : > { %7233 = vmatmul.msk.bf16.gmra.mxu2 %vm1775_vm1, %v6327_v35 }
 0xd04   : > { %v12311_v54 = vpop.eup %7967 }
 0xd05   : > { %v6054_v19 = vsel %vm1775_vm1, %v12311_v54, 0.0 }
 0xd06   : > { %6052 = vadd.xlane.f32.xlu0 %v6051_v61 }
 0xd0e   : > { %6055 = vadd.xlane.f32.xlu0 %v6054_v19 }
 0xd16   : > { %5884 = vmax.xlane.f32.xlu0 %v5883_v31  ;;  %v5837_v17 = vpop.xlane.xlu0 %5836 }
 0xd17   : > { %v5915_v34 = vsub.f32 %v12219_v37, %v5837_v17 }
 0xd19   : > { %v5955_v3 = vmul.f32 1.442695, %v5915_v34 }
 0xd1b   : > { %7969 = vpow2.f32 %v5955_v3 }
 0xd1e   : > { %5887 = vmax.xlane.f32.xlu0 %v5886_v39  ;;  %v5840_v46 = vpop.xlane.xlu1 %5839  ;;  %v5870_v49 = vpop.xlane.xlu0 %5869 }
 0xd1f   : > { %v5916_v18 = vsub.f32 %v12227_v14, %v5840_v46 }
 0xd21   : > { %v12327_v1 = vpop.eup %7969  ;;  %v5957_v30 = vmul.f32 1.442695, %v5916_v18 }
 0xd22   : > { %v6027_v52 = vsel %vm1775_vm1, %v12327_v1, 0.0 }
 0xd23   : > { %7971 = vpow2.f32 %v5957_v30  ;;  %6028 = vadd.xlane.f32.xlu1 %v6027_v52 }
 0xd26   : > { %v5843_v37 = vpop.xlane.xlu0 %5842 }
 0xd27   : > { %v5917_v4 = vsub.f32 %v12238_v42, %v5843_v37 }
 0xd29   : > { %v12332_v35 = vpop.eup %7971  ;;  %v5959_v38 = vmul.f32 1.442695, %v5917_v4 }
 0xd2a   : > { %v6030_v61 = vsel %vm1775_vm1, %v12332_v35, 0.0 }
 0xd2b   : > { %7973 = vpow2.f32 %v5959_v38  ;;  %6031 = vadd.xlane.f32.xlu1 %v6030_v61 }
 0xd2e   : > { %v5846_v14 = vpop.xlane.xlu2 %5845 }
 0xd2f   : > { %v5918_v24 = vsub.f32 %v12244_v16, %v5846_v14 }
 0xd31   : > { %v12337_v19 = vpop.eup %7973  ;;  %v5961_v47 = vmul.f32 1.442695, %v5918_v24 }
 0xd32   : > { %v6033_v31 = vsel %vm1775_vm1, %v12337_v19, 0.0 }
 0xd33   : > { %7975 = vpow2.f32 %v5961_v47  ;;  %6034 = vadd.xlane.f32.xlu0 %v6033_v31 }
 0xd36   : > { %v5873_v42 = vpop.xlane.xlu1 %5872 }
 0xd37   : > { %v5927_v17 = vsub.f32 %v12254_v60, %v5873_v42  ;;  %v13208_v60 = vld [vmem:[#allocation66_spill] sm:$0xff]  ;;  %v5925_v42 = vsub.f32 %v12182_v26, %v5867_v55 }
 0xd39   : > { %v12342_v34 = vpop.eup %7975  ;;  %v5979_v3 = vmul.f32 1.442695, %v5927_v17  ;;  %v13209_v17 = vld [vmem:[#allocation97_spill] sm:$0xff] }
 0xd3a   : > { %v6036_v39 = vsel %vm1775_vm1, %v12342_v34, 0.0 }
 0xd3b   : > { %7977 = vpow2.f32 %v5979_v3  ;;  %6037 = vadd.xlane.f32.xlu0 %v6036_v39  ;;  %v5926_v39 = vsub.f32 %v12224_v13, %v5870_v49 }
 0xd3e   : > { %v5876_v16 = vpop.xlane.xlu2 %5875 }
 0xd3f   : > { %v5928_v46 = vsub.f32 %v12259_v8, %v5876_v16  ;;  %v5977_v16 = vmul.f32 1.442695, %v5926_v39 }
 0xd41   : > { %v12347_v18 = vpop.eup %7977  ;;  %v5981_v30 = vmul.f32 1.442695, %v5928_v46 }
 0xd42   : > { %v6063_v52 = vsel %vm1775_vm1, %v12347_v18, 0.0 }
 0xd43   : > { %7979 = vpow2.f32 %v5981_v30  ;;  %6064 = vadd.xlane.f32.xlu2 %v6063_v52 }
 0xd44   : > { %6410 = vrot.lane.b32.xlu1 %v13208_v60, %s8329_s14  ;;  %v12368_v60 = vpop.f32.mrf.mxu1 }
 0xd46   : > { %v5879_v37 = vpop.xlane.xlu1 %5878 }
 0xd47   : > { %v5929_v4 = vsub.f32 %v12269_v27, %v5879_v37  ;;  %v5975_v27 = vmul.f32 1.442695, %v5925_v42  ;;  %v13210_v37 = vld [vmem:[#allocation98_spill] sm:$0xff] }
 0xd49   : > { %v12354_v38 = vpop.eup %7979  ;;  %v5983_v61 = vmul.f32 1.442695, %v5929_v4 }
 0xd4a   : > { %v6066_v8 = vsel %vm1775_vm1, %v12354_v38, 0.0 }
 0xd4b   : > { %7981 = vpow2.f32 %v5983_v61  ;;  %6067 = vadd.xlane.f32.xlu0 %v6066_v8 }
 0xd4c   : > { %7983 = vpow2.f32 %v5975_v27  ;;  %v5767_v27 = vpop.f32.mrf.mxu0 }
 0xd4d   : > { %v6020_v14 = vpop.xlane.xlu2 %6019 }
 0xd4e   : > { %v5882_v3 = vpop.xlane.xlu0 %5881  ;;  %7985 = vrcp.f32 %v6020_v14 }
 0xd4f   : > { %v5930_v26 = vsub.f32 %v12276_v32, %v5882_v3  ;;  %v5803_v32 = vpop.f32.mrf.mxu1 }
 0xd51   : > { %v12358_v24 = vpop.eup %7981  ;;  %v5985_v4 = vmul.f32 1.442695, %v5930_v26 }
 0xd52   : > { %v6069_v47 = vsel %vm1775_vm1, %v12358_v24, 0.0  ;;  %v12366_v46 = vpop.eup %7983 }
 0xd53   : > { %6070 = vadd.xlane.f32.xlu2 %v6069_v47  ;;  %v6057_v13 = vsel %vm1775_vm1, %v12366_v46, 0.0 }
 0xd54   : > { %v7986_v52 = vpop.eup %7985 }
 0xd55   : > { %v6413_v31 = vpop.permute.xlu2 %6412  ;;  %v6136_v55 = vmul.f32 %v7986_v52, %v12273_v40 }
 0xd56   : > { %6428 = vmatpush.bf16.msrb.mxu1 %v6413_v31 }
 0xd57   : > { %v6168_v61 = vpack.c.bf16 %v6136_v55, %v6136_v55 }
 0xd59   : > { %v6241_v40 = vunpack.c.l.b16 %v6168_v61 }
 0xd5f   : > { %6371 = vrot.lane.b32.xlu0 %v13209_v17, %s8329_s14 }
 0xd69   : > { %v6017_v30 = vpop.xlane.xlu0 %6016 }
 0xd6a   : > { %7987 = vrcp.f32 %v6017_v30 }
 0xd6b   : > { %6369 = vrot.lane.b32.xlu2 %v13210_v37, %s8329_s14  ;;  %7989 = vpow2.f32 %v5977_v16 }
 0xd6e   : > { %6058 = vadd.xlane.f32.xlu1 %v6057_v13  ;;  %v5769_v13 = vpop.f32.mrf.mxu0 }
 0xd70   : > { %v7988_v49 = vpop.eup %7987 }
 0xd71   : > { %v6135_v8 = vmul.f32 %v7988_v49, %v12291_v48  ;;  %v6023_v14 = vpop.xlane.xlu1 %6022  ;;  %v6026_v47 = vpop.xlane.xlu0 %6025 }
 0xd72   : > { %v12377_v31 = vpop.eup %7989  ;;  %7991 = vrcp.f32 %v6023_v14  ;;  %v5806_v49 = vpop.f32.mrf.mxu1 }
 0xd73   : > { %v6167_v42 = vpack.c.bf16 %v6135_v8, %v6135_v8  ;;  %7993 = vrcp.f32 %v6026_v47  ;;  %v6060_v3 = vsel %vm1775_vm1, %v12377_v31, 0.0  ;;  %v12389_v8 = vadd.f32 %v11902_v0, %v5769_v13 }
 0xd74   : > { %7995 = vpow2.f32 %v5985_v4 }
 0xd75   : > { %v6240_v17 = vunpack.c.l.b16 %v6167_v42 }
 0xd76   : > { %6061 = vadd.xlane.f32.xlu1 %v6060_v3 }
 0xd77   : > { %v6244_v39 = vpack.c.b16 %v6241_v40, %v6240_v17  ;;  %v5892_v17 = vsel %vm1775_vm1, %v12389_v8, -inf }
 0xd78   : > { %v7992_v16 = vpop.eup %7991 }
 0xd79   : > { %v7994_v30 = vpop.eup %7993  ;;  %7228 = vmatmul.msk.bf16.vlgmr.msra.gmra.mxu0 %vm1775_vm1, %v6244_v39  ;;  %v6053_v48 = vpop.xlane.xlu0 %6052  ;;  %v6137_v37 = vmul.f32 %v7992_v16, %v12299_v11  ;;  %v12392_v11 = vadd.f32 %v11854_v44, %v5767_v27 }
 0xd7a   : > { %v12382_v52 = vpop.eup %7995  ;;  %v6138_v26 = vmul.f32 %v7994_v30, %v12297_v33  ;;  %7997 = vrcp.f32 %v6053_v48  ;;  %v12400_v30 = vadd.f32 %v11878_v12, %v5803_v32  ;;  %v5808_v48 = vpop.f32.mrf.mxu1 }
 0xd7b   : > { %v6072_v55 = vsel %vm1775_vm1, %v12382_v52, 0.0  ;;  %v6169_v4 = vpack.c.bf16 %v6137_v37, %v6137_v37  ;;  %v5889_v16 = vsel %vm1775_vm1, %v12392_v11, -inf  ;;  %v12406_v13 = vadd.f32 %v11902_v0, %v5808_v48 }
 0xd7c   : > { %v6170_v61 = vpack.c.bf16 %v6138_v26, %v6138_v26  ;;  %v5898_v12 = vsel %vm1775_vm1, %v12400_v30, -inf }
 0xd7d   : > { %v6242_v42 = vunpack.c.l.b16 %v6169_v4  ;;  %v5904_v0 = vsel %vm1775_vm1, %v12406_v13, -inf }
 0xd7e   : > { %6073 = vadd.xlane.f32.xlu1 %v6072_v55  ;;  %v6243_v40 = vunpack.c.l.b16 %v6170_v61 }
 0xd80   : > { %v7998_v47 = vpop.eup %7997  ;;  %v6245_v3 = vpack.c.b16 %v6243_v40, %v6242_v42 }
 0xd81   : > { %v6056_v14 = vpop.xlane.xlu0 %6055  ;;  %v6147_v33 = vmul.f32 %v7998_v47, %v12307_v9 }
 0xd82   : > { %7999 = vrcp.f32 %v6056_v14 }
 0xd83   : > { %v6179_v37 = vpack.c.bf16 %v6147_v33, %v6147_v33 }
 0xd85   : > { %v12408_v61 = vunpack.c.l.b16 %v6179_v37 }
 0xd86   : > { %5893 = vmax.xlane.f32.xlu1 %v5892_v17 }
 0xd88   : > { %v8000_v39 = vpop.eup %7999 }
 0xd89   : > { %v6148_v26 = vmul.f32 %v8000_v39, %v12311_v54  ;;  %7229 = vmatmul.msk.bf16.gmra.mxu0 %vm1775_vm1, %v6245_v3  ;;  %v5885_v27 = vpop.xlane.xlu0 %5884  ;;  %5890 = vmax.xlane.f32.xlu0 %v5889_v16  ;;  %v12416_v54 = vadd.f32 %v11885_v25, %v12368_v60  ;;  %v12434_v16 = vadd.f32 %v11854_v44, %v5806_v49 }
 0xd8a   : > { %v5931_v9 = vsub.f32 %v12316_v21, %v5885_v27 }
 0xd8b   : > { %v6180_v55 = vpack.c.bf16 %v6148_v26, %v6148_v26  ;;  %v5895_v42 = vsel %vm1775_vm1, %v12416_v54, -inf  ;;  %v5901_v26 = vsel %vm1775_vm1, %v12434_v16, -inf }
 0xd8c   : > { %v5987_v4 = vmul.f32 1.442695, %v5931_v9 }
 0xd8d   : > { %v12410_v14 = vunpack.c.l.b16 %v6180_v55 }
 0xd8e   : > { %8001 = vpow2.f32 %v5987_v4  ;;  %5899 = vmax.xlane.f32.xlu1 %v5898_v12 }
 0xd8f   : > { %v6367_v21 = vpack.c.b16 %v12410_v14, %v12408_v61  ;;  %v7304_v14 = vld [vmem:[#allocation10 + $0x30] sm:$0xff] }
 0xd91   : > { %v5888_v32 = vpop.xlane.xlu0 %5887  ;;  %5905 = vmax.xlane.f32.xlu0 %v5904_v0 }
 0xd92   : > { %v5932_v47 = vsub.f32 %v12322_v45, %v5888_v32 }
 0xd94   : > { %v12425_v40 = vpop.eup %8001  ;;  %v5989_v33 = vmul.f32 1.442695, %v5932_v47  ;;  %5896 = vmax.xlane.f32.xlu2 %v5895_v42  ;;  %v13211_v47 = vld [vmem:[#allocation78_spill] sm:$0xff]  ;;  %v13212_v42 = vld [vmem:[#allocation93_spill] sm:$0xff] }
 0xd95   : > { %v6075_v25 = vsel %vm1775_vm1, %v12425_v40, 0.0 }
 0xd96   : > { %8003 = vpow2.f32 %v5989_v33  ;;  %v6029_v60 = vpop.xlane.xlu1 %6028  ;;  %6076 = vadd.xlane.f32.xlu1 %v6075_v25 }
 0xd97   : > { %8005 = vrcp.f32 %v6029_v60 }
 0xd9c   : > { %v12429_v17 = vpop.eup %8003 }
 0xd9d   : > { %v6078_v3 = vsel %vm1775_vm1, %v12429_v17, 0.0  ;;  %v8006_v39 = vpop.eup %8005 }
 0xd9e   : > { %v6032_v45 = vpop.xlane.xlu1 %6031  ;;  %6079 = vadd.xlane.f32.xlu1 %v6078_v3  ;;  %v6139_v48 = vmul.f32 %v8006_v39, %v12327_v1 }
 0xd9f   : > { %8007 = vrcp.f32 %v6032_v45 }
 0xda0   : > { %v6171_v27 = vpack.c.bf16 %v6139_v48, %v6139_v48 }
 0xda2   : > { %v6281_v12 = vunpack.c.l.b16 %v6171_v27 }
 0xda5   : > { %v8008_v37 = vpop.eup %8007 }
 0xda6   : > { %v6140_v9 = vmul.f32 %v8008_v37, %v12332_v35  ;;  %5902 = vmax.xlane.f32.xlu1 %v5901_v26  ;;  %v6035_v55 = vpop.xlane.xlu0 %6034 }
 0xda7   : > { %8009 = vrcp.f32 %v6035_v55 }
 0xda8   : > { %v6172_v4 = vpack.c.bf16 %v6140_v9, %v6140_v9 }
 0xdaa   : > { %v6282_v0 = vunpack.c.l.b16 %v6172_v4 }
 0xdac   : > { %v6285_v32 = vpack.c.b16 %v6282_v0, %v6281_v12  ;;  %6451 = vrot.lane.b32.xlu2 %v13211_v47, %s8329_s14 }
 0xdad   : > { %v8010_v1 = vpop.eup %8009 }
 0xdae   : > { %7230 = vmatmul.msk.bf16.vlgmr.msra.gmra.mxu1 %vm1775_vm1, %v6285_v32  ;;  %v6038_v44 = vpop.xlane.xlu0 %6037  ;;  %v6141_v49 = vmul.f32 %v8010_v1, %v12337_v19  ;;  %v13213_v19 = vld [vmem:[#allocation82_spill] sm:$0xff] }
 0xdaf   : > { %8011 = vrcp.f32 %v6038_v44 }
 0xdb0   : > { %v6173_v33 = vpack.c.bf16 %v6141_v49, %v6141_v49 }
 0xdb2   : > { %v6283_v39 = vunpack.c.l.b16 %v6173_v33 }
 0xdb4   : > { %6494 = vrot.lane.b32.xlu2 %v13212_v42, %s8329_s14 }
 0xdb5   : > { %v8012_v35 = vpop.eup %8011 }
 0xdb6   : > { %v6142_v25 = vmul.f32 %v8012_v35, %v12342_v34  ;;  %v6065_v60 = vpop.xlane.xlu2 %6064  ;;  %v6411_v3 = vpop.permute.xlu1 %6410 }
 0xdb7   : > { %6429 = vmatpush.bf16.msrb.mxu1 %v6411_v3  ;;  %8013 = vrcp.f32 %v6065_v60 }
 0xdb8   : > { %v6174_v45 = vpack.c.bf16 %v6142_v25, %v6142_v25  ;;  %v7305_v25 = vld [vmem:[#allocation10 + $0x38] sm:$0xff] }
 0xdba   : > { %v6284_v48 = vunpack.c.l.b16 %v6174_v45 }
 0xdbb   : > { %6605 = vmatpush.bf16.msra.mxu1 %v7305_v25 }
 0xdbc   : > { %v6286_v37 = vpack.c.b16 %v6284_v48, %v6283_v39 }
 0xdbd   : > { %v8014_v27 = vpop.eup %8013 }
 0xdbe   : > { %7231 = vmatmul.msk.bf16.gmra.mxu1 %vm1775_vm1, %v6286_v37  ;;  %v6068_v26 = vpop.xlane.xlu0 %6067  ;;  %v6151_v9 = vmul.f32 %v8014_v27, %v12347_v18 }
 0xdbf   : > { %8015 = vrcp.f32 %v6068_v26  ;;  %6453 = vrot.lane.b32.xlu1 %v13213_v19, %s8329_s14  ;;  %6606 = vmatpush.bf16.msra.mxu1 %v7304_v14 }
 0xdc0   : > { %v6183_v34 = vpack.c.bf16 %v6151_v9, %v6151_v9 }
 0xdc2   : > { %v6404_v0 = vunpack.c.l.b16 %v6183_v34 }
 0xdc5   : > { %v8016_v55 = vpop.eup %8015 }
 0xdc6   : > { %v6152_v4 = vmul.f32 %v8016_v55, %v12354_v38  ;;  %v6071_v47 = vpop.xlane.xlu2 %6070 }
 0xdc8   : > { %v6184_v12 = vpack.c.bf16 %v6152_v4, %v6152_v4 }
 0xdca   : > { %v6405_v32 = vunpack.c.l.b16 %v6184_v12 }
 0xdcc   : > { %v6408_v44 = vpack.c.b16 %v6405_v32, %v6404_v0  ;;  %v6226_v0 = vpop.f32.mrf.mxu2 }
 0xdce   : > { %7236 = vmatmul.msk.bf16.vlgmr.msrb.gmra.mxu1 %vm1775_vm1, %v6408_v44  ;;  %v6370_v49 = vpop.permute.xlu2 %6369 }
 0xdd1   : > { %v6372_v1 = vpop.permute.xlu0 %6371 }
 0xdd2   : > { %6387 = vmatpush.bf16.msrb.mxu0 %v6372_v1 }
 0xdd6   : > { %6388 = vmatpush.bf16.msrb.mxu0 %v6370_v49 }
 0xdd9   : > { %7234 = vmatmul.msk.bf16.vlgmr.msrb.gmra.mxu0 %vm1775_vm1, %v6367_v21 }
 0xde1   : > { %v6059_v18 = vpop.xlane.xlu1 %6058 }
 0xde2   : > { %8017 = vrcp.f32 %v6059_v18 }
 0xde8   : > { %v8018_v38 = vpop.eup %8017 }
 0xde9   : > { %v6062_v42 = vpop.xlane.xlu1 %6061  ;;  %v6149_v35 = vmul.f32 %v8018_v38, %v12366_v46  ;;  %v6228_v38 = vpop.f32.mrf.mxu2 }
 0xdea   : > { %8019 = vrcp.f32 %v6062_v42 }
 0xdeb   : > { %8021 = vrcp.f32 %v6071_v47  ;;  %v6181_v60 = vpack.c.bf16 %v6149_v35, %v6149_v35 }
 0xded   : > { %v6365_v48 = vunpack.c.l.b16 %v6181_v60 }
 0xdf0   : > { %v8020_v33 = vpop.eup %8019 }
 0xdf1   : > { %v6150_v3 = vmul.f32 %v8020_v33, %v12377_v31  ;;  %v6074_v45 = vpop.xlane.xlu1 %6073  ;;  %v8022_v39 = vpop.eup %8021 }
 0xdf2   : > { %8023 = vrcp.f32 %v6074_v45  ;;  %v6153_v21 = vmul.f32 %v8022_v39, %v12358_v24 }
 0xdf3   : > { %v6182_v61 = vpack.c.bf16 %v6150_v3, %v6150_v3  ;;  %v6523_v3 = vpack.c.bf16 %v6228_v38, %v6226_v0 }
 0xdf4   : > { %v6185_v19 = vpack.c.bf16 %v6153_v21, %v6153_v21 }
 0xdf5   : > { %v6366_v37 = vunpack.c.l.b16 %v6182_v61  ;;  %v6231_v61 = vpop.f32.mrf.mxu2 }
 0xdf6   : > { %v6406_v34 = vunpack.c.l.b16 %v6185_v19 }
 0xdf7   : > { %v6368_v26 = vpack.c.b16 %v6366_v37, %v6365_v48 }
 0xdf8   : > { %v8024_v27 = vpop.eup %8023 }
 0xdf9   : > { %v6154_v46 = vmul.f32 %v8024_v27, %v12382_v52  ;;  %v5894_v9 = vpop.xlane.xlu1 %5893  ;;  %7235 = vmatmul.msk.bf16.gmra.mxu0 %vm1775_vm1, %v6368_v26 }
 0xdfa   : > { %v5934_v24 = vsub.f32 %v12389_v8, %v5894_v9 }
 0xdfb   : > { %v6186_v31 = vpack.c.bf16 %v6154_v46, %v6154_v46  ;;  %v6267_v46 = vpop.f32.mrf.mxu0 }
 0xdfc   : > { %v5891_v55 = vpop.xlane.xlu0 %5890  ;;  %v5993_v1 = vmul.f32 1.442695, %v5934_v24  ;;  %v13214_v24 = vld [vmem:[#allocation87_spill] sm:$0xff] }
 0xdfd   : > { %v6407_v4 = vunpack.c.l.b16 %v6186_v31  ;;  %v5933_v12 = vsub.f32 %v12392_v11, %v5891_v55  ;;  %v6233_v27 = vpop.f32.mrf.mxu2 }
 0xdfe   : > { %v6524_v9 = vpack.c.bf16 %v6233_v27, %v6231_v61 }
 0xdff   : > { %v5991_v32 = vmul.f32 1.442695, %v5933_v12  ;;  %v6409_v47 = vpack.c.b16 %v6407_v4, %v6406_v34 }
 0xe01   : > { %8025 = vpow2.f32 %v5991_v32  ;;  %v5900_v44 = vpop.xlane.xlu1 %5899  ;;  %7237 = vmatmul.msk.bf16.gmra.mxu1 %vm1775_vm1, %v6409_v47 }
 0xe02   : > { %v5936_v52 = vsub.f32 %v12400_v30, %v5900_v44 }
 0xe03   : > { %v6269_v4 = vpop.f32.mrf.mxu0 }
 0xe04   : > { %v5997_v49 = vmul.f32 1.442695, %v5936_v52  ;;  %v6525_v32 = vpack.c.bf16 %v6269_v4, %v6267_v46 }
 0xe06   : > { %8027 = vpow2.f32 %v5997_v49 }
 0xe07   : > { %v12466_v18 = vpop.eup %8025  ;;  %8029 = vpow2.f32 %v5993_v1  ;;  %v5897_v42 = vpop.xlane.xlu2 %5896 }
 0xe08   : > { %v5935_v11 = vsub.f32 %v12416_v54, %v5897_v42  ;;  %v6081_v8 = vsel %vm1775_vm1, %v12466_v18, 0.0 }
 0xe09   : > { %v6077_v35 = vpop.xlane.xlu1 %6076  ;;  %6082 = vadd.xlane.f32.xlu0 %v6081_v8  ;;  %v5906_v8 = vpop.xlane.xlu0 %5905 }
 0xe0a   : > { %v5995_v33 = vmul.f32 1.442695, %v5935_v11 }
 0xe0b   : > { %v6272_v1 = vpop.f32.mrf.mxu0 }
 0xe0c   : > { %v12471_v25 = vpop.eup %8027  ;;  %8031 = vpow2.f32 %v5995_v33 }
 0xe0d   : > { %v12473_v60 = vpop.eup %8029  ;;  %v6090_v30 = vsel %vm1775_vm1, %v12471_v25, 0.0 }
 0xe0e   : > { %6091 = vadd.xlane.f32.xlu1 %v6090_v30  ;;  %v6084_v54 = vsel %vm1775_vm1, %v12473_v60, 0.0 }
 0xe0f   : > { %v6452_v45 = vpop.permute.xlu2 %6451 }
 0xe11   : > { %v6080_v39 = vpop.xlane.xlu1 %6079  ;;  %7250 = vmatmul.msk.bf16.vlgmr.msra.gmra.mxu1 %vm1775_vm1, %v6523_v3  ;;  %6085 = vadd.xlane.f32.xlu0 %v6084_v54 }
 0xe12   : > { %v12480_v14 = vpop.eup %8031 }
 0xe13   : > { %v6087_v48 = vsel %vm1775_vm1, %v12480_v14, 0.0 }
 0xe17   : > { %v6495_v21 = vpop.permute.xlu2 %6494 }
 0xe18   : > { %6510 = vmatpush.bf16.msra.mxu0 %v6495_v21  ;;  %v6349_v21 = vpop.f32.mrf.mxu2 }
 0xe19   : > { %v5903_v37 = vpop.xlane.xlu1 %5902  ;;  %6088 = vadd.xlane.f32.xlu0 %v6087_v48 }
 0xe1a   : > { %v5937_v26 = vsub.f32 %v12434_v16, %v5903_v37 }
 0xe1c   : > { %v5999_v19 = vmul.f32 1.442695, %v5937_v26 }
 0xe1e   : > { %8033 = vpow2.f32 %v5999_v19 }
 0xe1f   : > { %8035 = vrcp.f32 %v6080_v39 }
 0xe20   : > { %8037 = vrcp.f32 %v6077_v35  ;;  %v5938_v35 = vsub.f32 %v12406_v13, %v5906_v8  ;;  %v6351_v37 = vpop.f32.mrf.mxu2 }
 0xe21   : > { %7251 = vmatmul.msk.bf16.gmra.mxu1 %vm1775_vm1, %v6524_v9  ;;  %v6529_v26 = vpack.c.bf16 %v6351_v37, %v6349_v21 }
 0xe22   : > { %v6001_v30 = vmul.f32 1.442695, %v5938_v35 }
 0xe24   : > { %v12486_v31 = vpop.eup %8033  ;;  %8039 = vpow2.f32 %v6001_v30 }
 0xe25   : > { %v6093_v55 = vsel %vm1775_vm1, %v12486_v31, 0.0  ;;  %v8036_v34 = vpop.eup %8035 }
 0xe26   : > { %6094 = vadd.xlane.f32.xlu2 %v6093_v55  ;;  %v8038_v12 = vpop.eup %8037  ;;  %v6156_v16 = vmul.f32 %v8036_v34, %v12429_v17  ;;  %v6274_v17 = vpop.f32.mrf.mxu0 }
 0xe27   : > { %v6155_v0 = vmul.f32 %v8038_v12, %v12425_v40  ;;  %v6526_v40 = vpack.c.bf16 %v6274_v17, %v6272_v1 }
 0xe28   : > { %v6188_v47 = vpack.c.bf16 %v6156_v16, %v6156_v16  ;;  %v6354_v27 = vpop.f32.mrf.mxu2 }
 0xe29   : > { %v6187_v44 = vpack.c.bf16 %v6155_v0, %v6155_v0 }
 0xe2a   : > { %v6446_v49 = vunpack.c.l.b16 %v6188_v47  ;;  %v12499_v39 = vpop.eup %8039 }
 0xe2b   : > { %v6445_v42 = vunpack.c.l.b16 %v6187_v44  ;;  %v6308_v11 = vpop.f32.mrf.mxu1 }
 0xe2d   : > { %6492 = vrot.lane.b32.xlu0 %v13214_v24, %s8329_s14  ;;  %v6449_v38 = vpack.c.b16 %v6446_v49, %v6445_v42  ;;  %v12519_v42 = vld [vmem:[%s12708_s6] ss:$0 sm:$0xff] }
 0xe30   : > { %v6356_v46 = vpop.f32.mrf.mxu2 }
 0xe31   : > { %v6454_v52 = vpop.permute.xlu1 %6453  ;;  %7252 = vmatmul.msk.bf16.gmra.mxu1 %vm1775_vm1, %v6525_v32  ;;  %v6530_v34 = vpack.c.bf16 %v6356_v46, %v6354_v27 }
 0xe32   : > { %6469 = vmatpush.bf16.msra.mxu2 %v6454_v52 }
 0xe33   : > { %v6310_v33 = vpop.f32.mrf.mxu1 }
 0xe34   : > { %v6527_v3 = vpack.c.bf16 %v6310_v33, %v6308_v11 }
 0xe36   : > { %6470 = vmatpush.bf16.msra.mxu2 %v6452_v45  ;;  %v6096_v45 = vsel %vm1775_vm1, %v12499_v39, 0.0 }
 0xe39   : > { %7238 = vmatmul.msk.bf16.vlgmr.msra.gmra.mxu2 %vm1775_vm1, %v6449_v38 }
 0xe3b   : > { %v6313_v54 = vpop.f32.mrf.mxu1 }
 0xe41   : > { %7253 = vmatmul.msk.bf16.gmra.mxu1 %vm1775_vm1, %v6526_v40 }
 0xe43   : > { %v6315_v61 = vpop.f32.mrf.mxu1 }
 0xe44   : > { %v6528_v48 = vpack.c.bf16 %v6315_v61, %v6313_v54 }
 0xe4b   : > { %v12504_v13 = vpop.f32.mrf.mxu1 }
 0xe51   : > { %7254 = vmatmul.msk.bf16.gmra.mxu1 %vm1775_vm1, %v6527_v3  ;;  %v13215_v3 = vld [vmem:[#allocation134_spill] sm:$0xff] }
 0xe52   : > { %v4201_v54 = vadd.f32 %v13215_v3, %v11716_v50 }
 0xe53   : > { %v12507_v19 = vpop.f32.mrf.mxu1 }
 0xe56   : > { %v6390_v4 = vpop.f32.mrf.mxu0 }
 0xe57   : > { %6097 = vadd.xlane.f32.xlu0 %v6096_v45 }
 0xe5e   : > { %v6392_v32 = vpop.f32.mrf.mxu0 }
 0xe5f   : > { %v6531_v11 = vpack.c.bf16 %v6392_v32, %v6390_v4 }
 0xe61   : > { %7255 = vmatmul.msk.bf16.gmra.mxu1 %vm1775_vm1, %v6528_v48 }
 0xe71   : > { %7256 = vmatmul.msk.bf16.gmra.mxu1 %vm1775_vm1, %v6529_v26 }
 0xe7c   : > { %v6083_v9 = vpop.xlane.xlu0 %6082 }
 0xe7d   : > { %8041 = vrcp.f32 %v6083_v9 }
 0xe7e   : > { %v12509_v55 = vpop.f32.mrf.mxu1 }
 0xe81   : > { %7257 = vmatmul.msk.bf16.gmra.mxu1 %vm1775_vm1, %v6530_v34  ;;  %v6092_v44 = vpop.xlane.xlu1 %6091 }
 0xe83   : > { %v8042_v16 = vpop.eup %8041 }
 0xe84   : > { %v6086_v12 = vpop.xlane.xlu0 %6085  ;;  %v6157_v24 = vmul.f32 %v8042_v16, %v12466_v18 }
 0xe85   : > { %8043 = vrcp.f32 %v6086_v12 }
 0xe86   : > { %v12512_v0 = vpop.f32.mrf.mxu1  ;;  %v6189_v52 = vpack.c.bf16 %v6157_v24, %v6157_v24  ;;  %v13216_v24 = vld [vmem:[#allocation123_spill] sm:$0xff] }
 0xe87   : > { %v4206_v32 = vadd.f32 %v13216_v24, %v11753_v62 }
 0xe88   : > { %v6447_v40 = vunpack.c.l.b16 %v6189_v52 }
 0xe8b   : > { %v8044_v47 = vpop.eup %8043 }
 0xe8c   : > { %v6158_v1 = vmul.f32 %v8044_v47, %v12473_v60  ;;  %v6089_v49 = vpop.xlane.xlu0 %6088  ;;  %v6395_v60 = vpop.f32.mrf.mxu0  ;;  %v5470_v47 = vadd.f32 %v12174_v36, %v4206_v32 }
 0xe8d   : > { %8045 = vrcp.f32 %v6089_v49 }
 0xe8e   : > { %8047 = vrcp.f32 %v6092_v44  ;;  %v6190_v38 = vpack.c.bf16 %v6158_v1, %v6158_v1  ;;  %v6608_v17 = vpop.f32.mrf.mxu1 }
 0xe8f   : > { %v6688_v18 = vadd.f32 %v6608_v17, %v12127_v2  ;;  %v5468_v2 = vadd.f32 %v12136_v28, %v4201_v54 }
 0xe90   : > { %v6448_v8 = vunpack.c.l.b16 %v6190_v38  ;;  %v6533_v38 = vpack.c.bf16 %v12507_v19, %v12504_v13  ;;  %v6534_v13 = vpack.c.bf16 %v12512_v0, %v12509_v55  ;;  %v13217_v55 = vld [vmem:[#allocation63_spill] sm:$0xff] }
 0xe91   : > { %v6724_v35 = vadd.f32 %v12519_v42, %v6688_v18  ;;  %7258 = vmatmul.msk.bf16.gmra.mxu1 %vm1775_vm1, %v6531_v11  ;;  %v4219_v0 = vadd.f32 %v13217_v55, %v11834_v43 }
 0xe92   : > { %v6450_v33 = vpack.c.b16 %v6448_v8, %v6447_v40 }
 0xe93   : > { %v8046_v30 = vpop.eup %8045  ;;  %6756 = vst [vmem:[%s12528_s22] sm:$0xff] %v6724_v35 }
 0xe94   : > { %v8048_v45 = vpop.eup %8047  ;;  %7239 = vmatmul.msk.bf16.gmra.mxu2 %vm1775_vm1, %v6450_v33  ;;  %v6159_v61 = vmul.f32 %v8046_v30, %v12480_v14  ;;  %v6397_v46 = vpop.f32.mrf.mxu0 }
 0xe95   : > { %v6160_v48 = vmul.f32 %v8048_v45, %v12471_v25  ;;  %v6532_v4 = vpack.c.bf16 %v6397_v46, %v6395_v60 }
 0xe96   : > { %v6610_v21 = vpop.f32.mrf.mxu1  ;;  %v6191_v26 = vpack.c.bf16 %v6159_v61, %v6159_v61 }
 0xe97   : > { %v6689_v37 = vadd.f32 %v6610_v21, %v5468_v2  ;;  %v6192_v27 = vpack.c.bf16 %v6160_v48, %v6160_v48 }
 0xe98   : > { %v6486_v9 = vunpack.c.l.b16 %v6191_v26 }
 0xe99   : > { %v6725_v50 = vadd.f32 %v12519_v42, %v6689_v37  ;;  %v6487_v12 = vunpack.c.l.b16 %v6192_v27  ;;  %v6095_v60 = vpop.xlane.xlu2 %6094 }
 0xe9a   : > { %8049 = vrcp.f32 %v6095_v60 }
 0xe9b   : > { %6757 = vst [vmem:[%s12528_s22 + $0x8] sm:$0xff] %v6725_v50  ;;  %v6490_v14 = vpack.c.b16 %v6487_v12, %v6486_v9  ;;  %v13218_v9 = vld [vmem:[#allocation126_spill] sm:$0xff] }
 0xe9e   : > { %v6613_v34 = vpop.f32.mrf.mxu1 }
 0xe9f   : > { %v6690_v28 = vadd.f32 %v6613_v34, %v12150_v20  ;;  %v6493_v16 = vpop.permute.xlu0 %6492  ;;  %v5407_v20 = vpop.f32.mrf.mxu3  ;;  %v4221_v34 = vadd.f32 %v13218_v9, %v11845_v6 }
 0xea0   : > { %6511 = vmatpush.bf16.msra.mxu0 %v6493_v16  ;;  %v8050_v2 = vpop.eup %8049  ;;  %v5475_v61 = vadd.f32 %v5407_v20, %v4219_v0 }
 0xea1   : > { %v6726_v25 = vadd.f32 %v12519_v42, %v6690_v28  ;;  %7259 = vmatmul.msk.bf16.gmra.mxu1 %vm1775_vm1, %v6532_v4  ;;  %v6161_v21 = vmul.f32 %v8050_v2, %v12486_v31 }
 0xea3   : > { %6758 = vst [vmem:[%s12528_s22 + $0x10] sm:$0xff] %v6726_v25  ;;  %7240 = vmatmul.msk.bf16.vlgmr.msra.gmra.mxu0 %vm1775_vm1, %v6490_v14  ;;  %v6193_v46 = vpack.c.bf16 %v6161_v21, %v6161_v21 }
 0xea5   : > { %v6488_v31 = vunpack.c.l.b16 %v6193_v46 }
 0xea6   : > { %v6615_v44 = vpop.f32.mrf.mxu1 }
 0xea7   : > { %v6691_v52 = vadd.f32 %v6615_v44, %v5470_v47  ;;  %v5409_v11 = vpop.f32.mrf.mxu3 }
 0xea8   : > { %v5476_v12 = vadd.f32 %v5409_v11, %v4221_v34 }
 0xea9   : > { %v6727_v1 = vadd.f32 %v12519_v42, %v6691_v52 }
 0xeab   : > { %6759 = vst [vmem:[%s12528_s22 + $0x18] sm:$0xff] %v6727_v1  ;;  %v13220_v1 = vld [vmem:[#allocation24_spill] sm:$0xff] }
 0xeae   : > { %v6618_v49 = vpop.f32.mrf.mxu1 }
 0xeaf   : > { %v6692_v17 = vadd.f32 %v6618_v49, %v12191_v29  ;;  %v5412_v8 = vpop.f32.mrf.mxu3  ;;  %v4226_v49 = vadd.f32 %v13220_v1, %v11871_v58  ;;  %v13222_v58 = vld [vmem:[#allocation113_spill] sm:$0xff] }
 0xeb1   : > { %v6728_v62 = vadd.f32 %v12519_v42, %v6692_v17  ;;  %7260 = vmatmul.msk.bf16.gmra.mxu1 %vm1775_vm1, %v6533_v38 }
 0xeb3   : > { %6760 = vst [vmem:[%s12528_s22 + $0x20] sm:$0xff] %v6728_v62 }
 0xeb6   : > { %v6620_v36 = vpop.f32.mrf.mxu1 }
 0xeb7   : > { %v6693_v18 = vadd.f32 %v6620_v36, %v12200_v53  ;;  %v5414_v53 = vpop.f32.mrf.mxu3 }
 0xeb8   : > { %v5478_v17 = vadd.f32 %v5414_v53, %v4226_v49 }
 0xeb9   : > { %v6729_v40 = vadd.f32 %v12519_v42, %v6693_v18  ;;  %v13221_v18 = vld [vmem:[#allocation120_spill] sm:$0xff] }
 0xebb   : > { %6761 = vst [vmem:[%s12528_s22 + $0x28] sm:$0xff] %v6729_v40 }
 0xebc   : > { %v6472_v33 = vpop.f32.mrf.mxu2 }
 0xebe   : > { %v6623_v35 = vpop.f32.mrf.mxu1 }
 0xebf   : > { %v6694_v29 = vadd.f32 %v6623_v35, %v12207_v59  ;;  %v5417_v50 = vpop.f32.mrf.mxu3 }
 0xec1   : > { %v6730_v19 = vadd.f32 %v12519_v42, %v6694_v29  ;;  %7261 = vmatmul.msk.bf16.gmra.mxu1 %vm1775_vm1, %v6534_v13 }
 0xec3   : > { %6762 = vst [vmem:[%s12528_s22 + $0x30] sm:$0xff] %v6730_v19  ;;  %v4231_v19 = vadd.f32 %v13222_v58, %v11906_v23  ;;  %v13224_v23 = vld [vmem:[#allocation34_spill] sm:$0xff] }
 0xec4   : > { %v6474_v59 = vpop.f32.mrf.mxu2 }
 0xec5   : > { %v6535_v37 = vpack.c.bf16 %v6474_v59, %v6472_v33 }
 0xec6   : > { %v6625_v30 = vpop.f32.mrf.mxu1 }
 0xec7   : > { %v6695_v3 = vadd.f32 %v6625_v30, %v12213_v10  ;;  %v5419_v32 = vpop.f32.mrf.mxu3 }
 0xec8   : > { %v5480_v60 = vadd.f32 %v5419_v32, %v4231_v19 }
 0xec9   : > { %v6731_v54 = vadd.f32 %v12519_v42, %v6695_v3 }
 0xeca   : > { %v6098_v45 = vpop.xlane.xlu0 %6097 }
 0xecb   : > { %6763 = vst [vmem:[%s12528_s22 + $0x38] sm:$0xff] %v6731_v54  ;;  %8051 = vrcp.f32 %v6098_v45 }
 0xece   : > { %v6628_v48 = vpop.f32.mrf.mxu1 }
 0xecf   : > { %v6696_v26 = vadd.f32 %v6628_v48, %v5475_v61  ;;  %v5422_v38 = vpop.f32.mrf.mxu3  ;;  %v4236_v61 = vadd.f32 %v13224_v23, %v11931_v5  ;;  %v4241_v5 = vadd.f32 %v11592_v51, %v11957_v63  ;;  %v13235_v23 = vld [vmem:[#allocation110_spill] sm:$0xff] }
 0xed1   : > { %v8052_v27 = vpop.eup %8051  ;;  %v6732_v10 = vadd.f32 %v12519_v42, %v6696_v26  ;;  %7262 = vmatmul.msk.bf16.gmra.mxu1 %vm1775_vm1, %v6535_v37 }
 0xed2   : > { %v6162_v43 = vmul.f32 %v8052_v27, %v12499_v39  ;;  %v13219_v39 = vld [vmem:[#allocation29_spill] sm:$0xff] }
 0xed3   : > { %6764 = vst [vmem:[%s12528_s22 + $0x40] sm:$0xff] %v6732_v10  ;;  %v4224_v47 = vadd.f32 %v13219_v39, %v11857_v41  ;;  %v4229_v41 = vadd.f32 %v13221_v18, %v11882_v56  ;;  %v13223_v56 = vld [vmem:[#allocation32_spill] sm:$0xff] }
 0xed4   : > { %v6194_v4 = vpack.c.bf16 %v6162_v43, %v6162_v43  ;;  %v4234_v54 = vadd.f32 %v13223_v56, %v11920_v22 }
 0xed5   : > { %v5477_v6 = vadd.f32 %v5412_v8, %v4224_v47  ;;  %v5479_v40 = vadd.f32 %v5417_v50, %v4229_v41  ;;  %v13225_v50 = vld [vmem:[#allocation90_spill] sm:$0xff]  ;;  %v13226_v47 = vld [vmem:[#allocation83_spill] sm:$0xff] }
 0xed6   : > { %v6489_v28 = vunpack.c.l.b16 %v6194_v4  ;;  %v6630_v16 = vpop.f32.mrf.mxu1  ;;  %v5481_v45 = vadd.f32 %v5422_v38, %v4234_v54  ;;  %v4239_v22 = vadd.f32 %v13225_v50, %v11944_v57  ;;  %v13228_v38 = vld [vmem:[#allocation84_spill] sm:$0xff] }
 0xed7   : > { %v6697_v14 = vadd.f32 %v6630_v16, %v5476_v12  ;;  %v5424_v8 = vpop.f32.mrf.mxu3  ;;  %v4244_v16 = vadd.f32 %v11611_v7, %v11969_v15 }
 0xed8   : > { %v6491_v25 = vpack.c.b16 %v6489_v28, %v6488_v31  ;;  %v5482_v21 = vadd.f32 %v5424_v8, %v4236_v61 }
 0xed9   : > { %v6733_v24 = vadd.f32 %v12519_v42, %v6697_v14 }
 0xeda   : > { %7241 = vmatmul.msk.bf16.gmra.mxu0 %vm1775_vm1, %v6491_v25 }
 0xedb   : > { %6765 = vst [vmem:[%s12528_s22 + $0x48] sm:$0xff] %v6733_v24 }
 0xede   : > { %v6633_v44 = vpop.f32.mrf.mxu1 }
 0xedf   : > { %v6698_v52 = vadd.f32 %v6633_v44, %v5477_v6  ;;  %v5427_v30 = vpop.f32.mrf.mxu3  ;;  %v13227_v6 = vld [vmem:[#allocation64_spill] sm:$0xff] }
 0xee0   : > { %v5483_v10 = vadd.f32 %v5427_v30, %v4239_v22  ;;  %v4246_v44 = vadd.f32 %v13227_v6, %v13226_v47  ;;  %v13232_v30 = vld [vmem:[#allocation106_spill] sm:$0xff] }
 0xee1   : > { %v6734_v20 = vadd.f32 %v12519_v42, %v6698_v52  ;;  %v13236_v22 = vld [vmem:[#allocation86_spill] sm:$0xff] }
 0xee3   : > { %6766 = vst [vmem:[%s12528_s22 + $0x50] sm:$0xff] %v6734_v20 }
 0xee6   : > { %v6635_v62 = vpop.f32.mrf.mxu1 }
 0xee7   : > { %v6699_v11 = vadd.f32 %v6635_v62, %v5478_v17  ;;  %v5429_v59 = vpop.f32.mrf.mxu3  ;;  %v13229_v17 = vld [vmem:[#allocation49_spill] sm:$0xff] }
 0xee8   : > { %v5484_v34 = vadd.f32 %v5429_v59, %v4241_v5  ;;  %v4249_v62 = vadd.f32 %v13229_v17, %v13228_v38  ;;  %v13234_v59 = vld [vmem:[#allocation104_spill] sm:$0xff] }
 0xee9   : > { %v6735_v36 = vadd.f32 %v12519_v42, %v6699_v11  ;;  %v4256_v61 = vadd.f32 %v13235_v23, %v13234_v59 }
 0xeeb   : > { %6767 = vst [vmem:[%s12528_s22 + $0x58] sm:$0xff] %v6735_v36 }
 0xeee   : > { %v6638_v35 = vpop.f32.mrf.mxu1 }
 0xeef   : > { %v6700_v13 = vadd.f32 %v6638_v35, %v5479_v40  ;;  %v5432_v27 = vpop.f32.mrf.mxu3  ;;  %v13230_v35 = vld [vmem:[#allocation75_spill] sm:$0xff] }
 0xef0   : > { %v5485_v14 = vadd.f32 %v5432_v27, %v4244_v16  ;;  %v13237_v27 = vld [vmem:[#allocation100_spill] sm:$0xff] }
 0xef1   : > { %v6736_v29 = vadd.f32 %v12519_v42, %v6700_v13  ;;  %v13231_v13 = vld [vmem:[#allocation85_spill] sm:$0xff] }
 0xef3   : > { %6768 = vst [vmem:[%s12528_s22 + $0x60] sm:$0xff] %v6736_v29  ;;  %v4251_v29 = vadd.f32 %v13231_v13, %v13230_v35 }
 0xef6   : > { %v6640_v33 = vpop.f32.mrf.mxu1 }
 0xef7   : > { %v6701_v53 = vadd.f32 %v6640_v33, %v5480_v60  ;;  %v5434_v4 = vpop.f32.mrf.mxu3 }
 0xef8   : > { %v5486_v20 = vadd.f32 %v5434_v4, %v4246_v44  ;;  %v13238_v4 = vld [vmem:[#allocation137_spill] sm:$0xff] }
 0xef9   : > { %v6737_v3 = vadd.f32 %v12519_v42, %v6701_v53 }
 0xefb   : > { %6769 = vst [vmem:[%s12528_s22 + $0x68] sm:$0xff] %v6737_v3  ;;  %v13233_v3 = vld [vmem:[#allocation26_spill] sm:$0xff] }
 0xefc   : > { %v4254_v56 = vadd.f32 %v13233_v3, %v13232_v30 }
 0xefe   : > { %v6643_v2 = vpop.f32.mrf.mxu1 }
 0xeff   : > { %v6702_v55 = vadd.f32 %v6643_v2, %v5481_v45  ;;  %v5437_v39 = vpop.f32.mrf.mxu3 }
 0xf00   : > { %v5487_v11 = vadd.f32 %v5437_v39, %v4249_v62 }
 0xf01   : > { %v6738_v0 = vadd.f32 %v12519_v42, %v6702_v55 }
 0xf03   : > { %6770 = vst [vmem:[%s12528_s22 + $0x70] sm:$0xff] %v6738_v0 }
 0xf06   : > { %v6645_v48 = vpop.f32.mrf.mxu1 }
 0xf07   : > { %v6703_v37 = vadd.f32 %v6645_v48, %v5482_v21  ;;  %v5439_v49 = vpop.f32.mrf.mxu3 }
 0xf08   : > { %v5488_v19 = vadd.f32 %v5439_v49, %v4251_v29 }
 0xf09   : > { %v6739_v26 = vadd.f32 %v12519_v42, %v6703_v37 }
 0xf0b   : > { %6771 = vst [vmem:[%s12528_s22 + $0x78] sm:$0xff] %v6739_v26 }
 0xf0e   : > { %v6648_v46 = vpop.f32.mrf.mxu1 }
 0xf0f   : > { %v6704_v43 = vadd.f32 %v6648_v46, %v5483_v10  ;;  %v5442_v58 = vpop.f32.mrf.mxu3  ;;  %v4259_v10 = vadd.f32 %v13237_v27, %v13236_v22 }
 0xf10   : > { %v5489_v54 = vadd.f32 %v5442_v58, %v4254_v56 }
 0xf11   : > { %v6740_v9 = vadd.f32 %v12519_v42, %v6704_v43 }
 0xf13   : > { %6772 = vst [vmem:[%s12528_s22 + $0x80] sm:$0xff] %v6740_v9 }
 0xf16   : > { %v6650_v12 = vpop.f32.mrf.mxu1 }
 0xf17   : > { %v6705_v31 = vadd.f32 %v6650_v12, %v5484_v34  ;;  %v6477_v28 = vpop.f32.mrf.mxu2  ;;  %v5444_v45 = vpop.f32.mrf.mxu3  ;;  %v13239_v12 = vld [vmem:[#allocation35_spill] sm:$0xff] }
 0xf18   : > { %v5490_v21 = vadd.f32 %v5444_v45, %v4256_v61  ;;  %v13248_v45 = vld [vmem:[#allocation62_spill] sm:$0xff] }
 0xf19   : > { %v6741_v57 = vadd.f32 %v12519_v42, %v6705_v31  ;;  %v4261_v31 = vadd.f32 %v13239_v12, %v13238_v4 }
 0xf1b   : > { %6773 = vst [vmem:[%s12528_s22 + $0x88] sm:$0xff] %v6741_v57 }
 0xf1e   : > { %v6653_v25 = vpop.f32.mrf.mxu1 }
 0xf1f   : > { %v6706_v24 = vadd.f32 %v6653_v25, %v5485_v14  ;;  %v6479_v32 = vpop.f32.mrf.mxu2  ;;  %v5447_v26 = vpop.f32.mrf.mxu3 }
 0xf20   : > { %v6536_v51 = vpack.c.bf16 %v6479_v32, %v6477_v28  ;;  %v6513_v52 = vpop.f32.mrf.mxu0  ;;  %v5491_v46 = vadd.f32 %v5447_v26, %v4259_v10 }
 0xf21   : > { %v6742_v63 = vadd.f32 %v12519_v42, %v6706_v24 }
 0xf22   : > { %7263 = vmatmul.msk.bf16.gmra.mxu1 %vm1775_vm1, %v6536_v51  ;;  %v13240_v51 = vld [vmem:[#allocation73_spill] sm:$0xff] }
 0xf23   : > { %6774 = vst [vmem:[%s12528_s22 + $0x90] sm:$0xff] %v6742_v63  ;;  %v13241_v63 = vld [vmem:[#allocation80_spill] sm:$0xff] }
 0xf24   : > { %v4264_v47 = vadd.f32 %v13241_v63, %v13240_v51 }
 0xf26   : > { %v6655_v7 = vpop.f32.mrf.mxu1 }
 0xf27   : > { %v6707_v15 = vadd.f32 %v6655_v7, %v5486_v20  ;;  %v5449_v34 = vpop.f32.mrf.mxu3 }
 0xf28   : > { %v6515_v36 = vpop.f32.mrf.mxu0  ;;  %v5492_v28 = vadd.f32 %v5449_v34, %v4261_v31 }
 0xf29   : > { %v6743_v1 = vadd.f32 %v12519_v42, %v6707_v15  ;;  %v6537_v40 = vpack.c.bf16 %v6515_v36, %v6513_v52  ;;  %v13242_v15 = vld [vmem:[#allocation102_spill] sm:$0xff] }
 0xf2b   : > { %6775 = vst [vmem:[%s12528_s22 + $0x98] sm:$0xff] %v6743_v1  ;;  %v13243_v1 = vld [vmem:[#allocation65_spill] sm:$0xff] }
 0xf2c   : > { %v4266_v49 = vadd.f32 %v13243_v1, %v13242_v15 }
 0xf2e   : > { %v6658_v18 = vpop.f32.mrf.mxu1 }
 0xf2f   : > { %v6708_v41 = vadd.f32 %v6658_v18, %v5487_v11  ;;  %v5452_v39 = vpop.f32.mrf.mxu3  ;;  %v13244_v18 = vld [vmem:[#allocation103_spill] sm:$0xff] }
 0xf30   : > { %v5493_v6 = vadd.f32 %v5452_v39, %v4264_v47 }
 0xf31   : > { %v6744_v8 = vadd.f32 %v12519_v42, %v6708_v41  ;;  %v13245_v41 = vld [vmem:[#allocation31_spill] sm:$0xff] }
 0xf32   : > { %7264 = vmatmul.msk.bf16.gmra.mxu1 %vm1775_vm1, %v6537_v40  ;;  %v4269_v40 = vadd.f32 %v13245_v41, %v13244_v18 }
 0xf33   : > { %6776 = vst [vmem:[%s12528_s22 + $0xa0] sm:$0xff] %v6744_v8 }
 0xf36   : > { %v6660_v60 = vpop.f32.mrf.mxu1 }
 0xf37   : > { %v6709_v33 = vadd.f32 %v6660_v60, %v5488_v19  ;;  %v5454_v44 = vpop.f32.mrf.mxu3  ;;  %v13246_v19 = vld [vmem:[#allocation94_spill] sm:$0xff] }
 0xf38   : > { %v5494_v38 = vadd.f32 %v5454_v44, %v4266_v49  ;;  %v13247_v60 = vld [vmem:[#allocation70_spill] sm:$0xff] }
 0xf39   : > { %v6745_v53 = vadd.f32 %v12519_v42, %v6709_v33  ;;  %v4271_v33 = vadd.f32 %v13247_v60, %v13246_v19 }
 0xf3b   : > { %6777 = vst [vmem:[%s12528_s22 + $0xa8] sm:$0xff] %v6745_v53 }
 0xf3e   : > { %v6663_v2 = vpop.f32.mrf.mxu1 }
 0xf3f   : > { %v6710_v55 = vadd.f32 %v6663_v2, %v5489_v54  ;;  %v5457_v11 = vpop.f32.mrf.mxu3  ;;  %v13249_v2 = vld [vmem:[#allocation135_spill] sm:$0xff] }
 0xf40   : > { %v5495_v8 = vadd.f32 %v5457_v11, %v4269_v40 }
 0xf41   : > { %v6746_v0 = vadd.f32 %v12519_v42, %v6710_v55  ;;  %v4274_v55 = vadd.f32 %v13249_v2, %v13248_v45 }
 0xf43   : > { %6778 = vst [vmem:[%s12528_s22 + $0xb0] sm:$0xff] %v6746_v0 }
 0xf46   : > { %v6665_v48 = vpop.f32.mrf.mxu1 }
 0xf47   : > { %v6711_v37 = vadd.f32 %v6665_v48, %v5490_v21  ;;  %v5459_v58 = vpop.f32.mrf.mxu3  ;;  %v13250_v48 = vld [vmem:[#allocation67_spill] sm:$0xff] }
 0xf48   : > { %v5496_v53 = vadd.f32 %v5459_v58, %v4271_v33 }
 0xf49   : > { %v6747_v50 = vadd.f32 %v12519_v42, %v6711_v37  ;;  %v13251_v37 = vld [vmem:[#allocation69_spill] sm:$0xff] }
 0xf4a   : > { %v4276_v26 = vadd.f32 %v13251_v37, %v13250_v48 }
 0xf4b   : > { %6779 = vst [vmem:[%s12528_s22 + $0xb8] sm:$0xff] %v6747_v50 }
 0xf4e   : > { %v6668_v43 = vpop.f32.mrf.mxu1 }
 0xf4f   : > { %v6712_v9 = vadd.f32 %v6668_v43, %v5491_v46  ;;  %v5462_v54 = vpop.f32.mrf.mxu3 }
 0xf50   : > { %v5497_v0 = vadd.f32 %v5462_v54, %v4274_v55 }
 0xf51   : > { %v6748_v5 = vadd.f32 %v12519_v42, %v6712_v9 }
 0xf53   : > { %6780 = vst [vmem:[%s12528_s22 + $0xc0] sm:$0xff] %v6748_v5 }
 0xf56   : > { %v6670_v57 = vpop.f32.mrf.mxu1 }
 0xf57   : > { %v6713_v16 = vadd.f32 %v6670_v57, %v5492_v28  ;;  %v6518_v14 = vpop.f32.mrf.mxu0  ;;  %v5464_v21 = vpop.f32.mrf.mxu3 }
 0xf58   : > { %v5498_v50 = vadd.f32 %v5464_v21, %v4276_v26 }
 0xf59   : > { %v6749_v25 = vadd.f32 %v12519_v42, %v6713_v16 }
 0xf5b   : > { %6781 = vst [vmem:[%s12528_s22 + $0xc8] sm:$0xff] %v6749_v25 }
 0xf5f   : > { %v6520_v24 = vpop.f32.mrf.mxu0 }
 0xf60   : > { %v6538_v32 = vpack.c.bf16 %v6520_v24, %v6518_v14 }
 0xf62   : > { %7265 = vmatmul.msk.bf16.gmra.mxu1 %vm1775_vm1, %v6538_v32 }
 0xf9f   : > { %v6673_v52 = vpop.f32.mrf.mxu1 }
 0xfa0   : > { %v6714_v20 = vadd.f32 %v6673_v52, %v5493_v6 }
 0xfa2   : > { %v6750_v7 = vadd.f32 %v12519_v42, %v6714_v20 }
 0xfa4   : > { %6782 = vst [vmem:[%s12528_s22 + $0xd0] sm:$0xff] %v6750_v7 }
 0xfa7   : > { %v6675_v17 = vpop.f32.mrf.mxu1 }
 0xfa8   : > { %v6715_v62 = vadd.f32 %v6675_v17, %v5494_v38 }
 0xfaa   : > { %v6751_v36 = vadd.f32 %v12519_v42, %v6715_v62 }
 0xfac   : > { %6783 = vst [vmem:[%s12528_s22 + $0xd8] sm:$0xff] %v6751_v36 }
 0xfaf   : > { %v6678_v35 = vpop.f32.mrf.mxu1 }
 0xfb0   : > { %v6716_v13 = vadd.f32 %v6678_v35, %v5495_v8 }
 0xfb2   : > { %v6752_v29 = vadd.f32 %v12519_v42, %v6716_v13 }
 0xfb4   : > { %6784 = vst [vmem:[%s12528_s22 + $0xe0] sm:$0xff] %v6752_v29 }
 0xfb7   : > { %v6680_v30 = vpop.f32.mrf.mxu1 }
 0xfb8   : > { %v6717_v3 = vadd.f32 %v6680_v30, %v5496_v53 }
 0xfba   : > { %v6753_v56 = vadd.f32 %v12519_v42, %v6717_v3 }
 0xfbc   : > { %6785 = vst [vmem:[%s12528_s22 + $0xe8] sm:$0xff] %v6753_v56 }
 0xfdf   : > { %v6683_v59 = vpop.f32.mrf.mxu1 }
 0xfe0   : > { %v6718_v23 = vadd.f32 %v6683_v59, %v5497_v0 }
 0xfe2   : > { %v6754_v61 = vadd.f32 %v12519_v42, %v6718_v23 }
 0xfe4   : > { %6786 = vst [vmem:[%s12528_s22 + $0xf0] sm:$0xff] %v6754_v61 }
 0xfe7   : > { %v6685_v22 = vpop.f32.mrf.mxu1 }
 0xfe8   : > { %v6719_v27 = vadd.f32 %v6685_v22, %v5498_v50 }
 0xfea   : > { %v6755_v10 = vadd.f32 %v12519_v42, %v6719_v27 }
 0xfec   : > { %6787 = vst [vmem:[%s12528_s22 + $0xf8] sm:$0xff] %v6755_v10 }
 0xfed   : > { %8262 = shalt.err (!%p8259_p9)
}
 0xfee   : > { %s8330_s10 = smov 128   ;;  %s8331_s20 = smov 8  }
 0xfef   : > { %7385 = dma.vmem_to_hbm [thread:$0]  (%p8467_p0), %s6803_s2, 4096, %s6805_s3, %s6789_s12, %s8330_s10, %s8330_s10, %s8331_s20  }
 0xff0 PF: > { %s6819_s22 = sand.u32 1, %s8301_s27   ;;  %p13252_p10 = scmp.ge.s32.totalorder %s8313_s30, 2 }
 0xff1   : > { %s6820_s23 = scalar_lea.sflag [#allocation4], %s6819_s22 }
 0xff2   : > { %p7408_p11 = pnand %p13252_p10, %p8473_p6 }
 0xff4   : > { %p7409_p12 = pneg %p7408_p11 }
 0xff6   : > { %8296 = dma.done.wait (%p7409_p12), %s6820_s23, 4096  }
 0xff7   : > { %8298 = vsyncadd (%p7409_p12), %s6820_s23, 4294963200  ;;  %p24_p2 = scmp.ge.s32.totalorder %s8443_s9, 4   ;;  %s13253_s27 = smov %s8305_s28 }
 0xff8   : > { %s13254_s28 = smov %s8309_s29  ;;  %s13255_s29 = smov %s8455_s16 }
 0xff9   : > { %s13256_s30 = smov %s8443_s9  ;;  %26 = sbr.rel (!%p24_p2) target bundleno = 12 (0xc), region = 117 }
 0xffe   :  { %6826 = vsyncpa [#allocation3], 1 }
 0xfff   :  { %6828 = vsyncpa [#allocation3 + $0x1], 1 }
0x1000   :  { %6829 = vsyncpa [#allocation6], 1 }
0x1001   :  { %6830 = vsyncpa [#allocation9], 1 }
0x1002   :  { %6831 = vsyncpa [#allocation12], 1 }
0x1003   :  { %6832 = vsyncpa [#allocation4], 1 }
0x1004   :  { %6834 = vsyncpa [#allocation4 + $0x1], 1 }

</bundles_post_ra>
